<compile_context>
chip_gen: v7x
topology: tpu7x:2x2x1
jax: 0.10.0
libtpu: 0.0.40
codegen_flags: <defaults>
</compile_context>

<pallas_src>
import numpy as np

import jax
import jax.numpy as jnp
from jax.experimental import pallas as pl
from jax.experimental.pallas import tpu as pltpu


# ----------------------------------------------------------------------------
# Host-side constant builders (computed once at module construction time)
# ----------------------------------------------------------------------------
def _out_hw(H, W, k, s, p):
    return (H + 2 * p - k) // s + 1, (W + 2 * p - k) // s + 1


def _build_conv4_sel(H, W):
    """0/1 tap-selection matrices for a 4x4 / stride 2 / pad 1 (zero) conv.

    sel has shape (16, H*W, Ho*Wo); for tap t = di*4+dj,
    (A @ sel[t])[:, ho*Wo+wo] == image[:, 2*ho+di-1, 2*wo+dj-1]  (0 where padded).
    """
    Ho, Wo = _out_hw(H, W, 4, 2, 1)
    sel = np.zeros((16, H * W, Ho * Wo), np.float32)
    for di in range(4):
        for dj in range(4):
            t = di * 4 + dj
            for ho in range(Ho):
                h = 2 * ho + di - 1
                if not (0 <= h < H):
                    continue
                for wo in range(Wo):
                    w = 2 * wo + dj - 1
                    if 0 <= w < W:
                        sel[t, h * W + w, ho * Wo + wo] = 1.0
    return sel, Ho, Wo


def _build_pool_mat(H, W):
    """AvgPool2d(3, stride=2, pad=1, count_include_pad=False) as a single matrix.

    Shape (H*W, Ho*Wo), with the 1/count reciprocal folded in: pooled = A @ mat.
    """
    Ho, Wo = _out_hw(H, W, 3, 2, 1)
    mat = np.zeros((H * W, Ho * Wo), np.float32)
    for ho in range(Ho):
        hs = [h for h in (2 * ho - 1, 2 * ho, 2 * ho + 1) if 0 <= h < H]
        for wo in range(Wo):
            ws = [w for w in (2 * wo - 1, 2 * wo, 2 * wo + 1) if 0 <= w < W]
            inv = 1.0 / float(len(hs) * len(ws))
            for h in hs:
                for w in ws:
                    mat[h * W + w, ho * Wo + wo] = inv
    return mat, Ho, Wo


def _expand_conv4_weights(Wt, b, N):
    """Per-tap weights: (16, Cout*N, Cin*N) = kron(W[:,:,di,dj], I_N); bias (Cout*N, 1)."""
    Cout, Cin, kh, kw = Wt.shape
    eye = jnp.eye(N, dtype=jnp.float32)
    wexp = jnp.stack(
        [jnp.kron(Wt[:, :, di, dj].astype(jnp.float32), eye)
         for di in range(kh) for dj in range(kw)], axis=0)
    bexp = jnp.repeat(b.astype(jnp.float32), N).reshape(Cout * N, 1)
    return wexp, bexp


def _expand_conv1_weights(Wt, b, N):
    Cout = Wt.shape[0]
    wexp = jnp.kron(Wt[:, :, 0, 0].astype(jnp.float32), jnp.eye(N, dtype=jnp.float32))
    bexp = jnp.repeat(b.astype(jnp.float32), N).reshape(Cout * N, 1)
    return wexp, bexp


# ----------------------------------------------------------------------------
# Fused discriminator: one pallas_call for the whole forward pass
# ----------------------------------------------------------------------------
def make_discriminator(params, *, N, H, W):
    """Returns a jitted forward(x) with the exact semantics of Discriminator.forward."""
    num_scales = len(params)
    const_ops = []   # constant operands passed to pallas_call (after the image)
    plan = []        # static plan consumed by the kernel
    out_shapes = []
    out_meta = []    # (Cout, Ho, Wo) per scale for un-flattening

    h, w = H, W
    for s, scale_params in enumerate(params):
        layers = []
        lh, lw = h, w
        for (Wt, b) in scale_params[:-1]:                 # 4x4 stride-2 pad-1 blocks
            sel, oh, ow = _build_conv4_sel(lh, lw)
            wexp, bexp = _expand_conv4_weights(Wt, b, N)
            idx = len(const_ops)
            const_ops.extend([jnp.asarray(sel), wexp, bexp])
            layers.append(("conv4", (idx, idx + 1, idx + 2)))
            lh, lw = oh, ow
        Wt, b = scale_params[-1]                          # final 1x1 conv, no activation
        wexp, bexp = _expand_conv1_weights(Wt, b, N)
        idx = len(const_ops)
        const_ops.extend([wexp, bexp])
        layers.append(("conv1", (idx, idx + 1)))
        Cout = Wt.shape[0]
        out_shapes.append(jax.ShapeDtypeStruct((Cout * N, lh * lw), jnp.float32))
        out_meta.append((Cout, lh, lw))

        pool_idx = None
        if s < num_scales - 1:
            pmat, ph, pw = _build_pool_mat(h, w)
            pool_idx = len(const_ops)
            const_ops.append(jnp.asarray(pmat))
            h, w = ph, pw
        plan.append({"layers": layers, "pool_idx": pool_idx})

    n_const = len(const_ops)

    def kernel(*refs):
        a0_ref = refs[0]
        cref = refs[1:1 + n_const]
        oref = refs[1 + n_const:]

        def conv4(a, sel_ref, w_ref, b_ref):
            n_taps = sel_ref.shape[0]
            acc = None
            for t in range(n_taps):                       # static unroll, all MXU dots
                xt = jnp.dot(a, sel_ref[t], preferred_element_type=jnp.float32)
                yt = jnp.dot(w_ref[t], xt, preferred_element_type=jnp.float32)
                acc = yt if acc is None else acc + yt
            acc = acc + b_ref[...]
            return jnp.where(acc > 0, acc, 0.2 * acc)     # LeakyReLU(0.2)

        def conv1(a, w_ref, b_ref):
            return jnp.dot(w_ref[...], a, preferred_element_type=jnp.float32) + b_ref[...]

        a_scale = a0_ref[...]                             # (C*N, H*W) in VMEM
        for s, sp in enumerate(plan):
            hcur = a_scale
            for kind, idxs in sp["layers"]:
                if kind == "conv4":
                    hcur = conv4(hcur, cref[idxs[0]], cref[idxs[1]], cref[idxs[2]])
                else:
                    hcur = conv1(hcur, cref[idxs[0]], cref[idxs[1]])
            oref[s][...] = hcur.astype(oref[s].dtype)
            if sp["pool_idx"] is not None:                # avg-pool (recip folded in)
                a_scale = jnp.dot(a_scale, cref[sp["pool_idx"]][...],
                                  preferred_element_type=jnp.float32)

    def _full_spec(shape):
        nd = len(shape)
        return pl.BlockSpec(shape, lambda i, nd=nd: (0,) * nd)

    const_specs = [_full_spec(a.shape) for a in const_ops]
    out_specs = tuple(_full_spec(s.shape) for s in out_shapes)

    def forward(x):
        Nb, C, Hh, Ww = x.shape
        # One-time layout plumbing: NCHW -> channel-major rows, spatial on lanes.
        a0 = jnp.transpose(x, (1, 0, 2, 3)).reshape(C * Nb, Hh * Ww).astype(jnp.float32)
        flat_outs = pl.pallas_call(
            kernel,
            out_shape=tuple(out_shapes),
            grid=(1,),
            in_specs=[_full_spec(a0.shape)] + const_specs,
            out_specs=out_specs,
            compiler_params=pltpu.CompilerParams(
                dimension_semantics=("arbitrary",)),
        )(a0, *const_ops)
        outs = []
        for o, (Cout, oh, ow) in zip(flat_outs, out_meta):
            outs.append(jnp.transpose(o.reshape(Cout, Nb, oh, ow), (1, 0, 2, 3)))
        return outs

    return jax.jit(forward)


# ----------------------------------------------------------------------------
# Parameter construction (same shapes as the PyTorch module)
# ----------------------------------------------------------------------------
def make_params(key, input_dim, dim, n_layer, num_scales):
    params = []
    for _ in range(num_scales):
        scale = []
        d_in, d_out = input_dim, dim
        for _ in range(n_layer):
            key, k1, k2 = jax.random.split(key, 3)
            scale.append((0.1 * jax.random.normal(k1, (d_out, d_in, 4, 4), jnp.float32),
                          0.1 * jax.random.normal(k2, (d_out,), jnp.float32)))
            d_in, d_out = d_out, d_out * 2
        key, k1, k2 = jax.random.split(key, 3)
        scale.append((0.1 * jax.random.normal(k1, (1, d_in, 1, 1), jnp.float32),
                      0.1 * jax.random.normal(k2, (1,), jnp.float32)))
        params.append(scale)
    return params


# ----------------------------------------------------------------------------
# Pure-JAX reference (correctness check only)
# ----------------------------------------------------------------------------
def _ref_conv(x, W, b, stride, pad, leaky):
    out = jax.lax.conv_general_dilated(
        x, W, (stride, stride), [(pad, pad), (pad, pad)],
        dimension_numbers=('NCHW', 'OIHW', 'NCHW'))
    out = out + b.reshape(1, -1, 1, 1)
    if leaky:
        out = jnp.where(out > 0, out, 0.2 * out)
    return out


def _ref_avgpool(x):
    win, strd = (1, 1, 3, 3), (1, 1, 2, 2)
    padcfg = [(0, 0), (0, 0), (1, 1), (1, 1)]
    s = jax.lax.reduce_window(x, 0.0, jax.lax.add, win, strd, padcfg)
    c = jax.lax.reduce_window(jnp.ones_like(x), 0.0, jax.lax.add, win, strd, padcfg)
    return s / c


def _ref_forward(x, params):
    outs = []
    for scale_params in params:
        h = x
        for (W, b) in scale_params[:-1]:
            h = _ref_conv(h, W, b, 2, 1, True)
        W, b = scale_params[-1]
        h = _ref_conv(h, W, b, 1, 0, False)
        outs.append(h)
        x = _ref_avgpool(x)
    return outs


# ----------------------------------------------------------------------------
if __name__ == "__main__":
    key = jax.random.PRNGKey(0)
    key, kx = jax.random.split(key)

    # hps: n_layer=2, dim=8, num_scales=2, norm='none', activ='lrelu', zero pad
    N, C, H, W = 2, 4, 16, 16
    x = jax.random.normal(kx, (N, C, H, W), jnp.float32)
    params = make_params(key, input_dim=C, dim=8, n_layer=2, num_scales=2)

    fwd = make_discriminator(params, N=N, H=H, W=W)
    outs = jax.block_until_ready(fwd(x))

    refs = _ref_forward(x, params)
    for o, r in zip(outs, refs):
        assert o.shape == r.shape, (o.shape, r.shape)
        assert jnp.allclose(o, r, atol=1e-4, rtol=1e-4), "mismatch vs reference"

    print("KERNEL_OK")
</pallas_src>

<mosaic_0001>
module attributes {stable_mosaic.version = 11 : i64} {
  func.func @kernel(%arg0: i32, %arg1: memref<8x256xf32, #tpu.memory_space<vmem>>, %arg2: memref<16x256x64xf32, #tpu.memory_space<vmem>>, %arg3: memref<16x16x8xf32, #tpu.memory_space<vmem>>, %arg4: memref<16x1xf32, #tpu.memory_space<vmem>>, %arg5: memref<16x64x16xf32, #tpu.memory_space<vmem>>, %arg6: memref<16x32x16xf32, #tpu.memory_space<vmem>>, %arg7: memref<32x1xf32, #tpu.memory_space<vmem>>, %arg8: memref<2x32xf32, #tpu.memory_space<vmem>>, %arg9: memref<2x1xf32, #tpu.memory_space<vmem>>, %arg10: memref<256x64xf32, #tpu.memory_space<vmem>>, %arg11: memref<16x64x16xf32, #tpu.memory_space<vmem>>, %arg12: memref<16x16x8xf32, #tpu.memory_space<vmem>>, %arg13: memref<16x1xf32, #tpu.memory_space<vmem>>, %arg14: memref<16x16x4xf32, #tpu.memory_space<vmem>>, %arg15: memref<16x32x16xf32, #tpu.memory_space<vmem>>, %arg16: memref<32x1xf32, #tpu.memory_space<vmem>>, %arg17: memref<2x32xf32, #tpu.memory_space<vmem>>, %arg18: memref<2x1xf32, #tpu.memory_space<vmem>>, %arg19: memref<2x16xf32, #tpu.memory_space<vmem>>, %arg20: memref<2x4xf32, #tpu.memory_space<vmem>>) attributes {dimension_semantics = [#tpu.dimension_semantics<arbitrary>], iteration_bounds = array<i64: 1>, scalar_prefetch = 0 : i64, scratch_operands = 0 : i64, tpu.core_type = #tpu.core_type<tc>, window_params = [{pipeline_mode = #tpu.pipeline_mode<synchronous>, transform_indices = @transform_0, window_bounds = array<i64: 8, 256>}, {pipeline_mode = #tpu.pipeline_mode<synchronous>, transform_indices = @transform_1, window_bounds = array<i64: 16, 256, 64>}, {pipeline_mode = #tpu.pipeline_mode<synchronous>, transform_indices = @transform_2, window_bounds = array<i64: 16, 16, 8>}, {pipeline_mode = #tpu.pipeline_mode<synchronous>, transform_indices = @transform_3, window_bounds = array<i64: 16, 1>}, {pipeline_mode = #tpu.pipeline_mode<synchronous>, transform_indices = @transform_4, window_bounds = array<i64: 16, 64, 16>}, {pipeline_mode = #tpu.pipeline_mode<synchronous>, transform_indices = @transform_5, window_bounds = array<i64: 16, 32, 16>}, {pipeline_mode = #tpu.pipeline_mode<synchronous>, transform_indices = @transform_6, window_bounds = array<i64: 32, 1>}, {pipeline_mode = #tpu.pipeline_mode<synchronous>, transform_indices = @transform_7, window_bounds = array<i64: 2, 32>}, {pipeline_mode = #tpu.pipeline_mode<synchronous>, transform_indices = @transform_8, window_bounds = array<i64: 2, 1>}, {pipeline_mode = #tpu.pipeline_mode<synchronous>, transform_indices = @transform_9, window_bounds = array<i64: 256, 64>}, {pipeline_mode = #tpu.pipeline_mode<synchronous>, transform_indices = @transform_10, window_bounds = array<i64: 16, 64, 16>}, {pipeline_mode = #tpu.pipeline_mode<synchronous>, transform_indices = @transform_11, window_bounds = array<i64: 16, 16, 8>}, {pipeline_mode = #tpu.pipeline_mode<synchronous>, transform_indices = @transform_12, window_bounds = array<i64: 16, 1>}, {pipeline_mode = #tpu.pipeline_mode<synchronous>, transform_indices = @transform_13, window_bounds = array<i64: 16, 16, 4>}, {pipeline_mode = #tpu.pipeline_mode<synchronous>, transform_indices = @transform_14, window_bounds = array<i64: 16, 32, 16>}, {pipeline_mode = #tpu.pipeline_mode<synchronous>, transform_indices = @transform_15, window_bounds = array<i64: 32, 1>}, {pipeline_mode = #tpu.pipeline_mode<synchronous>, transform_indices = @transform_16, window_bounds = array<i64: 2, 32>}, {pipeline_mode = #tpu.pipeline_mode<synchronous>, transform_indices = @transform_17, window_bounds = array<i64: 2, 1>}, {pipeline_mode = #tpu.pipeline_mode<synchronous>, transform_indices = @transform_18, window_bounds = array<i64: 2, 16>}, {pipeline_mode = #tpu.pipeline_mode<synchronous>, transform_indices = @transform_19, window_bounds = array<i64: 2, 4>}]} {
    %c0 = arith.constant 0 : index
    %c0_0 = arith.constant 0 : index
    %0 = vector.load %arg1[%c0, %c0_0] : memref<8x256xf32, #tpu.memory_space<vmem>>, vector<8x256xf32>
    %c0_1 = arith.constant 0 : index
    %c0_2 = arith.constant 0 : index
    %c0_3 = arith.constant 0 : index
    %1 = vector.load %arg2[%c0_1, %c0_2, %c0_3] : memref<16x256x64xf32, #tpu.memory_space<vmem>>, vector<1x256x64xf32>
    %2 = vector.shape_cast %1 : vector<1x256x64xf32> to vector<256x64xf32>
    %cst = arith.constant dense<0.000000e+00> : vector<8x64xf32>
    %3 = tpu.matmul %0, %2, %cst {dimension_numbers = #tpu.dot_dimension_numbers<[1], [0], [0], [1], [0, 0, 1, 1], [], []>} : vector<8x256xf32>, vector<256x64xf32>, vector<8x64xf32> -> vector<8x64xf32>
    %c0_4 = arith.constant 0 : index
    %c0_5 = arith.constant 0 : index
    %c0_6 = arith.constant 0 : index
    %4 = vector.load %arg3[%c0_4, %c0_5, %c0_6] : memref<16x16x8xf32, #tpu.memory_space<vmem>>, vector<1x16x8xf32>
    %5 = vector.shape_cast %4 : vector<1x16x8xf32> to vector<16x8xf32>
    %cst_7 = arith.constant dense<0.000000e+00> : vector<16x64xf32>
    %6 = tpu.matmul %5, %3, %cst_7 {dimension_numbers = #tpu.dot_dimension_numbers<[1], [0], [0], [1], [0, 0, 1, 1], [], []>} : vector<16x8xf32>, vector<8x64xf32>, vector<16x64xf32> -> vector<16x64xf32>
    %c1 = arith.constant 1 : index
    %c0_8 = arith.constant 0 : index
    %c0_9 = arith.constant 0 : index
    %7 = vector.load %arg2[%c1, %c0_8, %c0_9] : memref<16x256x64xf32, #tpu.memory_space<vmem>>, vector<1x256x64xf32>
    %8 = vector.shape_cast %7 : vector<1x256x64xf32> to vector<256x64xf32>
    %cst_10 = arith.constant dense<0.000000e+00> : vector<8x64xf32>
    %9 = tpu.matmul %0, %8, %cst_10 {dimension_numbers = #tpu.dot_dimension_numbers<[1], [0], [0], [1], [0, 0, 1, 1], [], []>} : vector<8x256xf32>, vector<256x64xf32>, vector<8x64xf32> -> vector<8x64xf32>
    %c1_11 = arith.constant 1 : index
    %c0_12 = arith.constant 0 : index
    %c0_13 = arith.constant 0 : index
    %10 = vector.load %arg3[%c1_11, %c0_12, %c0_13] : memref<16x16x8xf32, #tpu.memory_space<vmem>>, vector<1x16x8xf32>
    %11 = vector.shape_cast %10 : vector<1x16x8xf32> to vector<16x8xf32>
    %cst_14 = arith.constant dense<0.000000e+00> : vector<16x64xf32>
    %12 = tpu.matmul %11, %9, %cst_14 {dimension_numbers = #tpu.dot_dimension_numbers<[1], [0], [0], [1], [0, 0, 1, 1], [], []>} : vector<16x8xf32>, vector<8x64xf32>, vector<16x64xf32> -> vector<16x64xf32>
    %13 = arith.addf %6, %12 : vector<16x64xf32>
    %c2 = arith.constant 2 : index
    %c0_15 = arith.constant 0 : index
    %c0_16 = arith.constant 0 : index
    %14 = vector.load %arg2[%c2, %c0_15, %c0_16] : memref<16x256x64xf32, #tpu.memory_space<vmem>>, vector<1x256x64xf32>
    %15 = vector.shape_cast %14 : vector<1x256x64xf32> to vector<256x64xf32>
    %cst_17 = arith.constant dense<0.000000e+00> : vector<8x64xf32>
    %16 = tpu.matmul %0, %15, %cst_17 {dimension_numbers = #tpu.dot_dimension_numbers<[1], [0], [0], [1], [0, 0, 1, 1], [], []>} : vector<8x256xf32>, vector<256x64xf32>, vector<8x64xf32> -> vector<8x64xf32>
    %c2_18 = arith.constant 2 : index
    %c0_19 = arith.constant 0 : index
    %c0_20 = arith.constant 0 : index
    %17 = vector.load %arg3[%c2_18, %c0_19, %c0_20] : memref<16x16x8xf32, #tpu.memory_space<vmem>>, vector<1x16x8xf32>
    %18 = vector.shape_cast %17 : vector<1x16x8xf32> to vector<16x8xf32>
    %cst_21 = arith.constant dense<0.000000e+00> : vector<16x64xf32>
    %19 = tpu.matmul %18, %16, %cst_21 {dimension_numbers = #tpu.dot_dimension_numbers<[1], [0], [0], [1], [0, 0, 1, 1], [], []>} : vector<16x8xf32>, vector<8x64xf32>, vector<16x64xf32> -> vector<16x64xf32>
    %20 = arith.addf %13, %19 : vector<16x64xf32>
    %c3 = arith.constant 3 : index
    %c0_22 = arith.constant 0 : index
    %c0_23 = arith.constant 0 : index
    %21 = vector.load %arg2[%c3, %c0_22, %c0_23] : memref<16x256x64xf32, #tpu.memory_space<vmem>>, vector<1x256x64xf32>
    %22 = vector.shape_cast %21 : vector<1x256x64xf32> to vector<256x64xf32>
    %cst_24 = arith.constant dense<0.000000e+00> : vector<8x64xf32>
    %23 = tpu.matmul %0, %22, %cst_24 {dimension_numbers = #tpu.dot_dimension_numbers<[1], [0], [0], [1], [0, 0, 1, 1], [], []>} : vector<8x256xf32>, vector<256x64xf32>, vector<8x64xf32> -> vector<8x64xf32>
    %c3_25 = arith.constant 3 : index
    %c0_26 = arith.constant 0 : index
    %c0_27 = arith.constant 0 : index
    %24 = vector.load %arg3[%c3_25, %c0_26, %c0_27] : memref<16x16x8xf32, #tpu.memory_space<vmem>>, vector<1x16x8xf32>
    %25 = vector.shape_cast %24 : vector<1x16x8xf32> to vector<16x8xf32>
    %cst_28 = arith.constant dense<0.000000e+00> : vector<16x64xf32>
    %26 = tpu.matmul %25, %23, %cst_28 {dimension_numbers = #tpu.dot_dimension_numbers<[1], [0], [0], [1], [0, 0, 1, 1], [], []>} : vector<16x8xf32>, vector<8x64xf32>, vector<16x64xf32> -> vector<16x64xf32>
    %27 = arith.addf %20, %26 : vector<16x64xf32>
    %c4 = arith.constant 4 : index
    %c0_29 = arith.constant 0 : index
    %c0_30 = arith.constant 0 : index
    %28 = vector.load %arg2[%c4, %c0_29, %c0_30] : memref<16x256x64xf32, #tpu.memory_space<vmem>>, vector<1x256x64xf32>
    %29 = vector.shape_cast %28 : vector<1x256x64xf32> to vector<256x64xf32>
    %cst_31 = arith.constant dense<0.000000e+00> : vector<8x64xf32>
    %30 = tpu.matmul %0, %29, %cst_31 {dimension_numbers = #tpu.dot_dimension_numbers<[1], [0], [0], [1], [0, 0, 1, 1], [], []>} : vector<8x256xf32>, vector<256x64xf32>, vector<8x64xf32> -> vector<8x64xf32>
    %c4_32 = arith.constant 4 : index
    %c0_33 = arith.constant 0 : index
    %c0_34 = arith.constant 0 : index
    %31 = vector.load %arg3[%c4_32, %c0_33, %c0_34] : memref<16x16x8xf32, #tpu.memory_space<vmem>>, vector<1x16x8xf32>
    %32 = vector.shape_cast %31 : vector<1x16x8xf32> to vector<16x8xf32>
    %cst_35 = arith.constant dense<0.000000e+00> : vector<16x64xf32>
    %33 = tpu.matmul %32, %30, %cst_35 {dimension_numbers = #tpu.dot_dimension_numbers<[1], [0], [0], [1], [0, 0, 1, 1], [], []>} : vector<16x8xf32>, vector<8x64xf32>, vector<16x64xf32> -> vector<16x64xf32>
    %34 = arith.addf %27, %33 : vector<16x64xf32>
    %c5 = arith.constant 5 : index
    %c0_36 = arith.constant 0 : index
    %c0_37 = arith.constant 0 : index
    %35 = vector.load %arg2[%c5, %c0_36, %c0_37] : memref<16x256x64xf32, #tpu.memory_space<vmem>>, vector<1x256x64xf32>
    %36 = vector.shape_cast %35 : vector<1x256x64xf32> to vector<256x64xf32>
    %cst_38 = arith.constant dense<0.000000e+00> : vector<8x64xf32>
    %37 = tpu.matmul %0, %36, %cst_38 {dimension_numbers = #tpu.dot_dimension_numbers<[1], [0], [0], [1], [0, 0, 1, 1], [], []>} : vector<8x256xf32>, vector<256x64xf32>, vector<8x64xf32> -> vector<8x64xf32>
    %c5_39 = arith.constant 5 : index
    %c0_40 = arith.constant 0 : index
    %c0_41 = arith.constant 0 : index
    %38 = vector.load %arg3[%c5_39, %c0_40, %c0_41] : memref<16x16x8xf32, #tpu.memory_space<vmem>>, vector<1x16x8xf32>
    %39 = vector.shape_cast %38 : vector<1x16x8xf32> to vector<16x8xf32>
    %cst_42 = arith.constant dense<0.000000e+00> : vector<16x64xf32>
    %40 = tpu.matmul %39, %37, %cst_42 {dimension_numbers = #tpu.dot_dimension_numbers<[1], [0], [0], [1], [0, 0, 1, 1], [], []>} : vector<16x8xf32>, vector<8x64xf32>, vector<16x64xf32> -> vector<16x64xf32>
    %41 = arith.addf %34, %40 : vector<16x64xf32>
    %c6 = arith.constant 6 : index
    %c0_43 = arith.constant 0 : index
    %c0_44 = arith.constant 0 : index
    %42 = vector.load %arg2[%c6, %c0_43, %c0_44] : memref<16x256x64xf32, #tpu.memory_space<vmem>>, vector<1x256x64xf32>
    %43 = vector.shape_cast %42 : vector<1x256x64xf32> to vector<256x64xf32>
    %cst_45 = arith.constant dense<0.000000e+00> : vector<8x64xf32>
    %44 = tpu.matmul %0, %43, %cst_45 {dimension_numbers = #tpu.dot_dimension_numbers<[1], [0], [0], [1], [0, 0, 1, 1], [], []>} : vector<8x256xf32>, vector<256x64xf32>, vector<8x64xf32> -> vector<8x64xf32>
    %c6_46 = arith.constant 6 : index
    %c0_47 = arith.constant 0 : index
    %c0_48 = arith.constant 0 : index
    %45 = vector.load %arg3[%c6_46, %c0_47, %c0_48] : memref<16x16x8xf32, #tpu.memory_space<vmem>>, vector<1x16x8xf32>
    %46 = vector.shape_cast %45 : vector<1x16x8xf32> to vector<16x8xf32>
    %cst_49 = arith.constant dense<0.000000e+00> : vector<16x64xf32>
    %47 = tpu.matmul %46, %44, %cst_49 {dimension_numbers = #tpu.dot_dimension_numbers<[1], [0], [0], [1], [0, 0, 1, 1], [], []>} : vector<16x8xf32>, vector<8x64xf32>, vector<16x64xf32> -> vector<16x64xf32>
    %48 = arith.addf %41, %47 : vector<16x64xf32>
    %c7 = arith.constant 7 : index
    %c0_50 = arith.constant 0 : index
    %c0_51 = arith.constant 0 : index
    %49 = vector.load %arg2[%c7, %c0_50, %c0_51] : memref<16x256x64xf32, #tpu.memory_space<vmem>>, vector<1x256x64xf32>
    %50 = vector.shape_cast %49 : vector<1x256x64xf32> to vector<256x64xf32>
    %cst_52 = arith.constant dense<0.000000e+00> : vector<8x64xf32>
    %51 = tpu.matmul %0, %50, %cst_52 {dimension_numbers = #tpu.dot_dimension_numbers<[1], [0], [0], [1], [0, 0, 1, 1], [], []>} : vector<8x256xf32>, vector<256x64xf32>, vector<8x64xf32> -> vector<8x64xf32>
    %c7_53 = arith.constant 7 : index
    %c0_54 = arith.constant 0 : index
    %c0_55 = arith.constant 0 : index
    %52 = vector.load %arg3[%c7_53, %c0_54, %c0_55] : memref<16x16x8xf32, #tpu.memory_space<vmem>>, vector<1x16x8xf32>
    %53 = vector.shape_cast %52 : vector<1x16x8xf32> to vector<16x8xf32>
    %cst_56 = arith.constant dense<0.000000e+00> : vector<16x64xf32>
    %54 = tpu.matmul %53, %51, %cst_56 {dimension_numbers = #tpu.dot_dimension_numbers<[1], [0], [0], [1], [0, 0, 1, 1], [], []>} : vector<16x8xf32>, vector<8x64xf32>, vector<16x64xf32> -> vector<16x64xf32>
    %55 = arith.addf %48, %54 : vector<16x64xf32>
    %c8 = arith.constant 8 : index
    %c0_57 = arith.constant 0 : index
    %c0_58 = arith.constant 0 : index
    %56 = vector.load %arg2[%c8, %c0_57, %c0_58] : memref<16x256x64xf32, #tpu.memory_space<vmem>>, vector<1x256x64xf32>
    %57 = vector.shape_cast %56 : vector<1x256x64xf32> to vector<256x64xf32>
    %cst_59 = arith.constant dense<0.000000e+00> : vector<8x64xf32>
    %58 = tpu.matmul %0, %57, %cst_59 {dimension_numbers = #tpu.dot_dimension_numbers<[1], [0], [0], [1], [0, 0, 1, 1], [], []>} : vector<8x256xf32>, vector<256x64xf32>, vector<8x64xf32> -> vector<8x64xf32>
    %c8_60 = arith.constant 8 : index
    %c0_61 = arith.constant 0 : index
    %c0_62 = arith.constant 0 : index
    %59 = vector.load %arg3[%c8_60, %c0_61, %c0_62] : memref<16x16x8xf32, #tpu.memory_space<vmem>>, vector<1x16x8xf32>
    %60 = vector.shape_cast %59 : vector<1x16x8xf32> to vector<16x8xf32>
    %cst_63 = arith.constant dense<0.000000e+00> : vector<16x64xf32>
    %61 = tpu.matmul %60, %58, %cst_63 {dimension_numbers = #tpu.dot_dimension_numbers<[1], [0], [0], [1], [0, 0, 1, 1], [], []>} : vector<16x8xf32>, vector<8x64xf32>, vector<16x64xf32> -> vector<16x64xf32>
    %62 = arith.addf %55, %61 : vector<16x64xf32>
    %c9 = arith.constant 9 : index
    %c0_64 = arith.constant 0 : index
    %c0_65 = arith.constant 0 : index
    %63 = vector.load %arg2[%c9, %c0_64, %c0_65] : memref<16x256x64xf32, #tpu.memory_space<vmem>>, vector<1x256x64xf32>
    %64 = vector.shape_cast %63 : vector<1x256x64xf32> to vector<256x64xf32>
    %cst_66 = arith.constant dense<0.000000e+00> : vector<8x64xf32>
    %65 = tpu.matmul %0, %64, %cst_66 {dimension_numbers = #tpu.dot_dimension_numbers<[1], [0], [0], [1], [0, 0, 1, 1], [], []>} : vector<8x256xf32>, vector<256x64xf32>, vector<8x64xf32> -> vector<8x64xf32>
    %c9_67 = arith.constant 9 : index
    %c0_68 = arith.constant 0 : index
    %c0_69 = arith.constant 0 : index
    %66 = vector.load %arg3[%c9_67, %c0_68, %c0_69] : memref<16x16x8xf32, #tpu.memory_space<vmem>>, vector<1x16x8xf32>
    %67 = vector.shape_cast %66 : vector<1x16x8xf32> to vector<16x8xf32>
    %cst_70 = arith.constant dense<0.000000e+00> : vector<16x64xf32>
    %68 = tpu.matmul %67, %65, %cst_70 {dimension_numbers = #tpu.dot_dimension_numbers<[1], [0], [0], [1], [0, 0, 1, 1], [], []>} : vector<16x8xf32>, vector<8x64xf32>, vector<16x64xf32> -> vector<16x64xf32>
    %69 = arith.addf %62, %68 : vector<16x64xf32>
    %c10 = arith.constant 10 : index
    %c0_71 = arith.constant 0 : index
    %c0_72 = arith.constant 0 : index
    %70 = vector.load %arg2[%c10, %c0_71, %c0_72] : memref<16x256x64xf32, #tpu.memory_space<vmem>>, vector<1x256x64xf32>
    %71 = vector.shape_cast %70 : vector<1x256x64xf32> to vector<256x64xf32>
    %cst_73 = arith.constant dense<0.000000e+00> : vector<8x64xf32>
    %72 = tpu.matmul %0, %71, %cst_73 {dimension_numbers = #tpu.dot_dimension_numbers<[1], [0], [0], [1], [0, 0, 1, 1], [], []>} : vector<8x256xf32>, vector<256x64xf32>, vector<8x64xf32> -> vector<8x64xf32>
    %c10_74 = arith.constant 10 : index
    %c0_75 = arith.constant 0 : index
    %c0_76 = arith.constant 0 : index
    %73 = vector.load %arg3[%c10_74, %c0_75, %c0_76] : memref<16x16x8xf32, #tpu.memory_space<vmem>>, vector<1x16x8xf32>
    %74 = vector.shape_cast %73 : vector<1x16x8xf32> to vector<16x8xf32>
    %cst_77 = arith.constant dense<0.000000e+00> : vector<16x64xf32>
    %75 = tpu.matmul %74, %72, %cst_77 {dimension_numbers = #tpu.dot_dimension_numbers<[1], [0], [0], [1], [0, 0, 1, 1], [], []>} : vector<16x8xf32>, vector<8x64xf32>, vector<16x64xf32> -> vector<16x64xf32>
    %76 = arith.addf %69, %75 : vector<16x64xf32>
    %c11 = arith.constant 11 : index
    %c0_78 = arith.constant 0 : index
    %c0_79 = arith.constant 0 : index
    %77 = vector.load %arg2[%c11, %c0_78, %c0_79] : memref<16x256x64xf32, #tpu.memory_space<vmem>>, vector<1x256x64xf32>
    %78 = vector.shape_cast %77 : vector<1x256x64xf32> to vector<256x64xf32>
    %cst_80 = arith.constant dense<0.000000e+00> : vector<8x64xf32>
    %79 = tpu.matmul %0, %78, %cst_80 {dimension_numbers = #tpu.dot_dimension_numbers<[1], [0], [0], [1], [0, 0, 1, 1], [], []>} : vector<8x256xf32>, vector<256x64xf32>, vector<8x64xf32> -> vector<8x64xf32>
    %c11_81 = arith.constant 11 : index
    %c0_82 = arith.constant 0 : index
    %c0_83 = arith.constant 0 : index
    %80 = vector.load %arg3[%c11_81, %c0_82, %c0_83] : memref<16x16x8xf32, #tpu.memory_space<vmem>>, vector<1x16x8xf32>
    %81 = vector.shape_cast %80 : vector<1x16x8xf32> to vector<16x8xf32>
    %cst_84 = arith.constant dense<0.000000e+00> : vector<16x64xf32>
    %82 = tpu.matmul %81, %79, %cst_84 {dimension_numbers = #tpu.dot_dimension_numbers<[1], [0], [0], [1], [0, 0, 1, 1], [], []>} : vector<16x8xf32>, vector<8x64xf32>, vector<16x64xf32> -> vector<16x64xf32>
    %83 = arith.addf %76, %82 : vector<16x64xf32>
    %c12 = arith.constant 12 : index
    %c0_85 = arith.constant 0 : index
    %c0_86 = arith.constant 0 : index
    %84 = vector.load %arg2[%c12, %c0_85, %c0_86] : memref<16x256x64xf32, #tpu.memory_space<vmem>>, vector<1x256x64xf32>
    %85 = vector.shape_cast %84 : vector<1x256x64xf32> to vector<256x64xf32>
    %cst_87 = arith.constant dense<0.000000e+00> : vector<8x64xf32>
    %86 = tpu.matmul %0, %85, %cst_87 {dimension_numbers = #tpu.dot_dimension_numbers<[1], [0], [0], [1], [0, 0, 1, 1], [], []>} : vector<8x256xf32>, vector<256x64xf32>, vector<8x64xf32> -> vector<8x64xf32>
    %c12_88 = arith.constant 12 : index
    %c0_89 = arith.constant 0 : index
    %c0_90 = arith.constant 0 : index
    %87 = vector.load %arg3[%c12_88, %c0_89, %c0_90] : memref<16x16x8xf32, #tpu.memory_space<vmem>>, vector<1x16x8xf32>
    %88 = vector.shape_cast %87 : vector<1x16x8xf32> to vector<16x8xf32>
    %cst_91 = arith.constant dense<0.000000e+00> : vector<16x64xf32>
    %89 = tpu.matmul %88, %86, %cst_91 {dimension_numbers = #tpu.dot_dimension_numbers<[1], [0], [0], [1], [0, 0, 1, 1], [], []>} : vector<16x8xf32>, vector<8x64xf32>, vector<16x64xf32> -> vector<16x64xf32>
    %90 = arith.addf %83, %89 : vector<16x64xf32>
    %c13 = arith.constant 13 : index
    %c0_92 = arith.constant 0 : index
    %c0_93 = arith.constant 0 : index
    %91 = vector.load %arg2[%c13, %c0_92, %c0_93] : memref<16x256x64xf32, #tpu.memory_space<vmem>>, vector<1x256x64xf32>
    %92 = vector.shape_cast %91 : vector<1x256x64xf32> to vector<256x64xf32>
    %cst_94 = arith.constant dense<0.000000e+00> : vector<8x64xf32>
    %93 = tpu.matmul %0, %92, %cst_94 {dimension_numbers = #tpu.dot_dimension_numbers<[1], [0], [0], [1], [0, 0, 1, 1], [], []>} : vector<8x256xf32>, vector<256x64xf32>, vector<8x64xf32> -> vector<8x64xf32>
    %c13_95 = arith.constant 13 : index
    %c0_96 = arith.constant 0 : index
    %c0_97 = arith.constant 0 : index
    %94 = vector.load %arg3[%c13_95, %c0_96, %c0_97] : memref<16x16x8xf32, #tpu.memory_space<vmem>>, vector<1x16x8xf32>
    %95 = vector.shape_cast %94 : vector<1x16x8xf32> to vector<16x8xf32>
    %cst_98 = arith.constant dense<0.000000e+00> : vector<16x64xf32>
    %96 = tpu.matmul %95, %93, %cst_98 {dimension_numbers = #tpu.dot_dimension_numbers<[1], [0], [0], [1], [0, 0, 1, 1], [], []>} : vector<16x8xf32>, vector<8x64xf32>, vector<16x64xf32> -> vector<16x64xf32>
    %97 = arith.addf %90, %96 : vector<16x64xf32>
    %c14 = arith.constant 14 : index
    %c0_99 = arith.constant 0 : index
    %c0_100 = arith.constant 0 : index
    %98 = vector.load %arg2[%c14, %c0_99, %c0_100] : memref<16x256x64xf32, #tpu.memory_space<vmem>>, vector<1x256x64xf32>
    %99 = vector.shape_cast %98 : vector<1x256x64xf32> to vector<256x64xf32>
    %cst_101 = arith.constant dense<0.000000e+00> : vector<8x64xf32>
    %100 = tpu.matmul %0, %99, %cst_101 {dimension_numbers = #tpu.dot_dimension_numbers<[1], [0], [0], [1], [0, 0, 1, 1], [], []>} : vector<8x256xf32>, vector<256x64xf32>, vector<8x64xf32> -> vector<8x64xf32>
    %c14_102 = arith.constant 14 : index
    %c0_103 = arith.constant 0 : index
    %c0_104 = arith.constant 0 : index
    %101 = vector.load %arg3[%c14_102, %c0_103, %c0_104] : memref<16x16x8xf32, #tpu.memory_space<vmem>>, vector<1x16x8xf32>
    %102 = vector.shape_cast %101 : vector<1x16x8xf32> to vector<16x8xf32>
    %cst_105 = arith.constant dense<0.000000e+00> : vector<16x64xf32>
    %103 = tpu.matmul %102, %100, %cst_105 {dimension_numbers = #tpu.dot_dimension_numbers<[1], [0], [0], [1], [0, 0, 1, 1], [], []>} : vector<16x8xf32>, vector<8x64xf32>, vector<16x64xf32> -> vector<16x64xf32>
    %104 = arith.addf %97, %103 : vector<16x64xf32>
    %c15 = arith.constant 15 : index
    %c0_106 = arith.constant 0 : index
    %c0_107 = arith.constant 0 : index
    %105 = vector.load %arg2[%c15, %c0_106, %c0_107] : memref<16x256x64xf32, #tpu.memory_space<vmem>>, vector<1x256x64xf32>
    %106 = vector.shape_cast %105 : vector<1x256x64xf32> to vector<256x64xf32>
    %cst_108 = arith.constant dense<0.000000e+00> : vector<8x64xf32>
    %107 = tpu.matmul %0, %106, %cst_108 {dimension_numbers = #tpu.dot_dimension_numbers<[1], [0], [0], [1], [0, 0, 1, 1], [], []>} : vector<8x256xf32>, vector<256x64xf32>, vector<8x64xf32> -> vector<8x64xf32>
    %c15_109 = arith.constant 15 : index
    %c0_110 = arith.constant 0 : index
    %c0_111 = arith.constant 0 : index
    %108 = vector.load %arg3[%c15_109, %c0_110, %c0_111] : memref<16x16x8xf32, #tpu.memory_space<vmem>>, vector<1x16x8xf32>
    %109 = vector.shape_cast %108 : vector<1x16x8xf32> to vector<16x8xf32>
    %cst_112 = arith.constant dense<0.000000e+00> : vector<16x64xf32>
    %110 = tpu.matmul %109, %107, %cst_112 {dimension_numbers = #tpu.dot_dimension_numbers<[1], [0], [0], [1], [0, 0, 1, 1], [], []>} : vector<16x8xf32>, vector<8x64xf32>, vector<16x64xf32> -> vector<16x64xf32>
    %111 = arith.addf %104, %110 : vector<16x64xf32>
    %c0_113 = arith.constant 0 : index
    %c0_114 = arith.constant 0 : index
    %112 = vector.load %arg4[%c0_113, %c0_114] : memref<16x1xf32, #tpu.memory_space<vmem>>, vector<16x1xf32>
    %113 = vector.broadcast %112 : vector<16x1xf32> to vector<16x64xf32>
    %114 = arith.addf %111, %113 : vector<16x64xf32>
    %cst_115 = arith.constant 0.000000e+00 : f32
    %115 = vector.broadcast %cst_115 : f32 to vector<16x64xf32>
    %116 = arith.cmpf ogt, %114, %115 : vector<16x64xf32>
    %cst_116 = arith.constant 2.000000e-01 : f32
    %117 = vector.broadcast %cst_116 : f32 to vector<16x64xf32>
    %118 = arith.mulf %117, %114 : vector<16x64xf32>
    %119 = arith.select %116, %114, %118 : vector<16x64xi1>, vector<16x64xf32>
    %c0_117 = arith.constant 0 : index
    %c0_118 = arith.constant 0 : index
    %c0_119 = arith.constant 0 : index
    %120 = vector.load %arg5[%c0_117, %c0_118, %c0_119] : memref<16x64x16xf32, #tpu.memory_space<vmem>>, vector<1x64x16xf32>
    %121 = vector.shape_cast %120 : vector<1x64x16xf32> to vector<64x16xf32>
    %cst_120 = arith.constant dense<0.000000e+00> : vector<16x16xf32>
    %122 = tpu.matmul %119, %121, %cst_120 {dimension_numbers = #tpu.dot_dimension_numbers<[1], [0], [0], [1], [0, 0, 1, 1], [], []>} : vector<16x64xf32>, vector<64x16xf32>, vector<16x16xf32> -> vector<16x16xf32>
    %c0_121 = arith.constant 0 : index
    %c0_122 = arith.constant 0 : index
    %c0_123 = arith.constant 0 : index
    %123 = vector.load %arg6[%c0_121, %c0_122, %c0_123] : memref<16x32x16xf32, #tpu.memory_space<vmem>>, vector<1x32x16xf32>
    %124 = vector.shape_cast %123 : vector<1x32x16xf32> to vector<32x16xf32>
    %cst_124 = arith.constant dense<0.000000e+00> : vector<32x16xf32>
    %125 = tpu.matmul %124, %122, %cst_124 {dimension_numbers = #tpu.dot_dimension_numbers<[1], [0], [0], [1], [0, 0, 1, 1], [], []>} : vector<32x16xf32>, vector<16x16xf32>, vector<32x16xf32> -> vector<32x16xf32>
    %c1_125 = arith.constant 1 : index
    %c0_126 = arith.constant 0 : index
    %c0_127 = arith.constant 0 : index
    %126 = vector.load %arg5[%c1_125, %c0_126, %c0_127] : memref<16x64x16xf32, #tpu.memory_space<vmem>>, vector<1x64x16xf32>
    %127 = vector.shape_cast %126 : vector<1x64x16xf32> to vector<64x16xf32>
    %cst_128 = arith.constant dense<0.000000e+00> : vector<16x16xf32>
    %128 = tpu.matmul %119, %127, %cst_128 {dimension_numbers = #tpu.dot_dimension_numbers<[1], [0], [0], [1], [0, 0, 1, 1], [], []>} : vector<16x64xf32>, vector<64x16xf32>, vector<16x16xf32> -> vector<16x16xf32>
    %c1_129 = arith.constant 1 : index
    %c0_130 = arith.constant 0 : index
    %c0_131 = arith.constant 0 : index
    %129 = vector.load %arg6[%c1_129, %c0_130, %c0_131] : memref<16x32x16xf32, #tpu.memory_space<vmem>>, vector<1x32x16xf32>
    %130 = vector.shape_cast %129 : vector<1x32x16xf32> to vector<32x16xf32>
    %cst_132 = arith.constant dense<0.000000e+00> : vector<32x16xf32>
    %131 = tpu.matmul %130, %128, %cst_132 {dimension_numbers = #tpu.dot_dimension_numbers<[1], [0], [0], [1], [0, 0, 1, 1], [], []>} : vector<32x16xf32>, vector<16x16xf32>, vector<32x16xf32> -> vector<32x16xf32>
    %132 = arith.addf %125, %131 : vector<32x16xf32>
    %c2_133 = arith.constant 2 : index
    %c0_134 = arith.constant 0 : index
    %c0_135 = arith.constant 0 : index
    %133 = vector.load %arg5[%c2_133, %c0_134, %c0_135] : memref<16x64x16xf32, #tpu.memory_space<vmem>>, vector<1x64x16xf32>
    %134 = vector.shape_cast %133 : vector<1x64x16xf32> to vector<64x16xf32>
    %cst_136 = arith.constant dense<0.000000e+00> : vector<16x16xf32>
    %135 = tpu.matmul %119, %134, %cst_136 {dimension_numbers = #tpu.dot_dimension_numbers<[1], [0], [0], [1], [0, 0, 1, 1], [], []>} : vector<16x64xf32>, vector<64x16xf32>, vector<16x16xf32> -> vector<16x16xf32>
    %c2_137 = arith.constant 2 : index
    %c0_138 = arith.constant 0 : index
    %c0_139 = arith.constant 0 : index
    %136 = vector.load %arg6[%c2_137, %c0_138, %c0_139] : memref<16x32x16xf32, #tpu.memory_space<vmem>>, vector<1x32x16xf32>
    %137 = vector.shape_cast %136 : vector<1x32x16xf32> to vector<32x16xf32>
    %cst_140 = arith.constant dense<0.000000e+00> : vector<32x16xf32>
    %138 = tpu.matmul %137, %135, %cst_140 {dimension_numbers = #tpu.dot_dimension_numbers<[1], [0], [0], [1], [0, 0, 1, 1], [], []>} : vector<32x16xf32>, vector<16x16xf32>, vector<32x16xf32> -> vector<32x16xf32>
    %139 = arith.addf %132, %138 : vector<32x16xf32>
    %c3_141 = arith.constant 3 : index
    %c0_142 = arith.constant 0 : index
    %c0_143 = arith.constant 0 : index
    %140 = vector.load %arg5[%c3_141, %c0_142, %c0_143] : memref<16x64x16xf32, #tpu.memory_space<vmem>>, vector<1x64x16xf32>
    %141 = vector.shape_cast %140 : vector<1x64x16xf32> to vector<64x16xf32>
    %cst_144 = arith.constant dense<0.000000e+00> : vector<16x16xf32>
    %142 = tpu.matmul %119, %141, %cst_144 {dimension_numbers = #tpu.dot_dimension_numbers<[1], [0], [0], [1], [0, 0, 1, 1], [], []>} : vector<16x64xf32>, vector<64x16xf32>, vector<16x16xf32> -> vector<16x16xf32>
    %c3_145 = arith.constant 3 : index
    %c0_146 = arith.constant 0 : index
    %c0_147 = arith.constant 0 : index
    %143 = vector.load %arg6[%c3_145, %c0_146, %c0_147] : memref<16x32x16xf32, #tpu.memory_space<vmem>>, vector<1x32x16xf32>
    %144 = vector.shape_cast %143 : vector<1x32x16xf32> to vector<32x16xf32>
    %cst_148 = arith.constant dense<0.000000e+00> : vector<32x16xf32>
    %145 = tpu.matmul %144, %142, %cst_148 {dimension_numbers = #tpu.dot_dimension_numbers<[1], [0], [0], [1], [0, 0, 1, 1], [], []>} : vector<32x16xf32>, vector<16x16xf32>, vector<32x16xf32> -> vector<32x16xf32>
    %146 = arith.addf %139, %145 : vector<32x16xf32>
    %c4_149 = arith.constant 4 : index
    %c0_150 = arith.constant 0 : index
    %c0_151 = arith.constant 0 : index
    %147 = vector.load %arg5[%c4_149, %c0_150, %c0_151] : memref<16x64x16xf32, #tpu.memory_space<vmem>>, vector<1x64x16xf32>
    %148 = vector.shape_cast %147 : vector<1x64x16xf32> to vector<64x16xf32>
    %cst_152 = arith.constant dense<0.000000e+00> : vector<16x16xf32>
    %149 = tpu.matmul %119, %148, %cst_152 {dimension_numbers = #tpu.dot_dimension_numbers<[1], [0], [0], [1], [0, 0, 1, 1], [], []>} : vector<16x64xf32>, vector<64x16xf32>, vector<16x16xf32> -> vector<16x16xf32>
    %c4_153 = arith.constant 4 : index
    %c0_154 = arith.constant 0 : index
    %c0_155 = arith.constant 0 : index
    %150 = vector.load %arg6[%c4_153, %c0_154, %c0_155] : memref<16x32x16xf32, #tpu.memory_space<vmem>>, vector<1x32x16xf32>
    %151 = vector.shape_cast %150 : vector<1x32x16xf32> to vector<32x16xf32>
    %cst_156 = arith.constant dense<0.000000e+00> : vector<32x16xf32>
    %152 = tpu.matmul %151, %149, %cst_156 {dimension_numbers = #tpu.dot_dimension_numbers<[1], [0], [0], [1], [0, 0, 1, 1], [], []>} : vector<32x16xf32>, vector<16x16xf32>, vector<32x16xf32> -> vector<32x16xf32>
    %153 = arith.addf %146, %152 : vector<32x16xf32>
    %c5_157 = arith.constant 5 : index
    %c0_158 = arith.constant 0 : index
    %c0_159 = arith.constant 0 : index
    %154 = vector.load %arg5[%c5_157, %c0_158, %c0_159] : memref<16x64x16xf32, #tpu.memory_space<vmem>>, vector<1x64x16xf32>
    %155 = vector.shape_cast %154 : vector<1x64x16xf32> to vector<64x16xf32>
    %cst_160 = arith.constant dense<0.000000e+00> : vector<16x16xf32>
    %156 = tpu.matmul %119, %155, %cst_160 {dimension_numbers = #tpu.dot_dimension_numbers<[1], [0], [0], [1], [0, 0, 1, 1], [], []>} : vector<16x64xf32>, vector<64x16xf32>, vector<16x16xf32> -> vector<16x16xf32>
    %c5_161 = arith.constant 5 : index
    %c0_162 = arith.constant 0 : index
    %c0_163 = arith.constant 0 : index
    %157 = vector.load %arg6[%c5_161, %c0_162, %c0_163] : memref<16x32x16xf32, #tpu.memory_space<vmem>>, vector<1x32x16xf32>
    %158 = vector.shape_cast %157 : vector<1x32x16xf32> to vector<32x16xf32>
    %cst_164 = arith.constant dense<0.000000e+00> : vector<32x16xf32>
    %159 = tpu.matmul %158, %156, %cst_164 {dimension_numbers = #tpu.dot_dimension_numbers<[1], [0], [0], [1], [0, 0, 1, 1], [], []>} : vector<32x16xf32>, vector<16x16xf32>, vector<32x16xf32> -> vector<32x16xf32>
    %160 = arith.addf %153, %159 : vector<32x16xf32>
    %c6_165 = arith.constant 6 : index
    %c0_166 = arith.constant 0 : index
    %c0_167 = arith.constant 0 : index
    %161 = vector.load %arg5[%c6_165, %c0_166, %c0_167] : memref<16x64x16xf32, #tpu.memory_space<vmem>>, vector<1x64x16xf32>
    %162 = vector.shape_cast %161 : vector<1x64x16xf32> to vector<64x16xf32>
    %cst_168 = arith.constant dense<0.000000e+00> : vector<16x16xf32>
    %163 = tpu.matmul %119, %162, %cst_168 {dimension_numbers = #tpu.dot_dimension_numbers<[1], [0], [0], [1], [0, 0, 1, 1], [], []>} : vector<16x64xf32>, vector<64x16xf32>, vector<16x16xf32> -> vector<16x16xf32>
    %c6_169 = arith.constant 6 : index
    %c0_170 = arith.constant 0 : index
    %c0_171 = arith.constant 0 : index
    %164 = vector.load %arg6[%c6_169, %c0_170, %c0_171] : memref<16x32x16xf32, #tpu.memory_space<vmem>>, vector<1x32x16xf32>
    %165 = vector.shape_cast %164 : vector<1x32x16xf32> to vector<32x16xf32>
    %cst_172 = arith.constant dense<0.000000e+00> : vector<32x16xf32>
    %166 = tpu.matmul %165, %163, %cst_172 {dimension_numbers = #tpu.dot_dimension_numbers<[1], [0], [0], [1], [0, 0, 1, 1], [], []>} : vector<32x16xf32>, vector<16x16xf32>, vector<32x16xf32> -> vector<32x16xf32>
    %167 = arith.addf %160, %166 : vector<32x16xf32>
    %c7_173 = arith.constant 7 : index
    %c0_174 = arith.constant 0 : index
    %c0_175 = arith.constant 0 : index
    %168 = vector.load %arg5[%c7_173, %c0_174, %c0_175] : memref<16x64x16xf32, #tpu.memory_space<vmem>>, vector<1x64x16xf32>
    %169 = vector.shape_cast %168 : vector<1x64x16xf32> to vector<64x16xf32>
    %cst_176 = arith.constant dense<0.000000e+00> : vector<16x16xf32>
    %170 = tpu.matmul %119, %169, %cst_176 {dimension_numbers = #tpu.dot_dimension_numbers<[1], [0], [0], [1], [0, 0, 1, 1], [], []>} : vector<16x64xf32>, vector<64x16xf32>, vector<16x16xf32> -> vector<16x16xf32>
    %c7_177 = arith.constant 7 : index
    %c0_178 = arith.constant 0 : index
    %c0_179 = arith.constant 0 : index
    %171 = vector.load %arg6[%c7_177, %c0_178, %c0_179] : memref<16x32x16xf32, #tpu.memory_space<vmem>>, vector<1x32x16xf32>
    %172 = vector.shape_cast %171 : vector<1x32x16xf32> to vector<32x16xf32>
    %cst_180 = arith.constant dense<0.000000e+00> : vector<32x16xf32>
    %173 = tpu.matmul %172, %170, %cst_180 {dimension_numbers = #tpu.dot_dimension_numbers<[1], [0], [0], [1], [0, 0, 1, 1], [], []>} : vector<32x16xf32>, vector<16x16xf32>, vector<32x16xf32> -> vector<32x16xf32>
    %174 = arith.addf %167, %173 : vector<32x16xf32>
    %c8_181 = arith.constant 8 : index
    %c0_182 = arith.constant 0 : index
    %c0_183 = arith.constant 0 : index
    %175 = vector.load %arg5[%c8_181, %c0_182, %c0_183] : memref<16x64x16xf32, #tpu.memory_space<vmem>>, vector<1x64x16xf32>
    %176 = vector.shape_cast %175 : vector<1x64x16xf32> to vector<64x16xf32>
    %cst_184 = arith.constant dense<0.000000e+00> : vector<16x16xf32>
    %177 = tpu.matmul %119, %176, %cst_184 {dimension_numbers = #tpu.dot_dimension_numbers<[1], [0], [0], [1], [0, 0, 1, 1], [], []>} : vector<16x64xf32>, vector<64x16xf32>, vector<16x16xf32> -> vector<16x16xf32>
    %c8_185 = arith.constant 8 : index
    %c0_186 = arith.constant 0 : index
    %c0_187 = arith.constant 0 : index
    %178 = vector.load %arg6[%c8_185, %c0_186, %c0_187] : memref<16x32x16xf32, #tpu.memory_space<vmem>>, vector<1x32x16xf32>
    %179 = vector.shape_cast %178 : vector<1x32x16xf32> to vector<32x16xf32>
    %cst_188 = arith.constant dense<0.000000e+00> : vector<32x16xf32>
    %180 = tpu.matmul %179, %177, %cst_188 {dimension_numbers = #tpu.dot_dimension_numbers<[1], [0], [0], [1], [0, 0, 1, 1], [], []>} : vector<32x16xf32>, vector<16x16xf32>, vector<32x16xf32> -> vector<32x16xf32>
    %181 = arith.addf %174, %180 : vector<32x16xf32>
    %c9_189 = arith.constant 9 : index
    %c0_190 = arith.constant 0 : index
    %c0_191 = arith.constant 0 : index
    %182 = vector.load %arg5[%c9_189, %c0_190, %c0_191] : memref<16x64x16xf32, #tpu.memory_space<vmem>>, vector<1x64x16xf32>
    %183 = vector.shape_cast %182 : vector<1x64x16xf32> to vector<64x16xf32>
    %cst_192 = arith.constant dense<0.000000e+00> : vector<16x16xf32>
    %184 = tpu.matmul %119, %183, %cst_192 {dimension_numbers = #tpu.dot_dimension_numbers<[1], [0], [0], [1], [0, 0, 1, 1], [], []>} : vector<16x64xf32>, vector<64x16xf32>, vector<16x16xf32> -> vector<16x16xf32>
    %c9_193 = arith.constant 9 : index
    %c0_194 = arith.constant 0 : index
    %c0_195 = arith.constant 0 : index
    %185 = vector.load %arg6[%c9_193, %c0_194, %c0_195] : memref<16x32x16xf32, #tpu.memory_space<vmem>>, vector<1x32x16xf32>
    %186 = vector.shape_cast %185 : vector<1x32x16xf32> to vector<32x16xf32>
    %cst_196 = arith.constant dense<0.000000e+00> : vector<32x16xf32>
    %187 = tpu.matmul %186, %184, %cst_196 {dimension_numbers = #tpu.dot_dimension_numbers<[1], [0], [0], [1], [0, 0, 1, 1], [], []>} : vector<32x16xf32>, vector<16x16xf32>, vector<32x16xf32> -> vector<32x16xf32>
    %188 = arith.addf %181, %187 : vector<32x16xf32>
    %c10_197 = arith.constant 10 : index
    %c0_198 = arith.constant 0 : index
    %c0_199 = arith.constant 0 : index
    %189 = vector.load %arg5[%c10_197, %c0_198, %c0_199] : memref<16x64x16xf32, #tpu.memory_space<vmem>>, vector<1x64x16xf32>
    %190 = vector.shape_cast %189 : vector<1x64x16xf32> to vector<64x16xf32>
    %cst_200 = arith.constant dense<0.000000e+00> : vector<16x16xf32>
    %191 = tpu.matmul %119, %190, %cst_200 {dimension_numbers = #tpu.dot_dimension_numbers<[1], [0], [0], [1], [0, 0, 1, 1], [], []>} : vector<16x64xf32>, vector<64x16xf32>, vector<16x16xf32> -> vector<16x16xf32>
    %c10_201 = arith.constant 10 : index
    %c0_202 = arith.constant 0 : index
    %c0_203 = arith.constant 0 : index
    %192 = vector.load %arg6[%c10_201, %c0_202, %c0_203] : memref<16x32x16xf32, #tpu.memory_space<vmem>>, vector<1x32x16xf32>
    %193 = vector.shape_cast %192 : vector<1x32x16xf32> to vector<32x16xf32>
    %cst_204 = arith.constant dense<0.000000e+00> : vector<32x16xf32>
    %194 = tpu.matmul %193, %191, %cst_204 {dimension_numbers = #tpu.dot_dimension_numbers<[1], [0], [0], [1], [0, 0, 1, 1], [], []>} : vector<32x16xf32>, vector<16x16xf32>, vector<32x16xf32> -> vector<32x16xf32>
    %195 = arith.addf %188, %194 : vector<32x16xf32>
    %c11_205 = arith.constant 11 : index
    %c0_206 = arith.constant 0 : index
    %c0_207 = arith.constant 0 : index
    %196 = vector.load %arg5[%c11_205, %c0_206, %c0_207] : memref<16x64x16xf32, #tpu.memory_space<vmem>>, vector<1x64x16xf32>
    %197 = vector.shape_cast %196 : vector<1x64x16xf32> to vector<64x16xf32>
    %cst_208 = arith.constant dense<0.000000e+00> : vector<16x16xf32>
    %198 = tpu.matmul %119, %197, %cst_208 {dimension_numbers = #tpu.dot_dimension_numbers<[1], [0], [0], [1], [0, 0, 1, 1], [], []>} : vector<16x64xf32>, vector<64x16xf32>, vector<16x16xf32> -> vector<16x16xf32>
    %c11_209 = arith.constant 11 : index
    %c0_210 = arith.constant 0 : index
    %c0_211 = arith.constant 0 : index
    %199 = vector.load %arg6[%c11_209, %c0_210, %c0_211] : memref<16x32x16xf32, #tpu.memory_space<vmem>>, vector<1x32x16xf32>
    %200 = vector.shape_cast %199 : vector<1x32x16xf32> to vector<32x16xf32>
    %cst_212 = arith.constant dense<0.000000e+00> : vector<32x16xf32>
    %201 = tpu.matmul %200, %198, %cst_212 {dimension_numbers = #tpu.dot_dimension_numbers<[1], [0], [0], [1], [0, 0, 1, 1], [], []>} : vector<32x16xf32>, vector<16x16xf32>, vector<32x16xf32> -> vector<32x16xf32>
    %202 = arith.addf %195, %201 : vector<32x16xf32>
    %c12_213 = arith.constant 12 : index
    %c0_214 = arith.constant 0 : index
    %c0_215 = arith.constant 0 : index
    %203 = vector.load %arg5[%c12_213, %c0_214, %c0_215] : memref<16x64x16xf32, #tpu.memory_space<vmem>>, vector<1x64x16xf32>
    %204 = vector.shape_cast %203 : vector<1x64x16xf32> to vector<64x16xf32>
    %cst_216 = arith.constant dense<0.000000e+00> : vector<16x16xf32>
    %205 = tpu.matmul %119, %204, %cst_216 {dimension_numbers = #tpu.dot_dimension_numbers<[1], [0], [0], [1], [0, 0, 1, 1], [], []>} : vector<16x64xf32>, vector<64x16xf32>, vector<16x16xf32> -> vector<16x16xf32>
    %c12_217 = arith.constant 12 : index
    %c0_218 = arith.constant 0 : index
    %c0_219 = arith.constant 0 : index
    %206 = vector.load %arg6[%c12_217, %c0_218, %c0_219] : memref<16x32x16xf32, #tpu.memory_space<vmem>>, vector<1x32x16xf32>
    %207 = vector.shape_cast %206 : vector<1x32x16xf32> to vector<32x16xf32>
    %cst_220 = arith.constant dense<0.000000e+00> : vector<32x16xf32>
    %208 = tpu.matmul %207, %205, %cst_220 {dimension_numbers = #tpu.dot_dimension_numbers<[1], [0], [0], [1], [0, 0, 1, 1], [], []>} : vector<32x16xf32>, vector<16x16xf32>, vector<32x16xf32> -> vector<32x16xf32>
    %209 = arith.addf %202, %208 : vector<32x16xf32>
    %c13_221 = arith.constant 13 : index
    %c0_222 = arith.constant 0 : index
    %c0_223 = arith.constant 0 : index
    %210 = vector.load %arg5[%c13_221, %c0_222, %c0_223] : memref<16x64x16xf32, #tpu.memory_space<vmem>>, vector<1x64x16xf32>
    %211 = vector.shape_cast %210 : vector<1x64x16xf32> to vector<64x16xf32>
    %cst_224 = arith.constant dense<0.000000e+00> : vector<16x16xf32>
    %212 = tpu.matmul %119, %211, %cst_224 {dimension_numbers = #tpu.dot_dimension_numbers<[1], [0], [0], [1], [0, 0, 1, 1], [], []>} : vector<16x64xf32>, vector<64x16xf32>, vector<16x16xf32> -> vector<16x16xf32>
    %c13_225 = arith.constant 13 : index
    %c0_226 = arith.constant 0 : index
    %c0_227 = arith.constant 0 : index
    %213 = vector.load %arg6[%c13_225, %c0_226, %c0_227] : memref<16x32x16xf32, #tpu.memory_space<vmem>>, vector<1x32x16xf32>
    %214 = vector.shape_cast %213 : vector<1x32x16xf32> to vector<32x16xf32>
    %cst_228 = arith.constant dense<0.000000e+00> : vector<32x16xf32>
    %215 = tpu.matmul %214, %212, %cst_228 {dimension_numbers = #tpu.dot_dimension_numbers<[1], [0], [0], [1], [0, 0, 1, 1], [], []>} : vector<32x16xf32>, vector<16x16xf32>, vector<32x16xf32> -> vector<32x16xf32>
    %216 = arith.addf %209, %215 : vector<32x16xf32>
    %c14_229 = arith.constant 14 : index
    %c0_230 = arith.constant 0 : index
    %c0_231 = arith.constant 0 : index
    %217 = vector.load %arg5[%c14_229, %c0_230, %c0_231] : memref<16x64x16xf32, #tpu.memory_space<vmem>>, vector<1x64x16xf32>
    %218 = vector.shape_cast %217 : vector<1x64x16xf32> to vector<64x16xf32>
    %cst_232 = arith.constant dense<0.000000e+00> : vector<16x16xf32>
    %219 = tpu.matmul %119, %218, %cst_232 {dimension_numbers = #tpu.dot_dimension_numbers<[1], [0], [0], [1], [0, 0, 1, 1], [], []>} : vector<16x64xf32>, vector<64x16xf32>, vector<16x16xf32> -> vector<16x16xf32>
    %c14_233 = arith.constant 14 : index
    %c0_234 = arith.constant 0 : index
    %c0_235 = arith.constant 0 : index
    %220 = vector.load %arg6[%c14_233, %c0_234, %c0_235] : memref<16x32x16xf32, #tpu.memory_space<vmem>>, vector<1x32x16xf32>
    %221 = vector.shape_cast %220 : vector<1x32x16xf32> to vector<32x16xf32>
    %cst_236 = arith.constant dense<0.000000e+00> : vector<32x16xf32>
    %222 = tpu.matmul %221, %219, %cst_236 {dimension_numbers = #tpu.dot_dimension_numbers<[1], [0], [0], [1], [0, 0, 1, 1], [], []>} : vector<32x16xf32>, vector<16x16xf32>, vector<32x16xf32> -> vector<32x16xf32>
    %223 = arith.addf %216, %222 : vector<32x16xf32>
    %c15_237 = arith.constant 15 : index
    %c0_238 = arith.constant 0 : index
    %c0_239 = arith.constant 0 : index
    %224 = vector.load %arg5[%c15_237, %c0_238, %c0_239] : memref<16x64x16xf32, #tpu.memory_space<vmem>>, vector<1x64x16xf32>
    %225 = vector.shape_cast %224 : vector<1x64x16xf32> to vector<64x16xf32>
    %cst_240 = arith.constant dense<0.000000e+00> : vector<16x16xf32>
    %226 = tpu.matmul %119, %225, %cst_240 {dimension_numbers = #tpu.dot_dimension_numbers<[1], [0], [0], [1], [0, 0, 1, 1], [], []>} : vector<16x64xf32>, vector<64x16xf32>, vector<16x16xf32> -> vector<16x16xf32>
    %c15_241 = arith.constant 15 : index
    %c0_242 = arith.constant 0 : index
    %c0_243 = arith.constant 0 : index
    %227 = vector.load %arg6[%c15_241, %c0_242, %c0_243] : memref<16x32x16xf32, #tpu.memory_space<vmem>>, vector<1x32x16xf32>
    %228 = vector.shape_cast %227 : vector<1x32x16xf32> to vector<32x16xf32>
    %cst_244 = arith.constant dense<0.000000e+00> : vector<32x16xf32>
    %229 = tpu.matmul %228, %226, %cst_244 {dimension_numbers = #tpu.dot_dimension_numbers<[1], [0], [0], [1], [0, 0, 1, 1], [], []>} : vector<32x16xf32>, vector<16x16xf32>, vector<32x16xf32> -> vector<32x16xf32>
    %230 = arith.addf %223, %229 : vector<32x16xf32>
    %c0_245 = arith.constant 0 : index
    %c0_246 = arith.constant 0 : index
    %231 = vector.load %arg7[%c0_245, %c0_246] : memref<32x1xf32, #tpu.memory_space<vmem>>, vector<32x1xf32>
    %232 = vector.broadcast %231 : vector<32x1xf32> to vector<32x16xf32>
    %233 = arith.addf %230, %232 : vector<32x16xf32>
    %cst_247 = arith.constant 0.000000e+00 : f32
    %234 = vector.broadcast %cst_247 : f32 to vector<32x16xf32>
    %235 = arith.cmpf ogt, %233, %234 : vector<32x16xf32>
    %cst_248 = arith.constant 2.000000e-01 : f32
    %236 = vector.broadcast %cst_248 : f32 to vector<32x16xf32>
    %237 = arith.mulf %236, %233 : vector<32x16xf32>
    %238 = arith.select %235, %233, %237 : vector<32x16xi1>, vector<32x16xf32>
    %c0_249 = arith.constant 0 : index
    %c0_250 = arith.constant 0 : index
    %239 = vector.load %arg8[%c0_249, %c0_250] : memref<2x32xf32, #tpu.memory_space<vmem>>, vector<2x32xf32>
    %cst_251 = arith.constant dense<0.000000e+00> : vector<2x16xf32>
    %240 = tpu.matmul %239, %238, %cst_251 {dimension_numbers = #tpu.dot_dimension_numbers<[1], [0], [0], [1], [0, 0, 1, 1], [], []>} : vector<2x32xf32>, vector<32x16xf32>, vector<2x16xf32> -> vector<2x16xf32>
    %c0_252 = arith.constant 0 : index
    %c0_253 = arith.constant 0 : index
    %241 = vector.load %arg9[%c0_252, %c0_253] : memref<2x1xf32, #tpu.memory_space<vmem>>, vector<2x1xf32>
    %242 = vector.broadcast %241 : vector<2x1xf32> to vector<2x16xf32>
    %243 = arith.addf %240, %242 : vector<2x16xf32>
    %c0_254 = arith.constant 0 : index
    %c0_255 = arith.constant 0 : index
    %244 = vector.load %arg19[%c0_254, %c0_255] : memref<2x16xf32, #tpu.memory_space<vmem>>, vector<2x16xf32>
    tpu.vector_store %arg19[%c0_254, %c0_255], %243 {strides = array<i32>} : memref<2x16xf32, #tpu.memory_space<vmem>>, vector<2x16xf32>,
    %c0_256 = arith.constant 0 : index
    %c0_257 = arith.constant 0 : index
    %245 = vector.load %arg10[%c0_256, %c0_257] : memref<256x64xf32, #tpu.memory_space<vmem>>, vector<256x64xf32>
    %cst_258 = arith.constant dense<0.000000e+00> : vector<8x64xf32>
    %246 = tpu.matmul %0, %245, %cst_258 {dimension_numbers = #tpu.dot_dimension_numbers<[1], [0], [0], [1], [0, 0, 1, 1], [], []>} : vector<8x256xf32>, vector<256x64xf32>, vector<8x64xf32> -> vector<8x64xf32>
    %c0_259 = arith.constant 0 : index
    %c0_260 = arith.constant 0 : index
    %c0_261 = arith.constant 0 : index
    %247 = vector.load %arg11[%c0_259, %c0_260, %c0_261] : memref<16x64x16xf32, #tpu.memory_space<vmem>>, vector<1x64x16xf32>
    %248 = vector.shape_cast %247 : vector<1x64x16xf32> to vector<64x16xf32>
    %cst_262 = arith.constant dense<0.000000e+00> : vector<8x16xf32>
    %249 = tpu.matmul %246, %248, %cst_262 {dimension_numbers = #tpu.dot_dimension_numbers<[1], [0], [0], [1], [0, 0, 1, 1], [], []>} : vector<8x64xf32>, vector<64x16xf32>, vector<8x16xf32> -> vector<8x16xf32>
    %c0_263 = arith.constant 0 : index
    %c0_264 = arith.constant 0 : index
    %c0_265 = arith.constant 0 : index
    %250 = vector.load %arg12[%c0_263, %c0_264, %c0_265] : memref<16x16x8xf32, #tpu.memory_space<vmem>>, vector<1x16x8xf32>
    %251 = vector.shape_cast %250 : vector<1x16x8xf32> to vector<16x8xf32>
    %cst_266 = arith.constant dense<0.000000e+00> : vector<16x16xf32>
    %252 = tpu.matmul %251, %249, %cst_266 {dimension_numbers = #tpu.dot_dimension_numbers<[1], [0], [0], [1], [0, 0, 1, 1], [], []>} : vector<16x8xf32>, vector<8x16xf32>, vector<16x16xf32> -> vector<16x16xf32>
    %c1_267 = arith.constant 1 : index
    %c0_268 = arith.constant 0 : index
    %c0_269 = arith.constant 0 : index
    %253 = vector.load %arg11[%c1_267, %c0_268, %c0_269] : memref<16x64x16xf32, #tpu.memory_space<vmem>>, vector<1x64x16xf32>
    %254 = vector.shape_cast %253 : vector<1x64x16xf32> to vector<64x16xf32>
    %cst_270 = arith.constant dense<0.000000e+00> : vector<8x16xf32>
    %255 = tpu.matmul %246, %254, %cst_270 {dimension_numbers = #tpu.dot_dimension_numbers<[1], [0], [0], [1], [0, 0, 1, 1], [], []>} : vector<8x64xf32>, vector<64x16xf32>, vector<8x16xf32> -> vector<8x16xf32>
    %c1_271 = arith.constant 1 : index
    %c0_272 = arith.constant 0 : index
    %c0_273 = arith.constant 0 : index
    %256 = vector.load %arg12[%c1_271, %c0_272, %c0_273] : memref<16x16x8xf32, #tpu.memory_space<vmem>>, vector<1x16x8xf32>
    %257 = vector.shape_cast %256 : vector<1x16x8xf32> to vector<16x8xf32>
    %cst_274 = arith.constant dense<0.000000e+00> : vector<16x16xf32>
    %258 = tpu.matmul %257, %255, %cst_274 {dimension_numbers = #tpu.dot_dimension_numbers<[1], [0], [0], [1], [0, 0, 1, 1], [], []>} : vector<16x8xf32>, vector<8x16xf32>, vector<16x16xf32> -> vector<16x16xf32>
    %259 = arith.addf %252, %258 : vector<16x16xf32>
    %c2_275 = arith.constant 2 : index
    %c0_276 = arith.constant 0 : index
    %c0_277 = arith.constant 0 : index
    %260 = vector.load %arg11[%c2_275, %c0_276, %c0_277] : memref<16x64x16xf32, #tpu.memory_space<vmem>>, vector<1x64x16xf32>
    %261 = vector.shape_cast %260 : vector<1x64x16xf32> to vector<64x16xf32>
    %cst_278 = arith.constant dense<0.000000e+00> : vector<8x16xf32>
    %262 = tpu.matmul %246, %261, %cst_278 {dimension_numbers = #tpu.dot_dimension_numbers<[1], [0], [0], [1], [0, 0, 1, 1], [], []>} : vector<8x64xf32>, vector<64x16xf32>, vector<8x16xf32> -> vector<8x16xf32>
    %c2_279 = arith.constant 2 : index
    %c0_280 = arith.constant 0 : index
    %c0_281 = arith.constant 0 : index
    %263 = vector.load %arg12[%c2_279, %c0_280, %c0_281] : memref<16x16x8xf32, #tpu.memory_space<vmem>>, vector<1x16x8xf32>
    %264 = vector.shape_cast %263 : vector<1x16x8xf32> to vector<16x8xf32>
    %cst_282 = arith.constant dense<0.000000e+00> : vector<16x16xf32>
    %265 = tpu.matmul %264, %262, %cst_282 {dimension_numbers = #tpu.dot_dimension_numbers<[1], [0], [0], [1], [0, 0, 1, 1], [], []>} : vector<16x8xf32>, vector<8x16xf32>, vector<16x16xf32> -> vector<16x16xf32>
    %266 = arith.addf %259, %265 : vector<16x16xf32>
    %c3_283 = arith.constant 3 : index
    %c0_284 = arith.constant 0 : index
    %c0_285 = arith.constant 0 : index
    %267 = vector.load %arg11[%c3_283, %c0_284, %c0_285] : memref<16x64x16xf32, #tpu.memory_space<vmem>>, vector<1x64x16xf32>
    %268 = vector.shape_cast %267 : vector<1x64x16xf32> to vector<64x16xf32>
    %cst_286 = arith.constant dense<0.000000e+00> : vector<8x16xf32>
    %269 = tpu.matmul %246, %268, %cst_286 {dimension_numbers = #tpu.dot_dimension_numbers<[1], [0], [0], [1], [0, 0, 1, 1], [], []>} : vector<8x64xf32>, vector<64x16xf32>, vector<8x16xf32> -> vector<8x16xf32>
    %c3_287 = arith.constant 3 : index
    %c0_288 = arith.constant 0 : index
    %c0_289 = arith.constant 0 : index
    %270 = vector.load %arg12[%c3_287, %c0_288, %c0_289] : memref<16x16x8xf32, #tpu.memory_space<vmem>>, vector<1x16x8xf32>
    %271 = vector.shape_cast %270 : vector<1x16x8xf32> to vector<16x8xf32>
    %cst_290 = arith.constant dense<0.000000e+00> : vector<16x16xf32>
    %272 = tpu.matmul %271, %269, %cst_290 {dimension_numbers = #tpu.dot_dimension_numbers<[1], [0], [0], [1], [0, 0, 1, 1], [], []>} : vector<16x8xf32>, vector<8x16xf32>, vector<16x16xf32> -> vector<16x16xf32>
    %273 = arith.addf %266, %272 : vector<16x16xf32>
    %c4_291 = arith.constant 4 : index
    %c0_292 = arith.constant 0 : index
    %c0_293 = arith.constant 0 : index
    %274 = vector.load %arg11[%c4_291, %c0_292, %c0_293] : memref<16x64x16xf32, #tpu.memory_space<vmem>>, vector<1x64x16xf32>
    %275 = vector.shape_cast %274 : vector<1x64x16xf32> to vector<64x16xf32>
    %cst_294 = arith.constant dense<0.000000e+00> : vector<8x16xf32>
    %276 = tpu.matmul %246, %275, %cst_294 {dimension_numbers = #tpu.dot_dimension_numbers<[1], [0], [0], [1], [0, 0, 1, 1], [], []>} : vector<8x64xf32>, vector<64x16xf32>, vector<8x16xf32> -> vector<8x16xf32>
    %c4_295 = arith.constant 4 : index
    %c0_296 = arith.constant 0 : index
    %c0_297 = arith.constant 0 : index
    %277 = vector.load %arg12[%c4_295, %c0_296, %c0_297] : memref<16x16x8xf32, #tpu.memory_space<vmem>>, vector<1x16x8xf32>
    %278 = vector.shape_cast %277 : vector<1x16x8xf32> to vector<16x8xf32>
    %cst_298 = arith.constant dense<0.000000e+00> : vector<16x16xf32>
    %279 = tpu.matmul %278, %276, %cst_298 {dimension_numbers = #tpu.dot_dimension_numbers<[1], [0], [0], [1], [0, 0, 1, 1], [], []>} : vector<16x8xf32>, vector<8x16xf32>, vector<16x16xf32> -> vector<16x16xf32>
    %280 = arith.addf %273, %279 : vector<16x16xf32>
    %c5_299 = arith.constant 5 : index
    %c0_300 = arith.constant 0 : index
    %c0_301 = arith.constant 0 : index
    %281 = vector.load %arg11[%c5_299, %c0_300, %c0_301] : memref<16x64x16xf32, #tpu.memory_space<vmem>>, vector<1x64x16xf32>
    %282 = vector.shape_cast %281 : vector<1x64x16xf32> to vector<64x16xf32>
    %cst_302 = arith.constant dense<0.000000e+00> : vector<8x16xf32>
    %283 = tpu.matmul %246, %282, %cst_302 {dimension_numbers = #tpu.dot_dimension_numbers<[1], [0], [0], [1], [0, 0, 1, 1], [], []>} : vector<8x64xf32>, vector<64x16xf32>, vector<8x16xf32> -> vector<8x16xf32>
    %c5_303 = arith.constant 5 : index
    %c0_304 = arith.constant 0 : index
    %c0_305 = arith.constant 0 : index
    %284 = vector.load %arg12[%c5_303, %c0_304, %c0_305] : memref<16x16x8xf32, #tpu.memory_space<vmem>>, vector<1x16x8xf32>
    %285 = vector.shape_cast %284 : vector<1x16x8xf32> to vector<16x8xf32>
    %cst_306 = arith.constant dense<0.000000e+00> : vector<16x16xf32>
    %286 = tpu.matmul %285, %283, %cst_306 {dimension_numbers = #tpu.dot_dimension_numbers<[1], [0], [0], [1], [0, 0, 1, 1], [], []>} : vector<16x8xf32>, vector<8x16xf32>, vector<16x16xf32> -> vector<16x16xf32>
    %287 = arith.addf %280, %286 : vector<16x16xf32>
    %c6_307 = arith.constant 6 : index
    %c0_308 = arith.constant 0 : index
    %c0_309 = arith.constant 0 : index
    %288 = vector.load %arg11[%c6_307, %c0_308, %c0_309] : memref<16x64x16xf32, #tpu.memory_space<vmem>>, vector<1x64x16xf32>
    %289 = vector.shape_cast %288 : vector<1x64x16xf32> to vector<64x16xf32>
    %cst_310 = arith.constant dense<0.000000e+00> : vector<8x16xf32>
    %290 = tpu.matmul %246, %289, %cst_310 {dimension_numbers = #tpu.dot_dimension_numbers<[1], [0], [0], [1], [0, 0, 1, 1], [], []>} : vector<8x64xf32>, vector<64x16xf32>, vector<8x16xf32> -> vector<8x16xf32>
    %c6_311 = arith.constant 6 : index
    %c0_312 = arith.constant 0 : index
    %c0_313 = arith.constant 0 : index
    %291 = vector.load %arg12[%c6_311, %c0_312, %c0_313] : memref<16x16x8xf32, #tpu.memory_space<vmem>>, vector<1x16x8xf32>
    %292 = vector.shape_cast %291 : vector<1x16x8xf32> to vector<16x8xf32>
    %cst_314 = arith.constant dense<0.000000e+00> : vector<16x16xf32>
    %293 = tpu.matmul %292, %290, %cst_314 {dimension_numbers = #tpu.dot_dimension_numbers<[1], [0], [0], [1], [0, 0, 1, 1], [], []>} : vector<16x8xf32>, vector<8x16xf32>, vector<16x16xf32> -> vector<16x16xf32>
    %294 = arith.addf %287, %293 : vector<16x16xf32>
    %c7_315 = arith.constant 7 : index
    %c0_316 = arith.constant 0 : index
    %c0_317 = arith.constant 0 : index
    %295 = vector.load %arg11[%c7_315, %c0_316, %c0_317] : memref<16x64x16xf32, #tpu.memory_space<vmem>>, vector<1x64x16xf32>
    %296 = vector.shape_cast %295 : vector<1x64x16xf32> to vector<64x16xf32>
    %cst_318 = arith.constant dense<0.000000e+00> : vector<8x16xf32>
    %297 = tpu.matmul %246, %296, %cst_318 {dimension_numbers = #tpu.dot_dimension_numbers<[1], [0], [0], [1], [0, 0, 1, 1], [], []>} : vector<8x64xf32>, vector<64x16xf32>, vector<8x16xf32> -> vector<8x16xf32>
    %c7_319 = arith.constant 7 : index
    %c0_320 = arith.constant 0 : index
    %c0_321 = arith.constant 0 : index
    %298 = vector.load %arg12[%c7_319, %c0_320, %c0_321] : memref<16x16x8xf32, #tpu.memory_space<vmem>>, vector<1x16x8xf32>
    %299 = vector.shape_cast %298 : vector<1x16x8xf32> to vector<16x8xf32>
    %cst_322 = arith.constant dense<0.000000e+00> : vector<16x16xf32>
    %300 = tpu.matmul %299, %297, %cst_322 {dimension_numbers = #tpu.dot_dimension_numbers<[1], [0], [0], [1], [0, 0, 1, 1], [], []>} : vector<16x8xf32>, vector<8x16xf32>, vector<16x16xf32> -> vector<16x16xf32>
    %301 = arith.addf %294, %300 : vector<16x16xf32>
    %c8_323 = arith.constant 8 : index
    %c0_324 = arith.constant 0 : index
    %c0_325 = arith.constant 0 : index
    %302 = vector.load %arg11[%c8_323, %c0_324, %c0_325] : memref<16x64x16xf32, #tpu.memory_space<vmem>>, vector<1x64x16xf32>
    %303 = vector.shape_cast %302 : vector<1x64x16xf32> to vector<64x16xf32>
    %cst_326 = arith.constant dense<0.000000e+00> : vector<8x16xf32>
    %304 = tpu.matmul %246, %303, %cst_326 {dimension_numbers = #tpu.dot_dimension_numbers<[1], [0], [0], [1], [0, 0, 1, 1], [], []>} : vector<8x64xf32>, vector<64x16xf32>, vector<8x16xf32> -> vector<8x16xf32>
    %c8_327 = arith.constant 8 : index
    %c0_328 = arith.constant 0 : index
    %c0_329 = arith.constant 0 : index
    %305 = vector.load %arg12[%c8_327, %c0_328, %c0_329] : memref<16x16x8xf32, #tpu.memory_space<vmem>>, vector<1x16x8xf32>
    %306 = vector.shape_cast %305 : vector<1x16x8xf32> to vector<16x8xf32>
    %cst_330 = arith.constant dense<0.000000e+00> : vector<16x16xf32>
    %307 = tpu.matmul %306, %304, %cst_330 {dimension_numbers = #tpu.dot_dimension_numbers<[1], [0], [0], [1], [0, 0, 1, 1], [], []>} : vector<16x8xf32>, vector<8x16xf32>, vector<16x16xf32> -> vector<16x16xf32>
    %308 = arith.addf %301, %307 : vector<16x16xf32>
    %c9_331 = arith.constant 9 : index
    %c0_332 = arith.constant 0 : index
    %c0_333 = arith.constant 0 : index
    %309 = vector.load %arg11[%c9_331, %c0_332, %c0_333] : memref<16x64x16xf32, #tpu.memory_space<vmem>>, vector<1x64x16xf32>
    %310 = vector.shape_cast %309 : vector<1x64x16xf32> to vector<64x16xf32>
    %cst_334 = arith.constant dense<0.000000e+00> : vector<8x16xf32>
    %311 = tpu.matmul %246, %310, %cst_334 {dimension_numbers = #tpu.dot_dimension_numbers<[1], [0], [0], [1], [0, 0, 1, 1], [], []>} : vector<8x64xf32>, vector<64x16xf32>, vector<8x16xf32> -> vector<8x16xf32>
    %c9_335 = arith.constant 9 : index
    %c0_336 = arith.constant 0 : index
    %c0_337 = arith.constant 0 : index
    %312 = vector.load %arg12[%c9_335, %c0_336, %c0_337] : memref<16x16x8xf32, #tpu.memory_space<vmem>>, vector<1x16x8xf32>
    %313 = vector.shape_cast %312 : vector<1x16x8xf32> to vector<16x8xf32>
    %cst_338 = arith.constant dense<0.000000e+00> : vector<16x16xf32>
    %314 = tpu.matmul %313, %311, %cst_338 {dimension_numbers = #tpu.dot_dimension_numbers<[1], [0], [0], [1], [0, 0, 1, 1], [], []>} : vector<16x8xf32>, vector<8x16xf32>, vector<16x16xf32> -> vector<16x16xf32>
    %315 = arith.addf %308, %314 : vector<16x16xf32>
    %c10_339 = arith.constant 10 : index
    %c0_340 = arith.constant 0 : index
    %c0_341 = arith.constant 0 : index
    %316 = vector.load %arg11[%c10_339, %c0_340, %c0_341] : memref<16x64x16xf32, #tpu.memory_space<vmem>>, vector<1x64x16xf32>
    %317 = vector.shape_cast %316 : vector<1x64x16xf32> to vector<64x16xf32>
    %cst_342 = arith.constant dense<0.000000e+00> : vector<8x16xf32>
    %318 = tpu.matmul %246, %317, %cst_342 {dimension_numbers = #tpu.dot_dimension_numbers<[1], [0], [0], [1], [0, 0, 1, 1], [], []>} : vector<8x64xf32>, vector<64x16xf32>, vector<8x16xf32> -> vector<8x16xf32>
    %c10_343 = arith.constant 10 : index
    %c0_344 = arith.constant 0 : index
    %c0_345 = arith.constant 0 : index
    %319 = vector.load %arg12[%c10_343, %c0_344, %c0_345] : memref<16x16x8xf32, #tpu.memory_space<vmem>>, vector<1x16x8xf32>
    %320 = vector.shape_cast %319 : vector<1x16x8xf32> to vector<16x8xf32>
    %cst_346 = arith.constant dense<0.000000e+00> : vector<16x16xf32>
    %321 = tpu.matmul %320, %318, %cst_346 {dimension_numbers = #tpu.dot_dimension_numbers<[1], [0], [0], [1], [0, 0, 1, 1], [], []>} : vector<16x8xf32>, vector<8x16xf32>, vector<16x16xf32> -> vector<16x16xf32>
    %322 = arith.addf %315, %321 : vector<16x16xf32>
    %c11_347 = arith.constant 11 : index
    %c0_348 = arith.constant 0 : index
    %c0_349 = arith.constant 0 : index
    %323 = vector.load %arg11[%c11_347, %c0_348, %c0_349] : memref<16x64x16xf32, #tpu.memory_space<vmem>>, vector<1x64x16xf32>
    %324 = vector.shape_cast %323 : vector<1x64x16xf32> to vector<64x16xf32>
    %cst_350 = arith.constant dense<0.000000e+00> : vector<8x16xf32>
    %325 = tpu.matmul %246, %324, %cst_350 {dimension_numbers = #tpu.dot_dimension_numbers<[1], [0], [0], [1], [0, 0, 1, 1], [], []>} : vector<8x64xf32>, vector<64x16xf32>, vector<8x16xf32> -> vector<8x16xf32>
    %c11_351 = arith.constant 11 : index
    %c0_352 = arith.constant 0 : index
    %c0_353 = arith.constant 0 : index
    %326 = vector.load %arg12[%c11_351, %c0_352, %c0_353] : memref<16x16x8xf32, #tpu.memory_space<vmem>>, vector<1x16x8xf32>
    %327 = vector.shape_cast %326 : vector<1x16x8xf32> to vector<16x8xf32>
    %cst_354 = arith.constant dense<0.000000e+00> : vector<16x16xf32>
    %328 = tpu.matmul %327, %325, %cst_354 {dimension_numbers = #tpu.dot_dimension_numbers<[1], [0], [0], [1], [0, 0, 1, 1], [], []>} : vector<16x8xf32>, vector<8x16xf32>, vector<16x16xf32> -> vector<16x16xf32>
    %329 = arith.addf %322, %328 : vector<16x16xf32>
    %c12_355 = arith.constant 12 : index
    %c0_356 = arith.constant 0 : index
    %c0_357 = arith.constant 0 : index
    %330 = vector.load %arg11[%c12_355, %c0_356, %c0_357] : memref<16x64x16xf32, #tpu.memory_space<vmem>>, vector<1x64x16xf32>
    %331 = vector.shape_cast %330 : vector<1x64x16xf32> to vector<64x16xf32>
    %cst_358 = arith.constant dense<0.000000e+00> : vector<8x16xf32>
    %332 = tpu.matmul %246, %331, %cst_358 {dimension_numbers = #tpu.dot_dimension_numbers<[1], [0], [0], [1], [0, 0, 1, 1], [], []>} : vector<8x64xf32>, vector<64x16xf32>, vector<8x16xf32> -> vector<8x16xf32>
    %c12_359 = arith.constant 12 : index
    %c0_360 = arith.constant 0 : index
    %c0_361 = arith.constant 0 : index
    %333 = vector.load %arg12[%c12_359, %c0_360, %c0_361] : memref<16x16x8xf32, #tpu.memory_space<vmem>>, vector<1x16x8xf32>
    %334 = vector.shape_cast %333 : vector<1x16x8xf32> to vector<16x8xf32>
    %cst_362 = arith.constant dense<0.000000e+00> : vector<16x16xf32>
    %335 = tpu.matmul %334, %332, %cst_362 {dimension_numbers = #tpu.dot_dimension_numbers<[1], [0], [0], [1], [0, 0, 1, 1], [], []>} : vector<16x8xf32>, vector<8x16xf32>, vector<16x16xf32> -> vector<16x16xf32>
    %336 = arith.addf %329, %335 : vector<16x16xf32>
    %c13_363 = arith.constant 13 : index
    %c0_364 = arith.constant 0 : index
    %c0_365 = arith.constant 0 : index
    %337 = vector.load %arg11[%c13_363, %c0_364, %c0_365] : memref<16x64x16xf32, #tpu.memory_space<vmem>>, vector<1x64x16xf32>
    %338 = vector.shape_cast %337 : vector<1x64x16xf32> to vector<64x16xf32>
    %cst_366 = arith.constant dense<0.000000e+00> : vector<8x16xf32>
    %339 = tpu.matmul %246, %338, %cst_366 {dimension_numbers = #tpu.dot_dimension_numbers<[1], [0], [0], [1], [0, 0, 1, 1], [], []>} : vector<8x64xf32>, vector<64x16xf32>, vector<8x16xf32> -> vector<8x16xf32>
    %c13_367 = arith.constant 13 : index
    %c0_368 = arith.constant 0 : index
    %c0_369 = arith.constant 0 : index
    %340 = vector.load %arg12[%c13_367, %c0_368, %c0_369] : memref<16x16x8xf32, #tpu.memory_space<vmem>>, vector<1x16x8xf32>
    %341 = vector.shape_cast %340 : vector<1x16x8xf32> to vector<16x8xf32>
    %cst_370 = arith.constant dense<0.000000e+00> : vector<16x16xf32>
    %342 = tpu.matmul %341, %339, %cst_370 {dimension_numbers = #tpu.dot_dimension_numbers<[1], [0], [0], [1], [0, 0, 1, 1], [], []>} : vector<16x8xf32>, vector<8x16xf32>, vector<16x16xf32> -> vector<16x16xf32>
    %343 = arith.addf %336, %342 : vector<16x16xf32>
    %c14_371 = arith.constant 14 : index
    %c0_372 = arith.constant 0 : index
    %c0_373 = arith.constant 0 : index
    %344 = vector.load %arg11[%c14_371, %c0_372, %c0_373] : memref<16x64x16xf32, #tpu.memory_space<vmem>>, vector<1x64x16xf32>
    %345 = vector.shape_cast %344 : vector<1x64x16xf32> to vector<64x16xf32>
    %cst_374 = arith.constant dense<0.000000e+00> : vector<8x16xf32>
    %346 = tpu.matmul %246, %345, %cst_374 {dimension_numbers = #tpu.dot_dimension_numbers<[1], [0], [0], [1], [0, 0, 1, 1], [], []>} : vector<8x64xf32>, vector<64x16xf32>, vector<8x16xf32> -> vector<8x16xf32>
    %c14_375 = arith.constant 14 : index
    %c0_376 = arith.constant 0 : index
    %c0_377 = arith.constant 0 : index
    %347 = vector.load %arg12[%c14_375, %c0_376, %c0_377] : memref<16x16x8xf32, #tpu.memory_space<vmem>>, vector<1x16x8xf32>
    %348 = vector.shape_cast %347 : vector<1x16x8xf32> to vector<16x8xf32>
    %cst_378 = arith.constant dense<0.000000e+00> : vector<16x16xf32>
    %349 = tpu.matmul %348, %346, %cst_378 {dimension_numbers = #tpu.dot_dimension_numbers<[1], [0], [0], [1], [0, 0, 1, 1], [], []>} : vector<16x8xf32>, vector<8x16xf32>, vector<16x16xf32> -> vector<16x16xf32>
    %350 = arith.addf %343, %349 : vector<16x16xf32>
    %c15_379 = arith.constant 15 : index
    %c0_380 = arith.constant 0 : index
    %c0_381 = arith.constant 0 : index
    %351 = vector.load %arg11[%c15_379, %c0_380, %c0_381] : memref<16x64x16xf32, #tpu.memory_space<vmem>>, vector<1x64x16xf32>
    %352 = vector.shape_cast %351 : vector<1x64x16xf32> to vector<64x16xf32>
    %cst_382 = arith.constant dense<0.000000e+00> : vector<8x16xf32>
    %353 = tpu.matmul %246, %352, %cst_382 {dimension_numbers = #tpu.dot_dimension_numbers<[1], [0], [0], [1], [0, 0, 1, 1], [], []>} : vector<8x64xf32>, vector<64x16xf32>, vector<8x16xf32> -> vector<8x16xf32>
    %c15_383 = arith.constant 15 : index
    %c0_384 = arith.constant 0 : index
    %c0_385 = arith.constant 0 : index
    %354 = vector.load %arg12[%c15_383, %c0_384, %c0_385] : memref<16x16x8xf32, #tpu.memory_space<vmem>>, vector<1x16x8xf32>
    %355 = vector.shape_cast %354 : vector<1x16x8xf32> to vector<16x8xf32>
    %cst_386 = arith.constant dense<0.000000e+00> : vector<16x16xf32>
    %356 = tpu.matmul %355, %353, %cst_386 {dimension_numbers = #tpu.dot_dimension_numbers<[1], [0], [0], [1], [0, 0, 1, 1], [], []>} : vector<16x8xf32>, vector<8x16xf32>, vector<16x16xf32> -> vector<16x16xf32>
    %357 = arith.addf %350, %356 : vector<16x16xf32>
    %c0_387 = arith.constant 0 : index
    %c0_388 = arith.constant 0 : index
    %358 = vector.load %arg13[%c0_387, %c0_388] : memref<16x1xf32, #tpu.memory_space<vmem>>, vector<16x1xf32>
    %359 = vector.broadcast %358 : vector<16x1xf32> to vector<16x16xf32>
    %360 = arith.addf %357, %359 : vector<16x16xf32>
    %cst_389 = arith.constant 0.000000e+00 : f32
    %361 = vector.broadcast %cst_389 : f32 to vector<16x16xf32>
    %362 = arith.cmpf ogt, %360, %361 : vector<16x16xf32>
    %cst_390 = arith.constant 2.000000e-01 : f32
    %363 = vector.broadcast %cst_390 : f32 to vector<16x16xf32>
    %364 = arith.mulf %363, %360 : vector<16x16xf32>
    %365 = arith.select %362, %360, %364 : vector<16x16xi1>, vector<16x16xf32>
    %c0_391 = arith.constant 0 : index
    %c0_392 = arith.constant 0 : index
    %c0_393 = arith.constant 0 : index
    %366 = vector.load %arg14[%c0_391, %c0_392, %c0_393] : memref<16x16x4xf32, #tpu.memory_space<vmem>>, vector<1x16x4xf32>
    %367 = vector.shape_cast %366 : vector<1x16x4xf32> to vector<16x4xf32>
    %cst_394 = arith.constant dense<0.000000e+00> : vector<16x4xf32>
    %368 = tpu.matmul %365, %367, %cst_394 {dimension_numbers = #tpu.dot_dimension_numbers<[1], [0], [0], [1], [0, 0, 1, 1], [], []>} : vector<16x16xf32>, vector<16x4xf32>, vector<16x4xf32> -> vector<16x4xf32>
    %c0_395 = arith.constant 0 : index
    %c0_396 = arith.constant 0 : index
    %c0_397 = arith.constant 0 : index
    %369 = vector.load %arg15[%c0_395, %c0_396, %c0_397] : memref<16x32x16xf32, #tpu.memory_space<vmem>>, vector<1x32x16xf32>
    %370 = vector.shape_cast %369 : vector<1x32x16xf32> to vector<32x16xf32>
    %cst_398 = arith.constant dense<0.000000e+00> : vector<32x4xf32>
    %371 = tpu.matmul %370, %368, %cst_398 {dimension_numbers = #tpu.dot_dimension_numbers<[1], [0], [0], [1], [0, 0, 1, 1], [], []>} : vector<32x16xf32>, vector<16x4xf32>, vector<32x4xf32> -> vector<32x4xf32>
    %c1_399 = arith.constant 1 : index
    %c0_400 = arith.constant 0 : index
    %c0_401 = arith.constant 0 : index
    %372 = vector.load %arg14[%c1_399, %c0_400, %c0_401] : memref<16x16x4xf32, #tpu.memory_space<vmem>>, vector<1x16x4xf32>
    %373 = vector.shape_cast %372 : vector<1x16x4xf32> to vector<16x4xf32>
    %cst_402 = arith.constant dense<0.000000e+00> : vector<16x4xf32>
    %374 = tpu.matmul %365, %373, %cst_402 {dimension_numbers = #tpu.dot_dimension_numbers<[1], [0], [0], [1], [0, 0, 1, 1], [], []>} : vector<16x16xf32>, vector<16x4xf32>, vector<16x4xf32> -> vector<16x4xf32>
    %c1_403 = arith.constant 1 : index
    %c0_404 = arith.constant 0 : index
    %c0_405 = arith.constant 0 : index
    %375 = vector.load %arg15[%c1_403, %c0_404, %c0_405] : memref<16x32x16xf32, #tpu.memory_space<vmem>>, vector<1x32x16xf32>
    %376 = vector.shape_cast %375 : vector<1x32x16xf32> to vector<32x16xf32>
    %cst_406 = arith.constant dense<0.000000e+00> : vector<32x4xf32>
    %377 = tpu.matmul %376, %374, %cst_406 {dimension_numbers = #tpu.dot_dimension_numbers<[1], [0], [0], [1], [0, 0, 1, 1], [], []>} : vector<32x16xf32>, vector<16x4xf32>, vector<32x4xf32> -> vector<32x4xf32>
    %378 = arith.addf %371, %377 : vector<32x4xf32>
    %c2_407 = arith.constant 2 : index
    %c0_408 = arith.constant 0 : index
    %c0_409 = arith.constant 0 : index
    %379 = vector.load %arg14[%c2_407, %c0_408, %c0_409] : memref<16x16x4xf32, #tpu.memory_space<vmem>>, vector<1x16x4xf32>
    %380 = vector.shape_cast %379 : vector<1x16x4xf32> to vector<16x4xf32>
    %cst_410 = arith.constant dense<0.000000e+00> : vector<16x4xf32>
    %381 = tpu.matmul %365, %380, %cst_410 {dimension_numbers = #tpu.dot_dimension_numbers<[1], [0], [0], [1], [0, 0, 1, 1], [], []>} : vector<16x16xf32>, vector<16x4xf32>, vector<16x4xf32> -> vector<16x4xf32>
    %c2_411 = arith.constant 2 : index
    %c0_412 = arith.constant 0 : index
    %c0_413 = arith.constant 0 : index
    %382 = vector.load %arg15[%c2_411, %c0_412, %c0_413] : memref<16x32x16xf32, #tpu.memory_space<vmem>>, vector<1x32x16xf32>
    %383 = vector.shape_cast %382 : vector<1x32x16xf32> to vector<32x16xf32>
    %cst_414 = arith.constant dense<0.000000e+00> : vector<32x4xf32>
    %384 = tpu.matmul %383, %381, %cst_414 {dimension_numbers = #tpu.dot_dimension_numbers<[1], [0], [0], [1], [0, 0, 1, 1], [], []>} : vector<32x16xf32>, vector<16x4xf32>, vector<32x4xf32> -> vector<32x4xf32>
    %385 = arith.addf %378, %384 : vector<32x4xf32>
    %c3_415 = arith.constant 3 : index
    %c0_416 = arith.constant 0 : index
    %c0_417 = arith.constant 0 : index
    %386 = vector.load %arg14[%c3_415, %c0_416, %c0_417] : memref<16x16x4xf32, #tpu.memory_space<vmem>>, vector<1x16x4xf32>
    %387 = vector.shape_cast %386 : vector<1x16x4xf32> to vector<16x4xf32>
    %cst_418 = arith.constant dense<0.000000e+00> : vector<16x4xf32>
    %388 = tpu.matmul %365, %387, %cst_418 {dimension_numbers = #tpu.dot_dimension_numbers<[1], [0], [0], [1], [0, 0, 1, 1], [], []>} : vector<16x16xf32>, vector<16x4xf32>, vector<16x4xf32> -> vector<16x4xf32>
    %c3_419 = arith.constant 3 : index
    %c0_420 = arith.constant 0 : index
    %c0_421 = arith.constant 0 : index
    %389 = vector.load %arg15[%c3_419, %c0_420, %c0_421] : memref<16x32x16xf32, #tpu.memory_space<vmem>>, vector<1x32x16xf32>
    %390 = vector.shape_cast %389 : vector<1x32x16xf32> to vector<32x16xf32>
    %cst_422 = arith.constant dense<0.000000e+00> : vector<32x4xf32>
    %391 = tpu.matmul %390, %388, %cst_422 {dimension_numbers = #tpu.dot_dimension_numbers<[1], [0], [0], [1], [0, 0, 1, 1], [], []>} : vector<32x16xf32>, vector<16x4xf32>, vector<32x4xf32> -> vector<32x4xf32>
    %392 = arith.addf %385, %391 : vector<32x4xf32>
    %c4_423 = arith.constant 4 : index
    %c0_424 = arith.constant 0 : index
    %c0_425 = arith.constant 0 : index
    %393 = vector.load %arg14[%c4_423, %c0_424, %c0_425] : memref<16x16x4xf32, #tpu.memory_space<vmem>>, vector<1x16x4xf32>
    %394 = vector.shape_cast %393 : vector<1x16x4xf32> to vector<16x4xf32>
    %cst_426 = arith.constant dense<0.000000e+00> : vector<16x4xf32>
    %395 = tpu.matmul %365, %394, %cst_426 {dimension_numbers = #tpu.dot_dimension_numbers<[1], [0], [0], [1], [0, 0, 1, 1], [], []>} : vector<16x16xf32>, vector<16x4xf32>, vector<16x4xf32> -> vector<16x4xf32>
    %c4_427 = arith.constant 4 : index
    %c0_428 = arith.constant 0 : index
    %c0_429 = arith.constant 0 : index
    %396 = vector.load %arg15[%c4_427, %c0_428, %c0_429] : memref<16x32x16xf32, #tpu.memory_space<vmem>>, vector<1x32x16xf32>
    %397 = vector.shape_cast %396 : vector<1x32x16xf32> to vector<32x16xf32>
    %cst_430 = arith.constant dense<0.000000e+00> : vector<32x4xf32>
    %398 = tpu.matmul %397, %395, %cst_430 {dimension_numbers = #tpu.dot_dimension_numbers<[1], [0], [0], [1], [0, 0, 1, 1], [], []>} : vector<32x16xf32>, vector<16x4xf32>, vector<32x4xf32> -> vector<32x4xf32>
    %399 = arith.addf %392, %398 : vector<32x4xf32>
    %c5_431 = arith.constant 5 : index
    %c0_432 = arith.constant 0 : index
    %c0_433 = arith.constant 0 : index
    %400 = vector.load %arg14[%c5_431, %c0_432, %c0_433] : memref<16x16x4xf32, #tpu.memory_space<vmem>>, vector<1x16x4xf32>
    %401 = vector.shape_cast %400 : vector<1x16x4xf32> to vector<16x4xf32>
    %cst_434 = arith.constant dense<0.000000e+00> : vector<16x4xf32>
    %402 = tpu.matmul %365, %401, %cst_434 {dimension_numbers = #tpu.dot_dimension_numbers<[1], [0], [0], [1], [0, 0, 1, 1], [], []>} : vector<16x16xf32>, vector<16x4xf32>, vector<16x4xf32> -> vector<16x4xf32>
    %c5_435 = arith.constant 5 : index
    %c0_436 = arith.constant 0 : index
    %c0_437 = arith.constant 0 : index
    %403 = vector.load %arg15[%c5_435, %c0_436, %c0_437] : memref<16x32x16xf32, #tpu.memory_space<vmem>>, vector<1x32x16xf32>
    %404 = vector.shape_cast %403 : vector<1x32x16xf32> to vector<32x16xf32>
    %cst_438 = arith.constant dense<0.000000e+00> : vector<32x4xf32>
    %405 = tpu.matmul %404, %402, %cst_438 {dimension_numbers = #tpu.dot_dimension_numbers<[1], [0], [0], [1], [0, 0, 1, 1], [], []>} : vector<32x16xf32>, vector<16x4xf32>, vector<32x4xf32> -> vector<32x4xf32>
    %406 = arith.addf %399, %405 : vector<32x4xf32>
    %c6_439 = arith.constant 6 : index
    %c0_440 = arith.constant 0 : index
    %c0_441 = arith.constant 0 : index
    %407 = vector.load %arg14[%c6_439, %c0_440, %c0_441] : memref<16x16x4xf32, #tpu.memory_space<vmem>>, vector<1x16x4xf32>
    %408 = vector.shape_cast %407 : vector<1x16x4xf32> to vector<16x4xf32>
    %cst_442 = arith.constant dense<0.000000e+00> : vector<16x4xf32>
    %409 = tpu.matmul %365, %408, %cst_442 {dimension_numbers = #tpu.dot_dimension_numbers<[1], [0], [0], [1], [0, 0, 1, 1], [], []>} : vector<16x16xf32>, vector<16x4xf32>, vector<16x4xf32> -> vector<16x4xf32>
    %c6_443 = arith.constant 6 : index
    %c0_444 = arith.constant 0 : index
    %c0_445 = arith.constant 0 : index
    %410 = vector.load %arg15[%c6_443, %c0_444, %c0_445] : memref<16x32x16xf32, #tpu.memory_space<vmem>>, vector<1x32x16xf32>
    %411 = vector.shape_cast %410 : vector<1x32x16xf32> to vector<32x16xf32>
    %cst_446 = arith.constant dense<0.000000e+00> : vector<32x4xf32>
    %412 = tpu.matmul %411, %409, %cst_446 {dimension_numbers = #tpu.dot_dimension_numbers<[1], [0], [0], [1], [0, 0, 1, 1], [], []>} : vector<32x16xf32>, vector<16x4xf32>, vector<32x4xf32> -> vector<32x4xf32>
    %413 = arith.addf %406, %412 : vector<32x4xf32>
    %c7_447 = arith.constant 7 : index
    %c0_448 = arith.constant 0 : index
    %c0_449 = arith.constant 0 : index
    %414 = vector.load %arg14[%c7_447, %c0_448, %c0_449] : memref<16x16x4xf32, #tpu.memory_space<vmem>>, vector<1x16x4xf32>
    %415 = vector.shape_cast %414 : vector<1x16x4xf32> to vector<16x4xf32>
    %cst_450 = arith.constant dense<0.000000e+00> : vector<16x4xf32>
    %416 = tpu.matmul %365, %415, %cst_450 {dimension_numbers = #tpu.dot_dimension_numbers<[1], [0], [0], [1], [0, 0, 1, 1], [], []>} : vector<16x16xf32>, vector<16x4xf32>, vector<16x4xf32> -> vector<16x4xf32>
    %c7_451 = arith.constant 7 : index
    %c0_452 = arith.constant 0 : index
    %c0_453 = arith.constant 0 : index
    %417 = vector.load %arg15[%c7_451, %c0_452, %c0_453] : memref<16x32x16xf32, #tpu.memory_space<vmem>>, vector<1x32x16xf32>
    %418 = vector.shape_cast %417 : vector<1x32x16xf32> to vector<32x16xf32>
    %cst_454 = arith.constant dense<0.000000e+00> : vector<32x4xf32>
    %419 = tpu.matmul %418, %416, %cst_454 {dimension_numbers = #tpu.dot_dimension_numbers<[1], [0], [0], [1], [0, 0, 1, 1], [], []>} : vector<32x16xf32>, vector<16x4xf32>, vector<32x4xf32> -> vector<32x4xf32>
    %420 = arith.addf %413, %419 : vector<32x4xf32>
    %c8_455 = arith.constant 8 : index
    %c0_456 = arith.constant 0 : index
    %c0_457 = arith.constant 0 : index
    %421 = vector.load %arg14[%c8_455, %c0_456, %c0_457] : memref<16x16x4xf32, #tpu.memory_space<vmem>>, vector<1x16x4xf32>
    %422 = vector.shape_cast %421 : vector<1x16x4xf32> to vector<16x4xf32>
    %cst_458 = arith.constant dense<0.000000e+00> : vector<16x4xf32>
    %423 = tpu.matmul %365, %422, %cst_458 {dimension_numbers = #tpu.dot_dimension_numbers<[1], [0], [0], [1], [0, 0, 1, 1], [], []>} : vector<16x16xf32>, vector<16x4xf32>, vector<16x4xf32> -> vector<16x4xf32>
    %c8_459 = arith.constant 8 : index
    %c0_460 = arith.constant 0 : index
    %c0_461 = arith.constant 0 : index
    %424 = vector.load %arg15[%c8_459, %c0_460, %c0_461] : memref<16x32x16xf32, #tpu.memory_space<vmem>>, vector<1x32x16xf32>
    %425 = vector.shape_cast %424 : vector<1x32x16xf32> to vector<32x16xf32>
    %cst_462 = arith.constant dense<0.000000e+00> : vector<32x4xf32>
    %426 = tpu.matmul %425, %423, %cst_462 {dimension_numbers = #tpu.dot_dimension_numbers<[1], [0], [0], [1], [0, 0, 1, 1], [], []>} : vector<32x16xf32>, vector<16x4xf32>, vector<32x4xf32> -> vector<32x4xf32>
    %427 = arith.addf %420, %426 : vector<32x4xf32>
    %c9_463 = arith.constant 9 : index
    %c0_464 = arith.constant 0 : index
    %c0_465 = arith.constant 0 : index
    %428 = vector.load %arg14[%c9_463, %c0_464, %c0_465] : memref<16x16x4xf32, #tpu.memory_space<vmem>>, vector<1x16x4xf32>
    %429 = vector.shape_cast %428 : vector<1x16x4xf32> to vector<16x4xf32>
    %cst_466 = arith.constant dense<0.000000e+00> : vector<16x4xf32>
    %430 = tpu.matmul %365, %429, %cst_466 {dimension_numbers = #tpu.dot_dimension_numbers<[1], [0], [0], [1], [0, 0, 1, 1], [], []>} : vector<16x16xf32>, vector<16x4xf32>, vector<16x4xf32> -> vector<16x4xf32>
    %c9_467 = arith.constant 9 : index
    %c0_468 = arith.constant 0 : index
    %c0_469 = arith.constant 0 : index
    %431 = vector.load %arg15[%c9_467, %c0_468, %c0_469] : memref<16x32x16xf32, #tpu.memory_space<vmem>>, vector<1x32x16xf32>
    %432 = vector.shape_cast %431 : vector<1x32x16xf32> to vector<32x16xf32>
    %cst_470 = arith.constant dense<0.000000e+00> : vector<32x4xf32>
    %433 = tpu.matmul %432, %430, %cst_470 {dimension_numbers = #tpu.dot_dimension_numbers<[1], [0], [0], [1], [0, 0, 1, 1], [], []>} : vector<32x16xf32>, vector<16x4xf32>, vector<32x4xf32> -> vector<32x4xf32>
    %434 = arith.addf %427, %433 : vector<32x4xf32>
    %c10_471 = arith.constant 10 : index
    %c0_472 = arith.constant 0 : index
    %c0_473 = arith.constant 0 : index
    %435 = vector.load %arg14[%c10_471, %c0_472, %c0_473] : memref<16x16x4xf32, #tpu.memory_space<vmem>>, vector<1x16x4xf32>
    %436 = vector.shape_cast %435 : vector<1x16x4xf32> to vector<16x4xf32>
    %cst_474 = arith.constant dense<0.000000e+00> : vector<16x4xf32>
    %437 = tpu.matmul %365, %436, %cst_474 {dimension_numbers = #tpu.dot_dimension_numbers<[1], [0], [0], [1], [0, 0, 1, 1], [], []>} : vector<16x16xf32>, vector<16x4xf32>, vector<16x4xf32> -> vector<16x4xf32>
    %c10_475 = arith.constant 10 : index
    %c0_476 = arith.constant 0 : index
    %c0_477 = arith.constant 0 : index
    %438 = vector.load %arg15[%c10_475, %c0_476, %c0_477] : memref<16x32x16xf32, #tpu.memory_space<vmem>>, vector<1x32x16xf32>
    %439 = vector.shape_cast %438 : vector<1x32x16xf32> to vector<32x16xf32>
    %cst_478 = arith.constant dense<0.000000e+00> : vector<32x4xf32>
    %440 = tpu.matmul %439, %437, %cst_478 {dimension_numbers = #tpu.dot_dimension_numbers<[1], [0], [0], [1], [0, 0, 1, 1], [], []>} : vector<32x16xf32>, vector<16x4xf32>, vector<32x4xf32> -> vector<32x4xf32>
    %441 = arith.addf %434, %440 : vector<32x4xf32>
    %c11_479 = arith.constant 11 : index
    %c0_480 = arith.constant 0 : index
    %c0_481 = arith.constant 0 : index
    %442 = vector.load %arg14[%c11_479, %c0_480, %c0_481] : memref<16x16x4xf32, #tpu.memory_space<vmem>>, vector<1x16x4xf32>
    %443 = vector.shape_cast %442 : vector<1x16x4xf32> to vector<16x4xf32>
    %cst_482 = arith.constant dense<0.000000e+00> : vector<16x4xf32>
    %444 = tpu.matmul %365, %443, %cst_482 {dimension_numbers = #tpu.dot_dimension_numbers<[1], [0], [0], [1], [0, 0, 1, 1], [], []>} : vector<16x16xf32>, vector<16x4xf32>, vector<16x4xf32> -> vector<16x4xf32>
    %c11_483 = arith.constant 11 : index
    %c0_484 = arith.constant 0 : index
    %c0_485 = arith.constant 0 : index
    %445 = vector.load %arg15[%c11_483, %c0_484, %c0_485] : memref<16x32x16xf32, #tpu.memory_space<vmem>>, vector<1x32x16xf32>
    %446 = vector.shape_cast %445 : vector<1x32x16xf32> to vector<32x16xf32>
    %cst_486 = arith.constant dense<0.000000e+00> : vector<32x4xf32>
    %447 = tpu.matmul %446, %444, %cst_486 {dimension_numbers = #tpu.dot_dimension_numbers<[1], [0], [0], [1], [0, 0, 1, 1], [], []>} : vector<32x16xf32>, vector<16x4xf32>, vector<32x4xf32> -> vector<32x4xf32>
    %448 = arith.addf %441, %447 : vector<32x4xf32>
    %c12_487 = arith.constant 12 : index
    %c0_488 = arith.constant 0 : index
    %c0_489 = arith.constant 0 : index
    %449 = vector.load %arg14[%c12_487, %c0_488, %c0_489] : memref<16x16x4xf32, #tpu.memory_space<vmem>>, vector<1x16x4xf32>
    %450 = vector.shape_cast %449 : vector<1x16x4xf32> to vector<16x4xf32>
    %cst_490 = arith.constant dense<0.000000e+00> : vector<16x4xf32>
    %451 = tpu.matmul %365, %450, %cst_490 {dimension_numbers = #tpu.dot_dimension_numbers<[1], [0], [0], [1], [0, 0, 1, 1], [], []>} : vector<16x16xf32>, vector<16x4xf32>, vector<16x4xf32> -> vector<16x4xf32>
    %c12_491 = arith.constant 12 : index
    %c0_492 = arith.constant 0 : index
    %c0_493 = arith.constant 0 : index
    %452 = vector.load %arg15[%c12_491, %c0_492, %c0_493] : memref<16x32x16xf32, #tpu.memory_space<vmem>>, vector<1x32x16xf32>
    %453 = vector.shape_cast %452 : vector<1x32x16xf32> to vector<32x16xf32>
    %cst_494 = arith.constant dense<0.000000e+00> : vector<32x4xf32>
    %454 = tpu.matmul %453, %451, %cst_494 {dimension_numbers = #tpu.dot_dimension_numbers<[1], [0], [0], [1], [0, 0, 1, 1], [], []>} : vector<32x16xf32>, vector<16x4xf32>, vector<32x4xf32> -> vector<32x4xf32>
    %455 = arith.addf %448, %454 : vector<32x4xf32>
    %c13_495 = arith.constant 13 : index
    %c0_496 = arith.constant 0 : index
    %c0_497 = arith.constant 0 : index
    %456 = vector.load %arg14[%c13_495, %c0_496, %c0_497] : memref<16x16x4xf32, #tpu.memory_space<vmem>>, vector<1x16x4xf32>
    %457 = vector.shape_cast %456 : vector<1x16x4xf32> to vector<16x4xf32>
    %cst_498 = arith.constant dense<0.000000e+00> : vector<16x4xf32>
    %458 = tpu.matmul %365, %457, %cst_498 {dimension_numbers = #tpu.dot_dimension_numbers<[1], [0], [0], [1], [0, 0, 1, 1], [], []>} : vector<16x16xf32>, vector<16x4xf32>, vector<16x4xf32> -> vector<16x4xf32>
    %c13_499 = arith.constant 13 : index
    %c0_500 = arith.constant 0 : index
    %c0_501 = arith.constant 0 : index
    %459 = vector.load %arg15[%c13_499, %c0_500, %c0_501] : memref<16x32x16xf32, #tpu.memory_space<vmem>>, vector<1x32x16xf32>
    %460 = vector.shape_cast %459 : vector<1x32x16xf32> to vector<32x16xf32>
    %cst_502 = arith.constant dense<0.000000e+00> : vector<32x4xf32>
    %461 = tpu.matmul %460, %458, %cst_502 {dimension_numbers = #tpu.dot_dimension_numbers<[1], [0], [0], [1], [0, 0, 1, 1], [], []>} : vector<32x16xf32>, vector<16x4xf32>, vector<32x4xf32> -> vector<32x4xf32>
    %462 = arith.addf %455, %461 : vector<32x4xf32>
    %c14_503 = arith.constant 14 : index
    %c0_504 = arith.constant 0 : index
    %c0_505 = arith.constant 0 : index
    %463 = vector.load %arg14[%c14_503, %c0_504, %c0_505] : memref<16x16x4xf32, #tpu.memory_space<vmem>>, vector<1x16x4xf32>
    %464 = vector.shape_cast %463 : vector<1x16x4xf32> to vector<16x4xf32>
    %cst_506 = arith.constant dense<0.000000e+00> : vector<16x4xf32>
    %465 = tpu.matmul %365, %464, %cst_506 {dimension_numbers = #tpu.dot_dimension_numbers<[1], [0], [0], [1], [0, 0, 1, 1], [], []>} : vector<16x16xf32>, vector<16x4xf32>, vector<16x4xf32> -> vector<16x4xf32>
    %c14_507 = arith.constant 14 : index
    %c0_508 = arith.constant 0 : index
    %c0_509 = arith.constant 0 : index
    %466 = vector.load %arg15[%c14_507, %c0_508, %c0_509] : memref<16x32x16xf32, #tpu.memory_space<vmem>>, vector<1x32x16xf32>
    %467 = vector.shape_cast %466 : vector<1x32x16xf32> to vector<32x16xf32>
    %cst_510 = arith.constant dense<0.000000e+00> : vector<32x4xf32>
    %468 = tpu.matmul %467, %465, %cst_510 {dimension_numbers = #tpu.dot_dimension_numbers<[1], [0], [0], [1], [0, 0, 1, 1], [], []>} : vector<32x16xf32>, vector<16x4xf32>, vector<32x4xf32> -> vector<32x4xf32>
    %469 = arith.addf %462, %468 : vector<32x4xf32>
    %c15_511 = arith.constant 15 : index
    %c0_512 = arith.constant 0 : index
    %c0_513 = arith.constant 0 : index
    %470 = vector.load %arg14[%c15_511, %c0_512, %c0_513] : memref<16x16x4xf32, #tpu.memory_space<vmem>>, vector<1x16x4xf32>
    %471 = vector.shape_cast %470 : vector<1x16x4xf32> to vector<16x4xf32>
    %cst_514 = arith.constant dense<0.000000e+00> : vector<16x4xf32>
    %472 = tpu.matmul %365, %471, %cst_514 {dimension_numbers = #tpu.dot_dimension_numbers<[1], [0], [0], [1], [0, 0, 1, 1], [], []>} : vector<16x16xf32>, vector<16x4xf32>, vector<16x4xf32> -> vector<16x4xf32>
    %c15_515 = arith.constant 15 : index
    %c0_516 = arith.constant 0 : index
    %c0_517 = arith.constant 0 : index
    %473 = vector.load %arg15[%c15_515, %c0_516, %c0_517] : memref<16x32x16xf32, #tpu.memory_space<vmem>>, vector<1x32x16xf32>
    %474 = vector.shape_cast %473 : vector<1x32x16xf32> to vector<32x16xf32>
    %cst_518 = arith.constant dense<0.000000e+00> : vector<32x4xf32>
    %475 = tpu.matmul %474, %472, %cst_518 {dimension_numbers = #tpu.dot_dimension_numbers<[1], [0], [0], [1], [0, 0, 1, 1], [], []>} : vector<32x16xf32>, vector<16x4xf32>, vector<32x4xf32> -> vector<32x4xf32>
    %476 = arith.addf %469, %475 : vector<32x4xf32>
    %c0_519 = arith.constant 0 : index
    %c0_520 = arith.constant 0 : index
    %477 = vector.load %arg16[%c0_519, %c0_520] : memref<32x1xf32, #tpu.memory_space<vmem>>, vector<32x1xf32>
    %478 = vector.broadcast %477 : vector<32x1xf32> to vector<32x4xf32>
    %479 = arith.addf %476, %478 : vector<32x4xf32>
    %cst_521 = arith.constant 0.000000e+00 : f32
    %480 = vector.broadcast %cst_521 : f32 to vector<32x4xf32>
    %481 = arith.cmpf ogt, %479, %480 : vector<32x4xf32>
    %cst_522 = arith.constant 2.000000e-01 : f32
    %482 = vector.broadcast %cst_522 : f32 to vector<32x4xf32>
    %483 = arith.mulf %482, %479 : vector<32x4xf32>
    %484 = arith.select %481, %479, %483 : vector<32x4xi1>, vector<32x4xf32>
    %c0_523 = arith.constant 0 : index
    %c0_524 = arith.constant 0 : index
    %485 = vector.load %arg17[%c0_523, %c0_524] : memref<2x32xf32, #tpu.memory_space<vmem>>, vector<2x32xf32>
    %cst_525 = arith.constant dense<0.000000e+00> : vector<2x4xf32>
    %486 = tpu.matmul %485, %484, %cst_525 {dimension_numbers = #tpu.dot_dimension_numbers<[1], [0], [0], [1], [0, 0, 1, 1], [], []>} : vector<2x32xf32>, vector<32x4xf32>, vector<2x4xf32> -> vector<2x4xf32>
    %c0_526 = arith.constant 0 : index
    %c0_527 = arith.constant 0 : index
    %487 = vector.load %arg18[%c0_526, %c0_527] : memref<2x1xf32, #tpu.memory_space<vmem>>, vector<2x1xf32>
    %488 = vector.broadcast %487 : vector<2x1xf32> to vector<2x4xf32>
    %489 = arith.addf %486, %488 : vector<2x4xf32>
    %c0_528 = arith.constant 0 : index
    %c0_529 = arith.constant 0 : index
    %490 = vector.load %arg20[%c0_528, %c0_529] : memref<2x4xf32, #tpu.memory_space<vmem>>, vector<2x4xf32>
    tpu.vector_store %arg20[%c0_528, %c0_529], %489 {strides = array<i32>} : memref<2x4xf32, #tpu.memory_space<vmem>>, vector<2x4xf32>,
    return
  }
  func.func @transform_0(%arg0: i32) -> (i32, i32) {
    %c0_i32 = arith.constant 0 : i32
    %c0_i32_0 = arith.constant 0 : i32
    %c0_i32_1 = arith.constant 0 : i32
    return %c0_i32, %c0_i32_0 : i32, i32
  }
  func.func @transform_1(%arg0: i32) -> (i32, i32, i32) {
    %c0_i32 = arith.constant 0 : i32
    %c0_i32_0 = arith.constant 0 : i32
    %c0_i32_1 = arith.constant 0 : i32
    %c0_i32_2 = arith.constant 0 : i32
    return %c0_i32, %c0_i32_0, %c0_i32_1 : i32, i32, i32
  }
  func.func @transform_2(%arg0: i32) -> (i32, i32, i32) {
    %c0_i32 = arith.constant 0 : i32
    %c0_i32_0 = arith.constant 0 : i32
    %c0_i32_1 = arith.constant 0 : i32
    %c0_i32_2 = arith.constant 0 : i32
    return %c0_i32, %c0_i32_0, %c0_i32_1 : i32, i32, i32
  }
  func.func @transform_3(%arg0: i32) -> (i32, i32) {
    %c0_i32 = arith.constant 0 : i32
    %c0_i32_0 = arith.constant 0 : i32
    %c0_i32_1 = arith.constant 0 : i32
    return %c0_i32, %c0_i32_0 : i32, i32
  }
  func.func @transform_4(%arg0: i32) -> (i32, i32, i32) {
    %c0_i32 = arith.constant 0 : i32
    %c0_i32_0 = arith.constant 0 : i32
    %c0_i32_1 = arith.constant 0 : i32
    %c0_i32_2 = arith.constant 0 : i32
    return %c0_i32, %c0_i32_0, %c0_i32_1 : i32, i32, i32
  }
  func.func @transform_5(%arg0: i32) -> (i32, i32, i32) {
    %c0_i32 = arith.constant 0 : i32
    %c0_i32_0 = arith.constant 0 : i32
    %c0_i32_1 = arith.constant 0 : i32
    %c0_i32_2 = arith.constant 0 : i32
    return %c0_i32, %c0_i32_0, %c0_i32_1 : i32, i32, i32
  }
  func.func @transform_6(%arg0: i32) -> (i32, i32) {
    %c0_i32 = arith.constant 0 : i32
    %c0_i32_0 = arith.constant 0 : i32
    %c0_i32_1 = arith.constant 0 : i32
    return %c0_i32, %c0_i32_0 : i32, i32
  }
  func.func @transform_7(%arg0: i32) -> (i32, i32) {
    %c0_i32 = arith.constant 0 : i32
    %c0_i32_0 = arith.constant 0 : i32
    %c0_i32_1 = arith.constant 0 : i32
    return %c0_i32, %c0_i32_0 : i32, i32
  }
  func.func @transform_8(%arg0: i32) -> (i32, i32) {
    %c0_i32 = arith.constant 0 : i32
    %c0_i32_0 = arith.constant 0 : i32
    %c0_i32_1 = arith.constant 0 : i32
    return %c0_i32, %c0_i32_0 : i32, i32
  }
  func.func @transform_9(%arg0: i32) -> (i32, i32) {
    %c0_i32 = arith.constant 0 : i32
    %c0_i32_0 = arith.constant 0 : i32
    %c0_i32_1 = arith.constant 0 : i32
    return %c0_i32, %c0_i32_0 : i32, i32
  }
  func.func @transform_10(%arg0: i32) -> (i32, i32, i32) {
    %c0_i32 = arith.constant 0 : i32
    %c0_i32_0 = arith.constant 0 : i32
    %c0_i32_1 = arith.constant 0 : i32
    %c0_i32_2 = arith.constant 0 : i32
    return %c0_i32, %c0_i32_0, %c0_i32_1 : i32, i32, i32
  }
  func.func @transform_11(%arg0: i32) -> (i32, i32, i32) {
    %c0_i32 = arith.constant 0 : i32
    %c0_i32_0 = arith.constant 0 : i32
    %c0_i32_1 = arith.constant 0 : i32
    %c0_i32_2 = arith.constant 0 : i32
    return %c0_i32, %c0_i32_0, %c0_i32_1 : i32, i32, i32
  }
  func.func @transform_12(%arg0: i32) -> (i32, i32) {
    %c0_i32 = arith.constant 0 : i32
    %c0_i32_0 = arith.constant 0 : i32
    %c0_i32_1 = arith.constant 0 : i32
    return %c0_i32, %c0_i32_0 : i32, i32
  }
  func.func @transform_13(%arg0: i32) -> (i32, i32, i32) {
    %c0_i32 = arith.constant 0 : i32
    %c0_i32_0 = arith.constant 0 : i32
    %c0_i32_1 = arith.constant 0 : i32
    %c0_i32_2 = arith.constant 0 : i32
    return %c0_i32, %c0_i32_0, %c0_i32_1 : i32, i32, i32
  }
  func.func @transform_14(%arg0: i32) -> (i32, i32, i32) {
    %c0_i32 = arith.constant 0 : i32
    %c0_i32_0 = arith.constant 0 : i32
    %c0_i32_1 = arith.constant 0 : i32
    %c0_i32_2 = arith.constant 0 : i32
    return %c0_i32, %c0_i32_0, %c0_i32_1 : i32, i32, i32
  }
  func.func @transform_15(%arg0: i32) -> (i32, i32) {
    %c0_i32 = arith.constant 0 : i32
    %c0_i32_0 = arith.constant 0 : i32
    %c0_i32_1 = arith.constant 0 : i32
    return %c0_i32, %c0_i32_0 : i32, i32
  }
  func.func @transform_16(%arg0: i32) -> (i32, i32) {
    %c0_i32 = arith.constant 0 : i32
    %c0_i32_0 = arith.constant 0 : i32
    %c0_i32_1 = arith.constant 0 : i32
    return %c0_i32, %c0_i32_0 : i32, i32
  }
  func.func @transform_17(%arg0: i32) -> (i32, i32) {
    %c0_i32 = arith.constant 0 : i32
    %c0_i32_0 = arith.constant 0 : i32
    %c0_i32_1 = arith.constant 0 : i32
    return %c0_i32, %c0_i32_0 : i32, i32
  }
  func.func @transform_18(%arg0: i32) -> (i32, i32) {
    %c0_i32 = arith.constant 0 : i32
    %c0_i32_0 = arith.constant 0 : i32
    %c0_i32_1 = arith.constant 0 : i32
    return %c0_i32, %c0_i32_0 : i32, i32
  }
  func.func @transform_19(%arg0: i32) -> (i32, i32) {
    %c0_i32 = arith.constant 0 : i32
    %c0_i32_0 = arith.constant 0 : i32
    %c0_i32_1 = arith.constant 0 : i32
    return %c0_i32, %c0_i32_0 : i32, i32
  }
}

</mosaic_0001>

<bundles_post_ra>
// kernel: forward.1
= control target key start
LH: loop header
LB: loop body
LE: loop exit
PB: predicated region body
PF: predicated region fallthrough
CT: control target
= control target key end

     0   :  { %s17860_s0 = inlined_call_operand.vmem [shape: f32[8,256], index: 0, kind: input, shape index: {}]   ;;  %s17861_s1 = inlined_call_operand.hbm [shape: f32[16,256,64], index: 1, kind: input, shape index: {}]   ;;  %s17862_s2 = inlined_call_operand.hbm [shape: f32[16,16,8], index: 2, kind: input, shape index: {}]   ;;  %s17863_s3 = inlined_call_operand.hbm [shape: f32[16,1], index: 3, kind: input, shape index: {}]   ;;  %s17864_s4 = inlined_call_operand.hbm [shape: f32[16,64,16], index: 4, kind: input, shape index: {}, may-alias: {4,10}]   ;;  %s17865_s5 = inlined_call_operand.hbm [shape: f32[16,32,16], index: 5, kind: input, shape index: {}]   ;;  %s17866_s6 = inlined_call_operand.hbm [shape: f32[32,1], index: 6, kind: input, shape index: {}]   ;;  %s17867_s7 = inlined_call_operand.hbm [shape: f32[2,32], index: 7, kind: input, shape index: {}]   ;;  %s17868_s8 = inlined_call_operand.vmem [shape: f32[2,1], index: 8, kind: input, shape index: {}]   ;;  %s17869_s9 = inlined_call_operand.hbm [shape: f32[256,64], index: 9, kind: input, shape index: {}]   ;;  %s17870_s10 = inlined_call_operand.hbm [shape: f32[16,64,16], index: 10, kind: input, shape index: {}, may-alias: {4,10}]   ;;  %s17871_s11 = inlined_call_operand.hbm [shape: f32[16,16,8], index: 11, kind: input, shape index: {}]   ;;  %s17872_s12 = inlined_call_operand.hbm [shape: f32[16,1], index: 12, kind: input, shape index: {}]   ;;  %s17873_s13 = inlined_call_operand.hbm [shape: f32[16,16,4], index: 13, kind: input, shape index: {}]   ;;  %s17874_s14 = inlined_call_operand.hbm [shape: f32[16,32,16], index: 14, kind: input, shape index: {}]   ;;  %s17875_s15 = inlined_call_operand.hbm [shape: f32[32,1], index: 15, kind: input, shape index: {}]   ;;  %s17876_s16 = inlined_call_operand.hbm [shape: f32[2,32], index: 16, kind: input, shape index: {}]   ;;  %s17877_s17 = inlined_call_operand.vmem [shape: f32[2,1], index: 17, kind: input, shape index: {}]   ;;  %s17878_s18 = inlined_call_operand.vmem [shape: f32[2,16], index: 18, kind: output, shape index: {0}]   ;;  %s17879_s19 = inlined_call_operand.vmem [shape: f32[2,4], index: 19, kind: output, shape index: {1}]  }
   0x1   :  { %17884 = sst [smem:[#allocation33_spill]] %s17860_s0 }
   0x2   :  { %17885 = sst [smem:[#allocation34_spill]] %s17861_s1 }
   0x3   :  { %17886 = sst [smem:[#allocation35_spill]] %s17862_s2 }
   0x4   :  { %17887 = sst [smem:[#allocation36_spill]] %s17863_s3 }
   0x5   :  { %17888 = sst [smem:[#allocation37_spill]] %s17879_s19 }
   0x6   :  { %25 = vsyncpa [#allocation3], 0 }
   0x7   :  { %26 = vsyncpa [#allocation5], 0 }
   0x8   :  { %27 = vsyncpa [#allocation8], 0 }
   0x9   :  { %28 = vsyncpa [#allocation11], 0 }
   0xa   :  { %29 = vsyncpa [#allocation14], 0 }
   0xb   :  { %30 = vsyncpa [#allocation17], 0 }
   0xc   :  { %31 = vsyncpa [#allocation20], 0 }
   0xd   :  { %32 = vsyncpa [#allocation23], 0  ;;  %s16807_s0 = smov [#allocation4]   ;;  %s16808_s20 = smov [#allocation7]  }
   0xe   :  { %s52_s30 = sshll.u32 %s16807_s0, 4  ;;  %s76_s21 = sshll.u32 %s16808_s20, 4  ;;  %s53_s30 = int_to_ptr.vmem [resolvable:$true] %s52_s30  ;;  %s16928_s21 = int_to_ptr.vmem [resolvable:$true] %s76_s21 }
   0xf   :  { %s17889_s2 = sld [smem:[#allocation35_spill]] }
  0x15   :  { %s16461_s23 = scalar_lea.hbm %s17889_s2, 4096 }
  0x16   :  { %p16462_p0 = scmp.ne.s32.totalorder %s17889_s2, %s16461_s23  ;;  %p16465_p1 = scmp.lt.u32.totalorder %s16461_s23, %s17889_s2 }
  0x18   :  { %p16467_p2 = pnand %p16465_p1, %p16462_p0 }
  0x1a   :  { %16470 = shalt.err (!%p16467_p2)
}
  0x1b   :  { %s16471_s27 = scalar_lea.vmem %s53_s30, 4096  ;;  %p16476_p4 = scmp.lt.s32.totalorder %s53_s30, %s53_s30 }
  0x1c   :  { %p16472_p3 = scmp.ne.s32.totalorder %s53_s30, %s16471_s27  ;;  %p16477_p5 = scmp.lt.s32.totalorder %s16471_s27, %s16471_s27 }
  0x1e   :  { %p16478_p6 = por %p16477_p5, %p16476_p4 }
  0x20   :  { %p16479_p7 = pnand %p16478_p6, %p16472_p3 }
  0x22   :  { %16482 = shalt.err (!%p16479_p7)
}
  0x23   :  { %s16809_s28 = smov 128   ;;  %s16810_s29 = smov 8  }
  0x24   :  { %58 = dma.hbm_to_vmem [thread:$0]  %s17889_s2, 4096, %s53_s30, [#allocation5], %s16809_s28, %s16809_s28, %s16810_s29  }
  0x25   :  { %s16483_s23 = scalar_lea.hbm %s17864_s4, 16384 }
  0x26   :  { %p16484_p8 = scmp.ne.s32.totalorder %s17864_s4, %s16483_s23  ;;  %p16487_p9 = scmp.lt.u32.totalorder %s16483_s23, %s17864_s4 }
  0x28   :  { %p16489_p10 = pnand %p16487_p9, %p16484_p8 }
  0x2a   :  { %16492 = shalt.err (!%p16489_p10)
}
  0x2b   :  { %s16493_s27 = scalar_lea.vmem %s16928_s21, 16384  ;;  %p16498_p12 = scmp.lt.s32.totalorder %s16928_s21, %s16928_s21 }
  0x2c   :  { %p16494_p11 = scmp.ne.s32.totalorder %s16928_s21, %s16493_s27  ;;  %p16499_p13 = scmp.lt.s32.totalorder %s16493_s27, %s16493_s27 }
  0x2e   :  { %p16500_p0 = por %p16499_p13, %p16498_p12 }
  0x30   :  { %p16501_p1 = pnand %p16500_p0, %p16494_p11 }
  0x32   :  { %16504 = shalt.err (!%p16501_p1)
}
  0x33   :  { %82 = dma.hbm_to_vmem [thread:$0]  %s17864_s4, 16384, %s16928_s21, [#allocation8], %s16809_s28, %s16809_s28, %s16810_s29  }
  0x34   :  { %s16811_s0 = smov [#allocation10]   ;;  %s16812_s1 = smov [#allocation13]  }
  0x35   :  { %s100_s20 = sshll.u32 %s16811_s0, 4  ;;  %s124_s22 = sshll.u32 %s16812_s1, 4  ;;  %s101_s20 = int_to_ptr.vmem [resolvable:$true] %s100_s20  ;;  %s16965_s22 = int_to_ptr.vmem [resolvable:$true] %s124_s22 }
  0x36   :  { %s16505_s25 = scalar_lea.hbm %s17866_s6, 512 }
  0x37   :  { %p16506_p2 = scmp.ne.s32.totalorder %s17866_s6, %s16505_s25  ;;  %p16509_p3 = scmp.lt.u32.totalorder %s16505_s25, %s17866_s6 }
  0x39   :  { %p16511_p4 = pnand %p16509_p3, %p16506_p2 }
  0x3b   :  { %16514 = shalt.err (!%p16511_p4)
}
  0x3c   :  { %s16515_s4 = scalar_lea.vmem %s101_s20, 512  ;;  %p16520_p6 = scmp.lt.s32.totalorder %s101_s20, %s101_s20 }
  0x3d   :  { %p16516_p5 = scmp.ne.s32.totalorder %s101_s20, %s16515_s4  ;;  %p16521_p7 = scmp.lt.s32.totalorder %s16515_s4, %s16515_s4 }
  0x3f   :  { %p16522_p8 = por %p16521_p7, %p16520_p6 }
  0x41   :  { %p16523_p9 = pnand %p16522_p8, %p16516_p5 }
  0x43   :  { %16526 = shalt.err (!%p16523_p9)
}
  0x44   :  { %106 = dma.hbm_to_vmem [thread:$0]  %s17866_s6, 512, %s101_s20, [#allocation11], %s16809_s28, %s16809_s28, %s16810_s29  }
  0x45   :  { %s16527_s19 = scalar_lea.hbm %s17869_s9, 4096 }
  0x46   :  { %p16528_p10 = scmp.ne.s32.totalorder %s17869_s9, %s16527_s19  ;;  %p16531_p11 = scmp.lt.u32.totalorder %s16527_s19, %s17869_s9 }
  0x48   :  { %p16533_p12 = pnand %p16531_p11, %p16528_p10 }
  0x4a   :  { %16536 = shalt.err (!%p16533_p12)
}
  0x4b   :  { %s16537_s3 = scalar_lea.vmem %s16965_s22, 4096  ;;  %p16542_p0 = scmp.lt.s32.totalorder %s16965_s22, %s16965_s22 }
  0x4c   :  { %p16538_p13 = scmp.ne.s32.totalorder %s16965_s22, %s16537_s3  ;;  %p16543_p1 = scmp.lt.s32.totalorder %s16537_s3, %s16537_s3 }
  0x4e   :  { %p16544_p2 = por %p16543_p1, %p16542_p0 }
  0x50   :  { %p16545_p3 = pnand %p16544_p2, %p16538_p13 }
  0x52   :  { %16548 = shalt.err (!%p16545_p3)
}
  0x53   :  { %130 = dma.hbm_to_vmem [thread:$0]  %s17869_s9, 4096, %s16965_s22, [#allocation14], %s16809_s28, %s16809_s28, %s16810_s29  }
  0x54   :  { %s16813_s26 = smov [#allocation16]   ;;  %s16814_s4 = smov [#allocation19]  }
  0x55   :  { %s148_s27 = sshll.u32 %s16813_s26, 4  ;;  %s172_s21 = sshll.u32 %s16814_s4, 4  ;;  %s149_s27 = int_to_ptr.vmem [resolvable:$true] %s148_s27  ;;  %s17002_s21 = int_to_ptr.vmem [resolvable:$true] %s172_s21 }
  0x56   :  { %s16549_s0 = scalar_lea.hbm %s17871_s11, 4096 }
  0x57   :  { %p16550_p4 = scmp.ne.s32.totalorder %s17871_s11, %s16549_s0  ;;  %p16553_p5 = scmp.lt.u32.totalorder %s16549_s0, %s17871_s11 }
  0x59   :  { %p16555_p6 = pnand %p16553_p5, %p16550_p4 }
  0x5b   :  { %16558 = shalt.err (!%p16555_p6)
}
  0x5c   :  { %s16559_s9 = scalar_lea.vmem %s149_s27, 4096  ;;  %p16564_p8 = scmp.lt.s32.totalorder %s149_s27, %s149_s27 }
  0x5d   :  { %p16560_p7 = scmp.ne.s32.totalorder %s149_s27, %s16559_s9  ;;  %p16565_p9 = scmp.lt.s32.totalorder %s16559_s9, %s16559_s9 }
  0x5f   :  { %p16566_p10 = por %p16565_p9, %p16564_p8 }
  0x61   :  { %p16567_p11 = pnand %p16566_p10, %p16560_p7 }
  0x63   :  { %16570 = shalt.err (!%p16567_p11)
}
  0x64   :  { %154 = dma.hbm_to_vmem [thread:$0]  %s17871_s11, 4096, %s149_s27, [#allocation17], %s16809_s28, %s16809_s28, %s16810_s29  }
  0x65   :  { %s16571_s20 = scalar_lea.hbm %s17873_s13, 4096 }
  0x66   :  { %p16572_p12 = scmp.ne.s32.totalorder %s17873_s13, %s16571_s20  ;;  %p16575_p13 = scmp.lt.u32.totalorder %s16571_s20, %s17873_s13 }
  0x68   :  { %p16577_p0 = pnand %p16575_p13, %p16572_p12 }
  0x6a   :  { %16580 = shalt.err (!%p16577_p0)
}
  0x6b   :  { %s16581_s0 = scalar_lea.vmem %s17002_s21, 4096  ;;  %p16586_p2 = scmp.lt.s32.totalorder %s17002_s21, %s17002_s21 }
  0x6c   :  { %p16582_p1 = scmp.ne.s32.totalorder %s17002_s21, %s16581_s0  ;;  %p16587_p3 = scmp.lt.s32.totalorder %s16581_s0, %s16581_s0 }
  0x6e   :  { %p16588_p4 = por %p16587_p3, %p16586_p2 }
  0x70   :  { %p16589_p5 = pnand %p16588_p4, %p16582_p1 }
  0x72   :  { %16592 = shalt.err (!%p16589_p5)
}
  0x73   :  { %178 = dma.hbm_to_vmem [thread:$0]  %s17873_s13, 4096, %s17002_s21, [#allocation20], %s16809_s28, %s16809_s28, %s16810_s29  }
  0x74   :  { %s16815_s19 = smov [#allocation22]   ;;  %s16816_s23 = smov [#allocation2]  }
  0x75   :  { %s196_s1 = sshll.u32 %s16815_s19, 4  ;;  %s40_s24 = sshll.u32 %s16816_s23, 4  ;;  %s197_s1 = int_to_ptr.vmem [resolvable:$true] %s196_s1  ;;  %s17039_s24 = int_to_ptr.vmem [resolvable:$true] %s40_s24 }
  0x76   :  { %s16593_s25 = scalar_lea.hbm %s17875_s15, 512 }
  0x77   :  { %p16594_p6 = scmp.ne.s32.totalorder %s17875_s15, %s16593_s25  ;;  %p16597_p7 = scmp.lt.u32.totalorder %s16593_s25, %s17875_s15 }
  0x79   :  { %p16599_p8 = pnand %p16597_p7, %p16594_p6 }
  0x7b   :  { %16602 = shalt.err (!%p16599_p8)
}
  0x7c   :  { %s16603_s13 = scalar_lea.vmem %s197_s1, 512  ;;  %p16608_p10 = scmp.lt.s32.totalorder %s197_s1, %s197_s1 }
  0x7d   :  { %p16604_p9 = scmp.ne.s32.totalorder %s197_s1, %s16603_s13  ;;  %p16609_p11 = scmp.lt.s32.totalorder %s16603_s13, %s16603_s13 }
  0x7f   :  { %p16610_p12 = por %p16609_p11, %p16608_p10 }
  0x81   :  { %p16611_p13 = pnand %p16610_p12, %p16604_p9 }
  0x83   :  { %16614 = shalt.err (!%p16611_p13)
}
  0x84   :  { %202 = dma.hbm_to_vmem [thread:$0]  %s17875_s15, 512, %s197_s1, [#allocation23], %s16809_s28, %s16809_s28, %s16810_s29  }
  0x85   :  { %s17890_s0 = sld [smem:[#allocation34_spill]] }
  0x8b   :  { %s16615_s11 = scalar_lea.hbm %s17890_s0, 65536 }
  0x8c   :  { %p16616_p0 = scmp.ne.s32.totalorder %s17890_s0, %s16615_s11  ;;  %p16619_p1 = scmp.lt.u32.totalorder %s16615_s11, %s17890_s0 }
  0x8e   :  { %p16621_p2 = pnand %p16619_p1, %p16616_p0 }
  0x90   :  { %16624 = shalt.err (!%p16621_p2)
}
  0x91   :  { %s16625_s22 = scalar_lea.vmem %s17039_s24, 65536  ;;  %p16630_p4 = scmp.lt.s32.totalorder %s17039_s24, %s17039_s24 }
  0x92   :  { %p16626_p3 = scmp.ne.s32.totalorder %s17039_s24, %s16625_s22  ;;  %p16631_p5 = scmp.lt.s32.totalorder %s16625_s22, %s16625_s22 }
  0x94   :  { %p16632_p6 = por %p16631_p5, %p16630_p4 }
  0x96   :  { %p16633_p7 = pnand %p16632_p6, %p16626_p3 }
  0x98   :  { %16636 = shalt.err (!%p16633_p7)
}
  0x99   :  { %46 = dma.hbm_to_vmem [thread:$0]  %s17890_s0, 65536, %s17039_s24, [#allocation3], %s16809_s28, %s16809_s28, %s16810_s29  }
  0x9a   :  { %s16817_s25 = smov [#allocation6]   ;;  %s16818_s6 = smov [#allocation9]  }
  0x9b   :  { %s64_s3 = sshll.u32 %s16817_s25, 4  ;;  %s88_s20 = sshll.u32 %s16818_s6, 4  ;;  %s65_s3 = int_to_ptr.vmem [resolvable:$true] %s64_s3  ;;  %s17076_s20 = int_to_ptr.vmem [resolvable:$true] %s88_s20 }
  0x9c   :  { %s17891_s21 = sld [smem:[#allocation36_spill]] }
  0xa2   :  { %s16637_s4 = scalar_lea.hbm %s17891_s21, 256 }
  0xa3   :  { %p16638_p8 = scmp.ne.s32.totalorder %s17891_s21, %s16637_s4  ;;  %p16641_p9 = scmp.lt.u32.totalorder %s16637_s4, %s17891_s21 }
  0xa5   :  { %p16643_p10 = pnand %p16641_p9, %p16638_p8 }
  0xa7   :  { %16646 = shalt.err (!%p16643_p10)
}
  0xa8   :  { %s16647_s24 = scalar_lea.vmem %s65_s3, 256  ;;  %p16652_p12 = scmp.lt.s32.totalorder %s65_s3, %s65_s3 }
  0xa9   :  { %p16648_p11 = scmp.ne.s32.totalorder %s65_s3, %s16647_s24  ;;  %p16653_p13 = scmp.lt.s32.totalorder %s16647_s24, %s16647_s24 }
  0xab   :  { %p16654_p0 = por %p16653_p13, %p16652_p12 }
  0xad   :  { %p16655_p1 = pnand %p16654_p0, %p16648_p11 }
  0xaf   :  { %16658 = shalt.err (!%p16655_p1)
}
  0xb0   :  { %70 = dma.hbm_to_vmem [thread:$0]  %s17891_s21, 256, %s65_s3, [#allocation5], %s16809_s28, %s16809_s28, %s16810_s29  }
  0xb1   :  { %s16659_s22 = scalar_lea.hbm %s17865_s5, 8192 }
  0xb2   :  { %p16660_p2 = scmp.ne.s32.totalorder %s17865_s5, %s16659_s22  ;;  %p16663_p3 = scmp.lt.u32.totalorder %s16659_s22, %s17865_s5 }
  0xb4   :  { %p16665_p4 = pnand %p16663_p3, %p16660_p2 }
  0xb6   :  { %16668 = shalt.err (!%p16665_p4)
}
  0xb7   :  { %s16669_s26 = scalar_lea.vmem %s17076_s20, 8192  ;;  %p16674_p6 = scmp.lt.s32.totalorder %s17076_s20, %s17076_s20 }
  0xb8   :  { %p16670_p5 = scmp.ne.s32.totalorder %s17076_s20, %s16669_s26  ;;  %p16675_p7 = scmp.lt.s32.totalorder %s16669_s26, %s16669_s26 }
  0xba   :  { %p16676_p8 = por %p16675_p7, %p16674_p6 }
  0xbc   :  { %p16677_p9 = pnand %p16676_p8, %p16670_p5 }
  0xbe   :  { %16680 = shalt.err (!%p16677_p9)
}
  0xbf   :  { %94 = dma.hbm_to_vmem [thread:$0]  %s17865_s5, 8192, %s17076_s20, [#allocation8], %s16809_s28, %s16809_s28, %s16810_s29  }
  0xc0   :  { %s16819_s21 = smov [#allocation12]   ;;  %s16820_s30 = smov [#allocation15]  }
  0xc1   :  { %s113_s4 = sshll.u32 %s16819_s21, 4  ;;  %s136_s2 = sshll.u32 %s16820_s30, 4  ;;  %s114_s4 = int_to_ptr.vmem [resolvable:$true] %s113_s4  ;;  %s17113_s2 = int_to_ptr.vmem [resolvable:$true] %s136_s2 }
  0xc2   :  { %s16681_s24 = scalar_lea.hbm %s17867_s7, 32 }
  0xc3   :  { %p16682_p10 = scmp.ne.s32.totalorder %s17867_s7, %s16681_s24  ;;  %p16685_p11 = scmp.lt.u32.totalorder %s16681_s24, %s17867_s7 }
  0xc5   :  { %p16687_p12 = pnand %p16685_p11, %p16682_p10 }
  0xc7   :  { %16690 = shalt.err (!%p16687_p12)
}
  0xc8   :  { %s16691_s5 = scalar_lea.vmem %s114_s4, 32  ;;  %p16696_p0 = scmp.lt.s32.totalorder %s114_s4, %s114_s4 }
  0xc9   :  { %p16692_p13 = scmp.ne.s32.totalorder %s114_s4, %s16691_s5  ;;  %p16697_p1 = scmp.lt.s32.totalorder %s16691_s5, %s16691_s5 }
  0xcb   :  { %p16698_p2 = por %p16697_p1, %p16696_p0 }
  0xcd   :  { %p16699_p3 = pnand %p16698_p2, %p16692_p13 }
  0xcf   :  { %16702 = shalt.err (!%p16699_p3)
}
  0xd0   :  { %116 = dma.hbm_to_vmem [thread:$0]  %s17867_s7, 32, %s114_s4, [#allocation11]  }
  0xd1   :  { %s16703_s25 = scalar_lea.hbm %s17870_s10, 16384 }
  0xd2   :  { %p16704_p4 = scmp.ne.s32.totalorder %s17870_s10, %s16703_s25  ;;  %p16707_p5 = scmp.lt.u32.totalorder %s16703_s25, %s17870_s10 }
  0xd4   :  { %p16709_p6 = pnand %p16707_p5, %p16704_p4 }
  0xd6   :  { %16712 = shalt.err (!%p16709_p6)
}
  0xd7   :  { %s16713_s21 = scalar_lea.vmem %s17113_s2, 16384  ;;  %p16718_p8 = scmp.lt.s32.totalorder %s17113_s2, %s17113_s2 }
  0xd8   :  { %p16714_p7 = scmp.ne.s32.totalorder %s17113_s2, %s16713_s21  ;;  %p16719_p9 = scmp.lt.s32.totalorder %s16713_s21, %s16713_s21 }
  0xda   :  { %p16720_p10 = por %p16719_p9, %p16718_p8 }
  0xdc   :  { %p16721_p11 = pnand %p16720_p10, %p16714_p7 }
  0xde   :  { %16724 = shalt.err (!%p16721_p11)
}
  0xdf   :  { %142 = dma.hbm_to_vmem [thread:$0]  %s17870_s10, 16384, %s17113_s2, [#allocation14], %s16809_s28, %s16809_s28, %s16810_s29  }
  0xe0   :  { %s16821_s30 = smov [#allocation18]   ;;  %s16822_s27 = smov [#allocation21]  }
  0xe1   :  { %s160_s11 = sshll.u32 %s16821_s30, 4  ;;  %s184_s24 = sshll.u32 %s16822_s27, 4  ;;  %s161_s11 = int_to_ptr.vmem [resolvable:$true] %s160_s11  ;;  %s17147_s24 = int_to_ptr.vmem [resolvable:$true] %s184_s24 }
  0xe2   :  { %s16725_s23 = scalar_lea.hbm %s17872_s12, 256 }
  0xe3   :  { %p16726_p12 = scmp.ne.s32.totalorder %s17872_s12, %s16725_s23  ;;  %p16729_p13 = scmp.lt.u32.totalorder %s16725_s23, %s17872_s12 }
  0xe5   :  { %p16731_p0 = pnand %p16729_p13, %p16726_p12 }
  0xe7   :  { %16734 = shalt.err (!%p16731_p0)
}
  0xe8   :  { %s16735_s10 = scalar_lea.vmem %s161_s11, 256  ;;  %p16740_p2 = scmp.lt.s32.totalorder %s161_s11, %s161_s11 }
  0xe9   :  { %p16736_p1 = scmp.ne.s32.totalorder %s161_s11, %s16735_s10  ;;  %p16741_p3 = scmp.lt.s32.totalorder %s16735_s10, %s16735_s10 }
  0xeb   :  { %p16742_p4 = por %p16741_p3, %p16740_p2 }
  0xed   :  { %p16743_p5 = pnand %p16742_p4, %p16736_p1 }
  0xef   :  { %16746 = shalt.err (!%p16743_p5)
}
  0xf0   :  { %166 = dma.hbm_to_vmem [thread:$0]  %s17872_s12, 256, %s161_s11, [#allocation17], %s16809_s28, %s16809_s28, %s16810_s29  }
  0xf1   :  { %s16747_s6 = scalar_lea.hbm %s17874_s14, 8192 }
  0xf2   :  { %p16748_p6 = scmp.ne.s32.totalorder %s17874_s14, %s16747_s6  ;;  %p16751_p7 = scmp.lt.u32.totalorder %s16747_s6, %s17874_s14 }
  0xf4   :  { %p16753_p8 = pnand %p16751_p7, %p16748_p6 }
  0xf6   :  { %16756 = shalt.err (!%p16753_p8)
}
  0xf7   :  { %s16757_s7 = scalar_lea.vmem %s17147_s24, 8192  ;;  %p16762_p10 = scmp.lt.s32.totalorder %s17147_s24, %s17147_s24 }
  0xf8   :  { %p16758_p9 = scmp.ne.s32.totalorder %s17147_s24, %s16757_s7  ;;  %p16763_p11 = scmp.lt.s32.totalorder %s16757_s7, %s16757_s7 }
  0xfa   :  { %p16764_p12 = por %p16763_p11, %p16762_p10 }
  0xfc   :  { %p16765_p13 = pnand %p16764_p12, %p16758_p9 }
  0xfe   :  { %16768 = shalt.err (!%p16765_p13)
}
  0xff   :  { %190 = dma.hbm_to_vmem [thread:$0]  %s17874_s14, 8192, %s17147_s24, [#allocation20], %s16809_s28, %s16809_s28, %s16810_s29  }
 0x100   :  { %s16823_s30 = smov [#allocation24]   ;;  %s16769_s19 = scalar_lea.hbm %s17876_s16, 32 }
 0x101   :  { %s209_s11 = sshll.u32 %s16823_s30, 4  ;;  %p16770_p0 = scmp.ne.s32.totalorder %s17876_s16, %s16769_s19  ;;  %s210_s11 = int_to_ptr.vmem [resolvable:$true] %s209_s11 }
 0x102   :  { %p16773_p1 = scmp.lt.u32.totalorder %s16769_s19, %s17876_s16 }
 0x104   :  { %p16775_p2 = pnand %p16773_p1, %p16770_p0 }
 0x106   :  { %16778 = shalt.err (!%p16775_p2)
}
 0x107   :  { %s16779_s22 = scalar_lea.vmem %s210_s11, 32  ;;  %p16784_p4 = scmp.lt.s32.totalorder %s210_s11, %s210_s11 }
 0x108   :  { %p16780_p3 = scmp.ne.s32.totalorder %s210_s11, %s16779_s22  ;;  %p16785_p5 = scmp.lt.s32.totalorder %s16779_s22, %s16779_s22 }
 0x10a   :  { %p16786_p6 = por %p16785_p5, %p16784_p4 }
 0x10c   :  { %p16787_p7 = pnand %p16786_p6, %p16780_p3 }
 0x10e   :  { %16790 = shalt.err (!%p16787_p7)
}
 0x10f   :  { %212 = dma.hbm_to_vmem [thread:$0]  %s17876_s16, 32, %s210_s11, [#allocation23]  }
 0x110   :  { %16791 = dma.done.wait [#allocation3], 65536  }
 0x111   :  { %16792 = vsyncadd [#allocation3], 4294901760 }
 0x112   :  { %16793 = dma.done.wait [#allocation5], 4352  }
 0x113   :  { %16794 = vsyncadd [#allocation5], 4294962944 }
 0x114   :  { %16795 = dma.done.wait [#allocation8], 24576  }
 0x115   :  { %16796 = vsyncadd [#allocation8], 4294942720 }
 0x116   :  { %16797 = dma.done.wait [#allocation11], 544  }
 0x117   :  { %16798 = vsyncadd [#allocation11], 4294966752 }
 0x118   :  { %16799 = dma.done.wait [#allocation14], 20480  }
 0x119   :  { %16800 = vsyncadd [#allocation14], 4294946816 }
 0x11a   :  { %16801 = dma.done.wait [#allocation17], 4352  }
 0x11b   :  { %16802 = vsyncadd [#allocation17], 4294962944 }
 0x11c   :  { %16803 = dma.done.wait [#allocation20], 12288  }
 0x11d   :  { %16804 = vsyncadd [#allocation20], 4294955008 }
 0x11e   :  { %16805 = dma.done.wait [#allocation23], 544  }
 0x11f   :  { %16806 = vsyncadd [#allocation23], 4294966752  ;;  %v278_v0 = vld [vmem:[#allocation2 + $0x80] sm:$0xff]  ;;  %v279_v1 = vld [vmem:[#allocation2 + $0x88] sm:$0xff]  ;;  %s17892_s24 = sld [smem:[#allocation33_spill]]  ;;  %vm472_vm0 = vcmask 64512  }
 0x120   :  { %v262_v2 = vld [vmem:[#allocation2] sm:$0xff]  ;;  %v15056_v3 = vpack.c.bf16 %v279_v1, %v278_v0  ;;  %v263_v4 = vld [vmem:[#allocation2 + $0x8] sm:$0xff]  ;;  %v280_v5 = vld [vmem:[#allocation2 + $0x90] sm:$0xff]  ;;  %vm3309_vm3 = vcmask 523264   ;;  %vm3484_vm4 = vcmask 130048   ;;  %vm16826_vm5 = vmmov 0  }
 0x121   :  { %v281_v6 = vld [vmem:[#allocation2 + $0x98] sm:$0xff]  ;;  %v15058_v7 = vpack.c.bf16 %v263_v4, %v262_v2  ;;  %v264_v9 = vld [vmem:[#allocation2 + $0x10] sm:$0xff]  ;;  %v282_v11 = vld [vmem:[#allocation2 + $0xa0] sm:$0xff]  ;;  %vm6386_vm10 = vcmask 261120   ;;  %vm6460_vm11 = vcmask 123904   ;;  %s17893_s9 = sld [smem:[#allocation37_spill]] }
 0x122   :  { %v15060_v8 = vpack.c.bf16 %v281_v6, %v280_v5  ;;  %v265_v10 = vld [vmem:[#allocation2 + $0x18] sm:$0xff]  ;;  %15057 = vmatprep.subr.bf16.mxu0 %v15056_v3  ;;  %v283_v12 = vld [vmem:[#allocation2 + $0xa8] sm:$0xff]  ;;  %v266_v15 = vld [vmem:[#allocation2 + $0x20] sm:$0xff] }
 0x123   :  { %15059 = vmatpush3.bf16.msra.mxu0 %v15058_v7  ;;  %v15062_v13 = vpack.c.bf16 %v265_v10, %v264_v9  ;;  %v15064_v14 = vpack.c.bf16 %v283_v12, %v282_v11  ;;  %v267_v16 = vld [vmem:[#allocation2 + $0x28] sm:$0xff]  ;;  %v284_v17 = vld [vmem:[#allocation2 + $0xb0] sm:$0xff]  ;;  %v285_v18 = vld [vmem:[#allocation2 + $0xb8] sm:$0xff] }
 0x124   :  { %15061 = vmatprep.subr.bf16.mxu0 %v15060_v8  ;;  %v15066_v19 = vpack.c.bf16 %v267_v16, %v266_v15  ;;  %v15068_v20 = vpack.c.bf16 %v285_v18, %v284_v17  ;;  %v268_v21 = vld [vmem:[#allocation2 + $0x30] sm:$0xff]  ;;  %v269_v22 = vld [vmem:[#allocation2 + $0x38] sm:$0xff]  ;;  %v286_v23 = vld [vmem:[#allocation2 + $0xc0] sm:$0xff] }
 0x125   :  { %v287_v24 = vld [vmem:[#allocation2 + $0xc8] sm:$0xff]  ;;  %v15070_v26 = vpack.c.bf16 %v269_v22, %v268_v21  ;;  %v270_v28 = vld [vmem:[#allocation2 + $0x40] sm:$0xff]  ;;  %v288_v30 = vld [vmem:[#allocation2 + $0xd0] sm:$0xff] }
 0x126   :  { %v17199_v25 = vld [vmem:[%s17892_s24 + $0x8] sm:$0xff]  ;;  %v15072_v27 = vpack.c.bf16 %v287_v24, %v286_v23  ;;  %v289_v31 = vld [vmem:[#allocation2 + $0xd8] sm:$0xff]  ;;  %v272_v34 = vld [vmem:[#allocation2 + $0x50] sm:$0xff] }
 0x127   :  { %15063 = vmatpush3.bf16.msra.mxu0 %v15062_v13  ;;  %358 = vmatprep.mubr.f32.mxu0 %v17199_v25  ;;  %v271_v29 = vld [vmem:[#allocation2 + $0x48] sm:$0xff]  ;;  %v15076_v33 = vpack.c.bf16 %v289_v31, %v288_v30  ;;  %v273_v35 = vld [vmem:[#allocation2 + $0x58] sm:$0xff]  ;;  %v290_v36 = vld [vmem:[#allocation2 + $0xe0] sm:$0xff] }
 0x128   :  { %15065 = vmatprep.subr.bf16.mxu0 %v15064_v14  ;;  %v15074_v32 = vpack.c.bf16 %v271_v29, %v270_v28  ;;  %v291_v37 = vld [vmem:[#allocation2 + $0xe8] sm:$0xff]  ;;  %v15078_v38 = vpack.c.bf16 %v273_v35, %v272_v34  ;;  %v274_v40 = vld [vmem:[#allocation2 + $0x60] sm:$0xff]  ;;  %v292_v42 = vld [vmem:[#allocation2 + $0xf0] sm:$0xff] }
 0x129   :  { %v15080_v39 = vpack.c.bf16 %v291_v37, %v290_v36  ;;  %v275_v41 = vld [vmem:[#allocation2 + $0x68] sm:$0xff]  ;;  %v293_v43 = vld [vmem:[#allocation2 + $0xf8] sm:$0xff]  ;;  %v276_v46 = vld [vmem:[#allocation2 + $0x70] sm:$0xff] }
 0x12a   :  { %v15082_v44 = vpack.c.bf16 %v275_v41, %v274_v40  ;;  %v15084_v45 = vpack.c.bf16 %v293_v43, %v292_v42  ;;  %v277_v47 = vld [vmem:[#allocation2 + $0x78] sm:$0xff]  ;;  %v383_v48 = vld [vmem:[#allocation2 + $0x180] sm:$0xff]  ;;  %v384_v49 = vld [vmem:[#allocation2 + $0x188] sm:$0xff] }
 0x12b   :  { %15067 = vmatpush3.bf16.msra.mxu0 %v15066_v19  ;;  %v15086_v50 = vpack.c.bf16 %v277_v47, %v276_v46  ;;  %v15088_v51 = vpack.c.bf16 %v384_v49, %v383_v48  ;;  %v367_v52 = vld [vmem:[#allocation2 + $0x100] sm:$0xff]  ;;  %v368_v53 = vld [vmem:[#allocation2 + $0x108] sm:$0xff]  ;;  %v385_v54 = vld [vmem:[#allocation2 + $0x190] sm:$0xff] }
 0x12c   :  { %15069 = vmatprep.subr.bf16.mxu0 %v15068_v20  ;;  %v386_v55 = vld [vmem:[#allocation2 + $0x198] sm:$0xff]  ;;  %v17205_v56 = vld [vmem:[%s17892_s24] sm:$0xff]  ;;  %v15090_v57 = vpack.c.bf16 %v368_v53, %v367_v52  ;;  %v369_v59 = vld [vmem:[#allocation2 + $0x110] sm:$0xff] }
 0x12d   :  { %v15092_v58 = vpack.c.bf16 %v386_v55, %v385_v54  ;;  %v370_v60 = vld [vmem:[#allocation2 + $0x118] sm:$0xff]  ;;  %v387_v61 = vld [vmem:[#allocation2 + $0x1a0] sm:$0xff]  ;;  %v388_v62 = vld [vmem:[#allocation2 + $0x1a8] sm:$0xff] }
 0x12e   :  { %v15094_v63 = vpack.c.bf16 %v370_v60, %v369_v59  ;;  %v15096_v0 = vpack.c.bf16 %v388_v62, %v387_v61  ;;  %v371_v1 = vld [vmem:[#allocation2 + $0x120] sm:$0xff]  ;;  %v372_v2 = vld [vmem:[#allocation2 + $0x128] sm:$0xff]  ;;  %v389_v3 = vld [vmem:[#allocation2 + $0x1b0] sm:$0xff] }
 0x12f   :  { %15071 = vmatpush3.bf16.msra.mxu0 %v15070_v26  ;;  %v390_v4 = vld [vmem:[#allocation2 + $0x1b8] sm:$0xff]  ;;  %v15098_v5 = vpack.c.bf16 %v372_v2, %v371_v1  ;;  %v373_v7 = vld [vmem:[#allocation2 + $0x130] sm:$0xff]  ;;  %v391_v9 = vld [vmem:[#allocation2 + $0x1c0] sm:$0xff] }
 0x130   :  { %15073 = vmatprep.subr.bf16.mxu0 %v15072_v27  ;;  %v15100_v6 = vpack.c.bf16 %v390_v4, %v389_v3  ;;  %v374_v8 = vld [vmem:[#allocation2 + $0x138] sm:$0xff]  ;;  %v392_v10 = vld [vmem:[#allocation2 + $0x1c8] sm:$0xff]  ;;  %v375_v13 = vld [vmem:[#allocation2 + $0x140] sm:$0xff] }
 0x131   :  { %v15102_v11 = vpack.c.bf16 %v374_v8, %v373_v7  ;;  %v15104_v12 = vpack.c.bf16 %v392_v10, %v391_v9  ;;  %v376_v14 = vld [vmem:[#allocation2 + $0x148] sm:$0xff]  ;;  %v393_v15 = vld [vmem:[#allocation2 + $0x1d0] sm:$0xff]  ;;  %v394_v16 = vld [vmem:[#allocation2 + $0x1d8] sm:$0xff] }
 0x132   :  { %v15106_v17 = vpack.c.bf16 %v376_v14, %v375_v13  ;;  %v15108_v18 = vpack.c.bf16 %v394_v16, %v393_v15  ;;  %v377_v19 = vld [vmem:[#allocation2 + $0x150] sm:$0xff]  ;;  %v378_v20 = vld [vmem:[#allocation2 + $0x158] sm:$0xff]  ;;  %v395_v21 = vld [vmem:[#allocation2 + $0x1e0] sm:$0xff] }
 0x133   :  { %15075 = vmatpush3.bf16.msra.mxu0 %v15074_v32  ;;  %v396_v22 = vld [vmem:[#allocation2 + $0x1e8] sm:$0xff]  ;;  %v15110_v23 = vpack.c.bf16 %v378_v20, %v377_v19  ;;  %v379_v26 = vld [vmem:[#allocation2 + $0x160] sm:$0xff]  ;;  %v397_v28 = vld [vmem:[#allocation2 + $0x1f0] sm:$0xff] }
 0x134   :  { %15077 = vmatprep.subr.bf16.mxu0 %v15076_v33  ;;  %v15112_v24 = vpack.c.bf16 %v396_v22, %v395_v21  ;;  %v380_v27 = vld [vmem:[#allocation2 + $0x168] sm:$0xff]  ;;  %v398_v29 = vld [vmem:[#allocation2 + $0x1f8] sm:$0xff]  ;;  %v381_v32 = vld [vmem:[#allocation2 + $0x170] sm:$0xff] }
 0x135   :  { %v15114_v30 = vpack.c.bf16 %v380_v27, %v379_v26  ;;  %v15116_v31 = vpack.c.bf16 %v398_v29, %v397_v28  ;;  %v382_v33 = vld [vmem:[#allocation2 + $0x178] sm:$0xff]  ;;  %v470_v35 = vld [vmem:[#allocation4 + $0x10] sm:$0xff]  ;;  %v653_v40 = vld [vmem:[#allocation2 + $0x288] sm:$0xff] }
 0x136   :  { %v15118_v34 = vpack.c.bf16 %v382_v33, %v381_v32  ;;  %13836 = vmatprep.mubr.msk.f32.mxu1 %vm472_vm0, %v470_v35  ;;  %v636_v42 = vld [vmem:[#allocation2 + $0x200] sm:$0xff]  ;;  %v637_v43 = vld [vmem:[#allocation2 + $0x208] sm:$0xff]  ;;  %v655_v46 = vld [vmem:[#allocation2 + $0x298] sm:$0xff] }
 0x137   :  { %15079 = vmatpush3.bf16.msra.mxu0 %v15078_v38  ;;  %v471_v49 = vld [vmem:[#allocation4 + $0x18] sm:$0xff]  ;;  %v638_v52 = vld [vmem:[#allocation2 + $0x210] sm:$0xff]  ;;  %v656_v54 = vld [vmem:[#allocation2 + $0x2a0] sm:$0xff] }
 0x138   :  { %15081 = vmatprep.subr.bf16.mxu0 %v15080_v39  ;;  %v652_v39 = vld [vmem:[#allocation2 + $0x280] sm:$0xff]  ;;  %v639_v53 = vld [vmem:[#allocation2 + $0x218] sm:$0xff]  ;;  %v657_v55 = vld [vmem:[#allocation2 + $0x2a8] sm:$0xff] }
 0x139   :  { %v15120_v48 = vpack.c.bf16 %v653_v40, %v652_v39  ;;  %v640_v59 = vld [vmem:[#allocation2 + $0x220] sm:$0xff]  ;;  %v641_v60 = vld [vmem:[#allocation2 + $0x228] sm:$0xff]  ;;  %v658_v61 = vld [vmem:[#allocation2 + $0x2b0] sm:$0xff] }
 0x13a   :  { %v659_v62 = vld [vmem:[#allocation2 + $0x2b8] sm:$0xff]  ;;  %v642_v1 = vld [vmem:[#allocation2 + $0x230] sm:$0xff]  ;;  %v660_v3 = vld [vmem:[#allocation2 + $0x2c0] sm:$0xff] }
 0x13b   :  { %15083 = vmatpush3.bf16.msra.mxu0 %v15082_v44  ;;  %v643_v2 = vld [vmem:[#allocation2 + $0x238] sm:$0xff]  ;;  %v661_v4 = vld [vmem:[#allocation2 + $0x2c8] sm:$0xff]  ;;  %v644_v7 = vld [vmem:[#allocation2 + $0x240] sm:$0xff] }
 0x13c   :  { %15085 = vmatprep.subr.bf16.mxu0 %v15084_v45  ;;  %v654_v45 = vld [vmem:[#allocation2 + $0x290] sm:$0xff]  ;;  %v645_v8 = vld [vmem:[#allocation2 + $0x248] sm:$0xff]  ;;  %v663_v10 = vld [vmem:[#allocation2 + $0x2d8] sm:$0xff] }
 0x13d   :  { %v662_v9 = vld [vmem:[#allocation2 + $0x2d0] sm:$0xff]  ;;  %v647_v14 = vld [vmem:[#allocation2 + $0x258] sm:$0xff]  ;;  %v664_v15 = vld [vmem:[#allocation2 + $0x2e0] sm:$0xff] }
 0x13e   :  { %v646_v13 = vld [vmem:[#allocation2 + $0x250] sm:$0xff]  ;;  %v665_v16 = vld [vmem:[#allocation2 + $0x2e8] sm:$0xff]  ;;  %v648_v19 = vld [vmem:[#allocation2 + $0x260] sm:$0xff] }
 0x13f   :  { %15087 = vmatpush3.bf16.msra.mxu0 %v15086_v50  ;;  %v15122_v50 = vpack.c.bf16 %v637_v43, %v636_v42  ;;  %v649_v20 = vld [vmem:[#allocation2 + $0x268] sm:$0xff]  ;;  %v666_v21 = vld [vmem:[#allocation2 + $0x2f0] sm:$0xff]  ;;  %v667_v22 = vld [vmem:[#allocation2 + $0x2f8] sm:$0xff] }
 0x140   :  { %15089 = vmatprep.subr.bf16.mxu0 %v15088_v51  ;;  %v15124_v51 = vpack.c.bf16 %v655_v46, %v654_v45  ;;  %v650_v26 = vld [vmem:[#allocation2 + $0x270] sm:$0xff]  ;;  %v651_v27 = vld [vmem:[#allocation2 + $0x278] sm:$0xff]  ;;  %v364_v29 = vld [vmem:[#allocation4] sm:$0xff] }
 0x141   :  { %v15150_v28 = vpack.c.bf16 %v651_v27, %v650_v26  ;;  %v1030_v32 = vld [vmem:[#allocation2 + $0x480] sm:$0xff]  ;;  %v1031_v33 = vld [vmem:[#allocation2 + $0x488] sm:$0xff]  ;;  %v1033_v39 = vld [vmem:[#allocation2 + $0x498] sm:$0xff] }
 0x142   :  { %359 = vmatmul.mubr.f32.vlgmr.msra.gmra.mrb[0].mxu0 %v17205_v56  ;;  %v1015_v35 = vld [vmem:[#allocation2 + $0x408] sm:$0xff]  ;;  %v1016_v40 = vld [vmem:[#allocation2 + $0x410] sm:$0xff]  ;;  %v1018_v46 = vld [vmem:[#allocation2 + $0x420] sm:$0xff] }
 0x143   :  { %15091 = vmatpush3.bf16.msra.mxu0 %v15090_v57  ;;  %463 = vmatprep.mubr.f32.mxu0 %v17199_v25  ;;  %v15126_v57 = vpack.c.bf16 %v639_v53, %v638_v52  ;;  %v1035_v45 = vld [vmem:[#allocation2 + $0x4a8] sm:$0xff]  ;;  %v1020_v52 = vld [vmem:[#allocation2 + $0x430] sm:$0xff]  ;;  %v1021_v53 = vld [vmem:[#allocation2 + $0x438] sm:$0xff] }
 0x144   :  { %15093 = vmatprep.subr.bf16.mxu0 %v15092_v58  ;;  %v15128_v58 = vpack.c.bf16 %v657_v55, %v656_v54  ;;  %v15198_v55 = vpack.c.bf16 %v1021_v53, %v1020_v52  ;;  %v843_v26 = vld [vmem:[#allocation2 + $0x390] sm:$0xff]  ;;  %v844_v27 = vld [vmem:[#allocation2 + $0x398] sm:$0xff]  ;;  %v834_v52 = vld [vmem:[#allocation2 + $0x348] sm:$0xff] }
 0x145   :  { %v851_v53 = vld [vmem:[#allocation2 + $0x3d0] sm:$0xff] }
 0x147   :  { %15095 = vmatpush3.bf16.msra.mxu0 %v15094_v63  ;;  %v15130_v63 = vpack.c.bf16 %v641_v60, %v640_v59  ;;  %v1022_v59 = vld [vmem:[#allocation2 + $0x440] sm:$0xff]  ;;  %v1023_v60 = vld [vmem:[#allocation2 + $0x448] sm:$0xff] }
 0x148   :  { %15097 = vmatprep.subr.bf16.mxu0 %v15096_v0  ;;  %v15132_v0 = vpack.c.bf16 %v659_v62, %v658_v61  ;;  %v15202_v62 = vpack.c.bf16 %v1023_v60, %v1022_v59  ;;  %v836_v59 = vld [vmem:[#allocation2 + $0x358] sm:$0xff]  ;;  %v853_v60 = vld [vmem:[#allocation2 + $0x3e0] sm:$0xff] }
 0x14b   :  { %15099 = vmatpush3.bf16.msra.mxu0 %v15098_v5  ;;  %v15134_v5 = vpack.c.bf16 %v643_v2, %v642_v1  ;;  %v1024_v1 = vld [vmem:[#allocation2 + $0x450] sm:$0xff]  ;;  %v1025_v2 = vld [vmem:[#allocation2 + $0x458] sm:$0xff] }
 0x14c   :  { %15101 = vmatprep.subr.bf16.mxu0 %v15100_v6  ;;  %v15136_v6 = vpack.c.bf16 %v661_v4, %v660_v3  ;;  %v15206_v4 = vpack.c.bf16 %v1025_v2, %v1024_v1  ;;  %v838_v1 = vld [vmem:[#allocation2 + $0x368] sm:$0xff]  ;;  %v855_v2 = vld [vmem:[#allocation2 + $0x3f0] sm:$0xff] }
 0x14f   :  { %15103 = vmatpush3.bf16.msra.mxu0 %v15102_v11  ;;  %v15138_v11 = vpack.c.bf16 %v645_v8, %v644_v7  ;;  %v1026_v7 = vld [vmem:[#allocation2 + $0x460] sm:$0xff]  ;;  %v1027_v8 = vld [vmem:[#allocation2 + $0x468] sm:$0xff] }
 0x150   :  { %15105 = vmatprep.subr.bf16.mxu0 %v15104_v12  ;;  %v15140_v12 = vpack.c.bf16 %v663_v10, %v662_v9  ;;  %v15210_v10 = vpack.c.bf16 %v1027_v8, %v1026_v7  ;;  %v840_v7 = vld [vmem:[#allocation2 + $0x378] sm:$0xff] }
 0x153   :  { %15107 = vmatpush3.bf16.msra.mxu0 %v15106_v17  ;;  %v15142_v17 = vpack.c.bf16 %v647_v14, %v646_v13  ;;  %v1028_v14 = vld [vmem:[#allocation2 + $0x470] sm:$0xff] }
 0x154   :  { %15109 = vmatprep.subr.bf16.mxu0 %v15108_v18  ;;  %v15144_v18 = vpack.c.bf16 %v665_v16, %v664_v15  ;;  %v1029_v15 = vld [vmem:[#allocation2 + $0x478] sm:$0xff] }
 0x155   :  { %v15214_v16 = vpack.c.bf16 %v1029_v15, %v1028_v14  ;;  %v1409_v14 = vld [vmem:[#allocation2 + $0x688] sm:$0xff]  ;;  %v1392_v15 = vld [vmem:[#allocation2 + $0x600] sm:$0xff] }
 0x157   :  { %15111 = vmatpush3.bf16.msra.mxu0 %v15110_v23  ;;  %v15146_v23 = vpack.c.bf16 %v649_v20, %v648_v19  ;;  %v841_v19 = vld [vmem:[#allocation2 + $0x380] sm:$0xff]  ;;  %v842_v20 = vld [vmem:[#allocation2 + $0x388] sm:$0xff] }
 0x158   :  { %15113 = vmatprep.subr.bf16.mxu0 %v15112_v24  ;;  %v15148_v24 = vpack.c.bf16 %v667_v22, %v666_v21  ;;  %v825_v22 = vld [vmem:[#allocation2 + $0x300] sm:$0xff] }
 0x15b   :  { %15115 = vmatpush3.bf16.msra.mxu0 %v15114_v30  ;;  %v365_v30 = vld [vmem:[#allocation4 + $0x8] sm:$0xff] }
 0x15c   :  { %15117 = vmatprep.subr.bf16.mxu0 %v15116_v31  ;;  %v739_v31 = vld [vmem:[#allocation4 + $0x20] sm:$0xff] }
 0x15f   :  { %15119 = vmatpush3.bf16.msra.mxu0 %v15118_v34  ;;  %v1014_v34 = vld [vmem:[#allocation2 + $0x400] sm:$0xff] }
 0x162   :  { %464 = vmatmul.mubr.f32.vlgmr.msra.gmra.mrb[2].mxu0 %v17205_v56 }
 0x163   :  { %13841 = vmatprep.mubr.msk.f32.mxu0 %vm472_vm0, %v364_v29  ;;  %v15152_v29 = vpack.c.bf16 %v842_v20, %v841_v19 }
 0x215   :  { %v12605_v36 = vpop.f32.mrb[0].mxu0 }
 0x216   :  { %v12606_v37 = vpop.f32.mrb[1].mxu0 }
 0x217   :  { %v12607_v38 = vadd.f32 %v12606_v37, %v12605_v36  ;;  %v15184_v36 = vpack.c.bf16 %v1031_v33, %v1030_v32  ;;  %v15186_v37 = vpack.c.bf16 %v1015_v35, %v1014_v34  ;;  %v15156_v32 = vpack.c.bf16 %v844_v27, %v843_v26  ;;  %v827_v33 = vld [vmem:[#allocation2 + $0x310] sm:$0xff]  ;;  %v828_v34 = vld [vmem:[#allocation2 + $0x318] sm:$0xff]  ;;  %v845_v35 = vld [vmem:[#allocation2 + $0x3a0] sm:$0xff] }
 0x219   :  { %13839 = vmatprep.subr.mxu0 %v12607_v38 }
 0x21a   :  { %13840 = vmatpush3.msra.mxu0 %v12607_v38  ;;  %v1032_v38 = vld [vmem:[#allocation2 + $0x490] sm:$0xff] }
 0x21b   :  { %13842 = vmatmul.mubr.msk.f32.vlgmr.msra.gmra.mrb[4].mxu0 %vm472_vm0, %v365_v30  ;;  %v15188_v42 = vpack.c.bf16 %v1033_v39, %v1032_v38  ;;  %v740_v30 = vld [vmem:[#allocation4 + $0x28] sm:$0xff]  ;;  %v829_v39 = vld [vmem:[#allocation2 + $0x320] sm:$0xff] }
 0x21c   :  { %13846 = vmatprep.mubr.msk.f32.mxu0 %vm472_vm0, %v739_v31 }
 0x235   :  { %v12640_v41 = vpop.f32.mrb[2].mxu0 }
 0x236   :  { %v12641_v44 = vpop.f32.mrb[3].mxu0 }
 0x237   :  { %v12642_v47 = vadd.f32 %v12641_v44, %v12640_v41  ;;  %v1017_v41 = vld [vmem:[#allocation2 + $0x418] sm:$0xff]  ;;  %v1034_v44 = vld [vmem:[#allocation2 + $0x4a0] sm:$0xff] }
 0x238   :  { %v15190_v43 = vpack.c.bf16 %v1017_v41, %v1016_v40  ;;  %v830_v40 = vld [vmem:[#allocation2 + $0x328] sm:$0xff]  ;;  %v847_v41 = vld [vmem:[#allocation2 + $0x3b0] sm:$0xff] }
 0x239   :  { %13834 = vmatprep.subr.mxu1 %v12642_v47 }
 0x23a   :  { %13835 = vmatpush3.msra.mxu1 %v12642_v47  ;;  %v1019_v47 = vld [vmem:[#allocation2 + $0x428] sm:$0xff] }
 0x23b   :  { %13837 = vmatmul.mubr.msk.f32.vlgmr.msra.gmra.mrb[0].mxu1 %vm472_vm0, %v471_v49  ;;  %15121 = vmatprep.subr.bf16.mxu1 %v15120_v48  ;;  %v15192_v48 = vpack.c.bf16 %v1035_v45, %v1034_v44  ;;  %v15194_v49 = vpack.c.bf16 %v1019_v47, %v1018_v46  ;;  %v831_v45 = vld [vmem:[#allocation2 + $0x330] sm:$0xff]  ;;  %v832_v46 = vld [vmem:[#allocation2 + $0x338] sm:$0xff]  ;;  %v849_v47 = vld [vmem:[#allocation2 + $0x3c0] sm:$0xff] }
 0x23c   :  { %15123 = vmatpush3.bf16.msra.mxu1 %v15122_v50  ;;  %732 = vmatprep.mubr.f32.mxu1 %v17199_v25  ;;  %v1036_v50 = vld [vmem:[#allocation2 + $0x4b0] sm:$0xff] }
 0x23d   :  { %15125 = vmatprep.subr.bf16.mxu1 %v15124_v51  ;;  %v1037_v51 = vld [vmem:[#allocation2 + $0x4b8] sm:$0xff] }
 0x23e   :  { %v15196_v54 = vpack.c.bf16 %v1037_v51, %v1036_v50  ;;  %v833_v51 = vld [vmem:[#allocation2 + $0x340] sm:$0xff] }
 0x240   :  { %15127 = vmatpush3.bf16.msra.mxu1 %v15126_v57  ;;  %v1038_v57 = vld [vmem:[#allocation2 + $0x4c0] sm:$0xff] }
 0x241   :  { %15129 = vmatprep.subr.bf16.mxu1 %v15128_v58  ;;  %v1039_v58 = vld [vmem:[#allocation2 + $0x4c8] sm:$0xff] }
 0x242   :  { %v15200_v61 = vpack.c.bf16 %v1039_v58, %v1038_v57  ;;  %v835_v58 = vld [vmem:[#allocation2 + $0x350] sm:$0xff] }
 0x244   :  { %15131 = vmatpush3.bf16.msra.mxu1 %v15130_v63  ;;  %v1040_v63 = vld [vmem:[#allocation2 + $0x4d0] sm:$0xff] }
 0x245   :  { %15133 = vmatprep.subr.bf16.mxu1 %v15132_v0  ;;  %v1041_v0 = vld [vmem:[#allocation2 + $0x4d8] sm:$0xff] }
 0x246   :  { %v15204_v3 = vpack.c.bf16 %v1041_v0, %v1040_v63  ;;  %v837_v0 = vld [vmem:[#allocation2 + $0x360] sm:$0xff] }
 0x248   :  { %15135 = vmatpush3.bf16.msra.mxu1 %v15134_v5  ;;  %v1042_v5 = vld [vmem:[#allocation2 + $0x4e0] sm:$0xff] }
 0x249   :  { %15137 = vmatprep.subr.bf16.mxu1 %v15136_v6  ;;  %v1043_v6 = vld [vmem:[#allocation2 + $0x4e8] sm:$0xff] }
 0x24a   :  { %v15208_v9 = vpack.c.bf16 %v1043_v6, %v1042_v5  ;;  %v839_v6 = vld [vmem:[#allocation2 + $0x370] sm:$0xff] }
 0x24b   :  { %v15182_v8 = vpack.c.bf16 %v840_v7, %v839_v6  ;;  %v1788_v6 = vld [vmem:[#allocation2 + $0x890] sm:$0xff]  ;;  %v1789_v7 = vld [vmem:[#allocation2 + $0x898] sm:$0xff] }
 0x24c   :  { %15139 = vmatpush3.bf16.msra.mxu1 %v15138_v11  ;;  %v1044_v11 = vld [vmem:[#allocation2 + $0x4f0] sm:$0xff] }
 0x24d   :  { %15141 = vmatprep.subr.bf16.mxu1 %v15140_v12  ;;  %v1045_v12 = vld [vmem:[#allocation2 + $0x4f8] sm:$0xff] }
 0x24e   :  { %v15212_v13 = vpack.c.bf16 %v1045_v12, %v1044_v11 }
 0x250   :  { %15143 = vmatpush3.bf16.msra.mxu1 %v15142_v17 }
 0x251   :  { %15145 = vmatprep.subr.bf16.mxu1 %v15144_v18 }
 0x254   :  { %15147 = vmatpush3.bf16.msra.mxu1 %v15146_v23  ;;  %v826_v23 = vld [vmem:[#allocation2 + $0x308] sm:$0xff] }
 0x255   :  { %15149 = vmatprep.subr.bf16.mxu1 %v15148_v24  ;;  %v15154_v31 = vpack.c.bf16 %v826_v23, %v825_v22  ;;  %v1411_v22 = vld [vmem:[#allocation2 + $0x698] sm:$0xff]  ;;  %v1394_v23 = vld [vmem:[#allocation2 + $0x610] sm:$0xff] }
 0x258   :  { %15151 = vmatpush3.bf16.msra.mxu1 %v15150_v28 }
 0x259   :  { %15185 = vmatprep.subr.bf16.mxu1 %v15184_v36  ;;  %v846_v36 = vld [vmem:[#allocation2 + $0x3a8] sm:$0xff] }
 0x25a   :  { %v15160_v38 = vpack.c.bf16 %v846_v36, %v845_v35  ;;  %v1415_v35 = vld [vmem:[#allocation2 + $0x6b8] sm:$0xff]  ;;  %v1398_v36 = vld [vmem:[#allocation2 + $0x630] sm:$0xff] }
 0x25b   :  { %733 = vmatmul.mubr.f32.vlgmr.msra.gmra.mrb[2].mxu1 %v17205_v56 }
 0x25c   :  { %1110 = vmatprep.mubr.f32.mxu1 %v17199_v25  ;;  %15187 = vmatpush3.bf16.msra.mxu1 %v15186_v37  ;;  %v15158_v37 = vpack.c.bf16 %v828_v34, %v827_v33  ;;  %v1414_v34 = vld [vmem:[#allocation2 + $0x6b0] sm:$0xff] }
 0x25d   :  { %15189 = vmatprep.subr.bf16.mxu1 %v15188_v42  ;;  %v848_v42 = vld [vmem:[#allocation2 + $0x3b8] sm:$0xff] }
 0x25e   :  { %v15164_v44 = vpack.c.bf16 %v848_v42, %v847_v41  ;;  %v1417_v41 = vld [vmem:[#allocation2 + $0x6c8] sm:$0xff]  ;;  %v1400_v42 = vld [vmem:[#allocation2 + $0x640] sm:$0xff] }
 0x260   :  { %15191 = vmatpush3.bf16.msra.mxu1 %v15190_v43  ;;  %v15162_v43 = vpack.c.bf16 %v830_v40, %v829_v39  ;;  %v1416_v40 = vld [vmem:[#allocation2 + $0x6c0] sm:$0xff] }
 0x261   :  { %15193 = vmatprep.subr.bf16.mxu1 %v15192_v48  ;;  %v850_v48 = vld [vmem:[#allocation2 + $0x3c8] sm:$0xff] }
 0x262   :  { %v15168_v50 = vpack.c.bf16 %v850_v48, %v849_v47  ;;  %v1419_v47 = vld [vmem:[#allocation2 + $0x6d8] sm:$0xff]  ;;  %v1402_v48 = vld [vmem:[#allocation2 + $0x650] sm:$0xff] }
 0x264   :  { %15195 = vmatpush3.bf16.msra.mxu1 %v15194_v49  ;;  %v15166_v49 = vpack.c.bf16 %v832_v46, %v831_v45  ;;  %v1418_v46 = vld [vmem:[#allocation2 + $0x6d0] sm:$0xff] }
 0x265   :  { %15197 = vmatprep.subr.bf16.mxu1 %v15196_v54  ;;  %v852_v54 = vld [vmem:[#allocation2 + $0x3d8] sm:$0xff] }
 0x266   :  { %v15172_v57 = vpack.c.bf16 %v852_v54, %v851_v53  ;;  %v1421_v53 = vld [vmem:[#allocation2 + $0x6e8] sm:$0xff]  ;;  %v1404_v54 = vld [vmem:[#allocation2 + $0x660] sm:$0xff] }
 0x268   :  { %15199 = vmatpush3.bf16.msra.mxu1 %v15198_v55  ;;  %v15170_v55 = vpack.c.bf16 %v834_v52, %v833_v51  ;;  %v1420_v52 = vld [vmem:[#allocation2 + $0x6e0] sm:$0xff] }
 0x269   :  { %15201 = vmatprep.subr.bf16.mxu1 %v15200_v61  ;;  %v854_v61 = vld [vmem:[#allocation2 + $0x3e8] sm:$0xff] }
 0x26a   :  { %v15176_v63 = vpack.c.bf16 %v854_v61, %v853_v60  ;;  %v1423_v60 = vld [vmem:[#allocation2 + $0x6f8] sm:$0xff] }
 0x26c   :  { %15203 = vmatpush3.bf16.msra.mxu1 %v15202_v62  ;;  %v15174_v62 = vpack.c.bf16 %v836_v59, %v835_v58  ;;  %v1422_v59 = vld [vmem:[#allocation2 + $0x6f0] sm:$0xff] }
 0x26d   :  { %15205 = vmatprep.subr.bf16.mxu1 %v15204_v3  ;;  %v856_v3 = vld [vmem:[#allocation2 + $0x3f8] sm:$0xff]  ;;  %v15276_v61 = vpack.c.bf16 %v1423_v60, %v1422_v59 }
 0x26e   :  { %v15180_v5 = vpack.c.bf16 %v856_v3, %v855_v2  ;;  %v1787_v2 = vld [vmem:[#allocation2 + $0x888] sm:$0xff]  ;;  %v1770_v3 = vld [vmem:[#allocation2 + $0x800] sm:$0xff] }
 0x270   :  { %15207 = vmatpush3.bf16.msra.mxu1 %v15206_v4  ;;  %v15178_v4 = vpack.c.bf16 %v838_v1, %v837_v0  ;;  %v1786_v1 = vld [vmem:[#allocation2 + $0x880] sm:$0xff] }
 0x271   :  { %15209 = vmatprep.subr.bf16.mxu1 %v15208_v9  ;;  %v928_v9 = vld [vmem:[#allocation4 + $0x30] sm:$0xff] }
 0x274   :  { %15211 = vmatpush3.bf16.msra.mxu1 %v15210_v10 }
 0x275   :  { %15213 = vmatprep.subr.bf16.mxu1 %v15212_v13  ;;  %v1408_v13 = vld [vmem:[#allocation2 + $0x680] sm:$0xff] }
 0x276   :  { %v15248_v19 = vpack.c.bf16 %v1409_v14, %v1408_v13 }
 0x278   :  { %15215 = vmatpush3.bf16.msra.mxu1 %v15214_v16  ;;  %v1393_v16 = vld [vmem:[#allocation2 + $0x608] sm:$0xff] }
 0x279   :  { %v15250_v20 = vpack.c.bf16 %v1393_v16, %v1392_v15  ;;  %15249 = vmatprep.subr.bf16.mxu1 %v15248_v19  ;;  %v1219_v16 = vld [vmem:[#allocation2 + $0x580] sm:$0xff]  ;;  %v1220_v19 = vld [vmem:[#allocation2 + $0x588] sm:$0xff] }
 0x27b   :  { %1111 = vmatmul.mubr.f32.vlgmr.msra.gmra.mrb[4].mxu1 %v17205_v56 }
 0x27c   :  { %1488 = vmatprep.mubr.f32.mxu1 %v17199_v25  ;;  %15251 = vmatpush3.bf16.msra.mxu1 %v15250_v20 }
 0x30e   :  { %v17220_v17 = vpop.f32.mrb[0].mxu1 }
 0x30f   :  { %v17222_v18 = vpop.f32.mrb[1].mxu1 }
 0x32e   :  { %v12681_v21 = vpop.f32.mrb[2].mxu1 }
 0x32f   :  { %v12682_v24 = vpop.f32.mrb[3].mxu1 }
 0x330   :  { %v12683_v28 = vadd.f32 %v12682_v24, %v12681_v21  ;;  %v1410_v21 = vld [vmem:[#allocation2 + $0x690] sm:$0xff]  ;;  %v1395_v24 = vld [vmem:[#allocation2 + $0x618] sm:$0xff] }
 0x331   :  { %v15252_v26 = vpack.c.bf16 %v1411_v22, %v1410_v21  ;;  %v15254_v27 = vpack.c.bf16 %v1395_v24, %v1394_v23  ;;  %v929_v21 = vld [vmem:[#allocation4 + $0x38] sm:$0xff]  ;;  %v1117_v22 = vld [vmem:[#allocation4 + $0x40] sm:$0xff]  ;;  %v15216_v23 = vpack.c.bf16 %v1220_v19, %v1219_v16  ;;  %v1776_v19 = vld [vmem:[#allocation2 + $0x830] sm:$0xff] }
 0x332   :  { %13844 = vmatprep.subr.mxu0 %v12683_v28  ;;  %v1203_v24 = vld [vmem:[#allocation2 + $0x500] sm:$0xff] }
 0x333   :  { %13845 = vmatpush3.msra.mxu0 %v12683_v28  ;;  %15253 = vmatprep.subr.bf16.mxu1 %v15252_v26  ;;  %v1412_v28 = vld [vmem:[#allocation2 + $0x6a0] sm:$0xff]  ;;  %v1204_v26 = vld [vmem:[#allocation2 + $0x508] sm:$0xff] }
 0x334   :  { %15153 = vmatprep.subr.bf16.mxu0 %v15152_v29  ;;  %13847 = vmatmul.mubr.msk.f32.vlgmr.msra.gmra.mrb[4].mxu0 %vm472_vm0, %v740_v30  ;;  %v1413_v29 = vld [vmem:[#allocation2 + $0x6a8] sm:$0xff]  ;;  %v1396_v30 = vld [vmem:[#allocation2 + $0x620] sm:$0xff] }
 0x335   :  { %15155 = vmatpush3.bf16.msra.mxu0 %v15154_v31  ;;  %921 = vmatprep.mubr.f32.mxu0 %v17199_v25  ;;  %v1397_v31 = vld [vmem:[#allocation2 + $0x628] sm:$0xff] }
 0x336   :  { %15157 = vmatprep.subr.bf16.mxu0 %v15156_v32  ;;  %15255 = vmatpush3.bf16.msra.mxu1 %v15254_v27  ;;  %v15256_v32 = vpack.c.bf16 %v1413_v29, %v1412_v28  ;;  %v15258_v33 = vpack.c.bf16 %v1397_v31, %v1396_v30  ;;  %v1221_v27 = vld [vmem:[#allocation2 + $0x590] sm:$0xff]  ;;  %v1222_v28 = vld [vmem:[#allocation2 + $0x598] sm:$0xff]  ;;  %v1118_v29 = vld [vmem:[#allocation4 + $0x48] sm:$0xff]  ;;  %v15218_v30 = vpack.c.bf16 %v1204_v26, %v1203_v24 }
 0x337   :  { %v15220_v31 = vpack.c.bf16 %v1222_v28, %v1221_v27  ;;  %v1795_v24 = vld [vmem:[#allocation2 + $0x8c8] sm:$0xff]  ;;  %v1778_v26 = vld [vmem:[#allocation2 + $0x840] sm:$0xff] }
 0x338   :  { %15257 = vmatprep.subr.bf16.mxu1 %v15256_v32  ;;  %v1205_v32 = vld [vmem:[#allocation2 + $0x510] sm:$0xff] }
 0x339   :  { %15159 = vmatpush3.bf16.msra.mxu0 %v15158_v37  ;;  %v1399_v37 = vld [vmem:[#allocation2 + $0x638] sm:$0xff] }
 0x33a   :  { %15161 = vmatprep.subr.bf16.mxu0 %v15160_v38  ;;  %15259 = vmatpush3.bf16.msra.mxu1 %v15258_v33  ;;  %v15260_v38 = vpack.c.bf16 %v1415_v35, %v1414_v34  ;;  %v15262_v39 = vpack.c.bf16 %v1399_v37, %v1398_v36  ;;  %v1206_v33 = vld [vmem:[#allocation2 + $0x518] sm:$0xff]  ;;  %v1223_v34 = vld [vmem:[#allocation2 + $0x5a0] sm:$0xff]  ;;  %v1224_v35 = vld [vmem:[#allocation2 + $0x5a8] sm:$0xff] }
 0x33b   :  { %v15222_v36 = vpack.c.bf16 %v1206_v33, %v1205_v32  ;;  %v1207_v37 = vld [vmem:[#allocation2 + $0x520] sm:$0xff]  ;;  %v1797_v32 = vld [vmem:[#allocation2 + $0x8d8] sm:$0xff] }
 0x33c   :  { %15261 = vmatprep.subr.bf16.mxu1 %v15260_v38  ;;  %v1208_v38 = vld [vmem:[#allocation2 + $0x528] sm:$0xff] }
 0x33d   :  { %15163 = vmatpush3.bf16.msra.mxu0 %v15162_v43  ;;  %v1401_v43 = vld [vmem:[#allocation2 + $0x648] sm:$0xff] }
 0x33e   :  { %15165 = vmatprep.subr.bf16.mxu0 %v15164_v44  ;;  %15263 = vmatpush3.bf16.msra.mxu1 %v15262_v39  ;;  %v15264_v44 = vpack.c.bf16 %v1417_v41, %v1416_v40  ;;  %v15266_v45 = vpack.c.bf16 %v1401_v43, %v1400_v42  ;;  %v1225_v39 = vld [vmem:[#allocation2 + $0x5b0] sm:$0xff]  ;;  %v1226_v40 = vld [vmem:[#allocation2 + $0x5b8] sm:$0xff]  ;;  %v15226_v41 = vpack.c.bf16 %v1208_v38, %v1207_v37  ;;  %v1799_v37 = vld [vmem:[#allocation2 + $0x8e8] sm:$0xff] }
 0x33f   :  { %v15228_v42 = vpack.c.bf16 %v1226_v40, %v1225_v39  ;;  %v1209_v43 = vld [vmem:[#allocation2 + $0x530] sm:$0xff]  ;;  %v1782_v38 = vld [vmem:[#allocation2 + $0x860] sm:$0xff]  ;;  %v1783_v39 = vld [vmem:[#allocation2 + $0x868] sm:$0xff] }
 0x340   :  { %15265 = vmatprep.subr.bf16.mxu1 %v15264_v44  ;;  %v1210_v44 = vld [vmem:[#allocation2 + $0x538] sm:$0xff] }
 0x341   :  { %15167 = vmatpush3.bf16.msra.mxu0 %v15166_v49  ;;  %v1403_v49 = vld [vmem:[#allocation2 + $0x658] sm:$0xff] }
 0x342   :  { %15169 = vmatprep.subr.bf16.mxu0 %v15168_v50  ;;  %15267 = vmatpush3.bf16.msra.mxu1 %v15266_v45  ;;  %v15268_v50 = vpack.c.bf16 %v1419_v47, %v1418_v46  ;;  %v15270_v51 = vpack.c.bf16 %v1403_v49, %v1402_v48  ;;  %v1227_v45 = vld [vmem:[#allocation2 + $0x5c0] sm:$0xff]  ;;  %v1228_v46 = vld [vmem:[#allocation2 + $0x5c8] sm:$0xff]  ;;  %v15230_v47 = vpack.c.bf16 %v1210_v44, %v1209_v43  ;;  %v1801_v43 = vld [vmem:[#allocation2 + $0x8f8] sm:$0xff] }
 0x343   :  { %v15232_v48 = vpack.c.bf16 %v1228_v46, %v1227_v45  ;;  %v1211_v49 = vld [vmem:[#allocation2 + $0x540] sm:$0xff]  ;;  %v1784_v44 = vld [vmem:[#allocation2 + $0x870] sm:$0xff]  ;;  %v1785_v45 = vld [vmem:[#allocation2 + $0x878] sm:$0xff] }
 0x344   :  { %15269 = vmatprep.subr.bf16.mxu1 %v15268_v50  ;;  %v1229_v50 = vld [vmem:[#allocation2 + $0x5d0] sm:$0xff] }
 0x345   :  { %15171 = vmatpush3.bf16.msra.mxu0 %v15170_v55  ;;  %v1405_v55 = vld [vmem:[#allocation2 + $0x668] sm:$0xff] }
 0x346   :  { %15173 = vmatprep.subr.bf16.mxu0 %v15172_v57  ;;  %15271 = vmatpush3.bf16.msra.mxu1 %v15270_v51  ;;  %v15272_v57 = vpack.c.bf16 %v1421_v53, %v1420_v52  ;;  %v15274_v58 = vpack.c.bf16 %v1405_v55, %v1404_v54  ;;  %v1230_v51 = vld [vmem:[#allocation2 + $0x5d8] sm:$0xff]  ;;  %v1213_v54 = vld [vmem:[#allocation2 + $0x550] sm:$0xff] }
 0x347   :  { %v15236_v53 = vpack.c.bf16 %v1230_v51, %v1229_v50  ;;  %v1214_v55 = vld [vmem:[#allocation2 + $0x558] sm:$0xff]  ;;  %v1960_v50 = vld [vmem:[#allocation2 + $0x908] sm:$0xff] }
 0x348   :  { %15273 = vmatprep.subr.bf16.mxu1 %v15272_v57  ;;  %v1231_v57 = vld [vmem:[#allocation2 + $0x5e0] sm:$0xff]  ;;  %v15238_v59 = vpack.c.bf16 %v1214_v55, %v1213_v54  ;;  %v1977_v54 = vld [vmem:[#allocation2 + $0x990] sm:$0xff]  ;;  %v1978_v55 = vld [vmem:[#allocation2 + $0x998] sm:$0xff] }
 0x349   :  { %15175 = vmatpush3.bf16.msra.mxu0 %v15174_v62  ;;  %v1406_v62 = vld [vmem:[#allocation2 + $0x670] sm:$0xff] }
 0x34a   :  { %15177 = vmatprep.subr.bf16.mxu0 %v15176_v63  ;;  %15275 = vmatpush3.bf16.msra.mxu1 %v15274_v58  ;;  %v1407_v63 = vld [vmem:[#allocation2 + $0x678] sm:$0xff]  ;;  %v1232_v58 = vld [vmem:[#allocation2 + $0x5e8] sm:$0xff] }
 0x34b   :  { %v15278_v0 = vpack.c.bf16 %v1407_v63, %v1406_v62  ;;  %15277 = vmatprep.subr.bf16.mxu1 %v15276_v61  ;;  %v15240_v60 = vpack.c.bf16 %v1232_v58, %v1231_v57  ;;  %v1215_v61 = vld [vmem:[#allocation2 + $0x560] sm:$0xff]  ;;  %v1216_v62 = vld [vmem:[#allocation2 + $0x568] sm:$0xff]  ;;  %v1233_v63 = vld [vmem:[#allocation2 + $0x5f0] sm:$0xff] }
 0x34c   :  { %v1961_v57 = vld [vmem:[#allocation2 + $0x910] sm:$0xff]  ;;  %v1962_v58 = vld [vmem:[#allocation2 + $0x918] sm:$0xff] }
 0x34d   :  { %15179 = vmatpush3.bf16.msra.mxu0 %v15178_v4  ;;  %v15312_v4 = vpack.c.bf16 %v1787_v2, %v1786_v1  ;;  %v15242_v1 = vpack.c.bf16 %v1216_v62, %v1215_v61  ;;  %v15350_v61 = vpack.c.bf16 %v1962_v58, %v1961_v57  ;;  %v1979_v62 = vld [vmem:[#allocation2 + $0x9a0] sm:$0xff] }
 0x34e   :  { %15181 = vmatprep.subr.bf16.mxu0 %v15180_v5  ;;  %v12757_v10 = vpop.f32.mrb[4].mxu1  ;;  %v1771_v5 = vld [vmem:[#allocation2 + $0x808] sm:$0xff]  ;;  %15279 = vmatpush3.bf16.msra.mxu1 %v15278_v0  ;;  %v1234_v0 = vld [vmem:[#allocation2 + $0x5f8] sm:$0xff]  ;;  %v1585_v58 = vld [vmem:[#allocation2 + $0x720] sm:$0xff] }
 0x34f   :  { %v12758_v11 = vpop.f32.mrb[5].mxu1  ;;  %15313 = vmatprep.subr.bf16.mxu1 %v15312_v4  ;;  %v15244_v2 = vpack.c.bf16 %v1234_v0, %v1233_v63  ;;  %v1218_v4 = vld [vmem:[#allocation2 + $0x578] sm:$0xff]  ;;  %v1980_v63 = vld [vmem:[#allocation2 + $0x9a8] sm:$0xff]  ;;  %v1963_v0 = vld [vmem:[#allocation2 + $0x920] sm:$0xff] }
 0x350   :  { %v17228_v12 = vadd.f32 %v12758_v11, %v12757_v10  ;;  %v1772_v10 = vld [vmem:[#allocation2 + $0x810] sm:$0xff]  ;;  %v1773_v11 = vld [vmem:[#allocation2 + $0x818] sm:$0xff] }
 0x351   :  { %15183 = vmatpush3.bf16.msra.mxu0 %v15182_v8  ;;  %v15314_v8 = vpack.c.bf16 %v1771_v5, %v1770_v3  ;;  %1489 = vmatmul.mubr.f32.vlgmr.msra.gmra.mrb[6].mxu1 %v17205_v56  ;;  %v15318_v13 = vpack.c.bf16 %v1773_v11, %v1772_v10  ;;  %v1217_v3 = vld [vmem:[#allocation2 + $0x570] sm:$0xff]  ;;  %v1775_v10 = vld [vmem:[#allocation2 + $0x828] sm:$0xff] }
 0x352   :  { %1866 = vmatprep.mubr.f32.mxu1 %v17199_v25  ;;  %v15246_v5 = vpack.c.bf16 %v1218_v4, %v1217_v3  ;;  %v1981_v4 = vld [vmem:[#allocation2 + $0x9b0] sm:$0xff] }
 0x353   :  { %15315 = vmatpush3.bf16.msra.mxu1 %v15314_v8 }
 0x354   :  { %922 = vmatmul.mubr.f32.vlgmr.msra.gmra.mrb[6].mxu0 %v17205_v56 }
 0x355   :  { %13851 = vmatprep.mubr.msk.f32.mxu0 %vm472_vm0, %v928_v9  ;;  %v15316_v9 = vpack.c.bf16 %v1789_v7, %v1788_v6  ;;  %v1790_v6 = vld [vmem:[#allocation2 + $0x8a0] sm:$0xff]  ;;  %v1791_v7 = vld [vmem:[#allocation2 + $0x8a8] sm:$0xff] }
 0x356   :  { %v15320_v8 = vpack.c.bf16 %v1791_v7, %v1790_v6  ;;  %v1965_v6 = vld [vmem:[#allocation2 + $0x930] sm:$0xff]  ;;  %v1966_v7 = vld [vmem:[#allocation2 + $0x938] sm:$0xff] }
 0x357   :  { %15317 = vmatprep.subr.bf16.mxu1 %v15316_v9  ;;  %v1774_v9 = vld [vmem:[#allocation2 + $0x820] sm:$0xff] }
 0x358   :  { %15319 = vmatpush3.bf16.msra.mxu1 %v15318_v13  ;;  %v15322_v11 = vpack.c.bf16 %v1775_v10, %v1774_v9  ;;  %v1792_v13 = vld [vmem:[#allocation2 + $0x8b0] sm:$0xff]  ;;  %v15358_v9 = vpack.c.bf16 %v1966_v7, %v1965_v6  ;;  %v1983_v10 = vld [vmem:[#allocation2 + $0x9c0] sm:$0xff] }
 0x359   :  { %15321 = vmatprep.subr.bf16.mxu1 %v15320_v8  ;;  %v1589_v7 = vld [vmem:[#allocation2 + $0x740] sm:$0xff] }
 0x35c   :  { %15323 = vmatpush3.bf16.msra.mxu1 %v15322_v11  ;;  %v1984_v11 = vld [vmem:[#allocation2 + $0x9c8] sm:$0xff] }
 0x427   :  { %v12719_v14 = vpop.f32.mrb[6].mxu0 }
 0x428   :  { %v12720_v15 = vpop.f32.mrb[7].mxu0 }
 0x429   :  { %v12721_v20 = vadd.f32 %v12720_v15, %v12719_v14  ;;  %v1793_v14 = vld [vmem:[#allocation2 + $0x8b8] sm:$0xff]  ;;  %v1306_v15 = vld [vmem:[#allocation4 + $0x50] sm:$0xff] }
 0x42a   :  { %v15324_v16 = vpack.c.bf16 %v1793_v14, %v1792_v13  ;;  %v1967_v13 = vld [vmem:[#allocation2 + $0x940] sm:$0xff]  ;;  %v1968_v14 = vld [vmem:[#allocation2 + $0x948] sm:$0xff] }
 0x42b   :  { %13849 = vmatprep.subr.mxu0 %v12721_v20 }
 0x42c   :  { %13850 = vmatpush3.msra.mxu0 %v12721_v20  ;;  %v1777_v20 = vld [vmem:[#allocation2 + $0x838] sm:$0xff]  ;;  %15325 = vmatprep.subr.bf16.mxu1 %v15324_v16  ;;  %v15362_v16 = vpack.c.bf16 %v1968_v14, %v1967_v13  ;;  %v1591_v14 = vld [vmem:[#allocation2 + $0x750] sm:$0xff] }
 0x42d   :  { %13852 = vmatmul.mubr.msk.f32.vlgmr.msra.gmra.mrb[4].mxu0 %vm472_vm0, %v929_v21  ;;  %13854 = vmatprep.subr.mxu0 %v17228_v12  ;;  %v15326_v21 = vpack.c.bf16 %v1777_v20, %v1776_v19  ;;  %v1985_v19 = vld [vmem:[#allocation2 + $0x9d0] sm:$0xff]  ;;  %v1986_v20 = vld [vmem:[#allocation2 + $0x9d8] sm:$0xff] }
 0x42e   :  { %13855 = vmatpush3.msra.mxu0 %v17228_v12  ;;  %13856 = vmatprep.mubr.msk.f32.mxu0 %vm472_vm0, %v1117_v22  ;;  %v15224_v12 = vpack.c.bf16 %v1224_v35, %v1223_v34  ;;  %v12833_v22 = vpop.f32.mrb[6].mxu1  ;;  %v1780_v34 = vld [vmem:[#allocation2 + $0x850] sm:$0xff]  ;;  %v1781_v35 = vld [vmem:[#allocation2 + $0x858] sm:$0xff] }
 0x42f   :  { %15217 = vmatprep.subr.bf16.mxu0 %v15216_v23  ;;  %15327 = vmatpush3.bf16.msra.mxu1 %v15326_v21  ;;  %v1794_v23 = vld [vmem:[#allocation2 + $0x8c0] sm:$0xff]  ;;  %v15364_v21 = vpack.c.bf16 %v1986_v20, %v1985_v19  ;;  %v1610_v19 = vld [vmem:[#allocation2 + $0x7e8] sm:$0xff] }
 0x430   :  { %v15328_v28 = vpack.c.bf16 %v1795_v24, %v1794_v23  ;;  %v1987_v24 = vld [vmem:[#allocation2 + $0x9e0] sm:$0xff] }
 0x432   :  { %15329 = vmatprep.subr.bf16.mxu1 %v15328_v28  ;;  %v1971_v28 = vld [vmem:[#allocation2 + $0x960] sm:$0xff] }
 0x435   :  { %13857 = vmatmul.mubr.msk.f32.vlgmr.msra.gmra.mrb[4].mxu0 %vm472_vm0, %v1118_v29  ;;  %v1779_v29 = vld [vmem:[#allocation2 + $0x848] sm:$0xff] }
 0x436   :  { %15219 = vmatpush3.bf16.msra.mxu0 %v15218_v30  ;;  %1299 = vmatprep.mubr.f32.mxu0 %v17199_v25  ;;  %v1212_v25 = vld [vmem:[#allocation2 + $0x548] sm:$0xff]  ;;  %v15330_v30 = vpack.c.bf16 %v1779_v29, %v1778_v26 }
 0x437   :  { %15221 = vmatprep.subr.bf16.mxu0 %v15220_v31  ;;  %v15234_v52 = vpack.c.bf16 %v1212_v25, %v1211_v49  ;;  %v1796_v31 = vld [vmem:[#allocation2 + $0x8d0] sm:$0xff]  ;;  %v1976_v49 = vld [vmem:[#allocation2 + $0x988] sm:$0xff]  ;;  %v1959_v25 = vld [vmem:[#allocation2 + $0x900] sm:$0xff] }
 0x438   :  { %15331 = vmatpush3.bf16.msra.mxu1 %v15330_v30  ;;  %v15332_v33 = vpack.c.bf16 %v1797_v32, %v1796_v31  ;;  %v1988_v26 = vld [vmem:[#allocation2 + $0x9e8] sm:$0xff]  ;;  %v1989_v31 = vld [vmem:[#allocation2 + $0x9f0] sm:$0xff]  ;;  %v1990_v32 = vld [vmem:[#allocation2 + $0x9f8] sm:$0xff] }
 0x439   :  { %v15368_v29 = vpack.c.bf16 %v1988_v26, %v1987_v24  ;;  %v1972_v30 = vld [vmem:[#allocation2 + $0x968] sm:$0xff]  ;;  %v1612_v24 = vld [vmem:[#allocation2 + $0x7f8] sm:$0xff] }
 0x43a   :  { %15223 = vmatpush3.bf16.msra.mxu0 %v15222_v36  ;;  %v15334_v36 = vpack.c.bf16 %v1781_v35, %v1780_v34  ;;  %15333 = vmatprep.subr.bf16.mxu1 %v15332_v33  ;;  %v15370_v33 = vpack.c.bf16 %v1972_v30, %v1971_v28  ;;  %v15372_v34 = vpack.c.bf16 %v1990_v32, %v1989_v31  ;;  %v1973_v35 = vld [vmem:[#allocation2 + $0x970] sm:$0xff]  ;;  %v1596_v30 = vld [vmem:[#allocation2 + $0x778] sm:$0xff] }
 0x43b   :  { %15225 = vmatprep.subr.bf16.mxu0 %v15224_v12  ;;  %v1798_v12 = vld [vmem:[#allocation2 + $0x8e0] sm:$0xff] }
 0x43c   :  { %15335 = vmatpush3.bf16.msra.mxu1 %v15334_v36  ;;  %v15336_v40 = vpack.c.bf16 %v1799_v37, %v1798_v12  ;;  %v1974_v36 = vld [vmem:[#allocation2 + $0x978] sm:$0xff] }
 0x43d   :  { %v15374_v12 = vpack.c.bf16 %v1974_v36, %v1973_v35  ;;  %v1684_v35 = vld [vmem:[#allocation4 + $0x70] sm:$0xff] }
 0x43e   :  { %15227 = vmatpush3.bf16.msra.mxu0 %v15226_v41  ;;  %v15338_v41 = vpack.c.bf16 %v1783_v39, %v1782_v38  ;;  %15337 = vmatprep.subr.bf16.mxu1 %v15336_v40  ;;  %v1597_v39 = vld [vmem:[#allocation2 + $0x780] sm:$0xff]  ;;  %v1598_v40 = vld [vmem:[#allocation2 + $0x788] sm:$0xff] }
 0x43f   :  { %15229 = vmatprep.subr.bf16.mxu0 %v15228_v42  ;;  %v1800_v42 = vld [vmem:[#allocation2 + $0x8f0] sm:$0xff] }
 0x440   :  { %15339 = vmatpush3.bf16.msra.mxu1 %v15338_v41  ;;  %v15340_v46 = vpack.c.bf16 %v1801_v43, %v1800_v42  ;;  %v1307_v42 = vld [vmem:[#allocation4 + $0x58] sm:$0xff]  ;;  %v1495_v43 = vld [vmem:[#allocation4 + $0x60] sm:$0xff] }
 0x442   :  { %15231 = vmatpush3.bf16.msra.mxu0 %v15230_v47  ;;  %v15342_v47 = vpack.c.bf16 %v1785_v45, %v1784_v44  ;;  %15341 = vmatprep.subr.bf16.mxu1 %v15340_v46  ;;  %v15280_v44 = vpack.c.bf16 %v1598_v40, %v1597_v39  ;;  %v1581_v45 = vld [vmem:[#allocation2 + $0x700] sm:$0xff]  ;;  %v1582_v46 = vld [vmem:[#allocation2 + $0x708] sm:$0xff] }
 0x443   :  { %15233 = vmatprep.subr.bf16.mxu0 %v15232_v48  ;;  %v1975_v48 = vld [vmem:[#allocation2 + $0x980] sm:$0xff]  ;;  %v2354_v39 = vld [vmem:[#allocation2 + $0xb88] sm:$0xff] }
 0x444   :  { %15343 = vmatpush3.bf16.msra.mxu1 %v15342_v47  ;;  %v15344_v51 = vpack.c.bf16 %v1976_v49, %v1975_v48  ;;  %v1599_v47 = vld [vmem:[#allocation2 + $0x790] sm:$0xff]  ;;  %v1600_v48 = vld [vmem:[#allocation2 + $0x798] sm:$0xff]  ;;  %v1496_v49 = vld [vmem:[#allocation4 + $0x68] sm:$0xff] }
 0x445   :  { %v2337_v40 = vld [vmem:[#allocation2 + $0xb00] sm:$0xff] }
 0x446   :  { %15235 = vmatpush3.bf16.msra.mxu0 %v15234_v52  ;;  %v15346_v52 = vpack.c.bf16 %v1960_v50, %v1959_v25  ;;  %15345 = vmatprep.subr.bf16.mxu1 %v15344_v51  ;;  %v15282_v25 = vpack.c.bf16 %v1582_v46, %v1581_v45  ;;  %v15284_v50 = vpack.c.bf16 %v1600_v48, %v1599_v47  ;;  %v1583_v51 = vld [vmem:[#allocation2 + $0x710] sm:$0xff]  ;;  %v2356_v45 = vld [vmem:[#allocation2 + $0xb98] sm:$0xff] }
 0x447   :  { %15237 = vmatprep.subr.bf16.mxu0 %v15236_v53  ;;  %v17245_v53 = vld [vmem:[%s17892_s24] sm:$0xff]  ;;  %v2339_v46 = vld [vmem:[#allocation2 + $0xb10] sm:$0xff]  ;;  %v2340_v47 = vld [vmem:[#allocation2 + $0xb18] sm:$0xff] }
 0x448   :  { %1867 = vmatmul.mubr.f32.vlgmr.msra.gmra.mrb[8].mxu1 %v17245_v53 }
 0x449   :  { %15347 = vmatpush3.bf16.msra.mxu1 %v15346_v52  ;;  %v1584_v52 = vld [vmem:[#allocation2 + $0x718] sm:$0xff] }
 0x44a   :  { %15239 = vmatpush3.bf16.msra.mxu0 %v15238_v59  ;;  %v17251_v59 = vld [vmem:[%s17892_s24 + $0x8] sm:$0xff]  ;;  %v15286_v57 = vpack.c.bf16 %v1584_v52, %v1583_v51  ;;  %v2341_v51 = vld [vmem:[#allocation2 + $0xb20] sm:$0xff] }
 0x44b   :  { %15241 = vmatprep.subr.bf16.mxu0 %v15240_v60  ;;  %2055 = vmatprep.mubr.f32.mxu1 %v17251_v59  ;;  %v15348_v60 = vpack.c.bf16 %v1978_v55, %v1977_v54  ;;  %v1601_v54 = vld [vmem:[#allocation2 + $0x7a0] sm:$0xff]  ;;  %v1602_v55 = vld [vmem:[#allocation2 + $0x7a8] sm:$0xff] }
 0x44c   :  { %v2342_v52 = vld [vmem:[#allocation2 + $0xb28] sm:$0xff] }
 0x44d   :  { %15349 = vmatprep.subr.bf16.mxu1 %v15348_v60  ;;  %v1586_v60 = vld [vmem:[#allocation2 + $0x728] sm:$0xff] }
 0x44e   :  { %15243 = vmatpush3.bf16.msra.mxu0 %v15242_v1  ;;  %15351 = vmatpush3.bf16.msra.mxu1 %v15350_v61  ;;  %v1964_v1 = vld [vmem:[#allocation2 + $0x928] sm:$0xff]  ;;  %v1603_v61 = vld [vmem:[#allocation2 + $0x7b0] sm:$0xff] }
 0x44f   :  { %15245 = vmatprep.subr.bf16.mxu0 %v15244_v2  ;;  %v15352_v2 = vpack.c.bf16 %v1980_v63, %v1979_v62  ;;  %v15354_v3 = vpack.c.bf16 %v1964_v1, %v1963_v0  ;;  %v1604_v62 = vld [vmem:[#allocation2 + $0x7b8] sm:$0xff]  ;;  %v15290_v63 = vpack.c.bf16 %v1586_v60, %v1585_v58  ;;  %v1587_v1 = vld [vmem:[#allocation2 + $0x730] sm:$0xff] }
 0x450   :  { %v15292_v0 = vpack.c.bf16 %v1604_v62, %v1603_v61  ;;  %v2343_v58 = vld [vmem:[#allocation2 + $0xb30] sm:$0xff]  ;;  %v2344_v60 = vld [vmem:[#allocation2 + $0xb38] sm:$0xff] }
 0x451   :  { %15353 = vmatprep.subr.bf16.mxu1 %v15352_v2  ;;  %v1588_v2 = vld [vmem:[#allocation2 + $0x738] sm:$0xff]  ;;  %v15422_v62 = vpack.c.bf16 %v2344_v60, %v2343_v58  ;;  %v2173_v58 = vld [vmem:[#allocation2 + $0xac8] sm:$0xff] }
 0x452   :  { %15247 = vmatpush3.bf16.msra.mxu0 %v15246_v5  ;;  %15355 = vmatpush3.bf16.msra.mxu1 %v15354_v3  ;;  %v1982_v5 = vld [vmem:[#allocation2 + $0x9b8] sm:$0xff]  ;;  %v1605_v3 = vld [vmem:[#allocation2 + $0x7c0] sm:$0xff] }
 0x453   :  { %v15356_v8 = vpack.c.bf16 %v1982_v5, %v1981_v4  ;;  %v1606_v4 = vld [vmem:[#allocation2 + $0x7c8] sm:$0xff]  ;;  %v15294_v5 = vpack.c.bf16 %v1588_v2, %v1587_v1  ;;  %v2345_v1 = vld [vmem:[#allocation2 + $0xb40] sm:$0xff] }
 0x454   :  { %v15296_v6 = vpack.c.bf16 %v1606_v4, %v1605_v3  ;;  %v2346_v2 = vld [vmem:[#allocation2 + $0xb48] sm:$0xff] }
 0x455   :  { %1300 = vmatmul.mubr.f32.vlgmr.msra.gmra.mrb[8].mxu0 %v17205_v56  ;;  %v12834_v56 = vpop.f32.mrb[7].mxu1  ;;  %15357 = vmatprep.subr.bf16.mxu1 %v15356_v8  ;;  %v1590_v8 = vld [vmem:[#allocation2 + $0x748] sm:$0xff]  ;;  %v15426_v4 = vpack.c.bf16 %v2346_v2, %v2345_v1  ;;  %v2175_v1 = vld [vmem:[#allocation2 + $0xad8] sm:$0xff] }
 0x456   :  { %13861 = vmatprep.mubr.msk.f32.mxu0 %vm472_vm0, %v1306_v15  ;;  %v17240_v27 = vadd.f32 %v12834_v56, %v12833_v22  ;;  %15359 = vmatpush3.bf16.msra.mxu1 %v15358_v9  ;;  %v15360_v15 = vpack.c.bf16 %v1984_v11, %v1983_v10  ;;  %v1969_v22 = vld [vmem:[#allocation2 + $0x950] sm:$0xff]  ;;  %v1970_v56 = vld [vmem:[#allocation2 + $0x958] sm:$0xff]  ;;  %v15298_v11 = vpack.c.bf16 %v1590_v8, %v1589_v7 }
 0x457   :  { %v15366_v23 = vpack.c.bf16 %v1970_v56, %v1969_v22  ;;  %v1607_v9 = vld [vmem:[#allocation2 + $0x7d0] sm:$0xff]  ;;  %v1608_v10 = vld [vmem:[#allocation2 + $0x7d8] sm:$0xff]  ;;  %v1593_v22 = vld [vmem:[#allocation2 + $0x760] sm:$0xff] }
 0x458   :  { %15361 = vmatprep.subr.bf16.mxu1 %v15360_v15  ;;  %v15300_v13 = vpack.c.bf16 %v1608_v10, %v1607_v9  ;;  %v1592_v15 = vld [vmem:[#allocation2 + $0x758] sm:$0xff]  ;;  %v1594_v56 = vld [vmem:[#allocation2 + $0x768] sm:$0xff]  ;;  %v2347_v7 = vld [vmem:[#allocation2 + $0xb50] sm:$0xff] }
 0x459   :  { %v15302_v20 = vpack.c.bf16 %v1592_v15, %v1591_v14  ;;  %v15306_v26 = vpack.c.bf16 %v1594_v56, %v1593_v22  ;;  %v2348_v8 = vld [vmem:[#allocation2 + $0xb58] sm:$0xff]  ;;  %v2349_v14 = vld [vmem:[#allocation2 + $0xb60] sm:$0xff]  ;;  %v2350_v15 = vld [vmem:[#allocation2 + $0xb68] sm:$0xff] }
 0x45a   :  { %15363 = vmatpush3.bf16.msra.mxu1 %v15362_v16  ;;  %v1609_v16 = vld [vmem:[#allocation2 + $0x7e0] sm:$0xff]  ;;  %v15430_v10 = vpack.c.bf16 %v2348_v8, %v2347_v7  ;;  %v2351_v56 = vld [vmem:[#allocation2 + $0xb70] sm:$0xff]  ;;  %v2177_v7 = vld [vmem:[#allocation2 + $0xae8] sm:$0xff] }
 0x45b   :  { %15365 = vmatprep.subr.bf16.mxu1 %v15364_v21  ;;  %v15304_v21 = vpack.c.bf16 %v1610_v19, %v1609_v16  ;;  %v15434_v19 = vpack.c.bf16 %v2350_v15, %v2349_v14  ;;  %v2179_v14 = vld [vmem:[#allocation2 + $0xaf8] sm:$0xff] }
 0x45e   :  { %15367 = vmatpush3.bf16.msra.mxu1 %v15366_v23  ;;  %v1611_v23 = vld [vmem:[#allocation2 + $0x7f0] sm:$0xff] }
 0x45f   :  { %15369 = vmatprep.subr.bf16.mxu1 %v15368_v29  ;;  %v15308_v28 = vpack.c.bf16 %v1612_v24, %v1611_v23  ;;  %v1595_v29 = vld [vmem:[#allocation2 + $0x770] sm:$0xff]  ;;  %v2352_v23 = vld [vmem:[#allocation2 + $0xb78] sm:$0xff] }
 0x460   :  { %v15310_v31 = vpack.c.bf16 %v1596_v30, %v1595_v29  ;;  %v15438_v24 = vpack.c.bf16 %v2352_v23, %v2351_v56  ;;  %v1685_v30 = vld [vmem:[#allocation4 + $0x78] sm:$0xff] }
 0x462   :  { %15371 = vmatpush3.bf16.msra.mxu1 %v15370_v33 }
 0x463   :  { %15373 = vmatprep.subr.bf16.mxu1 %v15372_v34 }
 0x466   :  { %15375 = vmatpush3.bf16.msra.mxu1 %v15374_v12 }
 0x469   :  { %2056 = vmatmul.mubr.f32.vlgmr.msra.gmra.mrb[10].mxu1 %v17245_v53 }
 0x46a   :  { %2433 = vmatprep.mubr.f32.mxu1 %v17251_v59 }
 0x51b   :  { %v12909_v32 = vpop.f32.mrb[8].mxu1 }
 0x51c   :  { %v12910_v33 = vpop.f32.mrb[9].mxu1 }
 0x51d   :  { %v17263_v34 = vadd.f32 %v12910_v33, %v12909_v32  ;;  %v2164_v32 = vld [vmem:[#allocation2 + $0xa80] sm:$0xff]  ;;  %v2165_v33 = vld [vmem:[#allocation2 + $0xa88] sm:$0xff] }
 0x528   :  { %v12795_v37 = vpop.f32.mrb[8].mxu0 }
 0x529   :  { %v12796_v38 = vpop.f32.mrb[9].mxu0 }
 0x52a   :  { %v12797_v41 = vadd.f32 %v12796_v38, %v12795_v37  ;;  %v2353_v38 = vld [vmem:[#allocation2 + $0xb80] sm:$0xff] }
 0x52c   :  { %13859 = vmatprep.subr.mxu0 %v12797_v41 }
 0x52d   :  { %13860 = vmatpush3.msra.mxu0 %v12797_v41  ;;  %v2338_v41 = vld [vmem:[#allocation2 + $0xb08] sm:$0xff] }
 0x52e   :  { %13862 = vmatmul.mubr.msk.f32.vlgmr.msra.gmra.mrb[4].mxu0 %vm472_vm0, %v1307_v42  ;;  %13864 = vmatprep.subr.mxu0 %v17240_v27  ;;  %v15408_v42 = vpack.c.bf16 %v2354_v39, %v2353_v38  ;;  %v2148_v38 = vld [vmem:[#allocation2 + $0xa00] sm:$0xff]  ;;  %v2149_v39 = vld [vmem:[#allocation2 + $0xa08] sm:$0xff] }
 0x52f   :  { %13865 = vmatpush3.msra.mxu0 %v17240_v27  ;;  %13866 = vmatprep.mubr.msk.f32.mxu0 %vm472_vm0, %v1495_v43  ;;  %v15288_v27 = vpack.c.bf16 %v1602_v55, %v1601_v54  ;;  %v15410_v43 = vpack.c.bf16 %v2338_v41, %v2337_v40  ;;  %v15418_v55 = vpack.c.bf16 %v2342_v52, %v2341_v51  ;;  %v2166_v40 = vld [vmem:[#allocation2 + $0xa90] sm:$0xff]  ;;  %v2063_v41 = vld [vmem:[#allocation4 + $0x98] sm:$0xff] }
 0x530   :  { %15281 = vmatprep.subr.bf16.mxu0 %v15280_v44  ;;  %15409 = vmatprep.subr.bf16.mxu1 %v15408_v42  ;;  %v2355_v44 = vld [vmem:[#allocation2 + $0xb90] sm:$0xff]  ;;  %v15378_v42 = vpack.c.bf16 %v2149_v39, %v2148_v38  ;;  %v2171_v51 = vld [vmem:[#allocation2 + $0xab8] sm:$0xff] }
 0x531   :  { %15411 = vmatpush3.bf16.msra.mxu1 %v15410_v43  ;;  %v15412_v48 = vpack.c.bf16 %v2356_v45, %v2355_v44  ;;  %v2150_v44 = vld [vmem:[#allocation2 + $0xa10] sm:$0xff]  ;;  %v2151_v45 = vld [vmem:[#allocation2 + $0xa18] sm:$0xff] }
 0x533   :  { %15413 = vmatprep.subr.bf16.mxu1 %v15412_v48  ;;  %v15382_v48 = vpack.c.bf16 %v2151_v45, %v2150_v44  ;;  %v2737_v45 = vld [vmem:[#allocation2 + $0xdb0] sm:$0xff] }
 0x536   :  { %13867 = vmatmul.mubr.msk.f32.vlgmr.msra.gmra.mrb[4].mxu0 %vm472_vm0, %v1496_v49  ;;  %v15414_v49 = vpack.c.bf16 %v2340_v47, %v2339_v46  ;;  %v2168_v46 = vld [vmem:[#allocation2 + $0xaa0] sm:$0xff]  ;;  %v2169_v47 = vld [vmem:[#allocation2 + $0xaa8] sm:$0xff] }
 0x537   :  { %15283 = vmatpush3.bf16.msra.mxu0 %v15282_v25  ;;  %1677 = vmatprep.mubr.f32.mxu0 %v17251_v59  ;;  %v2357_v25 = vld [vmem:[#allocation2 + $0xba0] sm:$0xff] }
 0x538   :  { %15285 = vmatprep.subr.bf16.mxu0 %v15284_v50  ;;  %15415 = vmatpush3.bf16.msra.mxu1 %v15414_v49  ;;  %v2358_v50 = vld [vmem:[#allocation2 + $0xba8] sm:$0xff]  ;;  %v2152_v49 = vld [vmem:[#allocation2 + $0xa20] sm:$0xff] }
 0x539   :  { %v15416_v54 = vpack.c.bf16 %v2358_v50, %v2357_v25  ;;  %v2153_v25 = vld [vmem:[#allocation2 + $0xa28] sm:$0xff]  ;;  %v2170_v50 = vld [vmem:[#allocation2 + $0xab0] sm:$0xff] }
 0x53a   :  { %v15386_v52 = vpack.c.bf16 %v2153_v25, %v2152_v49  ;;  %v2739_v25 = vld [vmem:[#allocation2 + $0xdc0] sm:$0xff] }
 0x53b   :  { %15287 = vmatpush3.bf16.msra.mxu0 %v15286_v57  ;;  %15417 = vmatprep.subr.bf16.mxu1 %v15416_v54  ;;  %v2359_v57 = vld [vmem:[#allocation2 + $0xbb0] sm:$0xff]  ;;  %v15388_v54 = vpack.c.bf16 %v2171_v51, %v2170_v50  ;;  %v2740_v50 = vld [vmem:[#allocation2 + $0xdc8] sm:$0xff]  ;;  %v2723_v51 = vld [vmem:[#allocation2 + $0xd40] sm:$0xff] }
 0x53c   :  { %15289 = vmatprep.subr.bf16.mxu0 %v15288_v27  ;;  %v12947_v36 = vpop.f32.mrb[10].mxu1  ;;  %15419 = vmatpush3.bf16.msra.mxu1 %v15418_v55  ;;  %v2360_v27 = vld [vmem:[#allocation2 + $0xbb8] sm:$0xff]  ;;  %v2154_v55 = vld [vmem:[#allocation2 + $0xa30] sm:$0xff] }
 0x53d   :  { %v12948_v12 = vpop.f32.mrb[11].mxu1  ;;  %v15420_v61 = vpack.c.bf16 %v2360_v27, %v2359_v57  ;;  %v2155_v57 = vld [vmem:[#allocation2 + $0xa38] sm:$0xff]  ;;  %v2172_v27 = vld [vmem:[#allocation2 + $0xac0] sm:$0xff] }
 0x53e   :  { %v17266_v37 = vadd.f32 %v12948_v12, %v12947_v36  ;;  %v2062_v36 = vld [vmem:[#allocation4 + $0x90] sm:$0xff]  ;;  %v15376_v12 = vpack.c.bf16 %v2165_v33, %v2164_v32  ;;  %v15390_v60 = vpack.c.bf16 %v2155_v57, %v2154_v55 }
 0x53f   :  { %15291 = vmatpush3.bf16.msra.mxu0 %v15290_v63  ;;  %15421 = vmatprep.subr.bf16.mxu1 %v15420_v61  ;;  %v2361_v63 = vld [vmem:[#allocation2 + $0xbc0] sm:$0xff]  ;;  %v15392_v61 = vpack.c.bf16 %v2173_v58, %v2172_v27  ;;  %v2733_v33 = vld [vmem:[#allocation2 + $0xd90] sm:$0xff]  ;;  %v2742_v27 = vld [vmem:[#allocation2 + $0xdd8] sm:$0xff] }
 0x540   :  { %15293 = vmatprep.subr.bf16.mxu0 %v15292_v0  ;;  %15423 = vmatpush3.bf16.msra.mxu1 %v15422_v62  ;;  %v2362_v0 = vld [vmem:[#allocation2 + $0xbc8] sm:$0xff]  ;;  %v2156_v62 = vld [vmem:[#allocation2 + $0xa40] sm:$0xff]  ;;  %v2741_v57 = vld [vmem:[#allocation2 + $0xdd0] sm:$0xff] }
 0x541   :  { %v15424_v3 = vpack.c.bf16 %v2362_v0, %v2361_v63  ;;  %v2157_v63 = vld [vmem:[#allocation2 + $0xa48] sm:$0xff]  ;;  %v2174_v0 = vld [vmem:[#allocation2 + $0xad0] sm:$0xff] }
 0x542   :  { %v15394_v2 = vpack.c.bf16 %v2157_v63, %v2156_v62  ;;  %v2725_v58 = vld [vmem:[#allocation2 + $0xd50] sm:$0xff]  ;;  %v2743_v63 = vld [vmem:[#allocation2 + $0xde0] sm:$0xff] }
 0x543   :  { %15295 = vmatpush3.bf16.msra.mxu0 %v15294_v5  ;;  %15425 = vmatprep.subr.bf16.mxu1 %v15424_v3  ;;  %v2363_v5 = vld [vmem:[#allocation2 + $0xbd0] sm:$0xff]  ;;  %v15396_v3 = vpack.c.bf16 %v2175_v1, %v2174_v0  ;;  %v2744_v0 = vld [vmem:[#allocation2 + $0xde8] sm:$0xff]  ;;  %v2727_v1 = vld [vmem:[#allocation2 + $0xd60] sm:$0xff] }
 0x544   :  { %15297 = vmatprep.subr.bf16.mxu0 %v15296_v6  ;;  %15427 = vmatpush3.bf16.msra.mxu1 %v15426_v4  ;;  %v2364_v6 = vld [vmem:[#allocation2 + $0xbd8] sm:$0xff]  ;;  %v2158_v4 = vld [vmem:[#allocation2 + $0xa50] sm:$0xff] }
 0x545   :  { %v15428_v9 = vpack.c.bf16 %v2364_v6, %v2363_v5  ;;  %v2159_v5 = vld [vmem:[#allocation2 + $0xa58] sm:$0xff]  ;;  %v2176_v6 = vld [vmem:[#allocation2 + $0xae0] sm:$0xff] }
 0x546   :  { %v15398_v8 = vpack.c.bf16 %v2159_v5, %v2158_v4  ;;  %v2745_v5 = vld [vmem:[#allocation2 + $0xdf0] sm:$0xff] }
 0x547   :  { %15299 = vmatpush3.bf16.msra.mxu0 %v15298_v11  ;;  %15429 = vmatprep.subr.bf16.mxu1 %v15428_v9  ;;  %v2365_v11 = vld [vmem:[#allocation2 + $0xbe0] sm:$0xff]  ;;  %v15400_v9 = vpack.c.bf16 %v2177_v7, %v2176_v6  ;;  %v2746_v6 = vld [vmem:[#allocation2 + $0xdf8] sm:$0xff] }
 0x548   :  { %15301 = vmatprep.subr.bf16.mxu0 %v15300_v13  ;;  %15431 = vmatpush3.bf16.msra.mxu1 %v15430_v10  ;;  %v2366_v13 = vld [vmem:[#allocation2 + $0xbe8] sm:$0xff]  ;;  %v2160_v10 = vld [vmem:[#allocation2 + $0xa60] sm:$0xff]  ;;  %v15500_v7 = vpack.c.bf16 %v2746_v6, %v2745_v5 }
 0x549   :  { %v15432_v16 = vpack.c.bf16 %v2366_v13, %v2365_v11  ;;  %v2161_v11 = vld [vmem:[#allocation2 + $0xa68] sm:$0xff]  ;;  %v2178_v13 = vld [vmem:[#allocation2 + $0xaf0] sm:$0xff] }
 0x54a   :  { %v15402_v15 = vpack.c.bf16 %v2161_v11, %v2160_v10 }
 0x54b   :  { %15303 = vmatpush3.bf16.msra.mxu0 %v15302_v20  ;;  %15433 = vmatprep.subr.bf16.mxu1 %v15432_v16  ;;  %v2367_v20 = vld [vmem:[#allocation2 + $0xbf0] sm:$0xff]  ;;  %v15404_v16 = vpack.c.bf16 %v2179_v14, %v2178_v13  ;;  %v2542_v14 = vld [vmem:[#allocation2 + $0xc80] sm:$0xff] }
 0x54c   :  { %15305 = vmatprep.subr.bf16.mxu0 %v15304_v21  ;;  %v2368_v21 = vld [vmem:[#allocation2 + $0xbf8] sm:$0xff]  ;;  %15435 = vmatpush3.bf16.msra.mxu1 %v15434_v19  ;;  %v2162_v19 = vld [vmem:[#allocation2 + $0xa70] sm:$0xff] }
 0x54d   :  { %v15436_v22 = vpack.c.bf16 %v2368_v21, %v2367_v20  ;;  %v2163_v20 = vld [vmem:[#allocation2 + $0xa78] sm:$0xff] }
 0x54e   :  { %v15406_v21 = vpack.c.bf16 %v2163_v20, %v2162_v19  ;;  %v2252_v19 = vld [vmem:[#allocation4 + $0xa8] sm:$0xff]  ;;  %v2440_v20 = vld [vmem:[#allocation4 + $0xb0] sm:$0xff] }
 0x54f   :  { %15307 = vmatpush3.bf16.msra.mxu0 %v15306_v26  ;;  %15437 = vmatprep.subr.bf16.mxu1 %v15436_v22  ;;  %v2251_v22 = vld [vmem:[#allocation4 + $0xa0] sm:$0xff] }
 0x550   :  { %15309 = vmatprep.subr.bf16.mxu0 %v15308_v28  ;;  %15439 = vmatpush3.bf16.msra.mxu1 %v15438_v24 }
 0x553   :  { %15311 = vmatpush3.bf16.msra.mxu0 %v15310_v31  ;;  %2434 = vmatmul.mubr.f32.vlgmr.msra.gmra.mrb[12].mxu1 %v17245_v53  ;;  %v1873_v31 = vld [vmem:[#allocation4 + $0x80] sm:$0xff] }
 0x554   :  { %2811 = vmatprep.mubr.f32.mxu1 %v17251_v59 }
 0x556   :  { %1678 = vmatmul.mubr.f32.vlgmr.msra.gmra.mrb[10].mxu0 %v17245_v53 }
 0x557   :  { %13871 = vmatprep.mubr.msk.f32.mxu0 %vm472_vm0, %v1684_v35  ;;  %v1874_v35 = vld [vmem:[#allocation4 + $0x88] sm:$0xff] }
 0x626   :  { %v13023_v56 = vpop.f32.mrb[12].mxu1 }
 0x627   :  { %v13024_v23 = vpop.f32.mrb[13].mxu1 }
 0x628   :  { %v17282_v24 = vadd.f32 %v13024_v23, %v13023_v56  ;;  %v2527_v56 = vld [vmem:[#allocation2 + $0xc08] sm:$0xff]  ;;  %v2544_v23 = vld [vmem:[#allocation2 + $0xc90] sm:$0xff] }
 0x629   :  { %v12871_v26 = vpop.f32.mrb[10].mxu0 }
 0x62a   :  { %v12872_v28 = vpop.f32.mrb[11].mxu0 }
 0x62b   :  { %v12873_v29 = vadd.f32 %v12872_v28, %v12871_v26  ;;  %v2731_v26 = vld [vmem:[#allocation2 + $0xd80] sm:$0xff]  ;;  %v2732_v28 = vld [vmem:[#allocation2 + $0xd88] sm:$0xff] }
 0x62d   :  { %13869 = vmatprep.subr.mxu0 %v12873_v29 }
 0x62e   :  { %13870 = vmatpush3.msra.mxu0 %v12873_v29  ;;  %v2715_v29 = vld [vmem:[#allocation2 + $0xd00] sm:$0xff] }
 0x62f   :  { %13872 = vmatmul.mubr.msk.f32.vlgmr.msra.gmra.mrb[4].mxu0 %vm472_vm0, %v1685_v30  ;;  %13874 = vmatprep.subr.mxu0 %v17263_v34  ;;  %v2716_v30 = vld [vmem:[#allocation2 + $0xd08] sm:$0xff] }
 0x630   :  { %13875 = vmatpush3.msra.mxu0 %v17263_v34  ;;  %13876 = vmatprep.mubr.msk.f32.mxu0 %vm472_vm0, %v1873_v31  ;;  %v2167_v34 = vld [vmem:[#allocation2 + $0xa98] sm:$0xff]  ;;  %v15472_v31 = vpack.c.bf16 %v2732_v28, %v2731_v26  ;;  %v15474_v32 = vpack.c.bf16 %v2716_v30, %v2715_v29 }
 0x631   :  { %13879 = vmatprep.subr.mxu0 %v17266_v37  ;;  %v15380_v43 = vpack.c.bf16 %v2167_v34, %v2166_v40  ;;  %v2735_v40 = vld [vmem:[#allocation2 + $0xda0] sm:$0xff]  ;;  %v2736_v34 = vld [vmem:[#allocation2 + $0xda8] sm:$0xff]  ;;  %v2545_v26 = vld [vmem:[#allocation2 + $0xc98] sm:$0xff] }
 0x632   :  { %15473 = vmatprep.subr.bf16.mxu1 %v15472_v31  ;;  %v2441_v28 = vld [vmem:[#allocation4 + $0xb8] sm:$0xff]  ;;  %v15444_v30 = vpack.c.bf16 %v2545_v26, %v2544_v23  ;;  %v2528_v31 = vld [vmem:[#allocation2 + $0xc10] sm:$0xff]  ;;  %v3097_v26 = vld [vmem:[#allocation2 + $0xf20] sm:$0xff] }
 0x633   :  { %15475 = vmatpush3.bf16.msra.mxu1 %v15474_v32  ;;  %v2529_v32 = vld [vmem:[#allocation2 + $0xc18] sm:$0xff] }
 0x637   :  { %13877 = vmatmul.mubr.msk.f32.vlgmr.msra.gmra.mrb[4].mxu0 %vm472_vm0, %v1874_v35  ;;  %v2734_v35 = vld [vmem:[#allocation2 + $0xd98] sm:$0xff] }
 0x638   :  { %13880 = vmatpush3.msra.mxu0 %v17266_v37  ;;  %13881 = vmatprep.mubr.msk.f32.mxu0 %vm472_vm0, %v2062_v36  ;;  %v15384_v37 = vpack.c.bf16 %v2169_v47, %v2168_v46  ;;  %v2717_v36 = vld [vmem:[#allocation2 + $0xd10] sm:$0xff]  ;;  %v15476_v38 = vpack.c.bf16 %v2734_v35, %v2733_v33  ;;  %v2738_v46 = vld [vmem:[#allocation2 + $0xdb8] sm:$0xff]  ;;  %v2546_v33 = vld [vmem:[#allocation2 + $0xca0] sm:$0xff] }
 0x639   :  { %15377 = vmatprep.subr.bf16.mxu0 %v15376_v12  ;;  %v2718_v12 = vld [vmem:[#allocation2 + $0xd18] sm:$0xff]  ;;  %v2721_v47 = vld [vmem:[#allocation2 + $0xd30] sm:$0xff]  ;;  %v2547_v35 = vld [vmem:[#allocation2 + $0xca8] sm:$0xff] }
 0x63a   :  { %v15478_v39 = vpack.c.bf16 %v2718_v12, %v2717_v36  ;;  %15477 = vmatprep.subr.bf16.mxu1 %v15476_v38  ;;  %v15446_v36 = vpack.c.bf16 %v2529_v32, %v2528_v31  ;;  %v2530_v12 = vld [vmem:[#allocation2 + $0xc20] sm:$0xff]  ;;  %v2531_v38 = vld [vmem:[#allocation2 + $0xc28] sm:$0xff]  ;;  %v3116_v31 = vld [vmem:[#allocation2 + $0xfb8] sm:$0xff] }
 0x63c   :  { %15479 = vmatpush3.bf16.msra.mxu1 %v15478_v39  ;;  %v2548_v39 = vld [vmem:[#allocation2 + $0xcb0] sm:$0xff] }
 0x63f   :  { %13882 = vmatmul.mubr.msk.f32.vlgmr.msra.gmra.mrb[4].mxu0 %vm472_vm0, %v2063_v41  ;;  %v2719_v41 = vld [vmem:[#allocation2 + $0xd20] sm:$0xff] }
 0x640   :  { %15379 = vmatpush3.bf16.msra.mxu0 %v15378_v42  ;;  %2244 = vmatprep.mubr.f32.mxu0 %v17251_v59  ;;  %v2720_v42 = vld [vmem:[#allocation2 + $0xd28] sm:$0xff] }
 0x641   :  { %15381 = vmatprep.subr.bf16.mxu0 %v15380_v43  ;;  %v15480_v43 = vpack.c.bf16 %v2736_v34, %v2735_v40  ;;  %v15482_v44 = vpack.c.bf16 %v2720_v42, %v2719_v41  ;;  %v2549_v40 = vld [vmem:[#allocation2 + $0xcb8] sm:$0xff]  ;;  %v15450_v34 = vpack.c.bf16 %v2531_v38, %v2530_v12  ;;  %v2532_v42 = vld [vmem:[#allocation2 + $0xc30] sm:$0xff]  ;;  %v3118_v12 = vld [vmem:[#allocation2 + $0xfc8] sm:$0xff] }
 0x642   :  { %v15452_v41 = vpack.c.bf16 %v2549_v40, %v2548_v39  ;;  %v3101_v39 = vld [vmem:[#allocation2 + $0xf40] sm:$0xff]  ;;  %v3102_v40 = vld [vmem:[#allocation2 + $0xf48] sm:$0xff] }
 0x643   :  { %15481 = vmatprep.subr.bf16.mxu1 %v15480_v43  ;;  %v2533_v43 = vld [vmem:[#allocation2 + $0xc38] sm:$0xff] }
 0x644   :  { %15383 = vmatpush3.bf16.msra.mxu0 %v15382_v48  ;;  %15483 = vmatpush3.bf16.msra.mxu1 %v15482_v44  ;;  %v2722_v48 = vld [vmem:[#allocation2 + $0xd38] sm:$0xff]  ;;  %v2550_v44 = vld [vmem:[#allocation2 + $0xcc0] sm:$0xff] }
 0x645   :  { %15385 = vmatprep.subr.bf16.mxu0 %v15384_v37  ;;  %v15484_v37 = vpack.c.bf16 %v2738_v46, %v2737_v45  ;;  %v15486_v49 = vpack.c.bf16 %v2722_v48, %v2721_v47  ;;  %v2551_v45 = vld [vmem:[#allocation2 + $0xcc8] sm:$0xff]  ;;  %v15454_v46 = vpack.c.bf16 %v2533_v43, %v2532_v42  ;;  %v2534_v48 = vld [vmem:[#allocation2 + $0xc40] sm:$0xff]  ;;  %v3120_v42 = vld [vmem:[#allocation2 + $0xfd8] sm:$0xff] }
 0x646   :  { %v15456_v47 = vpack.c.bf16 %v2551_v45, %v2550_v44  ;;  %v3103_v44 = vld [vmem:[#allocation2 + $0xf50] sm:$0xff]  ;;  %v3104_v45 = vld [vmem:[#allocation2 + $0xf58] sm:$0xff] }
 0x647   :  { %15485 = vmatprep.subr.bf16.mxu1 %v15484_v37  ;;  %v2552_v37 = vld [vmem:[#allocation2 + $0xcd0] sm:$0xff] }
 0x648   :  { %15387 = vmatpush3.bf16.msra.mxu0 %v15386_v52  ;;  %15487 = vmatpush3.bf16.msra.mxu1 %v15486_v49  ;;  %v2724_v52 = vld [vmem:[#allocation2 + $0xd48] sm:$0xff]  ;;  %v2553_v49 = vld [vmem:[#allocation2 + $0xcd8] sm:$0xff] }
 0x649   :  { %15389 = vmatprep.subr.bf16.mxu0 %v15388_v54  ;;  %v15488_v54 = vpack.c.bf16 %v2740_v50, %v2739_v25  ;;  %v15490_v55 = vpack.c.bf16 %v2724_v52, %v2723_v51  ;;  %v15460_v50 = vpack.c.bf16 %v2553_v49, %v2552_v37  ;;  %v2536_v51 = vld [vmem:[#allocation2 + $0xc50] sm:$0xff]  ;;  %v2537_v52 = vld [vmem:[#allocation2 + $0xc58] sm:$0xff]  ;;  %v3105_v37 = vld [vmem:[#allocation2 + $0xf60] sm:$0xff] }
 0x64a   :  { %v3106_v49 = vld [vmem:[#allocation2 + $0xf68] sm:$0xff] }
 0x64b   :  { %15489 = vmatprep.subr.bf16.mxu1 %v15488_v54  ;;  %v2554_v54 = vld [vmem:[#allocation2 + $0xce0] sm:$0xff] }
 0x64c   :  { %15391 = vmatpush3.bf16.msra.mxu0 %v15390_v60  ;;  %15491 = vmatpush3.bf16.msra.mxu1 %v15490_v55  ;;  %v2726_v60 = vld [vmem:[#allocation2 + $0xd58] sm:$0xff]  ;;  %v2555_v55 = vld [vmem:[#allocation2 + $0xce8] sm:$0xff] }
 0x64d   :  { %15393 = vmatprep.subr.bf16.mxu0 %v15392_v61  ;;  %v15492_v61 = vpack.c.bf16 %v2742_v27, %v2741_v57  ;;  %v15494_v62 = vpack.c.bf16 %v2726_v60, %v2725_v58  ;;  %v15462_v57 = vpack.c.bf16 %v2537_v52, %v2536_v51  ;;  %v15464_v27 = vpack.c.bf16 %v2555_v55, %v2554_v54  ;;  %v2538_v58 = vld [vmem:[#allocation2 + $0xc60] sm:$0xff]  ;;  %v2539_v60 = vld [vmem:[#allocation2 + $0xc68] sm:$0xff]  ;;  %v3124_v51 = vld [vmem:[#allocation2 + $0xff8] sm:$0xff] }
 0x64e   :  { %v3107_v54 = vld [vmem:[#allocation2 + $0xf70] sm:$0xff]  ;;  %v3108_v55 = vld [vmem:[#allocation2 + $0xf78] sm:$0xff] }
 0x64f   :  { %15493 = vmatprep.subr.bf16.mxu1 %v15492_v61  ;;  %v2556_v61 = vld [vmem:[#allocation2 + $0xcf0] sm:$0xff] }
 0x650   :  { %15395 = vmatpush3.bf16.msra.mxu0 %v15394_v2  ;;  %15495 = vmatpush3.bf16.msra.mxu1 %v15494_v62  ;;  %v2728_v2 = vld [vmem:[#allocation2 + $0xd68] sm:$0xff]  ;;  %v2557_v62 = vld [vmem:[#allocation2 + $0xcf8] sm:$0xff] }
 0x651   :  { %15397 = vmatprep.subr.bf16.mxu0 %v15396_v3  ;;  %v15496_v3 = vpack.c.bf16 %v2744_v0, %v2743_v63  ;;  %v15498_v4 = vpack.c.bf16 %v2728_v2, %v2727_v1  ;;  %v15466_v63 = vpack.c.bf16 %v2539_v60, %v2538_v58  ;;  %v15468_v0 = vpack.c.bf16 %v2557_v62, %v2556_v61  ;;  %v2540_v1 = vld [vmem:[#allocation2 + $0xc70] sm:$0xff]  ;;  %v2541_v2 = vld [vmem:[#allocation2 + $0xc78] sm:$0xff]  ;;  %v2920_v61 = vld [vmem:[#allocation2 + $0xe80] sm:$0xff] }
 0x652   :  { %v2921_v62 = vld [vmem:[#allocation2 + $0xe88] sm:$0xff] }
 0x653   :  { %15497 = vmatprep.subr.bf16.mxu1 %v15496_v3  ;;  %v15470_v3 = vpack.c.bf16 %v2541_v2, %v2540_v1  ;;  %v2818_v1 = vld [vmem:[#allocation4 + $0xd0] sm:$0xff]  ;;  %v15504_v2 = vpack.c.bf16 %v2921_v62, %v2920_v61  ;;  %v12161_v62 = vld [vmem:[#allocation22] sm:$0xff] }
 0x654   :  { %15399 = vmatpush3.bf16.msra.mxu0 %v15398_v8  ;;  %15499 = vmatpush3.bf16.msra.mxu1 %v15498_v4  ;;  %v2729_v8 = vld [vmem:[#allocation2 + $0xd70] sm:$0xff]  ;;  %v2629_v4 = vld [vmem:[#allocation4 + $0xc0] sm:$0xff] }
 0x655   :  { %15401 = vmatprep.subr.bf16.mxu0 %v15400_v9  ;;  %v2730_v9 = vld [vmem:[#allocation2 + $0xd78] sm:$0xff]  ;;  %15501 = vmatprep.subr.bf16.mxu1 %v15500_v7 }
 0x656   :  { %v15502_v10 = vpack.c.bf16 %v2730_v9, %v2729_v8  ;;  %v3109_v8 = vld [vmem:[#allocation2 + $0xf80] sm:$0xff]  ;;  %v3110_v9 = vld [vmem:[#allocation2 + $0xf88] sm:$0xff]  ;;  %v9201_v61 = vld [vmem:[#allocation18] sm:$0xff] }
 0x658   :  { %15403 = vmatpush3.bf16.msra.mxu0 %v15402_v15  ;;  %15503 = vmatpush3.bf16.msra.mxu1 %v15502_v10  ;;  %v2543_v15 = vld [vmem:[#allocation2 + $0xc88] sm:$0xff]  ;;  %v15536_v10 = vpack.c.bf16 %v3110_v9, %v3109_v8  ;;  %v2819_v8 = vld [vmem:[#allocation4 + $0xd8] sm:$0xff] }
 0x659   :  { %15405 = vmatprep.subr.bf16.mxu0 %v15404_v16 }
 0x65a   :  { %15537 = vmatprep.subr.bf16.mxu1 %v15536_v10 }
 0x65b   :  { %2812 = vmatmul.mubr.f32.vlgmr.msra.gmra.mrb[14].mxu1 %v17245_v53 }
 0x65c   :  { %15407 = vmatpush3.bf16.msra.mxu0 %v15406_v21  ;;  %3189 = vmatprep.mubr.f32.mxu1 %v17251_v59  ;;  %v15440_v21 = vpack.c.bf16 %v2543_v15, %v2542_v14  ;;  %v3111_v15 = vld [vmem:[#allocation2 + $0xf90] sm:$0xff] }
 0x65f   :  { %2245 = vmatmul.mubr.f32.vlgmr.msra.gmra.mrb[12].mxu0 %v17245_v53 }
 0x660   :  { %13886 = vmatprep.mubr.msk.f32.mxu0 %vm472_vm0, %v2251_v22  ;;  %v2526_v22 = vld [vmem:[#allocation2 + $0xc00] sm:$0xff] }
 0x661   :  { %v15442_v29 = vpack.c.bf16 %v2527_v56, %v2526_v22  ;;  %v3113_v22 = vld [vmem:[#allocation2 + $0xfa0] sm:$0xff]  ;;  %v3114_v56 = vld [vmem:[#allocation2 + $0xfa8] sm:$0xff] }
 0x662   :  { %v15544_v23 = vpack.c.bf16 %v3114_v56, %v3113_v22  ;;  %v2927_v22 = vld [vmem:[#allocation2 + $0xeb8] sm:$0xff] }
 0x72e   :  { %v13099_v5 = vpop.f32.mrb[14].mxu1 }
 0x72f   :  { %v13100_v6 = vpop.f32.mrb[15].mxu1 }
 0x730   :  { %v17294_v7 = vadd.f32 %v13100_v6, %v13099_v5  ;;  %v2922_v5 = vld [vmem:[#allocation2 + $0xe90] sm:$0xff]  ;;  %v2923_v6 = vld [vmem:[#allocation2 + $0xe98] sm:$0xff] }
 0x731   :  { %v15508_v10 = vpack.c.bf16 %v2923_v6, %v2922_v5  ;;  %v6380_v5 = vld [vmem:[%s17868_s8] sm:$0x3] }
 0x732   :  { %v12985_v11 = vpop.f32.mrb[12].mxu0 }
 0x733   :  { %v12986_v13 = vpop.f32.mrb[13].mxu0 }
 0x734   :  { %v12987_v16 = vadd.f32 %v12986_v13, %v12985_v11  ;;  %v3093_v11 = vld [vmem:[#allocation2 + $0xf00] sm:$0xff]  ;;  %v3094_v13 = vld [vmem:[#allocation2 + $0xf08] sm:$0xff] }
 0x735   :  { %v15538_v14 = vpack.c.bf16 %v3094_v13, %v3093_v11  ;;  %v2906_v11 = vld [vmem:[#allocation2 + $0xe10] sm:$0xff]  ;;  %v2907_v13 = vld [vmem:[#allocation2 + $0xe18] sm:$0xff] }
 0x736   :  { %13884 = vmatprep.subr.mxu0 %v12987_v16 }
 0x737   :  { %13885 = vmatpush3.msra.mxu0 %v12987_v16  ;;  %15539 = vmatpush3.bf16.msra.mxu1 %v15538_v14  ;;  %v3112_v16 = vld [vmem:[#allocation2 + $0xf98] sm:$0xff]  ;;  %v2924_v14 = vld [vmem:[#allocation2 + $0xea0] sm:$0xff] }
 0x738   :  { %13887 = vmatmul.mubr.msk.f32.vlgmr.msra.gmra.mrb[4].mxu0 %vm472_vm0, %v2252_v19  ;;  %13889 = vmatprep.subr.mxu0 %v17282_v24  ;;  %v15540_v19 = vpack.c.bf16 %v3112_v16, %v3111_v15  ;;  %v2925_v15 = vld [vmem:[#allocation2 + $0xea8] sm:$0xff]  ;;  %v15510_v16 = vpack.c.bf16 %v2907_v13, %v2906_v11 }
 0x739   :  { %13890 = vmatpush3.msra.mxu0 %v17282_v24  ;;  %13891 = vmatprep.mubr.msk.f32.mxu0 %vm472_vm0, %v2440_v20  ;;  %v15448_v24 = vpack.c.bf16 %v2547_v35, %v2546_v33  ;;  %v3095_v20 = vld [vmem:[#allocation2 + $0xf10] sm:$0xff]  ;;  %v3100_v35 = vld [vmem:[#allocation2 + $0xf38] sm:$0xff]  ;;  %v3008_v13 = vld [vmem:[#allocation4 + $0xe8] sm:$0xff] }
 0x73a   :  { %15441 = vmatprep.subr.bf16.mxu0 %v15440_v21  ;;  %15541 = vmatprep.subr.bf16.mxu1 %v15540_v19  ;;  %v3099_v33 = vld [vmem:[#allocation2 + $0xf30] sm:$0xff]  ;;  %v15512_v19 = vpack.c.bf16 %v2925_v15, %v2924_v14 }
 0x73b   :  { %v3196_v14 = vld [vmem:[#allocation4 + $0xf0] sm:$0xff] }
 0x740   :  { %13892 = vmatmul.mubr.msk.f32.vlgmr.msra.gmra.mrb[4].mxu0 %vm472_vm0, %v2441_v28  ;;  %v3098_v28 = vld [vmem:[#allocation2 + $0xf28] sm:$0xff] }
 0x741   :  { %15443 = vmatpush3.bf16.msra.mxu0 %v15442_v29  ;;  %2622 = vmatprep.mubr.f32.mxu0 %v17251_v59  ;;  %v2535_v59 = vld [vmem:[#allocation2 + $0xc48] sm:$0xff]  ;;  %v15546_v29 = vpack.c.bf16 %v3098_v28, %v3097_v26  ;;  %v2910_v26 = vld [vmem:[#allocation2 + $0xe30] sm:$0xff]  ;;  %v2911_v28 = vld [vmem:[#allocation2 + $0xe38] sm:$0xff] }
 0x742   :  { %15445 = vmatprep.subr.bf16.mxu0 %v15444_v30  ;;  %v15458_v25 = vpack.c.bf16 %v2535_v59, %v2534_v48  ;;  %v3115_v30 = vld [vmem:[#allocation2 + $0xfb0] sm:$0xff]  ;;  %v3122_v48 = vld [vmem:[#allocation2 + $0xfe8] sm:$0xff] }
 0x743   :  { %v15548_v32 = vpack.c.bf16 %v3116_v31, %v3115_v30  ;;  %v2929_v30 = vld [vmem:[#allocation2 + $0xec8] sm:$0xff]  ;;  %v15518_v31 = vpack.c.bf16 %v2911_v28, %v2910_v26  ;;  %v3402_v28 = vld [vmem:[#allocation7 + $0x70] sm:$0xff] }
 0x745   :  { %15447 = vmatpush3.bf16.msra.mxu0 %v15446_v36  ;;  %v15550_v36 = vpack.c.bf16 %v3100_v35, %v3099_v33  ;;  %v2912_v33 = vld [vmem:[#allocation2 + $0xe40] sm:$0xff]  ;;  %v2913_v35 = vld [vmem:[#allocation2 + $0xe48] sm:$0xff] }
 0x746   :  { %15449 = vmatprep.subr.bf16.mxu0 %v15448_v24  ;;  %v3117_v24 = vld [vmem:[#allocation2 + $0xfc0] sm:$0xff] }
 0x747   :  { %v15552_v38 = vpack.c.bf16 %v3118_v12, %v3117_v24  ;;  %v2931_v24 = vld [vmem:[#allocation2 + $0xed8] sm:$0xff]  ;;  %v15522_v12 = vpack.c.bf16 %v2913_v35, %v2912_v33  ;;  %v3680_v35 = vld [vmem:[#allocation7 + $0x80] sm:$0xff] }
 0x749   :  { %15451 = vmatpush3.bf16.msra.mxu0 %v15450_v34  ;;  %v15554_v34 = vpack.c.bf16 %v3102_v40, %v3101_v39  ;;  %v2914_v39 = vld [vmem:[#allocation2 + $0xe50] sm:$0xff]  ;;  %v2915_v40 = vld [vmem:[#allocation2 + $0xe58] sm:$0xff] }
 0x74a   :  { %15453 = vmatprep.subr.bf16.mxu0 %v15452_v41  ;;  %v3119_v41 = vld [vmem:[#allocation2 + $0xfd0] sm:$0xff] }
 0x74b   :  { %v15556_v43 = vpack.c.bf16 %v3120_v42, %v3119_v41  ;;  %v2933_v41 = vld [vmem:[#allocation2 + $0xee8] sm:$0xff]  ;;  %v15526_v42 = vpack.c.bf16 %v2915_v40, %v2914_v39 }
 0x74d   :  { %15455 = vmatpush3.bf16.msra.mxu0 %v15454_v46  ;;  %v15558_v46 = vpack.c.bf16 %v3104_v45, %v3103_v44  ;;  %v2916_v44 = vld [vmem:[#allocation2 + $0xe60] sm:$0xff]  ;;  %v2917_v45 = vld [vmem:[#allocation2 + $0xe68] sm:$0xff] }
 0x74e   :  { %15457 = vmatprep.subr.bf16.mxu0 %v15456_v47  ;;  %v3121_v47 = vld [vmem:[#allocation2 + $0xfe0] sm:$0xff] }
 0x74f   :  { %v15560_v59 = vpack.c.bf16 %v3122_v48, %v3121_v47  ;;  %v2935_v47 = vld [vmem:[#allocation2 + $0xef8] sm:$0xff]  ;;  %v15530_v48 = vpack.c.bf16 %v2917_v45, %v2916_v44  ;;  %v3682_v45 = vld [vmem:[#allocation7 + $0x90] sm:$0xff] }
 0x751   :  { %15459 = vmatpush3.bf16.msra.mxu0 %v15458_v25  ;;  %v15562_v25 = vpack.c.bf16 %v3106_v49, %v3105_v37  ;;  %v2918_v37 = vld [vmem:[#allocation2 + $0xe70] sm:$0xff]  ;;  %v2919_v49 = vld [vmem:[#allocation2 + $0xe78] sm:$0xff] }
 0x752   :  { %15461 = vmatprep.subr.bf16.mxu0 %v15460_v50  ;;  %v3123_v50 = vld [vmem:[#allocation2 + $0xff0] sm:$0xff] }
 0x753   :  { %v15564_v52 = vpack.c.bf16 %v3124_v51, %v3123_v50  ;;  %v3007_v50 = vld [vmem:[#allocation4 + $0xe0] sm:$0xff] }
 0x755   :  { %15463 = vmatpush3.bf16.msra.mxu0 %v15462_v57  ;;  %v15566_v57 = vpack.c.bf16 %v3108_v55, %v3107_v54  ;;  %v3281_v55 = vld [vmem:[#allocation6] sm:$0xff] }
 0x756   :  { %15465 = vmatprep.subr.bf16.mxu0 %v15464_v27  ;;  %v17299_v27 = vld [vmem:[%s17892_s24] sm:$0xff] }
 0x759   :  { %15467 = vmatpush3.bf16.msra.mxu0 %v15466_v63 }
 0x75a   :  { %15469 = vmatprep.subr.bf16.mxu0 %v15468_v0  ;;  %v2630_v0 = vld [vmem:[#allocation4 + $0xc8] sm:$0xff] }
 0x75d   :  { %15471 = vmatpush3.bf16.msra.mxu0 %v15470_v3  ;;  %v2904_v3 = vld [vmem:[#allocation2 + $0xe00] sm:$0xff] }
 0x760   :  { %2623 = vmatmul.mubr.f32.vlgmr.msra.gmra.mrb[14].mxu0 %v17245_v53  ;;  %v3096_v53 = vld [vmem:[#allocation2 + $0xf18] sm:$0xff] }
 0x761   :  { %13896 = vmatprep.mubr.msk.f32.mxu0 %vm472_vm0, %v2629_v4  ;;  %v15542_v21 = vpack.c.bf16 %v3096_v53, %v3095_v20  ;;  %v2905_v4 = vld [vmem:[#allocation2 + $0xe08] sm:$0xff]  ;;  %v2908_v20 = vld [vmem:[#allocation2 + $0xe20] sm:$0xff] }
 0x762   :  { %v15506_v9 = vpack.c.bf16 %v2905_v4, %v2904_v3  ;;  %v2909_v53 = vld [vmem:[#allocation2 + $0xe28] sm:$0xff] }
 0x763   :  { %15543 = vmatpush3.bf16.msra.mxu1 %v15542_v21  ;;  %v2926_v21 = vld [vmem:[#allocation2 + $0xeb0] sm:$0xff]  ;;  %v15514_v56 = vpack.c.bf16 %v2909_v53, %v2908_v20  ;;  %v3399_v3 = vld [vmem:[#allocation7 + $0x58] sm:$0xff] }
 0x764   :  { %15545 = vmatprep.subr.bf16.mxu1 %v15544_v23  ;;  %v15516_v23 = vpack.c.bf16 %v2927_v22, %v2926_v21  ;;  %v3400_v53 = vld [vmem:[#allocation7 + $0x60] sm:$0xff]  ;;  %v3401_v21 = vld [vmem:[#allocation7 + $0x68] sm:$0xff] }
 0x765   :  { %v15592_v22 = vpack.c.bf16 %v3401_v21, %v3400_v53  ;;  %v4443_v53 = vld [vmem:[#allocation7 + $0x198] sm:$0xff] }
 0x767   :  { %15547 = vmatpush3.bf16.msra.mxu1 %v15546_v29  ;;  %v2928_v29 = vld [vmem:[#allocation2 + $0xec0] sm:$0xff] }
 0x768   :  { %15549 = vmatprep.subr.bf16.mxu1 %v15548_v32  ;;  %v15520_v32 = vpack.c.bf16 %v2929_v30, %v2928_v29  ;;  %v3403_v29 = vld [vmem:[#allocation7 + $0x78] sm:$0xff] }
 0x769   :  { %v15596_v30 = vpack.c.bf16 %v3403_v29, %v3402_v28  ;;  %v4447_v28 = vld [vmem:[#allocation7 + $0x1b8] sm:$0xff] }
 0x76b   :  { %15551 = vmatpush3.bf16.msra.mxu1 %v15550_v36  ;;  %v2930_v36 = vld [vmem:[#allocation2 + $0xed0] sm:$0xff] }
 0x76c   :  { %15553 = vmatprep.subr.bf16.mxu1 %v15552_v38  ;;  %v15524_v38 = vpack.c.bf16 %v2931_v24, %v2930_v36  ;;  %v3681_v36 = vld [vmem:[#allocation7 + $0x88] sm:$0xff] }
 0x76d   :  { %v15608_v24 = vpack.c.bf16 %v3681_v36, %v3680_v35  ;;  %v4823_v35 = vld [vmem:[#allocation7 + $0x218] sm:$0xff] }
 0x76f   :  { %15555 = vmatpush3.bf16.msra.mxu1 %v15554_v34  ;;  %v2932_v34 = vld [vmem:[#allocation2 + $0xee0] sm:$0xff] }
 0x770   :  { %15557 = vmatprep.subr.bf16.mxu1 %v15556_v43  ;;  %v15528_v43 = vpack.c.bf16 %v2933_v41, %v2932_v34 }
 0x773   :  { %15559 = vmatpush3.bf16.msra.mxu1 %v15558_v46  ;;  %v2934_v46 = vld [vmem:[#allocation2 + $0xef0] sm:$0xff] }
 0x774   :  { %15561 = vmatprep.subr.bf16.mxu1 %v15560_v59  ;;  %v15532_v59 = vpack.c.bf16 %v2935_v47, %v2934_v46  ;;  %v3683_v46 = vld [vmem:[#allocation7 + $0x98] sm:$0xff] }
 0x777   :  { %15563 = vmatpush3.bf16.msra.mxu1 %v15562_v25  ;;  %v15534_v25 = vpack.c.bf16 %v2919_v49, %v2918_v37 }
 0x778   :  { %15565 = vmatprep.subr.bf16.mxu1 %v15564_v52 }
 0x77b   :  { %15567 = vmatpush3.bf16.msra.mxu1 %v15566_v57  ;;  %v16824_v57 = vmov 0  }
 0x77c   :  { %16453 = vset.pattern.permute.xlu0 %v16824_v57  ;;  %16454 = vset.pattern.permute.xlu1 %v16824_v57  ;;  %v3872_v57 = vld [vmem:[#allocation7 + $0xd0] sm:$0xff] }
 0x77d   :  { %3285 = vperm.xlu0 %16453, %v3281_v55  }
 0x77e   :  { %3190 = vmatmul.mubr.f32.vlgmr.msra.gmra.mrb[16].mxu1 %v17299_v27 }
 0x833   :  { %v13061_v58 = vpop.f32.mrb[14].mxu0 }
 0x834   :  { %v13062_v60 = vpop.f32.mrb[15].mxu0 }
 0x835   :  { %v13063_v63 = vadd.f32 %v13062_v60, %v13061_v58  ;;  %v3282_v58 = vld [vmem:[#allocation6 + $0x8] sm:$0xff]  ;;  %v6341_v60 = vld [vmem:[#allocation10 + $0x10] sm:$0xff] }
 0x836   :  { %3290 = vperm.xlu0 %16453, %v3282_v58   ;;  %v3873_v58 = vld [vmem:[#allocation7 + $0xd8] sm:$0xff] }
 0x837   :  { %13894 = vmatprep.subr.mxu0 %v13063_v63 }
 0x838   :  { %13895 = vmatpush3.msra.mxu0 %v13063_v63  ;;  %v3396_v63 = vld [vmem:[#allocation7 + $0x40] sm:$0xff] }
 0x839   :  { %13897 = vmatmul.mubr.msk.f32.vlgmr.msra.gmra.mrb[4].mxu0 %vm472_vm0, %v2630_v0  ;;  %13899 = vmatprep.subr.mxu0 %v17294_v7 }
 0x83a   :  { %13900 = vmatpush3.msra.mxu0 %v17294_v7  ;;  %13901 = vmatprep.mubr.msk.f32.mxu0 %vm472_vm0, %v2818_v1  ;;  %v16458_v7 = vld [vmem:[%s17892_s24 + $0x8] sm:$0xff]  ;;  %v12163_v1 = vld [vmem:[#allocation22 + $0x10] sm:$0xff] }
 0x83b   :  { %15505 = vmatprep.subr.bf16.mxu0 %v15504_v2  ;;  %6355 = vperm.xlu0 %16453, %v6341_v60   ;;  %v3398_v2 = vld [vmem:[#allocation7 + $0x50] sm:$0xff]  ;;  %v15632_v60 = vpack.c.bf16 %v3873_v58, %v3872_v57  ;;  %v5203_v57 = vld [vmem:[#allocation7 + $0x298] sm:$0xff] }
 0x83c   :  { %v15588_v4 = vpack.c.bf16 %v3399_v3, %v3398_v2  ;;  %v4250_v2 = vld [vmem:[#allocation7 + $0x140] sm:$0xff]  ;;  %v4251_v3 = vld [vmem:[#allocation7 + $0x148] sm:$0xff] }
 0x83f   :  { %9205 = vperm.xlu0 %16453, %v9201_v61   ;;  %v3874_v61 = vld [vmem:[#allocation7 + $0xe0] sm:$0xff] }
 0x841   :  { %13902 = vmatmul.mubr.msk.f32.vlgmr.msra.gmra.mrb[4].mxu0 %vm472_vm0, %v2819_v8 }
 0x842   :  { %15507 = vmatpush3.bf16.msra.mxu0 %v15506_v9  ;;  %3000 = vmatprep.mubr.f32.mxu0 %v16458_v7  ;;  %v3301_v9 = vld [vmem:[#allocation7] sm:$0xff]  ;;  %v3304_v7 = vld [vmem:[#allocation7 + $0x18] sm:$0xff] }
 0x843   :  { %15509 = vmatprep.subr.bf16.mxu0 %v15508_v10  ;;  %12167 = vperm.xlu0 %16453, %v12161_v62   ;;  %v3302_v10 = vld [vmem:[#allocation7 + $0x8] sm:$0xff] }
 0x844   :  { %v15568_v15 = vpack.c.bf16 %v3302_v10, %v3301_v9  ;;  %v3875_v62 = vld [vmem:[#allocation7 + $0xe8] sm:$0xff]  ;;  %v4254_v9 = vld [vmem:[#allocation7 + $0x160] sm:$0xff] }
 0x845   :  { %v4255_v10 = vld [vmem:[#allocation7 + $0x168] sm:$0xff] }
 0x846   :  { %15511 = vmatpush3.bf16.msra.mxu0 %v15510_v16  ;;  %v3303_v16 = vld [vmem:[#allocation7 + $0x10] sm:$0xff] }
 0x847   :  { %15513 = vmatprep.subr.bf16.mxu0 %v15512_v19  ;;  %12177 = vperm.xlu0 %16453, %v12163_v1   ;;  %v3197_v19 = vld [vmem:[#allocation4 + $0xf8] sm:$0xff]  ;;  %v15572_v20 = vpack.c.bf16 %v3304_v7, %v3303_v16  ;;  %v4440_v16 = vld [vmem:[#allocation7 + $0x180] sm:$0xff] }
 0x848   :  { %v4441_v7 = vld [vmem:[#allocation7 + $0x188] sm:$0xff] }
 0x84a   :  { %15515 = vmatpush3.bf16.msra.mxu0 %v15514_v56  ;;  %v3305_v56 = vld [vmem:[#allocation7 + $0x20] sm:$0xff] }
 0x84b   :  { %15517 = vmatprep.subr.bf16.mxu0 %v15516_v23  ;;  %6383 = vperm.xlu0 %16453, %v6380_v5   ;;  %v3306_v23 = vld [vmem:[#allocation7 + $0x28] sm:$0xff]  ;;  %v4252_v5 = vld [vmem:[#allocation7 + $0x150] sm:$0xff] }
 0x84c   :  { %v15576_v26 = vpack.c.bf16 %v3306_v23, %v3305_v56  ;;  %v4445_v56 = vld [vmem:[#allocation7 + $0x1a8] sm:$0xff] }
 0x84e   :  { %15519 = vmatpush3.bf16.msra.mxu0 %v15518_v31  ;;  %v3307_v31 = vld [vmem:[#allocation7 + $0x30] sm:$0xff] }
 0x84f   :  { %15521 = vmatprep.subr.bf16.mxu0 %v15520_v32  ;;  %v3308_v32 = vld [vmem:[#allocation7 + $0x38] sm:$0xff] }
 0x850   :  { %v15580_v33 = vpack.c.bf16 %v3308_v32, %v3307_v31  ;;  %v4821_v31 = vld [vmem:[#allocation7 + $0x208] sm:$0xff] }
 0x851   :  { %v13175_v51 = vpop.f32.mrb[16].mxu1 }
 0x852   :  { %15523 = vmatpush3.bf16.msra.mxu0 %v15522_v12  ;;  %v13176_v52 = vpop.f32.mrb[17].mxu1  ;;  %v3286_v12 = vpop.permute.xlu0 %3285 }
 0x853   :  { %15525 = vmatprep.subr.bf16.mxu0 %v15524_v38  ;;  %v13177_v54 = vadd.f32 %v13176_v52, %v13175_v51  ;;  %v3870_v52 = vld [vmem:[#allocation7 + $0xc0] sm:$0xff] }
 0x856   :  { %15527 = vmatpush3.bf16.msra.mxu0 %v15526_v42 }
 0x857   :  { %15529 = vmatprep.subr.bf16.mxu0 %v15528_v43 }
 0x85a   :  { %15531 = vmatpush3.bf16.msra.mxu0 %v15530_v48 }
 0x85b   :  { %15533 = vmatprep.subr.bf16.mxu0 %v15532_v59  ;;  %v15612_v59 = vpack.c.bf16 %v3683_v46, %v3682_v45  ;;  %v5013_v45 = vld [vmem:[#allocation7 + $0x258] sm:$0xff] }
 0x85e   :  { %15535 = vmatpush3.bf16.msra.mxu0 %v15534_v25  ;;  %v3686_v25 = vld [vmem:[#allocation7 + $0xb0] sm:$0xff] }
 0x861   :  { %3001 = vmatmul.mubr.f32.vlgmr.msra.gmra.mrb[16].mxu0 %v17299_v27  ;;  %v3397_v27 = vld [vmem:[#allocation7 + $0x48] sm:$0xff] }
 0x862   :  { %13906 = vmatprep.mubr.msk.f32.mxu0 %vm472_vm0, %v3007_v50  ;;  %v15584_v0 = vpack.c.bf16 %v3397_v27, %v3396_v63  ;;  %v3687_v50 = vld [vmem:[#allocation7 + $0xb8] sm:$0xff]  ;;  %v15636_v63 = vpack.c.bf16 %v3875_v62, %v3874_v61  ;;  %v3876_v27 = vld [vmem:[#allocation7 + $0xf0] sm:$0xff]  ;;  %v5205_v61 = vld [vmem:[#allocation7 + $0x2a8] sm:$0xff] }
 0x863   :  { %v15620_v51 = vpack.c.bf16 %v3687_v50, %v3686_v25  ;;  %v5200_v50 = vld [vmem:[#allocation7 + $0x280] sm:$0xff] }
 0x864   :  { %15585 = vmatprep.subr.bf16.mxu1 %v15584_v0 }
 0x865   :  { %15587 = vmatpush3.bf16.msra.mxu1 %v15584_v0  ;;  %v3877_v0 = vld [vmem:[#allocation7 + $0xf8] sm:$0xff] }
 0x866   :  { %15589 = vmatprep.subr.bf16.mxu1 %v15588_v4  ;;  %v15640_v1 = vpack.c.bf16 %v3877_v0, %v3876_v27  ;;  %v5207_v27 = vld [vmem:[#allocation7 + $0x2b8] sm:$0xff] }
 0x869   :  { %15591 = vmatpush3.bf16.msra.mxu1 %v15588_v4  ;;  %v15668_v4 = vpack.c.bf16 %v4251_v3, %v4250_v2  ;;  %v5581_v2 = vld [vmem:[#allocation7 + $0x308] sm:$0xff] }
 0x86a   :  { %15593 = vmatprep.subr.bf16.mxu1 %v15592_v22 }
 0x86d   :  { %15595 = vmatpush3.bf16.msra.mxu1 %v15592_v22  ;;  %v4444_v22 = vld [vmem:[#allocation7 + $0x1a0] sm:$0xff] }
 0x86e   :  { %15597 = vmatprep.subr.bf16.mxu1 %v15596_v30  ;;  %v15696_v23 = vpack.c.bf16 %v4445_v56, %v4444_v22  ;;  %v5775_v22 = vld [vmem:[#allocation7 + $0x368] sm:$0xff] }
 0x871   :  { %15599 = vmatpush3.bf16.msra.mxu1 %v15596_v30  ;;  %v4820_v30 = vld [vmem:[#allocation7 + $0x200] sm:$0xff] }
 0x872   :  { %15609 = vmatprep.subr.bf16.mxu1 %v15608_v24  ;;  %v15728_v32 = vpack.c.bf16 %v4821_v31, %v4820_v30  ;;  %v6151_v30 = vld [vmem:[#allocation7 + $0x3c8] sm:$0xff] }
 0x8b5   :  { %v3291_v34 = vpop.permute.xlu0 %3290 }
 0x934   :  { %v13137_v6 = vpop.f32.mrb[16].mxu0 }
 0x935   :  { %v13138_v8 = vpop.f32.mrb[17].mxu0 }
 0x936   :  { %v13139_v11 = vadd.f32 %v13138_v8, %v13137_v6  ;;  %v4253_v6 = vld [vmem:[#allocation7 + $0x158] sm:$0xff] }
 0x937   :  { %v15672_v8 = vpack.c.bf16 %v4253_v6, %v4252_v5  ;;  %v5583_v5 = vld [vmem:[#allocation7 + $0x318] sm:$0xff] }
 0x938   :  { %13904 = vmatprep.subr.mxu0 %v13139_v11 }
 0x939   :  { %13905 = vmatpush3.msra.mxu0 %v13139_v11  ;;  %v15676_v11 = vpack.c.bf16 %v4255_v10, %v4254_v9  ;;  %v5585_v9 = vld [vmem:[#allocation7 + $0x328] sm:$0xff] }
 0x93a   :  { %13907 = vmatmul.mubr.msk.f32.vlgmr.msra.gmra.mrb[4].mxu0 %vm472_vm0, %v3008_v13  ;;  %13909 = vmatprep.subr.mxu0 %v13177_v54  ;;  %v4256_v13 = vld [vmem:[#allocation7 + $0x170] sm:$0xff] }
 0x93b   :  { %13910 = vmatpush3.msra.mxu0 %v13177_v54  ;;  %13911 = vmatprep.mubr.msk.f32.mxu0 %vm472_vm0, %v3196_v14  ;;  %v3871_v54 = vld [vmem:[#allocation7 + $0xc8] sm:$0xff]  ;;  %v4257_v14 = vld [vmem:[#allocation7 + $0x178] sm:$0xff] }
 0x93c   :  { %15569 = vmatprep.subr.bf16.mxu0 %v15568_v15  ;;  %v15628_v55 = vpack.c.bf16 %v3871_v54, %v3870_v52  ;;  %v3480_v52 = vld [vmem:[#allocation9 + $0x20] sm:$0xff] }
 0x942   :  { %13912 = vmatmul.mubr.msk.f32.vlgmr.msra.gmra.mrb[4].mxu0 %vm472_vm0, %v3197_v19  ;;  %v15688_v19 = vpack.c.bf16 %v4441_v7, %v4440_v16  ;;  %v5771_v16 = vld [vmem:[#allocation7 + $0x348] sm:$0xff] }
 0x943   :  { %15571 = vmatpush3.bf16.msra.mxu0 %v15568_v15  ;;  %v15680_v15 = vpack.c.bf16 %v4257_v14, %v4256_v13  ;;  %v5587_v13 = vld [vmem:[#allocation7 + $0x338] sm:$0xff] }
 0x944   :  { %15573 = vmatprep.subr.bf16.mxu0 %v15572_v20 }
 0x947   :  { %15575 = vmatpush3.bf16.msra.mxu0 %v15572_v20  ;;  %v4442_v20 = vld [vmem:[#allocation7 + $0x190] sm:$0xff] }
 0x948   :  { %15577 = vmatprep.subr.bf16.mxu0 %v15576_v26  ;;  %v15692_v21 = vpack.c.bf16 %v4443_v53, %v4442_v20  ;;  %v5773_v20 = vld [vmem:[#allocation7 + $0x358] sm:$0xff] }
 0x94b   :  { %15579 = vmatpush3.bf16.msra.mxu0 %v15576_v26  ;;  %v4446_v26 = vld [vmem:[#allocation7 + $0x1b0] sm:$0xff] }
 0x94c   :  { %15581 = vmatprep.subr.bf16.mxu0 %v15580_v33  ;;  %v15700_v29 = vpack.c.bf16 %v4447_v28, %v4446_v26  ;;  %v5777_v26 = vld [vmem:[#allocation7 + $0x378] sm:$0xff] }
 0x94f   :  { %15583 = vmatpush3.bf16.msra.mxu0 %v15580_v33  ;;  %v4822_v33 = vld [vmem:[#allocation7 + $0x210] sm:$0xff] }
 0x950   :  { %v15732_v36 = vpack.c.bf16 %v4823_v35, %v4822_v33  ;;  %v6153_v33 = vld [vmem:[#allocation7 + $0x3d8] sm:$0xff] }
 0xa15   :  { %v13913_v38 = vpop.f32.mrb[4].mxu0 }
 0xa16   :  { %v16252_v39 = vadd.f32 %v13913_v38, %v17220_v17  ;;  %v3270_v40 = vpop.f32.mrb[5].mxu0  ;;  %v3684_v17 = vld [vmem:[#allocation7 + $0xa0] sm:$0xff] }
 0xa17   :  { %v16253_v41 = vadd.f32 %v3270_v40, %v17222_v18  ;;  %v3685_v18 = vld [vmem:[#allocation7 + $0xa8] sm:$0xff]  ;;  %v4827_v40 = vld [vmem:[#allocation7 + $0x238] sm:$0xff] }
 0xa18   :  { %v3294_v42 = vadd.f32 %v16252_v39, %v3291_v34  ;;  %v15616_v49 = vpack.c.bf16 %v3685_v18, %v3684_v17  ;;  %v4826_v39 = vld [vmem:[#allocation7 + $0x230] sm:$0xff] }
 0xa19   :  { %v3293_v43 = vadd.f32 %v16253_v41, %v3286_v12  ;;  %v4825_v12 = vld [vmem:[#allocation7 + $0x228] sm:$0xff]  ;;  %v15740_v34 = vpack.c.bf16 %v4827_v40, %v4826_v39  ;;  %v5010_v41 = vld [vmem:[#allocation7 + $0x240] sm:$0xff]  ;;  %v5016_v18 = vld [vmem:[#allocation7 + $0x270] sm:$0xff] }
 0xa1a   :  { %v3298_v44 = vmul.f32 0.2, %v3294_v42  ;;  %vm3296_vm1 = vcmp.gt.f32.partialorder %v3294_v42, 0.0  ;;  %v6157_v39 = vld [vmem:[#allocation7 + $0x3f8] sm:$0xff] }
 0xa1b   :  { %vm3295_vm2 = vcmp.gt.f32.partialorder %v3293_v43, 0.0  ;;  %v3297_v47 = vmul.f32 0.2, %v3293_v43 }
 0xa1c   :  { %v17322_v37 = vsel %vm3296_vm1, %v3294_v42, %v3298_v44  ;;  %v5011_v42 = vld [vmem:[#allocation7 + $0x248] sm:$0xff]  ;;  %v5012_v44 = vld [vmem:[#allocation7 + $0x250] sm:$0xff] }
 0xa1d   :  { %v17320_v48 = vsel %vm3295_vm2, %v3293_v43, %v3297_v47  ;;  %v15748_v43 = vpack.c.bf16 %v5011_v42, %v5010_v41  ;;  %v15752_v46 = vpack.c.bf16 %v5013_v45, %v5012_v44  ;;  %v5014_v47 = vld [vmem:[#allocation7 + $0x260] sm:$0xff]  ;;  %vm12281_vm2 = vcmask 25600  }
 0xa1e   :  { %13930 = vmatprep.mubr.msk.f32.mxu0 %vm3309_vm3, %v17320_v48  ;;  %13949 = vmatprep.mubr.msk.f32.mxu1 %vm3309_vm3, %v17320_v48 }
 0xa1f   :  { %13931 = vmatmul.mubr.msk.f32.vlgmr.msra.gmra.mrb[18].mxu0 %vm3309_vm3, %v17322_v37  ;;  %13950 = vmatmul.mubr.msk.f32.vlgmr.msra.gmra.mrb[18].mxu1 %vm3309_vm3, %v17322_v37 }
 0xa20   :  { %15611 = vmatpush3.bf16.msra.mxu1 %v15608_v24  ;;  %13988 = vmatprep.mubr.msk.f32.mxu1 %vm3309_vm3, %v17320_v48  ;;  %v4824_v24 = vld [vmem:[#allocation7 + $0x220] sm:$0xff] }
 0xa21   :  { %15613 = vmatprep.subr.bf16.mxu1 %v15612_v59  ;;  %v15736_v38 = vpack.c.bf16 %v4825_v12, %v4824_v24  ;;  %13956 = vmatprep.mubr.msk.f32.mxu0 %vm3484_vm4, %v3480_v52  ;;  %v6155_v24 = vld [vmem:[#allocation7 + $0x3e8] sm:$0xff] }
 0xa24   :  { %15615 = vmatpush3.bf16.msra.mxu1 %v15612_v59  ;;  %v5015_v59 = vld [vmem:[#allocation7 + $0x268] sm:$0xff] }
 0xa25   :  { %15617 = vmatprep.subr.bf16.mxu1 %v15616_v49  ;;  %v15756_v17 = vpack.c.bf16 %v5015_v59, %v5014_v47  ;;  %v3482_v47 = vld [vmem:[#allocation9 + $0x30] sm:$0xff]  ;;  %v3483_v59 = vld [vmem:[#allocation9 + $0x38] sm:$0xff] }
 0xa28   :  { %15619 = vmatpush3.bf16.msra.mxu1 %v15616_v49  ;;  %v5017_v49 = vld [vmem:[#allocation7 + $0x278] sm:$0xff] }
 0xa29   :  { %15621 = vmatprep.subr.bf16.mxu1 %v15620_v51  ;;  %v15760_v25 = vpack.c.bf16 %v5017_v49, %v5016_v18  ;;  %v3392_v18 = vld [vmem:[#allocation9 + $0x8] sm:$0xff]  ;;  %v3393_v49 = vld [vmem:[#allocation9 + $0x10] sm:$0xff] }
 0xa2c   :  { %15623 = vmatpush3.bf16.msra.mxu1 %v15620_v51  ;;  %v5201_v51 = vld [vmem:[#allocation7 + $0x288] sm:$0xff] }
 0xa2d   :  { %15629 = vmatprep.subr.bf16.mxu1 %v15628_v55  ;;  %v15768_v54 = vpack.c.bf16 %v5201_v51, %v5200_v50  ;;  %v3394_v51 = vld [vmem:[#allocation9 + $0x18] sm:$0xff] }
 0xa2f   :  { %13989 = vmatmul.mubr.msk.f32.vlgmr.msra.gmra.mrb[20].mxu1 %vm3309_vm3, %v17322_v37 }
 0xa30   :  { %15631 = vmatpush3.bf16.msra.mxu1 %v15628_v55  ;;  %14017 = vmatprep.mubr.msk.f32.mxu1 %vm3309_vm3, %v17320_v48  ;;  %v5202_v55 = vld [vmem:[#allocation7 + $0x290] sm:$0xff] }
 0xa31   :  { %15633 = vmatprep.subr.bf16.mxu1 %v15632_v60  ;;  %v15772_v58 = vpack.c.bf16 %v5203_v57, %v5202_v55  ;;  %v3765_v55 = vld [vmem:[#allocation9 + $0x48] sm:$0xff]  ;;  %v3766_v57 = vld [vmem:[#allocation9 + $0x50] sm:$0xff] }
 0xa34   :  { %15635 = vmatpush3.bf16.msra.mxu1 %v15632_v60  ;;  %v5204_v60 = vld [vmem:[#allocation7 + $0x2a0] sm:$0xff] }
 0xa35   :  { %15637 = vmatprep.subr.bf16.mxu1 %v15636_v63  ;;  %v15776_v62 = vpack.c.bf16 %v5205_v61, %v5204_v60  ;;  %v3954_v60 = vld [vmem:[#allocation9 + $0x60] sm:$0xff] }
 0xa36   :  { %v4060_v61 = vld [vmem:[#allocation7 + $0x100] sm:$0xff] }
 0xa38   :  { %15639 = vmatpush3.bf16.msra.mxu1 %v15636_v63  ;;  %v5206_v63 = vld [vmem:[#allocation7 + $0x2b0] sm:$0xff] }
 0xa39   :  { %15641 = vmatprep.subr.bf16.mxu1 %v15640_v1  ;;  %v15780_v0 = vpack.c.bf16 %v5207_v27, %v5206_v63 }
 0xa3c   :  { %15643 = vmatpush3.bf16.msra.mxu1 %v15640_v1  ;;  %v5580_v1 = vld [vmem:[#allocation7 + $0x300] sm:$0xff] }
 0xa3d   :  { %15669 = vmatprep.subr.bf16.mxu1 %v15668_v4  ;;  %v15808_v3 = vpack.c.bf16 %v5581_v2, %v5580_v1  ;;  %v4062_v2 = vld [vmem:[#allocation7 + $0x110] sm:$0xff] }
 0xa3f   :  { %14018 = vmatmul.mubr.msk.f32.vlgmr.msra.gmra.mrb[22].mxu1 %vm3309_vm3, %v17322_v37 }
 0xa40   :  { %15671 = vmatpush3.bf16.msra.mxu1 %v15668_v4  ;;  %14075 = vmatprep.mubr.msk.f32.mxu1 %vm3309_vm3, %v17320_v48  ;;  %v5582_v4 = vld [vmem:[#allocation7 + $0x310] sm:$0xff] }
 0xa41   :  { %15673 = vmatprep.subr.bf16.mxu1 %v15672_v8  ;;  %v15812_v6 = vpack.c.bf16 %v5583_v5, %v5582_v4  ;;  %v3955_v4 = vld [vmem:[#allocation9 + $0x68] sm:$0xff]  ;;  %v3956_v5 = vld [vmem:[#allocation9 + $0x70] sm:$0xff] }
 0xa44   :  { %15675 = vmatpush3.bf16.msra.mxu1 %v15672_v8  ;;  %v5584_v8 = vld [vmem:[#allocation7 + $0x320] sm:$0xff] }
 0xa45   :  { %15677 = vmatprep.subr.bf16.mxu1 %v15676_v11  ;;  %v15816_v10 = vpack.c.bf16 %v5585_v9, %v5584_v8  ;;  %v4064_v8 = vld [vmem:[#allocation7 + $0x120] sm:$0xff]  ;;  %v4065_v9 = vld [vmem:[#allocation7 + $0x128] sm:$0xff] }
 0xa48   :  { %15679 = vmatpush3.bf16.msra.mxu1 %v15676_v11  ;;  %v5586_v11 = vld [vmem:[#allocation7 + $0x330] sm:$0xff] }
 0xa49   :  { %15681 = vmatprep.subr.bf16.mxu1 %v15680_v15  ;;  %v15820_v14 = vpack.c.bf16 %v5587_v13, %v5586_v11  ;;  %v15656_v11 = vpack.c.bf16 %v4065_v9, %v4064_v8  ;;  %v4066_v13 = vld [vmem:[#allocation7 + $0x130] sm:$0xff]  ;;  %v4715_v8 = vld [vmem:[#allocation9 + $0xe8] sm:$0xff] }
 0xa4a   :  { %v4716_v9 = vld [vmem:[#allocation9 + $0xf0] sm:$0xff] }
 0xa4c   :  { %15683 = vmatpush3.bf16.msra.mxu1 %v15680_v15  ;;  %v5770_v15 = vld [vmem:[#allocation7 + $0x340] sm:$0xff] }
 0xa4d   :  { %15689 = vmatprep.subr.bf16.mxu1 %v15688_v19  ;;  %v15828_v7 = vpack.c.bf16 %v5771_v16, %v5770_v15 }
 0xa4f   :  { %14076 = vmatmul.mubr.msk.f32.vlgmr.msra.gmra.mrb[24].mxu1 %vm3309_vm3, %v17322_v37 }
 0xa50   :  { %15691 = vmatpush3.bf16.msra.mxu1 %v15688_v19  ;;  %14104 = vmatprep.mubr.msk.f32.mxu1 %vm3309_vm3, %v17320_v48  ;;  %v5772_v19 = vld [vmem:[#allocation7 + $0x350] sm:$0xff] }
 0xa51   :  { %15693 = vmatprep.subr.bf16.mxu1 %v15692_v21  ;;  %v15832_v53 = vpack.c.bf16 %v5773_v20, %v5772_v19 }
 0xa54   :  { %15695 = vmatpush3.bf16.msra.mxu1 %v15692_v21  ;;  %v5774_v21 = vld [vmem:[#allocation7 + $0x360] sm:$0xff] }
 0xa55   :  { %15697 = vmatprep.subr.bf16.mxu1 %v15696_v23  ;;  %v15836_v56 = vpack.c.bf16 %v5775_v22, %v5774_v21 }
 0xa58   :  { %15699 = vmatpush3.bf16.msra.mxu1 %v15696_v23  ;;  %v5776_v23 = vld [vmem:[#allocation7 + $0x370] sm:$0xff] }
 0xa59   :  { %15701 = vmatprep.subr.bf16.mxu1 %v15700_v29  ;;  %v15840_v28 = vpack.c.bf16 %v5777_v26, %v5776_v23 }
 0xa5c   :  { %15703 = vmatpush3.bf16.msra.mxu1 %v15700_v29  ;;  %v6150_v29 = vld [vmem:[#allocation7 + $0x3c0] sm:$0xff] }
 0xa5d   :  { %15729 = vmatprep.subr.bf16.mxu1 %v15728_v32  ;;  %v15868_v31 = vpack.c.bf16 %v6151_v30, %v6150_v29 }
 0xa5f   :  { %14105 = vmatmul.mubr.msk.f32.vlgmr.msra.gmra.mrb[26].mxu1 %vm3309_vm3, %v17322_v37 }
 0xa60   :  { %15731 = vmatpush3.bf16.msra.mxu1 %v15728_v32  ;;  %14162 = vmatprep.mubr.msk.f32.mxu1 %vm3309_vm3, %v17320_v48  ;;  %v6152_v32 = vld [vmem:[#allocation7 + $0x3d0] sm:$0xff] }
 0xa61   :  { %15733 = vmatprep.subr.bf16.mxu1 %v15732_v36  ;;  %v15872_v35 = vpack.c.bf16 %v6153_v33, %v6152_v32 }
 0xa64   :  { %15735 = vmatpush3.bf16.msra.mxu1 %v15732_v36  ;;  %v6154_v36 = vld [vmem:[#allocation7 + $0x3e0] sm:$0xff] }
 0xa65   :  { %15737 = vmatprep.subr.bf16.mxu1 %v15736_v38  ;;  %v15876_v12 = vpack.c.bf16 %v6155_v24, %v6154_v36 }
 0xa68   :  { %15739 = vmatpush3.bf16.msra.mxu1 %v15736_v38  ;;  %v6156_v38 = vld [vmem:[#allocation7 + $0x3f0] sm:$0xff] }
 0xa69   :  { %15741 = vmatprep.subr.bf16.mxu1 %v15740_v34  ;;  %v15880_v40 = vpack.c.bf16 %v6157_v39, %v6156_v38  ;;  %v4144_v38 = vld [vmem:[#allocation9 + $0x80] sm:$0xff] }
 0xa6c   :  { %15743 = vmatpush3.bf16.msra.mxu1 %v15740_v34 }
 0xa6d   :  { %15749 = vmatprep.subr.bf16.mxu1 %v15748_v43 }
 0xa6f   :  { %14163 = vmatmul.mubr.msk.f32.vlgmr.msra.gmra.mrb[28].mxu1 %vm3309_vm3, %v17322_v37 }
 0xa70   :  { %15751 = vmatpush3.bf16.msra.mxu1 %v15748_v43  ;;  %14191 = vmatprep.mubr.msk.f32.mxu1 %vm3309_vm3, %v17320_v48 }
 0xa71   :  { %15753 = vmatprep.subr.bf16.mxu1 %v15752_v46 }
 0xa74   :  { %15755 = vmatpush3.bf16.msra.mxu1 %v15752_v46  ;;  %v3481_v46 = vld [vmem:[#allocation9 + $0x28] sm:$0xff] }
 0xa75   :  { %15757 = vmatprep.subr.bf16.mxu1 %v15756_v17 }
 0xa78   :  { %15759 = vmatpush3.bf16.msra.mxu1 %v15756_v17  ;;  %v3391_v17 = vld [vmem:[#allocation9] sm:$0xff] }
 0xa79   :  { %15761 = vmatprep.subr.bf16.mxu1 %v15760_v25 }
 0xa7c   :  { %15763 = vmatpush3.bf16.msra.mxu1 %v15760_v25 }
 0xa7d   :  { %15769 = vmatprep.subr.bf16.mxu1 %v15768_v54 }
 0xa7f   :  { %14192 = vmatmul.mubr.msk.f32.vlgmr.msra.gmra.mrb[30].mxu1 %vm3309_vm3, %v17322_v37 }
 0xa80   :  { %15771 = vmatpush3.bf16.msra.mxu1 %v15768_v54  ;;  %14220 = vmatprep.mubr.msk.f32.mxu1 %vm3309_vm3, %v17320_v48  ;;  %v3764_v54 = vld [vmem:[#allocation9 + $0x40] sm:$0xff] }
 0xa81   :  { %15773 = vmatprep.subr.bf16.mxu1 %v15772_v58 }
 0xa84   :  { %15775 = vmatpush3.bf16.msra.mxu1 %v15772_v58  ;;  %v3767_v58 = vld [vmem:[#allocation9 + $0x58] sm:$0xff] }
 0xa85   :  { %15777 = vmatprep.subr.bf16.mxu1 %v15776_v62 }
 0xa88   :  { %15779 = vmatpush3.bf16.msra.mxu1 %v15776_v62  ;;  %v4061_v62 = vld [vmem:[#allocation7 + $0x108] sm:$0xff] }
 0xa89   :  { %15781 = vmatprep.subr.bf16.mxu1 %v15780_v0  ;;  %v15648_v1 = vpack.c.bf16 %v4061_v62, %v4060_v61  ;;  %v4634_v61 = vld [vmem:[#allocation7 + $0x1e0] sm:$0xff]  ;;  %v4635_v62 = vld [vmem:[#allocation7 + $0x1e8] sm:$0xff] }
 0xa8c   :  { %15783 = vmatpush3.bf16.msra.mxu1 %v15780_v0 }
 0xa8d   :  { %15809 = vmatprep.subr.bf16.mxu1 %v15808_v3 }
 0xa8f   :  { %14221 = vmatmul.mubr.msk.f32.vlgmr.msra.gmra.mrb[32].mxu1 %vm3309_vm3, %v17322_v37 }
 0xa90   :  { %15811 = vmatpush3.bf16.msra.mxu1 %v15808_v3  ;;  %14278 = vmatprep.mubr.msk.f32.mxu1 %vm3309_vm3, %v17320_v48  ;;  %v4063_v3 = vld [vmem:[#allocation7 + $0x118] sm:$0xff] }
 0xa91   :  { %15813 = vmatprep.subr.bf16.mxu1 %v15812_v6 }
 0xa94   :  { %15815 = vmatpush3.bf16.msra.mxu1 %v15812_v6  ;;  %v15652_v6 = vpack.c.bf16 %v4063_v3, %v4062_v2  ;;  %v4714_v3 = vld [vmem:[#allocation9 + $0xe0] sm:$0xff] }
 0xa95   :  { %15817 = vmatprep.subr.bf16.mxu1 %v15816_v10 }
 0xa98   :  { %15819 = vmatpush3.bf16.msra.mxu1 %v15816_v10  ;;  %v3957_v10 = vld [vmem:[#allocation9 + $0x78] sm:$0xff] }
 0xa99   :  { %15821 = vmatprep.subr.bf16.mxu1 %v15820_v14 }
 0xa9c   :  { %15823 = vmatpush3.bf16.msra.mxu1 %v15820_v14  ;;  %v4067_v14 = vld [vmem:[#allocation7 + $0x138] sm:$0xff] }
 0xa9d   :  { %15829 = vmatprep.subr.bf16.mxu1 %v15828_v7  ;;  %v15660_v15 = vpack.c.bf16 %v4067_v14, %v4066_v13  ;;  %v4905_v13 = vld [vmem:[#allocation9 + $0x108] sm:$0xff]  ;;  %v4906_v14 = vld [vmem:[#allocation9 + $0x110] sm:$0xff] }
 0xa9f   :  { %14279 = vmatmul.mubr.msk.f32.vlgmr.msra.gmra.mrb[34].mxu1 %vm3309_vm3, %v17322_v37 }
 0xaa0   :  { %15831 = vmatpush3.bf16.msra.mxu1 %v15828_v7  ;;  %14307 = vmatprep.mubr.msk.f32.mxu1 %vm3309_vm3, %v17320_v48 }
 0xaa1   :  { %15833 = vmatprep.subr.bf16.mxu1 %v15832_v53 }
 0xaa4   :  { %15835 = vmatpush3.bf16.msra.mxu1 %v15832_v53 }
 0xaa5   :  { %15837 = vmatprep.subr.bf16.mxu1 %v15836_v56 }
 0xaa8   :  { %15839 = vmatpush3.bf16.msra.mxu1 %v15836_v56 }
 0xaa9   :  { %15841 = vmatprep.subr.bf16.mxu1 %v15840_v28 }
 0xaac   :  { %15843 = vmatpush3.bf16.msra.mxu1 %v15840_v28 }
 0xaad   :  { %15869 = vmatprep.subr.bf16.mxu1 %v15868_v31 }
 0xaaf   :  { %14308 = vmatmul.mubr.msk.f32.vlgmr.msra.gmra.mrb[36].mxu1 %vm3309_vm3, %v17322_v37 }
 0xab0   :  { %15871 = vmatpush3.bf16.msra.mxu1 %v15868_v31  ;;  %14365 = vmatprep.mubr.msk.f32.mxu1 %vm3309_vm3, %v17320_v48 }
 0xab1   :  { %15873 = vmatprep.subr.bf16.mxu1 %v15872_v35 }
 0xab4   :  { %15875 = vmatpush3.bf16.msra.mxu1 %v15872_v35 }
 0xab5   :  { %15877 = vmatprep.subr.bf16.mxu1 %v15876_v12 }
 0xab8   :  { %15879 = vmatpush3.bf16.msra.mxu1 %v15876_v12 }
 0xab9   :  { %15881 = vmatprep.subr.bf16.mxu1 %v15880_v40 }
 0xabc   :  { %15883 = vmatpush3.bf16.msra.mxu1 %v15880_v40 }
 0xabf   :  { %14366 = vmatmul.mubr.msk.f32.vlgmr.msra.gmra.mrb[38].mxu1 %vm3309_vm3, %v17322_v37 }
 0xaf2   :  { %v13932_v34 = vpop.f32.mrb[18].mxu0  ;;  %v13951_v41 = vpop.f32.mrb[18].mxu1 }
 0xaf3   :  { %v3382_v42 = vpop.f32.mrb[19].mxu0  ;;  %v3470_v43 = vpop.f32.mrb[19].mxu1 }
 0xaf4   :  { %v15604_v44 = vpack.c.bf16 %v13932_v34, %v3382_v42  ;;  %v15600_v45 = vpack.c.bf16 %v13951_v41, %v3470_v43 }
 0xaf6   :  { %15601 = vmatprep.subr.bf16.mxu0 %v15600_v45 }
 0xaf7   :  { %15603 = vmatpush3.bf16.msra.mxu0 %v15600_v45  ;;  %v4145_v45 = vld [vmem:[#allocation9 + $0x88] sm:$0xff] }
 0xaf8   :  { %15605 = vmatprep.subr.bf16.mxu0 %v15604_v44 }
 0xafa   :  { %13957 = vmatmul.mubr.msk.f32.vlgmr.msra.gmra.mrb[20].mxu0 %vm3484_vm4, %v3481_v46  ;;  %v4146_v46 = vld [vmem:[#allocation9 + $0x90] sm:$0xff] }
 0xafb   :  { %15607 = vmatpush3.bf16.msra.mxu0 %v15604_v44  ;;  %13959 = vmatprep.mubr.msk.f32.mxu0 %vm3484_vm4, %v3482_v47  ;;  %v4147_v47 = vld [vmem:[#allocation9 + $0x98] sm:$0xff] }
 0xafe   :  { %13960 = vmatmul.mubr.msk.f32.gmra.mrb[22].mxu0 %vm3484_vm4, %v3483_v59  ;;  %v4334_v59 = vld [vmem:[#allocation9 + $0xa0] sm:$0xff] }
 0xaff   :  { %13966 = vmatprep.mubr.msk.f32.mxu0 %vm3484_vm4, %v3391_v17  ;;  %v4630_v17 = vld [vmem:[#allocation7 + $0x1c0] sm:$0xff] }
 0xb02   :  { %v13990_v25 = vpop.f32.mrb[20].mxu1  ;;  %13967 = vmatmul.mubr.msk.f32.vlgmr.msra.gmra.mrb[20].mxu0 %vm3484_vm4, %v3392_v18  ;;  %v4631_v18 = vld [vmem:[#allocation7 + $0x1c8] sm:$0xff] }
 0xb03   :  { %v3754_v50 = vpop.f32.mrb[21].mxu1  ;;  %13969 = vmatprep.mubr.msk.f32.mxu0 %vm3484_vm4, %v3393_v49  ;;  %v4335_v49 = vld [vmem:[#allocation9 + $0xa8] sm:$0xff] }
 0xb04   :  { %v15624_v52 = vpack.c.bf16 %v13990_v25, %v3754_v50  ;;  %v4336_v25 = vld [vmem:[#allocation9 + $0xb0] sm:$0xff]  ;;  %v15708_v50 = vpack.c.bf16 %v4631_v18, %v4630_v17  ;;  %v5961_v17 = vld [vmem:[#allocation7 + $0x388] sm:$0xff] }
 0xb05   :  { %v5665_v18 = vld [vmem:[#allocation9 + $0x188] sm:$0xff] }
 0xb06   :  { %15625 = vmatprep.subr.bf16.mxu0 %v15624_v52  ;;  %13970 = vmatmul.mubr.msk.f32.gmra.mrb[22].mxu0 %vm3484_vm4, %v3394_v51  ;;  %v4337_v51 = vld [vmem:[#allocation9 + $0xb8] sm:$0xff] }
 0xb07   :  { %15627 = vmatpush3.bf16.msra.mxu0 %v15624_v52  ;;  %13995 = vmatprep.mubr.msk.f32.mxu0 %vm3484_vm4, %v3764_v54  ;;  %v4524_v52 = vld [vmem:[#allocation9 + $0xc0] sm:$0xff]  ;;  %v4632_v54 = vld [vmem:[#allocation7 + $0x1d0] sm:$0xff] }
 0xb0a   :  { %13996 = vmatmul.mubr.msk.f32.vlgmr.msra.gmra.mrb[20].mxu0 %vm3484_vm4, %v3765_v55  ;;  %v4633_v55 = vld [vmem:[#allocation7 + $0x1d8] sm:$0xff] }
 0xb0b   :  { %13998 = vmatprep.mubr.msk.f32.mxu0 %vm3484_vm4, %v3766_v57  ;;  %v4525_v57 = vld [vmem:[#allocation9 + $0xc8] sm:$0xff] }
 0xb0e   :  { %13999 = vmatmul.mubr.msk.f32.gmra.mrb[22].mxu0 %vm3484_vm4, %v3767_v58  ;;  %v4526_v58 = vld [vmem:[#allocation9 + $0xd0] sm:$0xff] }
 0xb0f   :  { %14024 = vmatprep.mubr.msk.f32.mxu0 %vm3484_vm4, %v3954_v60  ;;  %v15712_v60 = vpack.c.bf16 %v4633_v55, %v4632_v54  ;;  %v5855_v54 = vld [vmem:[#allocation9 + $0x1a8] sm:$0xff]  ;;  %v5856_v55 = vld [vmem:[#allocation9 + $0x1b0] sm:$0xff] }
 0xb12   :  { %v14019_v63 = vpop.f32.mrb[22].mxu1 }
 0xb13   :  { %v3944_v27 = vpop.f32.mrb[23].mxu1 }
 0xb14   :  { %v15644_v0 = vpack.c.bf16 %v14019_v63, %v3944_v27  ;;  %v4527_v63 = vld [vmem:[#allocation9 + $0xd8] sm:$0xff]  ;;  %v15716_v27 = vpack.c.bf16 %v4635_v62, %v4634_v61  ;;  %v5966_v62 = vld [vmem:[#allocation7 + $0x3b0] sm:$0xff] }
 0xb16   :  { %15645 = vmatprep.subr.bf16.mxu0 %v15644_v0 }
 0xb17   :  { %15647 = vmatpush3.bf16.msra.mxu0 %v15644_v0  ;;  %v4636_v0 = vld [vmem:[#allocation7 + $0x1f0] sm:$0xff] }
 0xb18   :  { %15649 = vmatprep.subr.bf16.mxu0 %v15648_v1 }
 0xb1a   :  { %14025 = vmatmul.mubr.msk.f32.vlgmr.msra.gmra.mrb[20].mxu0 %vm3484_vm4, %v3955_v4 }
 0xb1b   :  { %15651 = vmatpush3.bf16.msra.mxu0 %v15648_v1  ;;  %14027 = vmatprep.mubr.msk.f32.mxu0 %vm3484_vm4, %v3956_v5  ;;  %v4637_v1 = vld [vmem:[#allocation7 + $0x1f8] sm:$0xff] }
 0xb1c   :  { %15653 = vmatprep.subr.bf16.mxu0 %v15652_v6  ;;  %v15720_v2 = vpack.c.bf16 %v4637_v1, %v4636_v0  ;;  %v6044_v0 = vld [vmem:[#allocation9 + $0x1c0] sm:$0xff] }
 0xb1d   :  { %v6339_v1 = vld [vmem:[#allocation10] sm:$0xff] }
 0xb1e   :  { %14028 = vmatmul.mubr.msk.f32.gmra.mrb[22].mxu0 %vm3484_vm4, %v3957_v10  ;;  %v4717_v10 = vld [vmem:[#allocation9 + $0xf8] sm:$0xff]  ;;  %6345 = vperm.xlu1 %16454, %v6339_v1  }
 0xb1f   :  { %15655 = vmatpush3.bf16.msra.mxu0 %v15652_v6  ;;  %14046 = vmatprep.mubr.msk.f32.mxu0 %vm3309_vm3, %v17320_v48  ;;  %v6468_v1 = vld [vmem:[#allocation13 + $0x30] sm:$0xff] }
 0xb20   :  { %15657 = vmatprep.subr.bf16.mxu0 %v15656_v11 }
 0xb22   :  { %v14077_v16 = vpop.f32.mrb[24].mxu1 }
 0xb23   :  { %15659 = vmatpush3.bf16.msra.mxu0 %v15656_v11  ;;  %v4324_v7 = vpop.f32.mrb[25].mxu1  ;;  %v4904_v11 = vld [vmem:[#allocation9 + $0x100] sm:$0xff] }
 0xb24   :  { %v15684_v19 = vpack.c.bf16 %v14077_v16, %v4324_v7  ;;  %15661 = vmatprep.subr.bf16.mxu0 %v15660_v15  ;;  %v5094_v16 = vld [vmem:[#allocation9 + $0x120] sm:$0xff] }
 0xb25   :  { %v5390_v7 = vld [vmem:[#allocation7 + $0x2c0] sm:$0xff] }
 0xb27   :  { %15663 = vmatpush3.bf16.msra.mxu0 %v15660_v15  ;;  %v4907_v15 = vld [vmem:[#allocation9 + $0x118] sm:$0xff] }
 0xb2a   :  { %14047 = vmatmul.mubr.msk.f32.vlgmr.msra.gmra.mrb[24].mxu0 %vm3309_vm3, %v17322_v37 }
 0xb2b   :  { %14053 = vmatprep.mubr.msk.f32.mxu0 %vm3484_vm4, %v4144_v38 }
 0xb32   :  { %v14106_v20 = vpop.f32.mrb[26].mxu1 }
 0xb33   :  { %v4514_v53 = vpop.f32.mrb[27].mxu1 }
 0xb34   :  { %v15704_v21 = vpack.c.bf16 %v14106_v20, %v4514_v53  ;;  %v5095_v20 = vld [vmem:[#allocation9 + $0x128] sm:$0xff]  ;;  %v5096_v53 = vld [vmem:[#allocation9 + $0x130] sm:$0xff] }
 0xb42   :  { %v14164_v22 = vpop.f32.mrb[28].mxu1 }
 0xb43   :  { %v4894_v56 = vpop.f32.mrb[29].mxu1 }
 0xb44   :  { %v17392_v23 = vpack.c.bf16 %v14164_v22, %v4894_v56  ;;  %v5097_v22 = vld [vmem:[#allocation9 + $0x138] sm:$0xff]  ;;  %v5284_v56 = vld [vmem:[#allocation9 + $0x140] sm:$0xff] }
 0xb52   :  { %v14193_v26 = vpop.f32.mrb[30].mxu1 }
 0xb53   :  { %v5084_v28 = vpop.f32.mrb[31].mxu1 }
 0xb54   :  { %v17394_v29 = vpack.c.bf16 %v14193_v26, %v5084_v28  ;;  %v5393_v26 = vld [vmem:[#allocation7 + $0x2d8] sm:$0xff]  ;;  %v5285_v28 = vld [vmem:[#allocation9 + $0x148] sm:$0xff] }
 0xb62   :  { %v14222_v30 = vpop.f32.mrb[32].mxu1 }
 0xb63   :  { %v5274_v31 = vpop.f32.mrb[33].mxu1 }
 0xb64   :  { %v17396_v32 = vpack.c.bf16 %v14222_v30, %v5274_v31  ;;  %v5394_v31 = vld [vmem:[#allocation7 + $0x2e0] sm:$0xff] }
 0xb72   :  { %v14280_v33 = vpop.f32.mrb[34].mxu1 }
 0xb73   :  { %v5654_v35 = vpop.f32.mrb[35].mxu1 }
 0xb74   :  { %v17398_v36 = vpack.c.bf16 %v14280_v33, %v5654_v35  ;;  %v5395_v33 = vld [vmem:[#allocation7 + $0x2e8] sm:$0xff] }
 0xb75   :  { %v15796_v35 = vpack.c.bf16 %v5395_v33, %v5394_v31  ;;  %v6356_v31 = vpop.permute.xlu0 %6355 }
 0xb82   :  { %v14309_v24 = vpop.f32.mrb[36].mxu1 }
 0xb83   :  { %v5844_v12 = vpop.f32.mrb[37].mxu1 }
 0xb84   :  { %v17400_v39 = vpack.c.bf16 %v14309_v24, %v5844_v12  ;;  %v5396_v24 = vld [vmem:[#allocation7 + $0x2f0] sm:$0xff]  ;;  %v5397_v12 = vld [vmem:[#allocation7 + $0x2f8] sm:$0xff] }
 0xb85   :  { %v15800_v38 = vpack.c.bf16 %v5397_v12, %v5396_v24 }
 0xb92   :  { %v14367_v40 = vpop.f32.mrb[38].mxu1 }
 0xb93   :  { %v6224_v34 = vpop.f32.mrb[39].mxu1 }
 0xb94   :  { %v17403_v41 = vpack.c.bf16 %v14367_v40, %v6224_v34  ;;  %v5474_v40 = vld [vmem:[#allocation9 + $0x160] sm:$0xff] }
 0xbfd   :  { %v14048_v42 = vpop.f32.mrb[24].mxu0 }
 0xbfe   :  { %v4134_v43 = vpop.f32.mrb[25].mxu0 }
 0xbff   :  { %v15664_v44 = vpack.c.bf16 %v14048_v42, %v4134_v43 }
 0xc01   :  { %15665 = vmatprep.subr.bf16.mxu0 %v15664_v44 }
 0xc02   :  { %15667 = vmatpush3.bf16.msra.mxu0 %v15664_v44  ;;  %v5475_v44 = vld [vmem:[#allocation9 + $0x168] sm:$0xff] }
 0xc03   :  { %15685 = vmatprep.subr.bf16.mxu0 %v15684_v19 }
 0xc05   :  { %14054 = vmatmul.mubr.msk.f32.vlgmr.msra.gmra.mrb[20].mxu0 %vm3484_vm4, %v4145_v45  ;;  %v5476_v45 = vld [vmem:[#allocation9 + $0x170] sm:$0xff] }
 0xc06   :  { %15687 = vmatpush3.bf16.msra.mxu0 %v15684_v19  ;;  %14056 = vmatprep.mubr.msk.f32.mxu0 %vm3484_vm4, %v4146_v46  ;;  %v5391_v19 = vld [vmem:[#allocation7 + $0x2c8] sm:$0xff]  ;;  %v5477_v46 = vld [vmem:[#allocation9 + $0x178] sm:$0xff] }
 0xc07   :  { %15705 = vmatprep.subr.bf16.mxu0 %v15704_v21 }
 0xc09   :  { %14057 = vmatmul.mubr.msk.f32.gmra.mrb[22].mxu0 %vm3484_vm4, %v4147_v47  ;;  %v5664_v47 = vld [vmem:[#allocation9 + $0x180] sm:$0xff] }
 0xc0a   :  { %14082 = vmatprep.mubr.msk.f32.mxu0 %vm3484_vm4, %v4334_v59  ;;  %v5960_v59 = vld [vmem:[#allocation7 + $0x380] sm:$0xff] }
 0xc0d   :  { %14083 = vmatmul.mubr.msk.f32.vlgmr.msra.gmra.mrb[20].mxu0 %vm3484_vm4, %v4335_v49  ;;  %v5666_v49 = vld [vmem:[#allocation9 + $0x190] sm:$0xff] }
 0xc0e   :  { %15707 = vmatpush3.bf16.msra.mxu0 %v15704_v21  ;;  %14085 = vmatprep.mubr.msk.f32.mxu0 %vm3484_vm4, %v4336_v25  ;;  %v15788_v21 = vpack.c.bf16 %v5391_v19, %v5390_v7  ;;  %v15848_v25 = vpack.c.bf16 %v5961_v17, %v5960_v59  ;;  %v6237_v7 = vld [vmem:[#allocation9 + $0x1f8] sm:$0xff]  ;;  %v16825_v19 = vmov 0.0|0.0   ;;  %v6463_v59 = vld [vmem:[#allocation13 + $0x8] sm:$0xff] }
 0xc0f   :  { %15709 = vmatprep.subr.bf16.mxu0 %v15708_v50  ;;  %15888 = vmatprep.subr.bf16.mxu1 %v16825_v19 }
 0xc11   :  { %14086 = vmatmul.mubr.msk.f32.gmra.mrb[22].mxu0 %vm3484_vm4, %v4337_v51  ;;  %v5962_v51 = vld [vmem:[#allocation7 + $0x390] sm:$0xff] }
 0xc12   :  { %14111 = vmatprep.mubr.msk.f32.mxu0 %vm3484_vm4, %v4524_v52  ;;  %v5963_v52 = vld [vmem:[#allocation7 + $0x398] sm:$0xff] }
 0xc15   :  { %14112 = vmatmul.mubr.msk.f32.vlgmr.msra.gmra.mrb[20].mxu0 %vm3484_vm4, %v4525_v57  ;;  %v15852_v57 = vpack.c.bf16 %v5963_v52, %v5962_v51  ;;  %v6464_v51 = vld [vmem:[#allocation13 + $0x10] sm:$0xff]  ;;  %v6465_v52 = vld [vmem:[#allocation13 + $0x18] sm:$0xff] }
 0xc16   :  { %15711 = vmatpush3.bf16.msra.mxu0 %v15708_v50  ;;  %14114 = vmatprep.mubr.msk.f32.mxu0 %vm3484_vm4, %v4526_v58  ;;  %v5854_v50 = vld [vmem:[#allocation9 + $0x1a0] sm:$0xff] }
 0xc17   :  { %15713 = vmatprep.subr.bf16.mxu0 %v15712_v60  ;;  %v5964_v58 = vld [vmem:[#allocation7 + $0x3a0] sm:$0xff] }
 0xc19   :  { %14115 = vmatmul.mubr.msk.f32.gmra.mrb[22].mxu0 %vm3484_vm4, %v4527_v63  ;;  %v5967_v63 = vld [vmem:[#allocation7 + $0x3b8] sm:$0xff] }
 0xc1a   :  { %15715 = vmatpush3.bf16.msra.mxu0 %v15712_v60  ;;  %14133 = vmatprep.mubr.msk.f32.mxu0 %vm3309_vm3, %v17320_v48  ;;  %v5965_v60 = vld [vmem:[#allocation7 + $0x3a8] sm:$0xff] }
 0xc1b   :  { %15717 = vmatprep.subr.bf16.mxu0 %v15716_v27  ;;  %v15856_v61 = vpack.c.bf16 %v5965_v60, %v5964_v58  ;;  %v16459_v58 = vld [vmem:[%s17892_s24 + $0x8] sm:$0xff] }
 0xc1e   :  { %15719 = vmatpush3.bf16.msra.mxu0 %v15716_v27  ;;  %v15860_v27 = vpack.c.bf16 %v5967_v63, %v5966_v62  ;;  %v6484_v62 = vld [vmem:[#allocation13 + $0xb0] sm:$0xff]  ;;  %v6485_v63 = vld [vmem:[#allocation13 + $0xb8] sm:$0xff] }
 0xc1f   :  { %15721 = vmatprep.subr.bf16.mxu0 %v15720_v2 }
 0xc22   :  { %15723 = vmatpush3.bf16.msra.mxu0 %v15720_v2  ;;  %v6340_v2 = vld [vmem:[#allocation10 + $0x8] sm:$0xff] }
 0xc23   :  { %6350 = vperm.xlu1 %16454, %v6340_v2   ;;  %v6469_v2 = vld [vmem:[#allocation13 + $0x38] sm:$0xff] }
 0xc25   :  { %14134 = vmatmul.mubr.msk.f32.vlgmr.msra.gmra.mrb[26].mxu0 %vm3309_vm3, %v17322_v37 }
 0xc26   :  { %14140 = vmatprep.mubr.msk.f32.mxu0 %vm3484_vm4, %v4714_v3  ;;  %v6342_v3 = vld [vmem:[#allocation10 + $0x18] sm:$0xff] }
 0xc27   :  { %6360 = vperm.xlu1 %16454, %v6342_v3   ;;  %v6486_v3 = vld [vmem:[#allocation13 + $0xc0] sm:$0xff] }
 0xcf8   :  { %v14135_v4 = vpop.f32.mrb[26].mxu0 }
 0xcf9   :  { %v4704_v5 = vpop.f32.mrb[27].mxu0 }
 0xcfa   :  { %v15724_v6 = vpack.c.bf16 %v14135_v4, %v4704_v5  ;;  %v9202_v4 = vld [vmem:[#allocation18 + $0x8] sm:$0xff] }
 0xcfb   :  { %9210 = vperm.xlu1 %16454, %v9202_v4   ;;  %v12164_v5 = vld [vmem:[#allocation22 + $0x18] sm:$0xff] }
 0xcfc   :  { %15725 = vmatprep.subr.bf16.mxu0 %v15724_v6  ;;  %v6487_v4 = vld [vmem:[#allocation13 + $0xc8] sm:$0xff] }
 0xcfd   :  { %15727 = vmatpush3.bf16.msra.mxu0 %v15724_v6  ;;  %v12202_v6 = vld [vmem:[%s17877_s17] sm:$0x3] }
 0xcfe   :  { %15745 = vmatprep.subr.bf16.mxu0 %v17392_v23 }
 0xd00   :  { %14141 = vmatmul.mubr.msk.f32.vlgmr.msra.gmra.mrb[20].mxu0 %vm3484_vm4, %v4715_v8 }
 0xd01   :  { %15747 = vmatpush3.bf16.msra.mxu0 %v17392_v23  ;;  %14143 = vmatprep.mubr.msk.f32.mxu0 %vm3484_vm4, %v4716_v9  ;;  %v5392_v23 = vld [vmem:[#allocation7 + $0x2d0] sm:$0xff] }
 0xd02   :  { %15765 = vmatprep.subr.bf16.mxu0 %v17394_v29  ;;  %v15792_v30 = vpack.c.bf16 %v5393_v26, %v5392_v23 }
 0xd04   :  { %14144 = vmatmul.mubr.msk.f32.gmra.mrb[22].mxu0 %vm3484_vm4, %v4717_v10  ;;  %v6045_v10 = vld [vmem:[#allocation9 + $0x1c8] sm:$0xff] }
 0xd05   :  { %14169 = vmatprep.mubr.msk.f32.mxu0 %vm3484_vm4, %v4904_v11  ;;  %v6046_v11 = vld [vmem:[#allocation9 + $0x1d0] sm:$0xff] }
 0xd08   :  { %14170 = vmatmul.mubr.msk.f32.vlgmr.msra.gmra.mrb[20].mxu0 %vm3484_vm4, %v4905_v13  ;;  %v6047_v13 = vld [vmem:[#allocation9 + $0x1d8] sm:$0xff] }
 0xd09   :  { %15767 = vmatpush3.bf16.msra.mxu0 %v17394_v29  ;;  %14172 = vmatprep.mubr.msk.f32.mxu0 %vm3484_vm4, %v4906_v14  ;;  %v5286_v29 = vld [vmem:[#allocation9 + $0x150] sm:$0xff]  ;;  %v6234_v14 = vld [vmem:[#allocation9 + $0x1e0] sm:$0xff] }
 0xd0a   :  { %15785 = vmatprep.subr.bf16.mxu0 %v17396_v32 }
 0xd0c   :  { %14173 = vmatmul.mubr.msk.f32.gmra.mrb[22].mxu0 %vm3484_vm4, %v4907_v15  ;;  %v6235_v15 = vld [vmem:[#allocation9 + $0x1e8] sm:$0xff] }
 0xd0d   :  { %14198 = vmatprep.mubr.msk.f32.mxu0 %vm3484_vm4, %v5094_v16  ;;  %v6236_v16 = vld [vmem:[#allocation9 + $0x1f0] sm:$0xff] }
 0xd10   :  { %14199 = vmatmul.mubr.msk.f32.vlgmr.msra.gmra.mrb[20].mxu0 %vm3484_vm4, %v5095_v20  ;;  %v6346_v20 = vpop.permute.xlu1 %6345 }
 0xd11   :  { %15787 = vmatpush3.bf16.msra.mxu0 %v17396_v32  ;;  %14201 = vmatprep.mubr.msk.f32.mxu0 %vm3484_vm4, %v5096_v53  ;;  %v5287_v32 = vld [vmem:[#allocation9 + $0x158] sm:$0xff] }
 0xd12   :  { %15789 = vmatprep.subr.bf16.mxu0 %v15788_v21 }
 0xd14   :  { %14202 = vmatmul.mubr.msk.f32.gmra.mrb[22].mxu0 %vm3484_vm4, %v5097_v22  ;;  %v6351_v53 = vpop.permute.xlu1 %6350 }
 0xd15   :  { %14227 = vmatprep.mubr.msk.f32.mxu0 %vm3484_vm4, %v5284_v56 }
 0xd18   :  { %14228 = vmatmul.mubr.msk.f32.vlgmr.msra.gmra.mrb[20].mxu0 %vm3484_vm4, %v5285_v28  ;;  %v6361_v28 = vpop.permute.xlu1 %6360 }
 0xd19   :  { %15791 = vmatpush3.bf16.msra.mxu0 %v15788_v21  ;;  %14230 = vmatprep.mubr.msk.f32.mxu0 %vm3484_vm4, %v5286_v29 }
 0xd1a   :  { %15793 = vmatprep.subr.bf16.mxu0 %v15792_v30 }
 0xd1c   :  { %14231 = vmatmul.mubr.msk.f32.gmra.mrb[22].mxu0 %vm3484_vm4, %v5287_v32 }
 0xd1d   :  { %15795 = vmatpush3.bf16.msra.mxu0 %v15792_v30  ;;  %14249 = vmatprep.mubr.msk.f32.mxu0 %vm3309_vm3, %v17320_v48 }
 0xd1e   :  { %15797 = vmatprep.subr.bf16.mxu0 %v15796_v35 }
 0xd21   :  { %15799 = vmatpush3.bf16.msra.mxu0 %v15796_v35 }
 0xd22   :  { %15801 = vmatprep.subr.bf16.mxu0 %v15800_v38 }
 0xd25   :  { %15803 = vmatpush3.bf16.msra.mxu0 %v15800_v38 }
 0xd28   :  { %14250 = vmatmul.mubr.msk.f32.vlgmr.msra.gmra.mrb[28].mxu0 %vm3309_vm3, %v17322_v37 }
 0xd29   :  { %14256 = vmatprep.mubr.msk.f32.mxu0 %vm3484_vm4, %v5474_v40 }
 0xdfb   :  { %v14251_v34 = vpop.f32.mrb[28].mxu0 }
 0xdfc   :  { %v5464_v42 = vpop.f32.mrb[29].mxu0 }
 0xdfd   :  { %v15804_v43 = vpack.c.bf16 %v14251_v34, %v5464_v42  ;;  %v6478_v34 = vld [vmem:[#allocation13 + $0x80] sm:$0xff]  ;;  %v6479_v42 = vld [vmem:[#allocation13 + $0x88] sm:$0xff] }
 0xdff   :  { %15805 = vmatprep.subr.bf16.mxu0 %v15804_v43 }
 0xe00   :  { %15807 = vmatpush3.bf16.msra.mxu0 %v15804_v43 }
 0xe01   :  { %15825 = vmatprep.subr.bf16.mxu0 %v17398_v36 }
 0xe03   :  { %14257 = vmatmul.mubr.msk.f32.vlgmr.msra.gmra.mrb[20].mxu0 %vm3484_vm4, %v5475_v44 }
 0xe04   :  { %15827 = vmatpush3.bf16.msra.mxu0 %v17398_v36  ;;  %14259 = vmatprep.mubr.msk.f32.mxu0 %vm3484_vm4, %v5476_v45  ;;  %v5667_v36 = vld [vmem:[#allocation9 + $0x198] sm:$0xff] }
 0xe05   :  { %15845 = vmatprep.subr.bf16.mxu0 %v17400_v39 }
 0xe07   :  { %14260 = vmatmul.mubr.msk.f32.gmra.mrb[22].mxu0 %vm3484_vm4, %v5477_v46  ;;  %v15894_v46 = vpack.c.bf16 %v6479_v42, %v6478_v34  ;;  %v6569_v34 = vld [vmem:[#allocation15 + $0x28] sm:$0xff] }
 0xe08   :  { %14285 = vmatprep.mubr.msk.f32.mxu0 %vm3484_vm4, %v5664_v47  ;;  %v6462_v47 = vld [vmem:[#allocation13] sm:$0xff] }
 0xe0b   :  { %14286 = vmatmul.mubr.msk.f32.vlgmr.msra.gmra.mrb[20].mxu0 %vm3484_vm4, %v5665_v18  ;;  %v6480_v18 = vld [vmem:[#allocation13 + $0x90] sm:$0xff] }
 0xe0c   :  { %15847 = vmatpush3.bf16.msra.mxu0 %v17400_v39  ;;  %14288 = vmatprep.mubr.msk.f32.mxu0 %vm3484_vm4, %v5666_v49  ;;  %v5857_v39 = vld [vmem:[#allocation9 + $0x1b8] sm:$0xff] }
 0xe0d   :  { %15849 = vmatprep.subr.bf16.mxu0 %v15848_v25  ;;  %v6481_v49 = vld [vmem:[#allocation13 + $0x98] sm:$0xff] }
 0xe0f   :  { %14289 = vmatmul.mubr.msk.f32.gmra.mrb[22].mxu0 %vm3484_vm4, %v5667_v36  ;;  %v15896_v36 = vpack.c.bf16 %v6463_v59, %v6462_v47 }
 0xe10   :  { %14314 = vmatprep.mubr.msk.f32.mxu0 %vm3484_vm4, %v5854_v50  ;;  %v15898_v50 = vpack.c.bf16 %v6481_v49, %v6480_v18 }
 0xe13   :  { %14315 = vmatmul.mubr.msk.f32.vlgmr.msra.gmra.mrb[20].mxu0 %vm3484_vm4, %v5855_v54  ;;  %v6482_v54 = vld [vmem:[#allocation13 + $0xa0] sm:$0xff] }
 0xe14   :  { %15851 = vmatpush3.bf16.msra.mxu0 %v15848_v25  ;;  %14317 = vmatprep.mubr.msk.f32.mxu0 %vm3484_vm4, %v5856_v55  ;;  %v6379_v25 = vld [vmem:[#allocation12] sm:$0x3]  ;;  %v6483_v55 = vld [vmem:[#allocation13 + $0xa8] sm:$0xff] }
 0xe15   :  { %15853 = vmatprep.subr.bf16.mxu0 %v15852_v57  ;;  %v15902_v60 = vpack.c.bf16 %v6483_v55, %v6482_v54 }
 0xe17   :  { %14318 = vmatmul.mubr.msk.f32.gmra.mrb[22].mxu0 %vm3484_vm4, %v5857_v39  ;;  %v6466_v39 = vld [vmem:[#allocation13 + $0x20] sm:$0xff] }
 0xe18   :  { %15855 = vmatpush3.bf16.msra.mxu0 %v15852_v57  ;;  %14336 = vmatprep.mubr.msk.f32.mxu0 %vm3309_vm3, %v17320_v48  ;;  %v12162_v48 = vld [vmem:[#allocation22 + $0x8] sm:$0xff]  ;;  %v15900_v57 = vpack.c.bf16 %v6465_v52, %v6464_v51 }
 0xe19   :  { %15857 = vmatprep.subr.bf16.mxu0 %v15856_v61  ;;  %12172 = vperm.xlu1 %16454, %v12162_v48   ;;  %v15908_v48 = vpack.c.bf16 %v6469_v2, %v6468_v1  ;;  %v6892_v1 = vld [vmem:[#allocation15 + $0x80] sm:$0xff]  ;;  %v6893_v2 = vld [vmem:[#allocation15 + $0x88] sm:$0xff] }
 0xe1c   :  { %15859 = vmatpush3.bf16.msra.mxu0 %v15856_v61  ;;  %v6467_v61 = vld [vmem:[#allocation13 + $0x28] sm:$0xff] }
 0xe1d   :  { %15861 = vmatprep.subr.bf16.mxu0 %v15860_v27  ;;  %12182 = vperm.xlu1 %16454, %v12164_v5   ;;  %v15910_v5 = vpack.c.bf16 %v6487_v4, %v6486_v3  ;;  %v15951_v3 = vpack.c.bf16 %v6893_v2, %v6892_v1  ;;  %v6894_v4 = vld [vmem:[#allocation15 + $0x90] sm:$0xff]  ;;  %v8054_v1 = vld [vmem:[#allocation15 + $0x278] sm:$0xff] }
 0xe20   :  { %15863 = vmatpush3.bf16.msra.mxu0 %v15860_v27  ;;  %v15904_v27 = vpack.c.bf16 %v6467_v61, %v6466_v39  ;;  %v6652_v39 = vld [vmem:[#allocation15 + $0x60] sm:$0xff]  ;;  %v6653_v61 = vld [vmem:[#allocation15 + $0x68] sm:$0xff] }
 0xe21   :  { %12205 = vperm.xlu1 %16454, %v12202_v6   ;;  %v6470_v6 = vld [vmem:[#allocation13 + $0x40] sm:$0xff] }
 0xe23   :  { %14337 = vmatmul.mubr.msk.f32.vlgmr.msra.gmra.mrb[30].mxu0 %vm3309_vm3, %v17322_v37 }
 0xe24   :  { %14343 = vmatprep.mubr.msk.f32.mxu0 %vm3484_vm4, %v6044_v0  ;;  %v15906_v0 = vpack.c.bf16 %v6485_v63, %v6484_v62  ;;  %v15945_v62 = vpack.c.bf16 %v6653_v61, %v6652_v39  ;;  %v6654_v63 = vld [vmem:[#allocation15 + $0x70] sm:$0xff]  ;;  %v8050_v39 = vld [vmem:[#allocation15 + $0x258] sm:$0xff] }
 0xef6   :  { %v14338_v37 = vpop.f32.mrb[30].mxu0 }
 0xef7   :  { %v6034_v8 = vpop.f32.mrb[31].mxu0 }
 0xef8   :  { %v15864_v9 = vpack.c.bf16 %v14338_v37, %v6034_v8  ;;  %v6471_v37 = vld [vmem:[#allocation13 + $0x48] sm:$0xff]  ;;  %v6488_v8 = vld [vmem:[#allocation13 + $0xd0] sm:$0xff] }
 0xefa   :  { %15865 = vmatprep.subr.bf16.mxu0 %v15864_v9 }
 0xefb   :  { %15867 = vmatpush3.bf16.msra.mxu0 %v15864_v9  ;;  %v6489_v9 = vld [vmem:[#allocation13 + $0xd8] sm:$0xff] }
 0xefc   :  { %15885 = vmatprep.subr.bf16.mxu0 %v17403_v41 }
 0xefe   :  { %14344 = vmatmul.mubr.msk.f32.vlgmr.msra.gmra.mrb[20].mxu0 %vm3484_vm4, %v6045_v10  ;;  %v15912_v10 = vpack.c.bf16 %v6471_v37, %v6470_v6  ;;  %v6896_v6 = vld [vmem:[#allocation15 + $0xa0] sm:$0xff]  ;;  %v6897_v37 = vld [vmem:[#allocation15 + $0xa8] sm:$0xff] }
 0xeff   :  { %15887 = vmatpush3.bf16.msra.mxu0 %v17403_v41  ;;  %14346 = vmatprep.mubr.msk.f32.mxu0 %vm3484_vm4, %v6046_v11  ;;  %v16827_v41 = vmov 0.0   ;;  %v15914_v11 = vpack.c.bf16 %v6489_v9, %v6488_v8  ;;  %v15957_v8 = vpack.c.bf16 %v6897_v37, %v6896_v6  ;;  %v6898_v9 = vld [vmem:[#allocation15 + $0xb0] sm:$0xff]  ;;  %v8215_v6 = vld [vmem:[#allocation15 + $0x298] sm:$0xff] }
 0xf00   :  { %15926 = vmatprep.subr.bf16.mxu0 %v16825_v19  ;;  %14386 = vmatprep.mubr.msk.f32.mxu1 %vm16826_vm5, %v16827_v41 }
 0xf02   :  { %14347 = vmatmul.mubr.msk.f32.gmra.mrb[22].mxu0 %vm3484_vm4, %v6047_v13  ;;  %v6472_v13 = vld [vmem:[#allocation13 + $0x50] sm:$0xff] }
 0xf03   :  { %14372 = vmatprep.mubr.msk.f32.mxu0 %vm3484_vm4, %v6234_v14  ;;  %v6473_v14 = vld [vmem:[#allocation13 + $0x58] sm:$0xff] }
 0xf06   :  { %14373 = vmatmul.mubr.msk.f32.vlgmr.msra.gmra.mrb[20].mxu0 %vm3484_vm4, %v6235_v15  ;;  %v6490_v15 = vld [vmem:[#allocation13 + $0xe0] sm:$0xff] }
 0xf07   :  { %14375 = vmatprep.mubr.msk.f32.mxu0 %vm3484_vm4, %v6236_v16  ;;  %v6491_v16 = vld [vmem:[#allocation13 + $0xe8] sm:$0xff] }
 0xf0a   :  { %14376 = vmatmul.mubr.msk.f32.gmra.mrb[22].mxu0 %vm3484_vm4, %v6237_v7  ;;  %v15916_v7 = vpack.c.bf16 %v6473_v14, %v6472_v13  ;;  %v7222_v13 = vld [vmem:[#allocation15 + $0x100] sm:$0xff]  ;;  %v7223_v14 = vld [vmem:[#allocation15 + $0x108] sm:$0xff] }
 0xf0b   :  { %14405 = vmatprep.mubr.msk.f32.mxu0 %vm16826_vm5, %v16827_v41 }
 0xfd9   :  { %v14374_v21 = vpop.f32.mrb[20].mxu0 }
 0xfda   :  { %v6364_v22 = vadd.f32 %v14374_v21, %v6351_v53  ;;  %v6316_v56 = vpop.f32.mrb[21].mxu0  ;;  %v6474_v53 = vld [vmem:[#allocation13 + $0x60] sm:$0xff]  ;;  %v6475_v21 = vld [vmem:[#allocation13 + $0x68] sm:$0xff] }
 0xfdb   :  { %v6363_v23 = vadd.f32 %v6346_v20, %v6316_v56  ;;  %v15918_v20 = vpack.c.bf16 %v6491_v16, %v6490_v15  ;;  %v6493_v56 = vld [vmem:[#allocation13 + $0xf8] sm:$0xff]  ;;  %v15975_v15 = vpack.c.bf16 %v7223_v14, %v7222_v13  ;;  %v7224_v16 = vld [vmem:[#allocation15 + $0x110] sm:$0xff] }
 0xfdc   :  { %vm6368_vm6 = vcmp.gt.f32.partialorder %v6364_v22, 0.0  ;;  %v6372_v26 = vmul.f32 0.2, %v6364_v22  ;;  %v8218_v13 = vld [vmem:[#allocation15 + $0x2b0] sm:$0xff]  ;;  %v8219_v14 = vld [vmem:[#allocation15 + $0x2b8] sm:$0xff] }
 0xfdd   :  { %vm6367_vm7 = vcmp.gt.f32.partialorder %v6363_v23, 0.0  ;;  %v6371_v29 = vmul.f32 0.2, %v6363_v23  ;;  %v14377_v30 = vpop.f32.mrb[22].mxu0 }
 0xfde   :  { %v6376_v33 = vsel %vm6368_vm6, %v6364_v22, %v6372_v26  ;;  %v6366_v32 = vadd.f32 %v14377_v30, %v6361_v28  ;;  %v6326_v35 = vpop.f32.mrb[23].mxu0  ;;  %v6492_v22 = vld [vmem:[#allocation13 + $0xf0] sm:$0xff] }
 0xfdf   :  { %v6375_v24 = vsel %vm6367_vm7, %v6363_v23, %v6371_v29  ;;  %v6365_v12 = vadd.f32 %v6356_v31, %v6326_v35  ;;  %v15920_v23 = vpack.c.bf16 %v6475_v21, %v6474_v53  ;;  %v15922_v26 = vpack.c.bf16 %v6493_v56, %v6492_v22  ;;  %v6476_v28 = vld [vmem:[#allocation13 + $0x70] sm:$0xff]  ;;  %v6477_v29 = vld [vmem:[#allocation13 + $0x78] sm:$0xff]  ;;  %v7226_v53 = vld [vmem:[#allocation15 + $0x120] sm:$0xff] }
 0xfe0   :  { %v15889_v38 = vpack.c.bf16 %v6376_v33, %v6375_v24  ;;  %vm6370_vm8 = vcmp.gt.f32.partialorder %v6366_v32, 0.0  ;;  %v6374_v40 = vmul.f32 0.2, %v6366_v32  ;;  %v15924_v30 = vpack.c.bf16 %v6477_v29, %v6476_v28  ;;  %v16460_v31 = vld [vmem:[%s17892_s24] sm:$0xff]  ;;  %v6564_v33 = vld [vmem:[#allocation15] sm:$0xff] }
 0xfe1   :  { %vm6369_vm9 = vcmp.gt.f32.partialorder %v6365_v12, 0.0  ;;  %v6373_v43 = vmul.f32 0.2, %v6365_v12  ;;  %v6566_v35 = vld [vmem:[#allocation15 + $0x10] sm:$0xff]  ;;  %v7227_v21 = vld [vmem:[#allocation15 + $0x128] sm:$0xff]  ;;  %v7387_v28 = vld [vmem:[#allocation15 + $0x140] sm:$0xff] }
 0xfe2   :  { %v6378_v44 = vsel %vm6370_vm8, %v6366_v32, %v6374_v40  ;;  %15890 = vmatpush3.bf16.msra.mxu1 %v15889_v38  ;;  %v6565_v32 = vld [vmem:[#allocation15 + $0x8] sm:$0xff]  ;;  %v6568_v40 = vld [vmem:[#allocation15 + $0x20] sm:$0xff]  ;;  %v15981_v22 = vpack.c.bf16 %v7227_v21, %v7226_v53  ;;  %v7228_v56 = vld [vmem:[#allocation15 + $0x130] sm:$0xff] }
 0xfe3   :  { %v6377_v45 = vsel %vm6369_vm9, %v6365_v12, %v6373_v43  ;;  %15891 = vmatprep.subr.bf16.mxu1 %v16825_v19  ;;  %v15927_v24 = vpack.c.bf16 %v6565_v32, %v6564_v33  ;;  %v6567_v12 = vld [vmem:[#allocation15 + $0x18] sm:$0xff]  ;;  %v15933_v42 = vpack.c.bf16 %v6569_v34, %v6568_v40  ;;  %v6570_v43 = vld [vmem:[#allocation15 + $0x30] sm:$0xff]  ;;  %v7388_v29 = vld [vmem:[#allocation15 + $0x148] sm:$0xff] }
 0xfe4   :  { %v15892_v17 = vpack.c.bf16 %v6378_v44, %v6377_v45  ;;  %v15930_v38 = vpack.c.bf16 %v6567_v12, %v6566_v35  ;;  %v6571_v44 = vld [vmem:[#allocation15 + $0x38] sm:$0xff]  ;;  %v7391_v35 = vld [vmem:[#allocation15 + $0x160] sm:$0xff]  ;;  %v8544_v53 = vld [vmem:[#allocation15 + $0x310] sm:$0xff] }
 0xfe5   :  { %15928 = vmatpush3.bf16.msra.mxu0 %v15927_v24  ;;  %v15936_v45 = vpack.c.bf16 %v6571_v44, %v6570_v43  ;;  %v7390_v33 = vld [vmem:[#allocation15 + $0x158] sm:$0xff]  ;;  %v7392_v24 = vld [vmem:[#allocation15 + $0x168] sm:$0xff] }
 0xfe6   :  { %15893 = vmatpush3.bf16.msra.mxu1 %v15892_v17  ;;  %15929 = vmatprep.subr.bf16.mxu0 %v16825_v19  ;;  %v15993_v12 = vpack.c.bf16 %v7392_v24, %v7391_v35  ;;  %v7394_v40 = vld [vmem:[#allocation15 + $0x178] sm:$0xff]  ;;  %v7718_v43 = vld [vmem:[#allocation15 + $0x1c8] sm:$0xff]  ;;  %v8709_v35 = vld [vmem:[#allocation15 + $0x350] sm:$0xff] }
 0xfe7   :  { %15895 = vmatprep.subr.bf16.mxu1 %v15894_v46  ;;  %v17497_v46 = vpop.permute.xlu0 %9205  ;;  %v8545_v21 = vld [vmem:[#allocation15 + $0x318] sm:$0xff] }
 0xfe8   :  { %v8710_v24 = vld [vmem:[#allocation15 + $0x358] sm:$0xff] }
 0xfe9   :  { %14387 = vmatmul.mubr.msk.f32.vlgmr.msra.gmra.mrb[40].mxu1 %vm6386_vm10, %v6379_v25  ;;  %15931 = vmatpush3.bf16.msra.mxu0 %v15930_v38  ;;  %v7393_v38 = vld [vmem:[#allocation15 + $0x170] sm:$0xff] }
 0xfea   :  { %15897 = vmatpush3.bf16.msra.mxu1 %v15896_v36  ;;  %6558 = vmatprep.mubr.f32.mxu1 %v16459_v58  ;;  %v6648_v36 = vld [vmem:[#allocation15 + $0x40] sm:$0xff]  ;;  %v6651_v58 = vld [vmem:[#allocation15 + $0x58] sm:$0xff]  ;;  %v15996_v34 = vpack.c.bf16 %v7394_v40, %v7393_v38  ;;  %v8712_v40 = vld [vmem:[#allocation15 + $0x368] sm:$0xff] }
 0xfeb   :  { %15899 = vmatprep.subr.bf16.mxu1 %v15898_v50  ;;  %15932 = vmatprep.subr.bf16.mxu0 %v16825_v19  ;;  %v17499_v47 = vpop.permute.xlu0 %12167  ;;  %v6649_v50 = vld [vmem:[#allocation15 + $0x48] sm:$0xff]  ;;  %v8711_v38 = vld [vmem:[#allocation15 + $0x360] sm:$0xff] }
 0xfec   :  { %v15939_v54 = vpack.c.bf16 %v6649_v50, %v6648_v36  ;;  %v7723_v50 = vld [vmem:[#allocation15 + $0x1f0] sm:$0xff] }
 0xfed   :  { %15934 = vmatpush3.bf16.msra.mxu0 %v15933_v42  ;;  %v7717_v42 = vld [vmem:[#allocation15 + $0x1c0] sm:$0xff] }
 0xfee   :  { %15901 = vmatpush3.bf16.msra.mxu1 %v15900_v57  ;;  %15935 = vmatprep.subr.bf16.mxu0 %v16825_v19  ;;  %v6650_v57 = vld [vmem:[#allocation15 + $0x50] sm:$0xff]  ;;  %v16011_v44 = vpack.c.bf16 %v7718_v43, %v7717_v42  ;;  %v8714_v43 = vld [vmem:[#allocation15 + $0x378] sm:$0xff] }
 0xfef   :  { %15903 = vmatprep.subr.bf16.mxu1 %v15902_v60  ;;  %v17501_v59 = vpop.permute.xlu0 %12177  ;;  %v15942_v60 = vpack.c.bf16 %v6651_v58, %v6650_v57  ;;  %v8048_v57 = vld [vmem:[#allocation15 + $0x248] sm:$0xff]  ;;  %v8713_v42 = vld [vmem:[#allocation15 + $0x370] sm:$0xff] }
 0xff1   :  { %15937 = vmatpush3.bf16.msra.mxu0 %v15936_v45  ;;  %v7719_v45 = vld [vmem:[#allocation15 + $0x1d0] sm:$0xff] }
 0xff2   :  { %15905 = vmatpush3.bf16.msra.mxu1 %v15904_v27  ;;  %15938 = vmatprep.subr.bf16.mxu0 %v16825_v19  ;;  %v6655_v27 = vld [vmem:[#allocation15 + $0x78] sm:$0xff] }
 0xff3   :  { %15907 = vmatprep.subr.bf16.mxu1 %v15906_v0  ;;  %v6384_v17 = vpop.permute.xlu0 %6383  ;;  %v15948_v0 = vpack.c.bf16 %v6655_v27, %v6654_v63  ;;  %v8052_v63 = vld [vmem:[#allocation15 + $0x268] sm:$0xff] }
 0xff6   :  { %15909 = vmatpush3.bf16.msra.mxu1 %v15908_v48  ;;  %v6895_v48 = vld [vmem:[#allocation15 + $0x98] sm:$0xff] }
 0xff7   :  { %15911 = vmatprep.subr.bf16.mxu1 %v15910_v5  ;;  %v15954_v5 = vpack.c.bf16 %v6895_v48, %v6894_v4  ;;  %v8213_v4 = vld [vmem:[#allocation15 + $0x288] sm:$0xff] }
 0xffa   :  { %15913 = vmatpush3.bf16.msra.mxu1 %v15912_v10  ;;  %v6899_v10 = vld [vmem:[#allocation15 + $0xb8] sm:$0xff] }
 0xffb   :  { %15915 = vmatprep.subr.bf16.mxu1 %v15914_v11  ;;  %v15960_v11 = vpack.c.bf16 %v6899_v10, %v6898_v9  ;;  %v8217_v9 = vld [vmem:[#allocation15 + $0x2a8] sm:$0xff] }
 0xffe   :  { %15917 = vmatpush3.bf16.msra.mxu1 %v15916_v7  ;;  %v7225_v7 = vld [vmem:[#allocation15 + $0x118] sm:$0xff] }
 0xfff   :  { %15919 = vmatprep.subr.bf16.mxu1 %v15918_v20  ;;  %v15978_v20 = vpack.c.bf16 %v7225_v7, %v7224_v16  ;;  %v8542_v16 = vld [vmem:[#allocation15 + $0x300] sm:$0xff]  ;;  %v8543_v7 = vld [vmem:[#allocation15 + $0x308] sm:$0xff] }
0x1002   :  { %15921 = vmatpush3.bf16.msra.mxu1 %v15920_v23  ;;  %v7229_v23 = vld [vmem:[#allocation15 + $0x138] sm:$0xff] }
0x1003   :  { %15923 = vmatprep.subr.bf16.mxu1 %v15922_v26  ;;  %v15984_v26 = vpack.c.bf16 %v7229_v23, %v7228_v56  ;;  %v8546_v56 = vld [vmem:[#allocation15 + $0x320] sm:$0xff]  ;;  %v8547_v23 = vld [vmem:[#allocation15 + $0x328] sm:$0xff] }
0x1006   :  { %15925 = vmatpush3.bf16.msra.mxu1 %v15924_v30  ;;  %v15987_v30 = vpack.c.bf16 %v7388_v29, %v7387_v28  ;;  %v8548_v28 = vld [vmem:[#allocation15 + $0x330] sm:$0xff]  ;;  %v8549_v29 = vld [vmem:[#allocation15 + $0x338] sm:$0xff] }
0x1009   :  { %6559 = vmatmul.mubr.f32.vlgmr.msra.gmra.mrb[42].mxu1 %v16460_v31  ;;  %v7389_v31 = vld [vmem:[#allocation15 + $0x150] sm:$0xff] }
0x100a   :  { %v15990_v32 = vpack.c.bf16 %v7390_v33, %v7389_v31  ;;  %v8707_v31 = vld [vmem:[#allocation15 + $0x340] sm:$0xff]  ;;  %v8708_v33 = vld [vmem:[#allocation15 + $0x348] sm:$0xff] }
0x10bc   :  { %v6456_v18 = vpop.f32.mrb[40].mxu1 }
0x10bd   :  { %v6457_v49 = vadd.f32 %v6456_v18, %v6384_v17  ;;  %v14388_v25 = vpop.f32.mrb[41].mxu1  ;;  %v7720_v17 = vld [vmem:[#allocation15 + $0x1d8] sm:$0xff] }
0x10be   :  { %v16014_v18 = vpack.c.bf16 %v7720_v17, %v7719_v45  ;;  %v7722_v25 = vld [vmem:[#allocation15 + $0x1e8] sm:$0xff]  ;;  %v9037_v45 = vld [vmem:[#allocation15 + $0x3c0] sm:$0xff] }
0x10bf   :  { %6461 = vst.msk [vmem:[%s17878_s18] sm:$0x3] %vm6460_vm11, %v6457_v49  ;;  %v7721_v49 = vld [vmem:[#allocation15 + $0x1e0] sm:$0xff]  ;;  %v9038_v17 = vld [vmem:[#allocation15 + $0x3c8] sm:$0xff] }
0x10c0   :  { %v16017_v36 = vpack.c.bf16 %v7722_v25, %v7721_v49  ;;  %v9039_v49 = vld [vmem:[#allocation15 + $0x3d0] sm:$0xff]  ;;  %v9040_v25 = vld [vmem:[#allocation15 + $0x3d8] sm:$0xff] }
0x10dc   :  { %v13474_v51 = vpop.f32.mrb[42].mxu1 }
0x10dd   :  { %v13475_v52 = vpop.f32.mrb[43].mxu1 }
0x10de   :  { %v17506_v55 = vadd.f32 %v13475_v52, %v13474_v51  ;;  %v7724_v51 = vld [vmem:[#allocation15 + $0x1f8] sm:$0xff] }
0x10df   :  { %v16020_v52 = vpack.c.bf16 %v7724_v51, %v7723_v50  ;;  %v9041_v50 = vld [vmem:[#allocation15 + $0x3e0] sm:$0xff]  ;;  %v9042_v51 = vld [vmem:[#allocation15 + $0x3e8] sm:$0xff] }
0x10e0   :  { %14406 = vmatmul.mubr.msk.f32.vlgmr.msra.gmra.mrb[32].mxu0 %vm3309_vm3, %v17506_v55 }
0x10e1   :  { %15940 = vmatpush3.bf16.msra.mxu0 %v15939_v54  ;;  %14424 = vmatprep.mubr.msk.f32.mxu0 %vm16826_vm5, %v16827_v41  ;;  %v8047_v54 = vld [vmem:[#allocation15 + $0x240] sm:$0xff] }
0x10e2   :  { %15941 = vmatprep.subr.bf16.mxu0 %v16825_v19  ;;  %v16035_v58 = vpack.c.bf16 %v8048_v57, %v8047_v54  ;;  %v9043_v54 = vld [vmem:[#allocation15 + $0x3f0] sm:$0xff]  ;;  %v9044_v57 = vld [vmem:[#allocation15 + $0x3f8] sm:$0xff] }
0x10e5   :  { %15943 = vmatpush3.bf16.msra.mxu0 %v15942_v60  ;;  %v8049_v60 = vld [vmem:[#allocation15 + $0x250] sm:$0xff] }
0x10e6   :  { %15944 = vmatprep.subr.bf16.mxu0 %v16825_v19  ;;  %v16038_v61 = vpack.c.bf16 %v8050_v39, %v8049_v60 }
0x10e9   :  { %15946 = vmatpush3.bf16.msra.mxu0 %v15945_v62  ;;  %v8051_v62 = vld [vmem:[#allocation15 + $0x260] sm:$0xff] }
0x10ea   :  { %15947 = vmatprep.subr.bf16.mxu0 %v16825_v19  ;;  %v16041_v27 = vpack.c.bf16 %v8052_v63, %v8051_v62  ;;  %v6728_v62 = vld [vmem:[#allocation16 + $0x18] sm:$0xff] }
0x10ed   :  { %15949 = vmatpush3.bf16.msra.mxu0 %v15948_v0  ;;  %v8053_v0 = vld [vmem:[#allocation15 + $0x270] sm:$0xff] }
0x10ee   :  { %15950 = vmatprep.subr.bf16.mxu0 %v16825_v19  ;;  %v16044_v2 = vpack.c.bf16 %v8054_v1, %v8053_v0  ;;  %v6646_v0 = vld [vmem:[#allocation16 + $0x8] sm:$0xff]  ;;  %v6971_v1 = vld [vmem:[#allocation16 + $0x20] sm:$0xff] }
0x10f0   :  { %14425 = vmatmul.mubr.msk.f32.vlgmr.msra.gmra.mrb[34].mxu0 %vm3309_vm3, %v17506_v55 }
0x10f1   :  { %15952 = vmatpush3.bf16.msra.mxu0 %v15951_v3  ;;  %14453 = vmatprep.mubr.msk.f32.mxu0 %vm16826_vm5, %v16827_v41  ;;  %v8212_v3 = vld [vmem:[#allocation15 + $0x280] sm:$0xff] }
0x10f2   :  { %15953 = vmatprep.subr.bf16.mxu0 %v16825_v19  ;;  %v16047_v48 = vpack.c.bf16 %v8213_v4, %v8212_v3  ;;  %v7058_v3 = vld [vmem:[#allocation15 + $0xc8] sm:$0xff] }
0x10f5   :  { %15955 = vmatpush3.bf16.msra.mxu0 %v15954_v5  ;;  %v8214_v5 = vld [vmem:[#allocation15 + $0x290] sm:$0xff] }
0x10f6   :  { %15956 = vmatprep.subr.bf16.mxu0 %v16825_v19  ;;  %v16050_v37 = vpack.c.bf16 %v8215_v6, %v8214_v5 }
0x10f9   :  { %15958 = vmatpush3.bf16.msra.mxu0 %v15957_v8  ;;  %v8216_v8 = vld [vmem:[#allocation15 + $0x2a0] sm:$0xff] }
0x10fa   :  { %15959 = vmatprep.subr.bf16.mxu0 %v16825_v19  ;;  %v16053_v10 = vpack.c.bf16 %v8217_v9, %v8216_v8  ;;  %v7060_v8 = vld [vmem:[#allocation15 + $0xd8] sm:$0xff] }
0x10fd   :  { %15961 = vmatpush3.bf16.msra.mxu0 %v15960_v11  ;;  %v6727_v11 = vld [vmem:[#allocation16 + $0x10] sm:$0xff] }
0x10fe   :  { %15974 = vmatprep.subr.bf16.mxu0 %v16825_v19  ;;  %14429 = vmatprep.mubr.msk.f32.mxu1 %vm472_vm0, %v6727_v11  ;;  %v7062_v11 = vld [vmem:[#allocation15 + $0xe8] sm:$0xff] }
0x1100   :  { %14454 = vmatmul.mubr.msk.f32.vlgmr.msra.gmra.mrb[36].mxu0 %vm3309_vm3, %v17506_v55 }
0x1101   :  { %15976 = vmatpush3.bf16.msra.mxu0 %v15975_v15  ;;  %14501 = vmatprep.mubr.msk.f32.mxu0 %vm16826_vm5, %v16827_v41  ;;  %v16056_v15 = vpack.c.bf16 %v8219_v14, %v8218_v13  ;;  %v7063_v14 = vld [vmem:[#allocation15 + $0xf0] sm:$0xff] }
0x1102   :  { %15977 = vmatprep.subr.bf16.mxu0 %v16825_v19 }
0x1105   :  { %15979 = vmatpush3.bf16.msra.mxu0 %v15978_v20  ;;  %v16071_v20 = vpack.c.bf16 %v8543_v7, %v8542_v16 }
0x1106   :  { %15980 = vmatprep.subr.bf16.mxu0 %v16825_v19 }
0x1109   :  { %15982 = vmatpush3.bf16.msra.mxu0 %v15981_v22  ;;  %v16074_v22 = vpack.c.bf16 %v8545_v21, %v8544_v53 }
0x110a   :  { %15983 = vmatprep.subr.bf16.mxu0 %v16825_v19 }
0x110d   :  { %15985 = vmatpush3.bf16.msra.mxu0 %v15984_v26  ;;  %v16077_v26 = vpack.c.bf16 %v8547_v23, %v8546_v56 }
0x110e   :  { %15986 = vmatprep.subr.bf16.mxu0 %v16825_v19 }
0x1110   :  { %14502 = vmatmul.mubr.msk.f32.vlgmr.msra.gmra.mrb[38].mxu0 %vm3309_vm3, %v17506_v55 }
0x1111   :  { %15988 = vmatpush3.bf16.msra.mxu0 %v15987_v30  ;;  %14525 = vmatprep.mubr.msk.f32.mxu0 %vm16826_vm5, %v16827_v41  ;;  %v16080_v30 = vpack.c.bf16 %v8549_v29, %v8548_v28 }
0x1112   :  { %15989 = vmatprep.subr.bf16.mxu0 %v16825_v19 }
0x1115   :  { %15991 = vmatpush3.bf16.msra.mxu0 %v15990_v32  ;;  %v16083_v32 = vpack.c.bf16 %v8708_v33, %v8707_v31  ;;  %v7136_v33 = vld [vmem:[#allocation16 + $0x30] sm:$0xff] }
0x1116   :  { %15992 = vmatprep.subr.bf16.mxu0 %v16825_v19 }
0x1119   :  { %15994 = vmatpush3.bf16.msra.mxu0 %v15993_v12  ;;  %v16086_v12 = vpack.c.bf16 %v8710_v24, %v8709_v35 }
0x111a   :  { %15995 = vmatprep.subr.bf16.mxu0 %v16825_v19 }
0x111d   :  { %15997 = vmatpush3.bf16.msra.mxu0 %v15996_v34  ;;  %v16089_v34 = vpack.c.bf16 %v8712_v40, %v8711_v38  ;;  %v7137_v40 = vld [vmem:[#allocation16 + $0x38] sm:$0xff] }
0x111e   :  { %16010 = vmatprep.subr.bf16.mxu0 %v16825_v19 }
0x1120   :  { %14526 = vmatmul.mubr.msk.f32.vlgmr.msra.gmra.mrb[40].mxu0 %vm3309_vm3, %v17506_v55 }
0x1121   :  { %16012 = vmatpush3.bf16.msra.mxu0 %v16011_v44  ;;  %14573 = vmatprep.mubr.msk.f32.mxu0 %vm16826_vm5, %v16827_v41  ;;  %v16092_v44 = vpack.c.bf16 %v8714_v43, %v8713_v42  ;;  %v7301_v42 = vld [vmem:[#allocation16 + $0x40] sm:$0xff]  ;;  %v7302_v43 = vld [vmem:[#allocation16 + $0x48] sm:$0xff] }
0x1122   :  { %16013 = vmatprep.subr.bf16.mxu0 %v16825_v19 }
0x1125   :  { %16015 = vmatpush3.bf16.msra.mxu0 %v16014_v18  ;;  %v16107_v18 = vpack.c.bf16 %v9038_v17, %v9037_v45  ;;  %v7552_v45 = vld [vmem:[#allocation15 + $0x180] sm:$0xff]  ;;  %v7553_v17 = vld [vmem:[#allocation15 + $0x188] sm:$0xff] }
0x1126   :  { %16016 = vmatprep.subr.bf16.mxu0 %v16825_v19 }
0x1129   :  { %16018 = vmatpush3.bf16.msra.mxu0 %v16017_v36  ;;  %v16110_v36 = vpack.c.bf16 %v9040_v25, %v9039_v49  ;;  %v15999_v49 = vpack.c.bf16 %v7553_v17, %v7552_v45  ;;  %v7554_v25 = vld [vmem:[#allocation15 + $0x190] sm:$0xff]  ;;  %v8621_v45 = vld [vmem:[#allocation16 + $0xc0] sm:$0xff]  ;;  %v8622_v17 = vld [vmem:[#allocation16 + $0xc8] sm:$0xff] }
0x112a   :  { %16019 = vmatprep.subr.bf16.mxu0 %v16825_v19 }
0x112d   :  { %16021 = vmatpush3.bf16.msra.mxu0 %v16020_v52  ;;  %v16113_v52 = vpack.c.bf16 %v9042_v51, %v9041_v50  ;;  %v7556_v51 = vld [vmem:[#allocation15 + $0x1a0] sm:$0xff] }
0x112e   :  { %16034 = vmatprep.subr.bf16.mxu0 %v16825_v19 }
0x1130   :  { %14574 = vmatmul.mubr.msk.f32.vlgmr.msra.gmra.mrb[42].mxu0 %vm3309_vm3, %v17506_v55 }
0x1131   :  { %16036 = vmatpush3.bf16.msra.mxu0 %v16035_v58  ;;  %14621 = vmatprep.mubr.msk.f32.mxu0 %vm16826_vm5, %v16827_v41  ;;  %v16116_v58 = vpack.c.bf16 %v9044_v57, %v9043_v54  ;;  %v7558_v57 = vld [vmem:[#allocation15 + $0x1b0] sm:$0xff] }
0x1132   :  { %16037 = vmatprep.subr.bf16.mxu0 %v16825_v19 }
0x1135   :  { %16039 = vmatpush3.bf16.msra.mxu0 %v16038_v61 }
0x1136   :  { %16040 = vmatprep.subr.bf16.mxu0 %v16825_v19 }
0x1139   :  { %16042 = vmatpush3.bf16.msra.mxu0 %v16041_v27  ;;  %v6645_v27 = vld [vmem:[#allocation16] sm:$0xff] }
0x113a   :  { %16043 = vmatprep.subr.bf16.mxu0 %v16825_v19 }
0x113d   :  { %16045 = vmatpush3.bf16.msra.mxu0 %v16044_v2  ;;  %v7057_v2 = vld [vmem:[#allocation15 + $0xc0] sm:$0xff] }
0x113e   :  { %16046 = vmatprep.subr.bf16.mxu0 %v16825_v19  ;;  %v15963_v5 = vpack.c.bf16 %v7058_v3, %v7057_v2  ;;  %v7797_v2 = vld [vmem:[#allocation16 + $0x78] sm:$0xff] }
0x1140   :  { %14622 = vmatmul.mubr.msk.f32.vlgmr.msra.gmra.mrb[44].mxu0 %vm3309_vm3, %v17506_v55 }
0x1141   :  { %16048 = vmatpush3.bf16.msra.mxu0 %v16047_v48  ;;  %14645 = vmatprep.mubr.msk.f32.mxu0 %vm16826_vm5, %v16827_v41  ;;  %v6972_v48 = vld [vmem:[#allocation16 + $0x28] sm:$0xff] }
0x1142   :  { %16049 = vmatprep.subr.bf16.mxu0 %v16825_v19 }
0x1145   :  { %16051 = vmatpush3.bf16.msra.mxu0 %v16050_v37  ;;  %v7059_v37 = vld [vmem:[#allocation15 + $0xd0] sm:$0xff] }
0x1146   :  { %16052 = vmatprep.subr.bf16.mxu0 %v16825_v19  ;;  %v15966_v9 = vpack.c.bf16 %v7060_v8, %v7059_v37  ;;  %v7887_v37 = vld [vmem:[#allocation15 + $0x228] sm:$0xff] }
0x1149   :  { %16054 = vmatpush3.bf16.msra.mxu0 %v16053_v10  ;;  %v7061_v10 = vld [vmem:[#allocation15 + $0xe0] sm:$0xff] }
0x114a   :  { %16055 = vmatprep.subr.bf16.mxu0 %v16825_v19  ;;  %v15969_v13 = vpack.c.bf16 %v7062_v11, %v7061_v10  ;;  %v7889_v10 = vld [vmem:[#allocation15 + $0x238] sm:$0xff] }
0x114d   :  { %16057 = vmatpush3.bf16.msra.mxu0 %v16056_v15  ;;  %v7064_v15 = vld [vmem:[#allocation15 + $0xf8] sm:$0xff] }
0x114e   :  { %16070 = vmatprep.subr.bf16.mxu0 %v16825_v19  ;;  %v15972_v16 = vpack.c.bf16 %v7064_v15, %v7063_v14  ;;  %v7962_v15 = vld [vmem:[#allocation16 + $0x88] sm:$0xff] }
0x1150   :  { %14646 = vmatmul.mubr.msk.f32.vlgmr.msra.gmra.mrb[46].mxu0 %vm3309_vm3, %v17506_v55 }
0x1151   :  { %16072 = vmatpush3.bf16.msra.mxu0 %v16071_v20  ;;  %14693 = vmatprep.mubr.msk.f32.mxu0 %vm16826_vm5, %v16827_v41 }
0x1152   :  { %16073 = vmatprep.subr.bf16.mxu0 %v16825_v19 }
0x1155   :  { %16075 = vmatpush3.bf16.msra.mxu0 %v16074_v22 }
0x1156   :  { %16076 = vmatprep.subr.bf16.mxu0 %v16825_v19 }
0x1159   :  { %16078 = vmatpush3.bf16.msra.mxu0 %v16077_v26 }
0x115a   :  { %16079 = vmatprep.subr.bf16.mxu0 %v16825_v19 }
0x115d   :  { %16081 = vmatpush3.bf16.msra.mxu0 %v16080_v30 }
0x115e   :  { %16082 = vmatprep.subr.bf16.mxu0 %v16825_v19 }
0x1160   :  { %14694 = vmatmul.mubr.msk.f32.vlgmr.msra.gmra.mrb[48].mxu0 %vm3309_vm3, %v17506_v55 }
0x1161   :  { %16084 = vmatpush3.bf16.msra.mxu0 %v16083_v32  ;;  %14717 = vmatprep.mubr.msk.f32.mxu0 %vm16826_vm5, %v16827_v41 }
0x1162   :  { %16085 = vmatprep.subr.bf16.mxu0 %v16825_v19 }
0x1165   :  { %16087 = vmatpush3.bf16.msra.mxu0 %v16086_v12 }
0x1166   :  { %16088 = vmatprep.subr.bf16.mxu0 %v16825_v19 }
0x1169   :  { %16090 = vmatpush3.bf16.msra.mxu0 %v16089_v34 }
0x116a   :  { %16091 = vmatprep.subr.bf16.mxu0 %v16825_v19 }
0x116d   :  { %16093 = vmatpush3.bf16.msra.mxu0 %v16092_v44  ;;  %v7466_v44 = vld [vmem:[#allocation16 + $0x50] sm:$0xff] }
0x116e   :  { %16106 = vmatprep.subr.bf16.mxu0 %v16825_v19 }
0x1170   :  { %14718 = vmatmul.mubr.msk.f32.vlgmr.msra.gmra.mrb[50].mxu0 %vm3309_vm3, %v17506_v55 }
0x1171   :  { %16108 = vmatpush3.bf16.msra.mxu0 %v16107_v18  ;;  %14765 = vmatprep.mubr.msk.f32.mxu0 %vm16826_vm5, %v16827_v41  ;;  %v7467_v18 = vld [vmem:[#allocation16 + $0x58] sm:$0xff] }
0x1172   :  { %16109 = vmatprep.subr.bf16.mxu0 %v16825_v19 }
0x1175   :  { %16111 = vmatpush3.bf16.msra.mxu0 %v16110_v36  ;;  %v7555_v36 = vld [vmem:[#allocation15 + $0x198] sm:$0xff] }
0x1176   :  { %16112 = vmatprep.subr.bf16.mxu0 %v16825_v19  ;;  %v16002_v50 = vpack.c.bf16 %v7555_v36, %v7554_v25  ;;  %v8873_v25 = vld [vmem:[#allocation15 + $0x388] sm:$0xff]  ;;  %v8787_v36 = vld [vmem:[#allocation16 + $0xd8] sm:$0xff] }
0x1179   :  { %16114 = vmatpush3.bf16.msra.mxu0 %v16113_v52  ;;  %v7557_v52 = vld [vmem:[#allocation15 + $0x1a8] sm:$0xff] }
0x117a   :  { %16115 = vmatprep.subr.bf16.mxu0 %v16825_v19  ;;  %v16005_v54 = vpack.c.bf16 %v7557_v52, %v7556_v51  ;;  %v8874_v51 = vld [vmem:[#allocation15 + $0x390] sm:$0xff] }
0x117d   :  { %16117 = vmatpush3.bf16.msra.mxu0 %v16116_v58  ;;  %v7559_v58 = vld [vmem:[#allocation15 + $0x1b8] sm:$0xff] }
0x1180   :  { %14766 = vmatmul.mubr.msk.f32.vlgmr.msra.gmra.mrb[52].mxu0 %vm3309_vm3, %v17506_v55 }
0x11b3   :  { %v6641_v60 = vpop.f32.mrb[32].mxu0 }
0x11b4   :  { %v14407_v39 = vpop.f32.mrb[33].mxu0 }
0x11b5   :  { %v7631_v39 = vld [vmem:[#allocation16 + $0x60] sm:$0xff] }
0x11c3   :  { %v6722_v61 = vpop.f32.mrb[34].mxu0 }
0x11c4   :  { %v14426_v63 = vpop.f32.mrb[35].mxu0  ;;  %14427 = vmatprep.subr.mxu1 %v6722_v61 }
0x11c5   :  { %14428 = vmatpush3.msra.mxu1 %v6722_v61 }
0x11c6   :  { %14432 = vmatprep.subr.mxu1 %v6641_v60  ;;  %14430 = vmatmul.mubr.msk.f32.vlgmr.msra.gmra.mrb[44].mxu1 %vm472_vm0, %v6728_v62  ;;  %v7632_v62 = vld [vmem:[#allocation16 + $0x68] sm:$0xff] }
0x11c7   :  { %14433 = vmatpush3.msra.mxu1 %v6641_v60  ;;  %14434 = vmatprep.mubr.msk.f32.mxu1 %vm472_vm0, %v6645_v27  ;;  %v16008_v60 = vpack.c.bf16 %v7559_v58, %v7558_v57  ;;  %v7796_v27 = vld [vmem:[#allocation16 + $0x70] sm:$0xff] }
0x11c8   :  { %v8878_v58 = vld [vmem:[#allocation15 + $0x3b0] sm:$0xff] }
0x11ce   :  { %14435 = vmatmul.mubr.msk.f32.vlgmr.msra.gmra.mrb[44].mxu1 %vm472_vm0, %v6646_v0  ;;  %v7882_v0 = vld [vmem:[#allocation15 + $0x200] sm:$0xff] }
0x11cf   :  { %14458 = vmatprep.mubr.msk.f32.mxu1 %vm472_vm0, %v6971_v1  ;;  %v7883_v1 = vld [vmem:[#allocation15 + $0x208] sm:$0xff] }
0x11d0   :  { %v16023_v3 = vpack.c.bf16 %v7883_v1, %v7882_v0  ;;  %v9116_v0 = vld [vmem:[#allocation16 + $0xf0] sm:$0xff]  ;;  %v9117_v1 = vld [vmem:[#allocation16 + $0xf8] sm:$0xff] }
0x11d3   :  { %v6966_v4 = vpop.f32.mrb[36].mxu0 }
0x11d4   :  { %v14455_v6 = vpop.f32.mrb[37].mxu0  ;;  %14456 = vmatprep.subr.mxu1 %v6966_v4 }
0x11d5   :  { %14457 = vmatpush3.msra.mxu1 %v6966_v4  ;;  %v7884_v4 = vld [vmem:[#allocation15 + $0x210] sm:$0xff]  ;;  %v7886_v6 = vld [vmem:[#allocation15 + $0x220] sm:$0xff] }
0x11d6   :  { %15962 = vmatprep.subr.bf16.mxu1 %v16825_v19  ;;  %14459 = vmatmul.mubr.msk.f32.vlgmr.msra.gmra.mrb[44].mxu1 %vm472_vm0, %v6972_v48  ;;  %v7885_v48 = vld [vmem:[#allocation15 + $0x218] sm:$0xff]  ;;  %v16029_v8 = vpack.c.bf16 %v7887_v37, %v7886_v6  ;;  %v9586_v6 = vld [vmem:[#allocation19 + $0x20] sm:$0xff] }
0x11d7   :  { %15964 = vmatpush3.bf16.msra.mxu1 %v15963_v5  ;;  %14477 = vmatprep.mubr.msk.f32.mxu1 %vm16826_vm5, %v16827_v41  ;;  %v16026_v5 = vpack.c.bf16 %v7885_v48, %v7884_v4  ;;  %v9310_v48 = vld [vmem:[#allocation19 + $0x18] sm:$0xff]  ;;  %v9587_v37 = vld [vmem:[#allocation19 + $0x28] sm:$0xff] }
0x11d8   :  { %15965 = vmatprep.subr.bf16.mxu1 %v16825_v19 }
0x11db   :  { %15967 = vmatpush3.bf16.msra.mxu1 %v15966_v9  ;;  %v7888_v9 = vld [vmem:[#allocation15 + $0x230] sm:$0xff] }
0x11dc   :  { %15968 = vmatprep.subr.bf16.mxu1 %v16825_v19  ;;  %v16032_v11 = vpack.c.bf16 %v7889_v10, %v7888_v9 }
0x11df   :  { %15970 = vmatpush3.bf16.msra.mxu1 %v15969_v13  ;;  %v7961_v13 = vld [vmem:[#allocation16 + $0x80] sm:$0xff] }
0x11e0   :  { %15971 = vmatprep.subr.bf16.mxu1 %v16825_v19 }
0x11e3   :  { %15973 = vmatpush3.bf16.msra.mxu1 %v15972_v16  ;;  %v7296_v7 = vpop.f32.mrb[38].mxu0 }
0x11e4   :  { %v14503_v20 = vpop.f32.mrb[39].mxu0 }
0x11e5   :  { %v8127_v20 = vld [vmem:[#allocation16 + $0x98] sm:$0xff] }
0x11e6   :  { %14478 = vmatmul.mubr.msk.f32.vlgmr.msra.gmra.mrb[46].mxu1 %vm3309_vm3, %v17506_v55 }
0x11e7   :  { %14482 = vmatprep.mubr.msk.f32.mxu1 %vm472_vm0, %v7136_v33  ;;  %v8382_v33 = vld [vmem:[#allocation15 + $0x2e8] sm:$0xff] }
0x11f3   :  { %v7461_v53 = vpop.f32.mrb[40].mxu0 }
0x11f4   :  { %v14527_v21 = vpop.f32.mrb[41].mxu0 }
0x11f5   :  { %v8377_v21 = vld [vmem:[#allocation15 + $0x2c0] sm:$0xff] }
0x1203   :  { %v17603_v22 = vpop.f32.mrb[42].mxu0 }
0x1204   :  { %v14575_v56 = vpop.f32.mrb[43].mxu0 }
0x1205   :  { %v8292_v56 = vld [vmem:[#allocation16 + $0xa8] sm:$0xff] }
0x1213   :  { %v17605_v23 = vpop.f32.mrb[44].mxu0 }
0x1214   :  { %v14623_v26 = vpop.f32.mrb[45].mxu0 }
0x1223   :  { %v17607_v28 = vpop.f32.mrb[46].mxu0 }
0x1224   :  { %v14647_v29 = vpop.f32.mrb[47].mxu0 }
0x1225   :  { %v8379_v29 = vld [vmem:[#allocation15 + $0x2d0] sm:$0xff] }
0x1233   :  { %v17609_v30 = vpop.f32.mrb[48].mxu0 }
0x1234   :  { %v14695_v31 = vpop.f32.mrb[49].mxu0 }
0x1243   :  { %v17612_v32 = vpop.f32.mrb[50].mxu0 }
0x1244   :  { %v14719_v35 = vpop.f32.mrb[51].mxu0 }
0x1253   :  { %v17614_v24 = vpop.f32.mrb[52].mxu0 }
0x1254   :  { %v14767_v12 = vpop.f32.mrb[53].mxu0 }
0x1255   :  { %v8383_v12 = vld [vmem:[#allocation15 + $0x2f0] sm:$0xff] }
0x12b9   :  { %v7131_v38 = vpop.f32.mrb[46].mxu1 }
0x12ba   :  { %v14479_v34 = vpop.f32.mrb[47].mxu1  ;;  %14480 = vmatprep.subr.mxu1 %v7131_v38 }
0x12bb   :  { %14481 = vmatpush3.msra.mxu1 %v7131_v38  ;;  %v8384_v38 = vld [vmem:[#allocation15 + $0x2f8] sm:$0xff]  ;;  %v8456_v34 = vld [vmem:[#allocation16 + $0xb0] sm:$0xff] }
0x12bc   :  { %14483 = vmatmul.mubr.msk.f32.vlgmr.msra.gmra.mrb[44].mxu1 %vm472_vm0, %v7137_v40  ;;  %14504 = vmatprep.subr.mxu1 %v7296_v7  ;;  %v16068_v40 = vpack.c.bf16 %v8384_v38, %v8383_v12  ;;  %v10507_v12 = vld [vmem:[#allocation19 + $0x78] sm:$0xff] }
0x12bd   :  { %14505 = vmatpush3.msra.mxu1 %v7296_v7  ;;  %14506 = vmatprep.mubr.msk.f32.mxu1 %vm472_vm0, %v7301_v42  ;;  %v8126_v7 = vld [vmem:[#allocation16 + $0x90] sm:$0xff] }
0x12be   :  { %14528 = vmatprep.subr.mxu1 %v7461_v53 }
0x12c4   :  { %14507 = vmatmul.mubr.msk.f32.vlgmr.msra.gmra.mrb[44].mxu1 %vm472_vm0, %v7302_v43  ;;  %v8457_v43 = vld [vmem:[#allocation16 + $0xb8] sm:$0xff] }
0x12c5   :  { %14529 = vmatpush3.msra.mxu1 %v7461_v53  ;;  %14530 = vmatprep.mubr.msk.f32.mxu1 %vm472_vm0, %v7466_v44  ;;  %v8291_v53 = vld [vmem:[#allocation16 + $0xa0] sm:$0xff] }
0x12c6   :  { %15998 = vmatprep.subr.bf16.mxu1 %v16825_v19 }
0x12cc   :  { %14531 = vmatmul.mubr.msk.f32.vlgmr.msra.gmra.mrb[44].mxu1 %vm472_vm0, %v7467_v18  ;;  %v8786_v18 = vld [vmem:[#allocation16 + $0xd0] sm:$0xff] }
0x12cd   :  { %16000 = vmatpush3.bf16.msra.mxu1 %v15999_v49  ;;  %14549 = vmatprep.mubr.msk.f32.mxu1 %vm16826_vm5, %v16827_v41  ;;  %v8872_v49 = vld [vmem:[#allocation15 + $0x380] sm:$0xff] }
0x12ce   :  { %16001 = vmatprep.subr.bf16.mxu1 %v16825_v19 }
0x12d1   :  { %16003 = vmatpush3.bf16.msra.mxu1 %v16002_v50  ;;  %v16095_v50 = vpack.c.bf16 %v8873_v25, %v8872_v49  ;;  %v11242_v25 = vld [vmem:[#allocation19 + $0xb0] sm:$0xff] }
0x12d2   :  { %16004 = vmatprep.subr.bf16.mxu1 %v16825_v19 }
0x12d5   :  { %16006 = vmatpush3.bf16.msra.mxu1 %v16005_v54  ;;  %v8877_v54 = vld [vmem:[#allocation15 + $0x3a8] sm:$0xff] }
0x12d6   :  { %16007 = vmatprep.subr.bf16.mxu1 %v16825_v19 }
0x12d9   :  { %16009 = vmatpush3.bf16.msra.mxu1 %v16008_v60  ;;  %v8879_v60 = vld [vmem:[#allocation15 + $0x3b8] sm:$0xff] }
0x12dc   :  { %14550 = vmatmul.mubr.msk.f32.vlgmr.msra.gmra.mrb[48].mxu1 %vm3309_vm3, %v17506_v55 }
0x12dd   :  { %14554 = vmatprep.mubr.msk.f32.mxu1 %vm472_vm0, %v7631_v39  ;;  %v16104_v39 = vpack.c.bf16 %v8879_v60, %v8878_v58  ;;  %v11794_v58 = vld [vmem:[#allocation19 + $0xe0] sm:$0xff]  ;;  %v11795_v60 = vld [vmem:[#allocation19 + $0xe8] sm:$0xff] }
0x13af   :  { %v7626_v61 = vpop.f32.mrb[48].mxu1 }
0x13b0   :  { %v14551_v63 = vpop.f32.mrb[49].mxu1  ;;  %14552 = vmatprep.subr.mxu1 %v7626_v61 }
0x13b1   :  { %14553 = vmatpush3.msra.mxu1 %v7626_v61  ;;  %v8951_v61 = vld [vmem:[#allocation16 + $0xe0] sm:$0xff]  ;;  %v8952_v63 = vld [vmem:[#allocation16 + $0xe8] sm:$0xff] }
0x13b2   :  { %14555 = vmatmul.mubr.msk.f32.vlgmr.msra.gmra.mrb[44].mxu1 %vm472_vm0, %v7632_v62  ;;  %14576 = vmatprep.subr.mxu1 %v17603_v22 }
0x13b3   :  { %14577 = vmatpush3.msra.mxu1 %v17603_v22  ;;  %14578 = vmatprep.mubr.msk.f32.mxu1 %vm472_vm0, %v7796_v27  ;;  %v8378_v22 = vld [vmem:[#allocation15 + $0x2c8] sm:$0xff] }
0x13b4   :  { %16022 = vmatprep.subr.bf16.mxu1 %v16825_v19  ;;  %v16059_v26 = vpack.c.bf16 %v8378_v22, %v8377_v21  ;;  %v9954_v22 = vld [vmem:[#allocation19 + $0x40] sm:$0xff] }
0x13ba   :  { %14579 = vmatmul.mubr.msk.f32.vlgmr.msra.gmra.mrb[44].mxu1 %vm472_vm0, %v7797_v2  ;;  %v9222_v2 = vld [vmem:[#allocation19 + $0x8] sm:$0xff] }
0x13bb   :  { %16024 = vmatpush3.bf16.msra.mxu1 %v16023_v3  ;;  %14597 = vmatprep.mubr.msk.f32.mxu1 %vm16826_vm5, %v16827_v41  ;;  %v9309_v3 = vld [vmem:[#allocation19 + $0x10] sm:$0xff] }
0x13bc   :  { %16025 = vmatprep.subr.bf16.mxu1 %v16825_v19 }
0x13bf   :  { %16027 = vmatpush3.bf16.msra.mxu1 %v16026_v5  ;;  %v16122_v5 = vpack.c.bf16 %v9310_v48, %v9309_v3 }
0x13c0   :  { %16028 = vmatprep.subr.bf16.mxu1 %v16825_v19 }
0x13c1   :  { %16123 = vmatprep.subr.bf16.mxu0 %v16122_v5 }
0x13c2   :  { %16125 = vmatpush3.bf16.msra.mxu0 %v16122_v5 }
0x13c3   :  { %16030 = vmatpush3.bf16.msra.mxu1 %v16029_v8  ;;  %v16134_v8 = vpack.c.bf16 %v9587_v37, %v9586_v6  ;;  %v9388_v6 = vld [vmem:[#allocation21 + $0x28] sm:$0xff] }
0x13c4   :  { %16031 = vmatprep.subr.bf16.mxu1 %v16825_v19 }
0x13c5   :  { %16135 = vmatprep.subr.bf16.mxu0 %v16134_v8 }
0x13c7   :  { %16033 = vmatpush3.bf16.msra.mxu1 %v16032_v11 }
0x13ca   :  { %14598 = vmatmul.mubr.msk.f32.vlgmr.msra.gmra.mrb[50].mxu1 %vm3309_vm3, %v17506_v55 }
0x13cb   :  { %14602 = vmatprep.mubr.msk.f32.mxu1 %vm472_vm0, %v7961_v13 }
0x149d   :  { %v7956_v14 = vpop.f32.mrb[50].mxu1 }
0x149e   :  { %v14599_v16 = vpop.f32.mrb[51].mxu1  ;;  %14600 = vmatprep.subr.mxu1 %v7956_v14 }
0x149f   :  { %14601 = vmatpush3.msra.mxu1 %v7956_v14  ;;  %v9771_v16 = vld [vmem:[#allocation19 + $0x38] sm:$0xff] }
0x14a0   :  { %14603 = vmatmul.mubr.msk.f32.vlgmr.msra.gmra.mrb[44].mxu1 %vm472_vm0, %v7962_v15  ;;  %14624 = vmatprep.subr.mxu1 %v17605_v23  ;;  %v9770_v15 = vld [vmem:[#allocation19 + $0x30] sm:$0xff] }
0x14a1   :  { %14625 = vmatpush3.msra.mxu1 %v17605_v23  ;;  %14626 = vmatprep.mubr.msk.f32.mxu1 %vm472_vm0, %v8126_v7  ;;  %v8380_v23 = vld [vmem:[#allocation15 + $0x2d8] sm:$0xff] }
0x14a2   :  { %14648 = vmatprep.subr.mxu1 %v17607_v28  ;;  %v16062_v31 = vpack.c.bf16 %v8380_v23, %v8379_v29  ;;  %v10139_v29 = vld [vmem:[#allocation19 + $0x58] sm:$0xff] }
0x14a8   :  { %14627 = vmatmul.mubr.msk.f32.vlgmr.msra.gmra.mrb[44].mxu1 %vm472_vm0, %v8127_v20 }
0x14a9   :  { %14649 = vmatpush3.msra.mxu1 %v17607_v28  ;;  %14650 = vmatprep.mubr.msk.f32.mxu1 %vm472_vm0, %v8291_v53  ;;  %v8381_v28 = vld [vmem:[#allocation15 + $0x2e0] sm:$0xff]  ;;  %v16142_v53 = vpack.c.bf16 %v9771_v16, %v9770_v15  ;;  %v9305_v15 = vld [vmem:[#allocation21 + $0x8] sm:$0xff] }
0x14aa   :  { %16058 = vmatprep.subr.bf16.mxu1 %v16825_v19  ;;  %v16065_v35 = vpack.c.bf16 %v8382_v33, %v8381_v28  ;;  %v10323_v28 = vld [vmem:[#allocation19 + $0x68] sm:$0xff] }
0x14b0   :  { %14651 = vmatmul.mubr.msk.f32.vlgmr.msra.gmra.mrb[44].mxu1 %vm472_vm0, %v8292_v56  ;;  %v9955_v56 = vld [vmem:[#allocation19 + $0x48] sm:$0xff] }
0x14b1   :  { %16060 = vmatpush3.bf16.msra.mxu1 %v16059_v26  ;;  %14669 = vmatprep.mubr.msk.f32.mxu1 %vm16826_vm5, %v16827_v41  ;;  %v10138_v26 = vld [vmem:[#allocation19 + $0x50] sm:$0xff] }
0x14b2   :  { %16061 = vmatprep.subr.bf16.mxu1 %v16825_v19  ;;  %v16158_v23 = vpack.c.bf16 %v10139_v29, %v10138_v26  ;;  %v9665_v29 = vld [vmem:[#allocation21 + $0x48] sm:$0xff] }
0x14b5   :  { %16063 = vmatpush3.bf16.msra.mxu1 %v16062_v31  ;;  %v10322_v31 = vld [vmem:[#allocation19 + $0x60] sm:$0xff] }
0x14b6   :  { %16064 = vmatprep.subr.bf16.mxu1 %v16825_v19  ;;  %v16166_v33 = vpack.c.bf16 %v10323_v28, %v10322_v31  ;;  %v9666_v31 = vld [vmem:[#allocation21 + $0x50] sm:$0xff] }
0x14b9   :  { %16066 = vmatpush3.bf16.msra.mxu1 %v16065_v35  ;;  %v10506_v35 = vld [vmem:[#allocation19 + $0x70] sm:$0xff] }
0x14ba   :  { %16067 = vmatprep.subr.bf16.mxu1 %v16825_v19  ;;  %v16174_v38 = vpack.c.bf16 %v10507_v12, %v10506_v35  ;;  %v9667_v35 = vld [vmem:[#allocation21 + $0x58] sm:$0xff] }
0x14bd   :  { %16069 = vmatpush3.bf16.msra.mxu1 %v16068_v40  ;;  %v10690_v40 = vld [vmem:[#allocation19 + $0x80] sm:$0xff] }
0x14c0   :  { %14670 = vmatmul.mubr.msk.f32.vlgmr.msra.gmra.mrb[52].mxu1 %vm3309_vm3, %v17506_v55 }
0x14c1   :  { %14674 = vmatprep.mubr.msk.f32.mxu1 %vm472_vm0, %v8456_v34  ;;  %v10691_v34 = vld [vmem:[#allocation19 + $0x88] sm:$0xff] }
0x1593   :  { %v8451_v42 = vpop.f32.mrb[52].mxu1 }
0x1594   :  { %v14671_v44 = vpop.f32.mrb[53].mxu1  ;;  %14672 = vmatprep.subr.mxu1 %v8451_v42 }
0x1595   :  { %14673 = vmatpush3.msra.mxu1 %v8451_v42  ;;  %v16182_v42 = vpack.c.bf16 %v10691_v34, %v10690_v40  ;;  %v10875_v44 = vld [vmem:[#allocation19 + $0x98] sm:$0xff] }
0x1596   :  { %14675 = vmatmul.mubr.msk.f32.vlgmr.msra.gmra.mrb[44].mxu1 %vm472_vm0, %v8457_v43  ;;  %14696 = vmatprep.subr.mxu1 %v17609_v30  ;;  %v10874_v43 = vld [vmem:[#allocation19 + $0x90] sm:$0xff] }
0x1597   :  { %14697 = vmatpush3.msra.mxu1 %v17609_v30  ;;  %14698 = vmatprep.mubr.msk.f32.mxu1 %vm472_vm0, %v8621_v45  ;;  %v8875_v30 = vld [vmem:[#allocation15 + $0x398] sm:$0xff]  ;;  %v16190_v45 = vpack.c.bf16 %v10875_v44, %v10874_v43  ;;  %v9850_v44 = vld [vmem:[#allocation21 + $0x70] sm:$0xff] }
0x1598   :  { %14720 = vmatprep.subr.mxu1 %v17612_v32  ;;  %v16098_v52 = vpack.c.bf16 %v8875_v30, %v8874_v51  ;;  %v11426_v51 = vld [vmem:[#allocation19 + $0xc0] sm:$0xff]  ;;  %v11427_v30 = vld [vmem:[#allocation19 + $0xc8] sm:$0xff] }
0x159e   :  { %14699 = vmatmul.mubr.msk.f32.vlgmr.msra.gmra.mrb[44].mxu1 %vm472_vm0, %v8622_v17  ;;  %v11058_v17 = vld [vmem:[#allocation19 + $0xa0] sm:$0xff] }
0x159f   :  { %14721 = vmatpush3.msra.mxu1 %v17612_v32  ;;  %14722 = vmatprep.mubr.msk.f32.mxu1 %vm472_vm0, %v8786_v18  ;;  %v8876_v32 = vld [vmem:[#allocation15 + $0x3a0] sm:$0xff]  ;;  %v11059_v18 = vld [vmem:[#allocation19 + $0xa8] sm:$0xff] }
0x15a0   :  { %16094 = vmatprep.subr.bf16.mxu1 %v16825_v19  ;;  %v16101_v57 = vpack.c.bf16 %v8877_v54, %v8876_v32  ;;  %v16198_v49 = vpack.c.bf16 %v11059_v18, %v11058_v17  ;;  %v11610_v32 = vld [vmem:[#allocation19 + $0xd0] sm:$0xff]  ;;  %v11611_v54 = vld [vmem:[#allocation19 + $0xd8] sm:$0xff] }
0x15a1   :  { %v9851_v18 = vld [vmem:[#allocation21 + $0x78] sm:$0xff] }
0x15a6   :  { %14723 = vmatmul.mubr.msk.f32.vlgmr.msra.gmra.mrb[44].mxu1 %vm472_vm0, %v8787_v36  ;;  %v11243_v36 = vld [vmem:[#allocation19 + $0xb8] sm:$0xff] }
0x15a7   :  { %16096 = vmatpush3.bf16.msra.mxu1 %v16095_v50  ;;  %14741 = vmatprep.mubr.msk.f32.mxu1 %vm16826_vm5, %v16827_v41  ;;  %v16206_v50 = vpack.c.bf16 %v11243_v36, %v11242_v25  ;;  %v10032_v25 = vld [vmem:[#allocation21 + $0x80] sm:$0xff] }
0x15a8   :  { %16097 = vmatprep.subr.bf16.mxu1 %v16825_v19 }
0x15ab   :  { %16099 = vmatpush3.bf16.msra.mxu1 %v16098_v52  ;;  %v16214_v52 = vpack.c.bf16 %v11427_v30, %v11426_v51  ;;  %v10033_v51 = vld [vmem:[#allocation21 + $0x88] sm:$0xff] }
0x15ac   :  { %16100 = vmatprep.subr.bf16.mxu1 %v16825_v19 }
0x15af   :  { %16102 = vmatpush3.bf16.msra.mxu1 %v16101_v57  ;;  %v16222_v57 = vpack.c.bf16 %v11611_v54, %v11610_v32 }
0x15b0   :  { %16103 = vmatprep.subr.bf16.mxu1 %v16825_v19 }
0x15b3   :  { %16105 = vmatpush3.bf16.msra.mxu1 %v16104_v39  ;;  %v16230_v39 = vpack.c.bf16 %v11795_v60, %v11794_v58  ;;  %v10216_v60 = vld [vmem:[#allocation21 + $0xa0] sm:$0xff] }
0x15b6   :  { %14742 = vmatmul.mubr.msk.f32.vlgmr.msra.gmra.mrb[54].mxu1 %vm3309_vm3, %v17506_v55  ;;  %v9221_v55 = vld [vmem:[#allocation19] sm:$0xff] }
0x15b7   :  { %14746 = vmatprep.mubr.msk.f32.mxu1 %vm472_vm0, %v8951_v61  ;;  %v16118_v4 = vpack.c.bf16 %v9222_v2, %v9221_v55  ;;  %v11978_v61 = vld [vmem:[#allocation19 + $0xf0] sm:$0xff] }
0x1689   :  { %v8946_v62 = vpop.f32.mrb[54].mxu1 }
0x168a   :  { %v14743_v27 = vpop.f32.mrb[55].mxu1  ;;  %14744 = vmatprep.subr.mxu1 %v8946_v62 }
0x168b   :  { %14745 = vmatpush3.msra.mxu1 %v8946_v62  ;;  %v11979_v62 = vld [vmem:[#allocation19 + $0xf8] sm:$0xff]  ;;  %v9387_v27 = vld [vmem:[#allocation21 + $0x20] sm:$0xff] }
0x168c   :  { %14747 = vmatmul.mubr.msk.f32.vlgmr.msra.gmra.mrb[44].mxu1 %vm472_vm0, %v8952_v63  ;;  %14768 = vmatprep.subr.mxu1 %v17614_v24  ;;  %v16238_v63 = vpack.c.bf16 %v11979_v62, %v11978_v61  ;;  %v10217_v62 = vld [vmem:[#allocation21 + $0xa8] sm:$0xff] }
0x168d   :  { %14769 = vmatpush3.msra.mxu1 %v17614_v24  ;;  %14770 = vmatprep.mubr.msk.f32.mxu1 %vm472_vm0, %v9116_v0  ;;  %v9211_v24 = vpop.permute.xlu1 %9210 }
0x168e   :  { %16119 = vmatprep.subr.bf16.mxu1 %v16118_v4 }
0x1694   :  { %14771 = vmatmul.mubr.msk.f32.vlgmr.msra.gmra.mrb[44].mxu1 %vm472_vm0, %v9117_v1 }
0x1695   :  { %16121 = vmatpush3.bf16.msra.mxu1 %v16118_v4 }
0x1767   :  { %v14772_v9 = vpop.f32.mrb[44].mxu1 }
0x1768   :  { %v9214_v10 = vadd.f32 %v14772_v9, %v9211_v24  ;;  %v9190_v11 = vpop.f32.mrb[45].mxu1  ;;  %v9390_v9 = vld [vmem:[#allocation21 + $0x38] sm:$0xff] }
0x1769   :  { %v9213_v13 = vadd.f32 %v17497_v46, %v9190_v11  ;;  %v16150_v46 = vpack.c.bf16 %v9955_v56, %v9954_v22  ;;  %v9304_v11 = vld [vmem:[#allocation21] sm:$0xff] }
0x176a   :  { %v9218_v14 = vmul.f32 0.2, %v9214_v10  ;;  %vm9216_vm12 = vcmp.gt.f32.partialorder %v9214_v10, 0.0  ;;  %v9664_v56 = vld [vmem:[#allocation21 + $0x40] sm:$0xff] }
0x176b   :  { %vm9215_vm13 = vcmp.gt.f32.partialorder %v9213_v13, 0.0  ;;  %v9217_v7 = vmul.f32 0.2, %v9213_v13 }
0x176c   :  { %v17688_v21 = vsel %vm9216_vm12, %v9214_v10, %v9218_v14 }
0x176d   :  { %v17686_v20 = vsel %vm9215_vm13, %v9213_v13, %v9217_v7  ;;  %v9306_v7 = vld [vmem:[#allocation21 + $0x10] sm:$0xff] }
0x176e   :  { %14777 = vmatprep.mubr.msk.f32.mxu1 %vm3484_vm4, %v17686_v20  ;;  %14784 = vmatprep.mubr.msk.f32.mxu0 %vm3484_vm4, %v17686_v20 }
0x176f   :  { %14778 = vmatmul.mubr.msk.f32.vlgmr.msra.gmra.mrb[56].mxu1 %vm3484_vm4, %v17688_v21  ;;  %14785 = vmatmul.mubr.msk.f32.vlgmr.msra.gmra.mrb[54].mxu0 %vm3484_vm4, %v17688_v21 }
0x1770   :  { %16137 = vmatpush3.bf16.msra.mxu0 %v16134_v8  ;;  %14811 = vmatprep.mubr.msk.f32.mxu0 %vm3484_vm4, %v17686_v20  ;;  %v9389_v8 = vld [vmem:[#allocation21 + $0x30] sm:$0xff] }
0x1771   :  { %16143 = vmatprep.subr.bf16.mxu0 %v16142_v53  ;;  %14791 = vmatprep.mubr.msk.f32.mxu1 %vm3484_vm4, %v9387_v27  ;;  %v10218_v27 = vld [vmem:[#allocation21 + $0xb0] sm:$0xff] }
0x1773   :  { %14812 = vmatmul.mubr.msk.f32.vlgmr.msra.gmra.mrb[56].mxu0 %vm3484_vm4, %v17688_v21 }
0x1774   :  { %16145 = vmatpush3.bf16.msra.mxu0 %v16142_v53  ;;  %14828 = vmatprep.mubr.msk.f32.mxu0 %vm3484_vm4, %v17686_v20 }
0x1775   :  { %16151 = vmatprep.subr.bf16.mxu0 %v16150_v46 }
0x1777   :  { %14829 = vmatmul.mubr.msk.f32.vlgmr.msra.gmra.mrb[58].mxu0 %vm3484_vm4, %v17688_v21 }
0x1778   :  { %16153 = vmatpush3.bf16.msra.mxu0 %v16150_v46  ;;  %14845 = vmatprep.mubr.msk.f32.mxu0 %vm3484_vm4, %v17686_v20 }
0x1779   :  { %16159 = vmatprep.subr.bf16.mxu0 %v16158_v23 }
0x177b   :  { %14846 = vmatmul.mubr.msk.f32.vlgmr.msra.gmra.mrb[60].mxu0 %vm3484_vm4, %v17688_v21 }
0x177c   :  { %16161 = vmatpush3.bf16.msra.mxu0 %v16158_v23  ;;  %14862 = vmatprep.mubr.msk.f32.mxu0 %vm3484_vm4, %v17686_v20 }
0x177d   :  { %16167 = vmatprep.subr.bf16.mxu0 %v16166_v33 }
0x177f   :  { %14863 = vmatmul.mubr.msk.f32.vlgmr.msra.gmra.mrb[62].mxu0 %vm3484_vm4, %v17688_v21 }
0x1780   :  { %16169 = vmatpush3.bf16.msra.mxu0 %v16166_v33  ;;  %14879 = vmatprep.mubr.msk.f32.mxu0 %vm3484_vm4, %v17686_v20 }
0x1781   :  { %16175 = vmatprep.subr.bf16.mxu0 %v16174_v38 }
0x1783   :  { %14880 = vmatmul.mubr.msk.f32.vlgmr.msra.gmra.mrb[64].mxu0 %vm3484_vm4, %v17688_v21 }
0x1784   :  { %16177 = vmatpush3.bf16.msra.mxu0 %v16174_v38  ;;  %14896 = vmatprep.mubr.msk.f32.mxu0 %vm3484_vm4, %v17686_v20  ;;  %v9848_v38 = vld [vmem:[#allocation21 + $0x60] sm:$0xff] }
0x1785   :  { %16183 = vmatprep.subr.bf16.mxu0 %v16182_v42 }
0x1787   :  { %14897 = vmatmul.mubr.msk.f32.vlgmr.msra.gmra.mrb[66].mxu0 %vm3484_vm4, %v17688_v21 }
0x1788   :  { %16185 = vmatpush3.bf16.msra.mxu0 %v16182_v42  ;;  %14913 = vmatprep.mubr.msk.f32.mxu0 %vm3484_vm4, %v17686_v20  ;;  %v9849_v42 = vld [vmem:[#allocation21 + $0x68] sm:$0xff] }
0x1789   :  { %16191 = vmatprep.subr.bf16.mxu0 %v16190_v45 }
0x178b   :  { %14914 = vmatmul.mubr.msk.f32.vlgmr.msra.gmra.mrb[68].mxu0 %vm3484_vm4, %v17688_v21 }
0x178c   :  { %16193 = vmatpush3.bf16.msra.mxu0 %v16190_v45  ;;  %14930 = vmatprep.mubr.msk.f32.mxu0 %vm3484_vm4, %v17686_v20 }
0x178d   :  { %16199 = vmatprep.subr.bf16.mxu0 %v16198_v49 }
0x178f   :  { %14931 = vmatmul.mubr.msk.f32.vlgmr.msra.gmra.mrb[70].mxu0 %vm3484_vm4, %v17688_v21 }
0x1790   :  { %16201 = vmatpush3.bf16.msra.mxu0 %v16198_v49  ;;  %14947 = vmatprep.mubr.msk.f32.mxu0 %vm3484_vm4, %v17686_v20 }
0x1791   :  { %16207 = vmatprep.subr.bf16.mxu0 %v16206_v50 }
0x1793   :  { %14948 = vmatmul.mubr.msk.f32.vlgmr.msra.gmra.mrb[72].mxu0 %vm3484_vm4, %v17688_v21 }
0x1794   :  { %16209 = vmatpush3.bf16.msra.mxu0 %v16206_v50  ;;  %14964 = vmatprep.mubr.msk.f32.mxu0 %vm3484_vm4, %v17686_v20 }
0x1795   :  { %16215 = vmatprep.subr.bf16.mxu0 %v16214_v52 }
0x1797   :  { %14965 = vmatmul.mubr.msk.f32.vlgmr.msra.gmra.mrb[74].mxu0 %vm3484_vm4, %v17688_v21 }
0x1798   :  { %16217 = vmatpush3.bf16.msra.mxu0 %v16214_v52  ;;  %14981 = vmatprep.mubr.msk.f32.mxu0 %vm3484_vm4, %v17686_v20  ;;  %v10034_v52 = vld [vmem:[#allocation21 + $0x90] sm:$0xff] }
0x1799   :  { %16223 = vmatprep.subr.bf16.mxu0 %v16222_v57 }
0x179b   :  { %14982 = vmatmul.mubr.msk.f32.vlgmr.msra.gmra.mrb[76].mxu0 %vm3484_vm4, %v17688_v21 }
0x179c   :  { %16225 = vmatpush3.bf16.msra.mxu0 %v16222_v57  ;;  %14998 = vmatprep.mubr.msk.f32.mxu0 %vm3484_vm4, %v17686_v20  ;;  %v10035_v57 = vld [vmem:[#allocation21 + $0x98] sm:$0xff] }
0x179d   :  { %16231 = vmatprep.subr.bf16.mxu0 %v16230_v39 }
0x179f   :  { %14999 = vmatmul.mubr.msk.f32.vlgmr.msra.gmra.mrb[78].mxu0 %vm3484_vm4, %v17688_v21 }
0x17a0   :  { %16233 = vmatpush3.bf16.msra.mxu0 %v16230_v39  ;;  %15015 = vmatprep.mubr.msk.f32.mxu0 %vm3484_vm4, %v17686_v20 }
0x17a1   :  { %16239 = vmatprep.subr.bf16.mxu0 %v16238_v63 }
0x17a3   :  { %15016 = vmatmul.mubr.msk.f32.vlgmr.msra.gmra.mrb[80].mxu0 %vm3484_vm4, %v17688_v21 }
0x17a4   :  { %16241 = vmatpush3.bf16.msra.mxu0 %v16238_v63  ;;  %15032 = vmatprep.mubr.msk.f32.mxu0 %vm3484_vm4, %v17686_v20 }
0x17a5   :  { %16246 = vmatprep.subr.bf16.mxu0 %v16825_v19 }
0x17a7   :  { %15033 = vmatmul.mubr.msk.f32.vlgmr.msra.gmra.mrb[82].mxu0 %vm3484_vm4, %v17688_v21  ;;  %v9307_v21 = vld [vmem:[#allocation21 + $0x18] sm:$0xff] }
0x17a8   :  { %15053 = vmatprep.mubr.msk.f32.mxu0 %vm16826_vm5, %v16827_v41 }
0x1842   :  { %v14779_v0 = vpop.f32.mrb[56].mxu1  ;;  %v14786_v1 = vpop.f32.mrb[54].mxu0 }
0x1843   :  { %v9295_v55 = vpop.f32.mrb[57].mxu1  ;;  %v9377_v2 = vpop.f32.mrb[55].mxu0 }
0x1844   :  { %v16130_v3 = vpack.c.bf16 %v14779_v0, %v9295_v55  ;;  %v16126_v4 = vpack.c.bf16 %v14786_v1, %v9377_v2  ;;  %v10219_v55 = vld [vmem:[#allocation21 + $0xb8] sm:$0xff] }
0x1846   :  { %16127 = vmatprep.subr.bf16.mxu1 %v16126_v4  ;;  %v14813_v48 = vpop.f32.mrb[56].mxu0 }
0x1847   :  { %16129 = vmatpush3.bf16.msra.mxu1 %v16126_v4  ;;  %v9654_v5 = vpop.f32.mrb[57].mxu0 }
0x1848   :  { %v16138_v37 = vpack.c.bf16 %v14813_v48, %v9654_v5  ;;  %16131 = vmatprep.subr.bf16.mxu1 %v16130_v3  ;;  %v10401_v5 = vld [vmem:[#allocation21 + $0xc8] sm:$0xff] }
0x184a   :  { %14792 = vmatmul.mubr.msk.f32.vlgmr.msra.gmra.mrb[58].mxu1 %vm3484_vm4, %v9388_v6  ;;  %v14830_v41 = vpop.f32.mrb[58].mxu0 }
0x184b   :  { %16133 = vmatpush3.bf16.msra.mxu1 %v16130_v3  ;;  %v9838_v24 = vpop.f32.mrb[59].mxu0  ;;  %14794 = vmatprep.mubr.msk.f32.mxu1 %vm3484_vm4, %v9389_v8  ;;  %v10400_v3 = vld [vmem:[#allocation21 + $0xc0] sm:$0xff] }
0x184c   :  { %v16146_v10 = vpack.c.bf16 %v14830_v41, %v9838_v24  ;;  %16139 = vmatprep.subr.bf16.mxu1 %v16138_v37  ;;  %v10403_v24 = vld [vmem:[#allocation21 + $0xd8] sm:$0xff] }
0x184e   :  { %14795 = vmatmul.mubr.msk.f32.gmra.mrb[60].mxu1 %vm3484_vm4, %v9390_v9  ;;  %v14847_v13 = vpop.f32.mrb[60].mxu0 }
0x184f   :  { %v10022_v14 = vpop.f32.mrb[61].mxu0  ;;  %14801 = vmatprep.mubr.msk.f32.mxu1 %vm3484_vm4, %v9304_v11  ;;  %v10585_v11 = vld [vmem:[#allocation21 + $0xe8] sm:$0xff] }
0x1850   :  { %v16154_v16 = vpack.c.bf16 %v14847_v13, %v10022_v14  ;;  %v10586_v13 = vld [vmem:[#allocation21 + $0xf0] sm:$0xff]  ;;  %v10587_v14 = vld [vmem:[#allocation21 + $0xf8] sm:$0xff] }
0x1852   :  { %14802 = vmatmul.mubr.msk.f32.vlgmr.msra.gmra.mrb[58].mxu1 %vm3484_vm4, %v9305_v15  ;;  %v14864_v20 = vpop.f32.mrb[62].mxu0  ;;  %v10768_v15 = vld [vmem:[#allocation21 + $0x100] sm:$0xff] }
0x1853   :  { %16141 = vmatpush3.bf16.msra.mxu1 %v16138_v37  ;;  %v10206_v53 = vpop.f32.mrb[63].mxu0  ;;  %14804 = vmatprep.mubr.msk.f32.mxu1 %vm3484_vm4, %v9306_v7  ;;  %v10402_v37 = vld [vmem:[#allocation21 + $0xd0] sm:$0xff] }
0x1854   :  { %16147 = vmatprep.subr.bf16.mxu1 %v16146_v10  ;;  %v16162_v22 = vpack.c.bf16 %v14864_v20, %v10206_v53  ;;  %v10770_v7 = vld [vmem:[#allocation21 + $0x110] sm:$0xff]  ;;  %v10771_v20 = vld [vmem:[#allocation21 + $0x118] sm:$0xff]  ;;  %v10952_v53 = vld [vmem:[#allocation21 + $0x120] sm:$0xff] }
0x1856   :  { %14805 = vmatmul.mubr.msk.f32.gmra.mrb[60].mxu1 %vm3484_vm4, %v9307_v21  ;;  %v14881_v46 = vpop.f32.mrb[64].mxu0  ;;  %v10953_v21 = vld [vmem:[#allocation21 + $0x128] sm:$0xff] }
0x1857   :  { %v10390_v26 = vpop.f32.mrb[65].mxu0  ;;  %14818 = vmatprep.mubr.msk.f32.mxu1 %vm3484_vm4, %v9664_v56  ;;  %v10955_v56 = vld [vmem:[#allocation21 + $0x138] sm:$0xff] }
0x1858   :  { %v16170_v23 = vpack.c.bf16 %v14881_v46, %v10390_v26  ;;  %v11136_v46 = vld [vmem:[#allocation21 + $0x140] sm:$0xff]  ;;  %v11137_v26 = vld [vmem:[#allocation21 + $0x148] sm:$0xff] }
0x185a   :  { %14819 = vmatmul.mubr.msk.f32.vlgmr.msra.gmra.mrb[58].mxu1 %vm3484_vm4, %v9665_v29  ;;  %v14898_v28 = vpop.f32.mrb[66].mxu0  ;;  %v11138_v29 = vld [vmem:[#allocation21 + $0x150] sm:$0xff] }
0x185b   :  { %16149 = vmatpush3.bf16.msra.mxu1 %v16146_v10  ;;  %v10574_v33 = vpop.f32.mrb[67].mxu0  ;;  %14821 = vmatprep.mubr.msk.f32.mxu1 %vm3484_vm4, %v9666_v31  ;;  %v10584_v10 = vld [vmem:[#allocation21 + $0xe0] sm:$0xff] }
0x185c   :  { %16155 = vmatprep.subr.bf16.mxu1 %v16154_v16  ;;  %v16178_v12 = vpack.c.bf16 %v14898_v28, %v10574_v33  ;;  %v11320_v31 = vld [vmem:[#allocation21 + $0x160] sm:$0xff]  ;;  %v11321_v28 = vld [vmem:[#allocation21 + $0x168] sm:$0xff]  ;;  %v11322_v33 = vld [vmem:[#allocation21 + $0x170] sm:$0xff] }
0x185e   :  { %14822 = vmatmul.mubr.msk.f32.gmra.mrb[60].mxu1 %vm3484_vm4, %v9667_v35  ;;  %v14915_v40 = vpop.f32.mrb[68].mxu0  ;;  %v11323_v35 = vld [vmem:[#allocation21 + $0x178] sm:$0xff] }
0x185f   :  { %v10758_v34 = vpop.f32.mrb[69].mxu0  ;;  %14835 = vmatprep.mubr.msk.f32.mxu1 %vm3484_vm4, %v9848_v38  ;;  %v11505_v38 = vld [vmem:[#allocation21 + $0x188] sm:$0xff] }
0x1860   :  { %v17770_v43 = vpack.c.bf16 %v14915_v40, %v10758_v34  ;;  %v11506_v40 = vld [vmem:[#allocation21 + $0x190] sm:$0xff]  ;;  %v11507_v34 = vld [vmem:[#allocation21 + $0x198] sm:$0xff] }
0x1862   :  { %14836 = vmatmul.mubr.msk.f32.vlgmr.msra.gmra.mrb[58].mxu1 %vm3484_vm4, %v9849_v42  ;;  %v14932_v45 = vpop.f32.mrb[70].mxu0  ;;  %v11688_v42 = vld [vmem:[#allocation21 + $0x1a0] sm:$0xff] }
0x1863   :  { %16157 = vmatpush3.bf16.msra.mxu1 %v16154_v16  ;;  %v10942_v17 = vpop.f32.mrb[71].mxu0  ;;  %14838 = vmatprep.mubr.msk.f32.mxu1 %vm3484_vm4, %v9850_v44  ;;  %v10769_v16 = vld [vmem:[#allocation21 + $0x108] sm:$0xff]  ;;  %v11690_v44 = vld [vmem:[#allocation21 + $0x1b0] sm:$0xff] }
0x1864   :  { %16163 = vmatprep.subr.bf16.mxu1 %v16162_v22  ;;  %v17774_v49 = vpack.c.bf16 %v14932_v45, %v10942_v17  ;;  %v11691_v45 = vld [vmem:[#allocation21 + $0x1b8] sm:$0xff]  ;;  %v11872_v17 = vld [vmem:[#allocation21 + $0x1c0] sm:$0xff] }
0x1866   :  { %14839 = vmatmul.mubr.msk.f32.gmra.mrb[60].mxu1 %vm3484_vm4, %v9851_v18  ;;  %v14949_v36 = vpop.f32.mrb[72].mxu0  ;;  %v11873_v18 = vld [vmem:[#allocation21 + $0x1c8] sm:$0xff] }
0x1867   :  { %v11126_v50 = vpop.f32.mrb[73].mxu0  ;;  %14852 = vmatprep.mubr.msk.f32.mxu1 %vm3484_vm4, %v10032_v25  ;;  %v11875_v25 = vld [vmem:[#allocation21 + $0x1d8] sm:$0xff] }
0x1868   :  { %v17778_v30 = vpack.c.bf16 %v14949_v36, %v11126_v50  ;;  %v12056_v36 = vld [vmem:[#allocation21 + $0x1e0] sm:$0xff]  ;;  %v12057_v50 = vld [vmem:[#allocation21 + $0x1e8] sm:$0xff] }
0x186a   :  { %14853 = vmatmul.mubr.msk.f32.vlgmr.msra.gmra.mrb[58].mxu1 %vm3484_vm4, %v10033_v51  ;;  %v14966_v32 = vpop.f32.mrb[74].mxu0  ;;  %v12058_v51 = vld [vmem:[#allocation21 + $0x1f0] sm:$0xff] }
0x186b   :  { %16165 = vmatpush3.bf16.msra.mxu1 %v16162_v22  ;;  %v11310_v54 = vpop.f32.mrb[75].mxu0  ;;  %14855 = vmatprep.mubr.msk.f32.mxu1 %vm3484_vm4, %v10034_v52  ;;  %v10954_v22 = vld [vmem:[#allocation21 + $0x130] sm:$0xff]  ;;  %v12173_v52 = vpop.permute.xlu1 %12172 }
0x186c   :  { %16171 = vmatprep.subr.bf16.mxu1 %v16170_v23  ;;  %v17782_v58 = vpack.c.bf16 %v14966_v32, %v11310_v54 }
0x186e   :  { %14856 = vmatmul.mubr.msk.f32.gmra.mrb[60].mxu1 %vm3484_vm4, %v10035_v57  ;;  %v14983_v39 = vpop.f32.mrb[76].mxu0 }
0x186f   :  { %v11494_v61 = vpop.f32.mrb[77].mxu0  ;;  %14869 = vmatprep.mubr.msk.f32.mxu1 %vm3484_vm4, %v10216_v60 }
0x1870   :  { %v17786_v63 = vpack.c.bf16 %v14983_v39, %v11494_v61  ;;  %v12183_v39 = vpop.permute.xlu1 %12182 }
0x1872   :  { %14870 = vmatmul.mubr.msk.f32.vlgmr.msra.gmra.mrb[58].mxu1 %vm3484_vm4, %v10217_v62  ;;  %v15000_v0 = vpop.f32.mrb[78].mxu0 }
0x1873   :  { %16173 = vmatpush3.bf16.msra.mxu1 %v16170_v23  ;;  %v11678_v1 = vpop.f32.mrb[79].mxu0  ;;  %14872 = vmatprep.mubr.msk.f32.mxu1 %vm3484_vm4, %v10218_v27  ;;  %v11139_v23 = vld [vmem:[#allocation21 + $0x158] sm:$0xff] }
0x1874   :  { %16179 = vmatprep.subr.bf16.mxu1 %v16178_v12  ;;  %v17790_v2 = vpack.c.bf16 %v15000_v0, %v11678_v1 }
0x1876   :  { %14873 = vmatmul.mubr.msk.f32.gmra.mrb[60].mxu1 %vm3484_vm4, %v10219_v55  ;;  %v15017_v4 = vpop.f32.mrb[80].mxu0 }
0x1877   :  { %v11862_v48 = vpop.f32.mrb[81].mxu0  ;;  %14886 = vmatprep.mubr.msk.f32.mxu1 %vm3484_vm4, %v10400_v3 }
0x1878   :  { %v17794_v6 = vpack.c.bf16 %v15017_v4, %v11862_v48 }
0x187a   :  { %14887 = vmatmul.mubr.msk.f32.vlgmr.msra.gmra.mrb[58].mxu1 %vm3484_vm4, %v10401_v5  ;;  %v15034_v8 = vpop.f32.mrb[82].mxu0 }
0x187b   :  { %16181 = vmatpush3.bf16.msra.mxu1 %v16178_v12  ;;  %v12046_v41 = vpop.f32.mrb[83].mxu0  ;;  %14889 = vmatprep.mubr.msk.f32.mxu1 %vm3484_vm4, %v10402_v37  ;;  %v11504_v12 = vld [vmem:[#allocation21 + $0x180] sm:$0xff]  ;;  %v12206_v37 = vpop.permute.xlu1 %12205 }
0x187c   :  { %16187 = vmatprep.subr.bf16.mxu1 %v17770_v43  ;;  %v17799_v9 = vpack.c.bf16 %v15034_v8, %v12046_v41 }
0x187e   :  { %14890 = vmatmul.mubr.msk.f32.gmra.mrb[60].mxu1 %vm3484_vm4, %v10403_v24 }
0x187f   :  { %14903 = vmatprep.mubr.msk.f32.mxu1 %vm3484_vm4, %v10584_v10 }
0x1882   :  { %14904 = vmatmul.mubr.msk.f32.vlgmr.msra.gmra.mrb[58].mxu1 %vm3484_vm4, %v10585_v11 }
0x1883   :  { %16189 = vmatpush3.bf16.msra.mxu1 %v17770_v43  ;;  %14906 = vmatprep.mubr.msk.f32.mxu1 %vm3484_vm4, %v10586_v13  ;;  %v11689_v43 = vld [vmem:[#allocation21 + $0x1a8] sm:$0xff] }
0x1884   :  { %16195 = vmatprep.subr.bf16.mxu1 %v17774_v49 }
0x1886   :  { %14907 = vmatmul.mubr.msk.f32.gmra.mrb[60].mxu1 %vm3484_vm4, %v10587_v14 }
0x1887   :  { %14920 = vmatprep.mubr.msk.f32.mxu1 %vm3484_vm4, %v10768_v15 }
0x188a   :  { %14921 = vmatmul.mubr.msk.f32.vlgmr.msra.gmra.mrb[58].mxu1 %vm3484_vm4, %v10769_v16 }
0x188b   :  { %16197 = vmatpush3.bf16.msra.mxu1 %v17774_v49  ;;  %14923 = vmatprep.mubr.msk.f32.mxu1 %vm3484_vm4, %v10770_v7  ;;  %v11874_v49 = vld [vmem:[#allocation21 + $0x1d0] sm:$0xff] }
0x188c   :  { %16203 = vmatprep.subr.bf16.mxu1 %v17778_v30 }
0x188e   :  { %14924 = vmatmul.mubr.msk.f32.gmra.mrb[60].mxu1 %vm3484_vm4, %v10771_v20 }
0x188f   :  { %14937 = vmatprep.mubr.msk.f32.mxu1 %vm3484_vm4, %v10952_v53 }
0x1892   :  { %14938 = vmatmul.mubr.msk.f32.vlgmr.msra.gmra.mrb[58].mxu1 %vm3484_vm4, %v10953_v21 }
0x1893   :  { %16205 = vmatpush3.bf16.msra.mxu1 %v17778_v30  ;;  %14940 = vmatprep.mubr.msk.f32.mxu1 %vm3484_vm4, %v10954_v22  ;;  %v12059_v30 = vld [vmem:[#allocation21 + $0x1f8] sm:$0xff] }
0x1894   :  { %16211 = vmatprep.subr.bf16.mxu1 %v17782_v58 }
0x1896   :  { %14941 = vmatmul.mubr.msk.f32.gmra.mrb[60].mxu1 %vm3484_vm4, %v10955_v56 }
0x1897   :  { %14954 = vmatprep.mubr.msk.f32.mxu1 %vm3484_vm4, %v11136_v46 }
0x189a   :  { %14955 = vmatmul.mubr.msk.f32.vlgmr.msra.gmra.mrb[58].mxu1 %vm3484_vm4, %v11137_v26 }
0x189b   :  { %16213 = vmatpush3.bf16.msra.mxu1 %v17782_v58  ;;  %14957 = vmatprep.mubr.msk.f32.mxu1 %vm3484_vm4, %v11138_v29 }
0x189c   :  { %16219 = vmatprep.subr.bf16.mxu1 %v17786_v63 }
0x189e   :  { %14958 = vmatmul.mubr.msk.f32.gmra.mrb[60].mxu1 %vm3484_vm4, %v11139_v23 }
0x189f   :  { %14971 = vmatprep.mubr.msk.f32.mxu1 %vm3484_vm4, %v11320_v31 }
0x18a2   :  { %14972 = vmatmul.mubr.msk.f32.vlgmr.msra.gmra.mrb[58].mxu1 %vm3484_vm4, %v11321_v28 }
0x18a3   :  { %16221 = vmatpush3.bf16.msra.mxu1 %v17786_v63  ;;  %14974 = vmatprep.mubr.msk.f32.mxu1 %vm3484_vm4, %v11322_v33 }
0x18a4   :  { %16227 = vmatprep.subr.bf16.mxu1 %v17790_v2 }
0x18a6   :  { %14975 = vmatmul.mubr.msk.f32.gmra.mrb[60].mxu1 %vm3484_vm4, %v11323_v35 }
0x18a7   :  { %14988 = vmatprep.mubr.msk.f32.mxu1 %vm3484_vm4, %v11504_v12 }
0x18aa   :  { %14989 = vmatmul.mubr.msk.f32.vlgmr.msra.gmra.mrb[58].mxu1 %vm3484_vm4, %v11505_v38 }
0x18ab   :  { %16229 = vmatpush3.bf16.msra.mxu1 %v17790_v2  ;;  %14991 = vmatprep.mubr.msk.f32.mxu1 %vm3484_vm4, %v11506_v40 }
0x18ac   :  { %16235 = vmatprep.subr.bf16.mxu1 %v17794_v6 }
0x18ae   :  { %14992 = vmatmul.mubr.msk.f32.gmra.mrb[60].mxu1 %vm3484_vm4, %v11507_v34 }
0x18af   :  { %15005 = vmatprep.mubr.msk.f32.mxu1 %vm3484_vm4, %v11688_v42 }
0x18b2   :  { %15006 = vmatmul.mubr.msk.f32.vlgmr.msra.gmra.mrb[58].mxu1 %vm3484_vm4, %v11689_v43 }
0x18b3   :  { %16237 = vmatpush3.bf16.msra.mxu1 %v17794_v6  ;;  %15008 = vmatprep.mubr.msk.f32.mxu1 %vm3484_vm4, %v11690_v44  ;;  %v12201_v6 = vld [vmem:[#allocation24] sm:$0x3] }
0x18b4   :  { %16243 = vmatprep.subr.bf16.mxu1 %v17799_v9 }
0x18b6   :  { %15009 = vmatmul.mubr.msk.f32.gmra.mrb[60].mxu1 %vm3484_vm4, %v11691_v45 }
0x18b7   :  { %15022 = vmatprep.mubr.msk.f32.mxu1 %vm3484_vm4, %v11872_v17 }
0x18ba   :  { %15023 = vmatmul.mubr.msk.f32.vlgmr.msra.gmra.mrb[58].mxu1 %vm3484_vm4, %v11873_v18 }
0x18bb   :  { %16245 = vmatpush3.bf16.msra.mxu1 %v17799_v9  ;;  %15025 = vmatprep.mubr.msk.f32.mxu1 %vm3484_vm4, %v11874_v49 }
0x18be   :  { %15026 = vmatmul.mubr.msk.f32.gmra.mrb[60].mxu1 %vm3484_vm4, %v11875_v25 }
0x18bf   :  { %15039 = vmatprep.mubr.msk.f32.mxu1 %vm3484_vm4, %v12056_v36 }
0x18c2   :  { %15040 = vmatmul.mubr.msk.f32.vlgmr.msra.gmra.mrb[58].mxu1 %vm3484_vm4, %v12057_v50 }
0x18c3   :  { %15042 = vmatprep.mubr.msk.f32.mxu1 %vm3484_vm4, %v12058_v51 }
0x18c6   :  { %15043 = vmatmul.mubr.msk.f32.gmra.mrb[60].mxu1 %vm3484_vm4, %v12059_v30 }
0x1995   :  { %v15041_v32 = vpop.f32.mrb[58].mxu1 }
0x1996   :  { %v12186_v54 = vadd.f32 %v15041_v32, %v12173_v52  ;;  %v12138_v57 = vpop.f32.mrb[59].mxu1 }
0x1997   :  { %v12185_v58 = vadd.f32 %v17499_v47, %v12138_v57 }
0x1998   :  { %vm12190_vm14 = vcmp.gt.f32.partialorder %v12186_v54, 0.0  ;;  %v12194_v60 = vmul.f32 0.2, %v12186_v54 }
0x1999   :  { %vm12189_vm15 = vcmp.gt.f32.partialorder %v12185_v58, 0.0  ;;  %v12193_v61 = vmul.f32 0.2, %v12185_v58  ;;  %v15044_v62 = vpop.f32.mrb[60].mxu1 }
0x199a   :  { %v12198_v63 = vsel %vm12190_vm14, %v12186_v54, %v12194_v60  ;;  %v12188_v27 = vadd.f32 %v15044_v62, %v12183_v39  ;;  %v12148_v0 = vpop.f32.mrb[61].mxu1 }
0x199b   :  { %v12197_v1 = vsel %vm12189_vm15, %v12185_v58, %v12193_v61  ;;  %v12187_v55 = vadd.f32 %v17501_v59, %v12148_v0 }
0x199c   :  { %v16247_v2 = vpack.c.bf16 %v12198_v63, %v12197_v1  ;;  %vm12192_vm0 = vcmp.gt.f32.partialorder %v12188_v27, 0.0  ;;  %v12196_v3 = vmul.f32 0.2, %v12188_v27 }
0x199d   :  { %vm12191_vm1 = vcmp.gt.f32.partialorder %v12187_v55, 0.0  ;;  %v12195_v4 = vmul.f32 0.2, %v12187_v55 }
0x199e   :  { %v12200_v48 = vsel %vm12192_vm0, %v12188_v27, %v12196_v3  ;;  %16248 = vmatpush3.bf16.msra.mxu0 %v16247_v2 }
0x199f   :  { %v12199_v47 = vsel %vm12191_vm1, %v12187_v55, %v12195_v4  ;;  %16249 = vmatprep.subr.bf16.mxu0 %v16825_v19 }
0x19a0   :  { %v16250_v5 = vpack.c.bf16 %v12200_v48, %v12199_v47 }
0x19a2   :  { %16251 = vmatpush3.bf16.msra.mxu0 %v16250_v5 }
0x19a5   :  { %15054 = vmatmul.mubr.msk.f32.vlgmr.msra.gmra.mrb[84].mxu0 %vm6386_vm10, %v12201_v6 }
0x1a78   :  { %v12277_v8 = vpop.f32.mrb[84].mxu0 }
0x1a79   :  { %v12278_v41 = vadd.f32 %v12277_v8, %v12206_v37  ;;  %v15055_v59 = vpop.f32.mrb[85].mxu0 }
0x1a7b   :  { %12282 = vst.msk [vmem:[%s17893_s9] sm:$0x3] %vm12281_vm2, %v12278_v41 }
0x1a7c   :  { %12291 = vsyncpa [#allocation3], 1 }
0x1a7d   :  { %12292 = vsyncpa [#allocation5], 1 }
0x1a7e   :  { %12293 = vsyncpa [#allocation8], 1 }
0x1a7f   :  { %12294 = vsyncpa [#allocation11], 1 }
0x1a80   :  { %12295 = vsyncpa [#allocation14], 1 }
0x1a81   :  { %12296 = vsyncpa [#allocation17], 1 }
0x1a82   :  { %12297 = vsyncpa [#allocation20], 1 }
0x1a83   :  { %12298 = vsyncpa [#allocation23], 1 }

</bundles_post_ra>
